<compile_context>
chip_gen: v7x
topology: tpu7x:2x2x1
jax: 0.10.0
libtpu: 0.0.40
codegen_flags: <defaults>
</compile_context>

<pallas_src>
import functools
import math

import jax
import jax.numpy as jnp
from jax import lax
from jax.experimental import pallas as pl
from jax.experimental.pallas import tpu as pltpu


# ----------------------------- Pallas kernel ------------------------------- #
def egnn_kernel(
    h0_ref, ea_ref, srow_ref, scol_ref, srt_ref,       # per-block graph slabs
    wembn_ref, bemb_ref, wea_ref, whh_ref, ball_ref,    # packed weights
    h_out_ref,                                           # output (Gn, Hp) f32
    ea_scr, nb_scr,                                      # VMEM scratch (L, ., Hp)
    *, n_layers, hp,
):
    f32, bf16 = jnp.float32, jnp.bfloat16

    def mm(a, b):  # bf16 x bf16 -> f32 accumulation on the MXU
        return jnp.dot(a, b, preferred_element_type=f32)

    def silu(v):   # nn.SiLU, kept in f32 (EUP sigmoid + VPU mul)
        return v * jax.nn.sigmoid(v)

    h0_b = h0_ref[...].astype(bf16)          # (Gn, F0)
    ea_b = ea_ref[...].astype(bf16)          # (Ge, 2+Fe)  [radial_hi|radial_lo|eattr]
    s_row = srow_ref[...]                    # (Ge, Gn) bf16 block-diagonal gather
    s_col = scol_ref[...]                    # (Ge, Gn) bf16
    s_rt = srt_ref[...]                      # (Gn, Ge) bf16 scatter (edge_mask folded)

    # ---- prologue: loop-invariant projections, one big matmul each ----
    node_proj = mm(h0_b, wembn_ref[...])     # (Gn, (L+1)*Hp): [emb | h0@W3n_l ...]
    edge_proj = mm(ea_b, wea_ref[...])       # (Ge, L*Hp): radial*W1r + eattr@W1a per l
    h = node_proj[:, :hp] + bemb_ref[...]    # h = embedding(h0)

    # Park per-layer slabs (+ their biases) in VMEM scratch for ref[l] access
    # inside the fori_loop below (static slices here, dynamic index there).
    for l in range(n_layers):
        ea_scr[l] = edge_proj[:, l * hp:(l + 1) * hp] + ball_ref[l, 0:1, :]        # + b1
        nb_scr[l] = node_proj[:, (l + 1) * hp:(l + 2) * hp] + ball_ref[l, 2:3, :]  # + b3

    def layer(l, h):
        hb = h.astype(bf16)
        w = whh_ref[l]                        # (Hp, 6*Hp) bf16: [W1s|W1d|W3h|W2|W3a|W4]
        ball = ball_ref[l]                    # (8, Hp) f32:    [b1,b2,b3,b4,0,...]

        # ---- edge model: h-terms reassociated to node granularity, fused N=3*Hp ----
        pqr = mm(hb, w[:, :3 * hp])           # (Gn, 3*Hp)
        p = pqr[:, :hp].astype(bf16)          # h @ W1s
        q = pqr[:, hp:2 * hp].astype(bf16)    # h @ W1d
        h_w3h = pqr[:, 2 * hp:3 * hp]         # h @ W3h (used by the node model)

        e_pre = mm(s_row, p) + mm(s_col, q) + ea_scr[l]          # (Ge, Hp)
        e_hid = silu(e_pre).astype(bf16)
        edge_feat = silu(mm(e_hid, w[:, 3 * hp:4 * hp]) + ball[1:2, :])   # (Ge, Hp)

        # ---- aggregation: masked unsorted_segment_sum(edge_feat, row, Gn) ----
        agg = mm(s_rt, edge_feat.astype(bf16))                   # (Gn, Hp)

        # ---- node model: node_mlp(cat([h, agg, h0])) + residual (recurrent) ----
        n_pre = h_w3h + mm(agg.astype(bf16), w[:, 4 * hp:5 * hp]) + nb_scr[l]
        n_hid = silu(n_pre).astype(bf16)
        return h + mm(n_hid, w[:, 5 * hp:6 * hp]) + ball[3:4, :]

    h = lax.fori_loop(0, n_layers, layer, h)
    h_out_ref[...] = h                        # lane-dense (Gn, Hp) store


# ------------------------------- wrapper ------------------------------------ #
def _pick_group(B, n, e, hp, budget_bytes=40 << 20):
    """Graphs per block: smallest divisor of B with G*n >= 128, under a VMEM budget
    (budget chosen to stay comfortable on v7x's 64 MiB physical VMEM)."""
    divs = sorted(d for d in range(1, B + 1) if B % d == 0)
    target = -(-128 // n)                       # ceil(128 / n)
    cands = [d for d in divs if d >= target]
    G = cands[0] if cands else divs[-1]

    def blk_bytes(g):                           # rough per-block VMEM estimate
        gn, ge = g * n, g * e
        s = 3 * ge * gn * 2                     # s_row/s_col/s_rt bf16
        acts = 6 * ge * hp * 4                  # edge intermediates f32
        return 2 * s + acts                     # double-buffered inputs + activations

    while G > 1 and blk_bytes(G) > budget_bytes:
        smaller = [d for d in divs if d < G]
        if not smaller:
            break
        G = smaller[-1]
    return G


def egnn_pallas(params, h0, x, rows, cols, edge_attr, edge_mask,
                n_graphs, nodes_per_graph, n_layers, hidden_pad=128):
    """Assumes edges are grouped per graph with equal counts and graph g owns
    nodes [g*n, (g+1)*n) (QM9-style batching); both are checked below."""
    B, n = int(n_graphs), int(nodes_per_graph)
    N = B * n
    E = int(rows.shape[0])
    assert E % B == 0, "edges must be evenly grouped per graph"
    e = E // B
    F0 = h0.shape[1]
    Fe = edge_attr.shape[1]
    H = params["W_emb"].shape[1]
    Hp = max(hidden_pad, ((H + 127) // 128) * 128)
    L = int(n_layers)

    f32, bf16 = jnp.float32, jnp.bfloat16

    # debug assertion from review: edge ordering / node ownership must match the
    # grouped layout (skipped when inputs are tracers).
    try:
        owner = jnp.repeat(jnp.arange(B, dtype=jnp.int32), e)
        ok = bool(jnp.all(rows.astype(jnp.int32) // n == owner)
                  & jnp.all(cols.astype(jnp.int32) // n == owner))
    except jax.errors.ConcretizationTypeError:
        ok = True
    if not ok:
        raise ValueError("edges must be grouped per graph with contiguous node numbering")

    G = _pick_group(B, n, e, Hp)          # graphs per grid step
    NB = B // G
    Gn, Ge = G * n, G * e

    # ---------- cheap XLA-side preprocessing (keeps the kernel lane-dense) ----------
    coord_diff = x[rows] - x[cols]
    radial = jnp.sum(coord_diff * coord_diff, axis=-1, keepdims=True)    # (E, 1) f32
    # hi/lo split so the bf16 MXU path reproduces the f32 radial contribution exactly
    r_hi = radial.astype(bf16).astype(f32)
    r_lo = radial - r_hi
    ea = jnp.concatenate([r_hi, r_lo, edge_attr.astype(f32)], axis=1)    # (E, 2+Fe)
    ea_g = ea.reshape(NB, Ge, 2 + Fe)

    base = (jnp.arange(NB, dtype=jnp.int32) * Gn)[:, None]
    rows_blk = rows.astype(jnp.int32).reshape(NB, Ge) - base             # block-local
    cols_blk = cols.astype(jnp.int32).reshape(NB, Ge) - base
    s_row = jax.nn.one_hot(rows_blk, Gn, dtype=bf16)                     # (NB, Ge, Gn)
    s_col = jax.nn.one_hot(cols_blk, Gn, dtype=bf16)
    # fold edge_mask into the scatter matrix (exact: mask is {0,1})
    s_rt = jnp.swapaxes(s_row, 1, 2) * edge_mask.reshape(NB, 1, Ge).astype(bf16)

    h0_g = h0.reshape(NB, Gn, F0).astype(f32)

    # ---------- weight packing (zero-pad hidden width to Hp; exact) ----------
    def pad_last(w):   # (..., H) -> (..., Hp)
        return jnp.pad(w, [(0, 0)] * (w.ndim - 1) + [(0, Hp - H)])

    def pad_hh(w):     # (..., H, H) -> (..., Hp, Hp)
        return jnp.pad(w, [(0, 0)] * (w.ndim - 2) + [(0, Hp - H), (0, Hp - H)])

    # node-side loop-invariant projections: [W_emb | W3n_0 | ... | W3n_{L-1}]
    w3n = pad_last(params["W3n"])                                        # (L, F0, Hp)
    w_embn = jnp.concatenate(
        [pad_last(params["W_emb"]),
         jnp.transpose(w3n, (1, 0, 2)).reshape(F0, L * Hp)], axis=1).astype(bf16)
    bemb = pad_last(params["b_emb"]).astype(f32)                         # (1, Hp)

    # edge-side loop-invariant projections: rows [W1r; W1r; W1a], columns per layer
    w1r = pad_last(params["W1r"])                                        # (L, 1, Hp)
    w1a = pad_last(params["W1a"])                                        # (L, Fe, Hp)
    w_ea = jnp.transpose(jnp.concatenate([w1r, w1r, w1a], axis=1),
                         (1, 0, 2)).reshape(2 + Fe, L * Hp).astype(bf16)

    # per-layer HxH weights packed along lanes: [W1s | W1d | W3h | W2 | W3a | W4]
    w_hh = jnp.concatenate(
        [pad_hh(params["W1s"]), pad_hh(params["W1d"]), pad_hh(params["W3h"]),
         pad_hh(params["W2"]), pad_hh(params["W3a"]), pad_hh(params["W4"])],
        axis=2).astype(bf16)                                             # (L, Hp, 6*Hp)

    # biases packed, padded to an (8, 128)-aligned sublane slab per layer
    b_all = jnp.concatenate(
        [pad_last(params["b1"]), pad_last(params["b2"]),
         pad_last(params["b3"]), pad_last(params["b4"])], axis=1)        # (L, 4, Hp)
    b_all = jnp.pad(b_all, ((0, 0), (0, 4), (0, 0))).astype(f32)         # (L, 8, Hp)

    graph_inputs = [h0_g, ea_g, s_row, s_col, s_rt]
    weight_inputs = [w_embn, bemb, w_ea, w_hh, b_all]

    def gspec(a):  # per-block slab: squeeze the block dim, select block b
        return pl.BlockSpec((None,) + a.shape[1:],
                            lambda b, _nd=a.ndim: (b,) + (0,) * (_nd - 1))

    def wspec(a):  # shared weights: full array, same block every step (no re-DMA)
        # TODO(synk): pipeline_mode=pl.Buffered(1) would single-buffer these
        # constant-index weights; left at the default for lowering safety.
        return pl.BlockSpec(a.shape, lambda b, _nd=a.ndim: (0,) * _nd)

    kernel = functools.partial(egnn_kernel, n_layers=L, hp=Hp)
    out = pl.pallas_call(
        kernel,
        out_shape=jax.ShapeDtypeStruct((NB, Gn, Hp), f32),
        grid=(NB,),
        in_specs=[gspec(a) for a in graph_inputs] + [wspec(a) for a in weight_inputs],
        out_specs=pl.BlockSpec((None, Gn, Hp), lambda b: (b, 0, 0)),
        scratch_shapes=[pltpu.VMEM((L, Ge, Hp), f32),   # per-layer edge base (+b1)
                        pltpu.VMEM((L, Gn, Hp), f32)],  # per-layer node base (+b3)
        compiler_params=pltpu.CompilerParams(
            dimension_semantics=("parallel",),
            vmem_limit_bytes=64 * 1024 * 1024,
        ),
    )(*graph_inputs, *weight_inputs)

    return out[:, :, :H].reshape(N, H)


# ---------------------- deterministic parameter init ------------------------ #
def _linear(key, fan_in, fan_out):
    # matches PyTorch nn.Linear default bounds; weights stored as (in, out)
    kw, kb = jax.random.split(key)
    bound = 1.0 / math.sqrt(fan_in)
    w = jax.random.uniform(kw, (fan_in, fan_out), jnp.float32, -bound, bound)
    b = jax.random.uniform(kb, (1, fan_out), jnp.float32, -bound, bound)
    return w, b


def init_params(key, f0, fe, h, n_layers):
    keys = jax.random.split(key, 1 + 4 * n_layers)
    w_emb, b_emb = _linear(keys[0], f0, h)
    acc = {k: [] for k in ["W1s", "W1d", "W1r", "W1a", "b1", "W2", "b2",
                           "W3h", "W3a", "W3n", "b3", "W4", "b4"]}
    for l in range(n_layers):
        k1, k2, k3, k4 = keys[1 + 4 * l: 1 + 4 * (l + 1)]
        w1, bb1 = _linear(k1, 2 * h + 1 + fe, h)     # edge_mlp[0]
        acc["W1s"].append(w1[:h]); acc["W1d"].append(w1[h:2 * h])
        acc["W1r"].append(w1[2 * h:2 * h + 1]); acc["W1a"].append(w1[2 * h + 1:])
        acc["b1"].append(bb1)
        w2, bb2 = _linear(k2, h, h)                  # edge_mlp[2]
        acc["W2"].append(w2); acc["b2"].append(bb2)
        w3, bb3 = _linear(k3, 2 * h + f0, h)         # node_mlp[0]
        acc["W3h"].append(w3[:h]); acc["W3a"].append(w3[h:2 * h])
        acc["W3n"].append(w3[2 * h:]); acc["b3"].append(bb3)
        w4, bb4 = _linear(k4, h, h)                  # node_mlp[2]
        acc["W4"].append(w4); acc["b4"].append(bb4)
    params = {k: jnp.stack(v, axis=0) for k, v in acc.items()}
    params["W_emb"] = w_emb
    params["b_emb"] = b_emb
    return params


# ------------------------ plain-JAX reference (PyTorch semantics) ----------- #
def egnn_reference(params, h0, x, rows, cols, edge_attr, edge_mask, n_layers):
    mm = lambda a, b: jnp.dot(a, b, precision=jax.lax.Precision.HIGHEST)
    h = mm(h0, params["W_emb"]) + params["b_emb"]
    coord_diff = x[rows] - x[cols]
    radial = jnp.sum(coord_diff ** 2, axis=1, keepdims=True)
    N = h0.shape[0]
    for l in range(n_layers):
        w1 = jnp.concatenate([params["W1s"][l], params["W1d"][l],
                              params["W1r"][l], params["W1a"][l]], axis=0)
        edge_in = jnp.concatenate([h[rows], h[cols], radial, edge_attr], axis=1)
        e = jax.nn.silu(mm(edge_in, w1) + params["b1"][l])
        e = jax.nn.silu(mm(e, params["W2"][l]) + params["b2"][l])
        e = e * edge_mask
        agg = jnp.zeros((N, e.shape[1]), e.dtype).at[rows].add(e)
        w3 = jnp.concatenate([params["W3h"][l], params["W3a"][l],
                              params["W3n"][l]], axis=0)
        node_in = jnp.concatenate([h, agg, h0], axis=1)
        o = jax.nn.silu(mm(node_in, w3) + params["b3"][l])
        o = mm(o, params["W4"][l]) + params["b4"][l]
        h = h + o
    return h


# ---------------------------------- main ------------------------------------ #
if __name__ == "__main__":
    key = jax.random.PRNGKey(0)
    # 32 graphs of 8 nodes -> 2 grid blocks of 16 graphs each (Gn=128, Ge=896),
    # so every matmul has M,K >= 128 and the MXU rows are actually filled.
    batch, nodes_per_graph = 32, 8
    F0, Fe, H, L = 8, 4, 32, 4          # in_node_nf, in_edge_nf, hidden_nf, n_layers
    N = batch * nodes_per_graph

    # fully connected edges (no self loops) within each graph, grouped per graph
    rows_l, cols_l = [], []
    for g in range(batch):
        base = g * nodes_per_graph
        for i in range(nodes_per_graph):
            for j in range(nodes_per_graph):
                if i != j:
                    rows_l.append(base + i)
                    cols_l.append(base + j)
    rows = jnp.array(rows_l, dtype=jnp.int32)
    cols = jnp.array(cols_l, dtype=jnp.int32)
    E = int(rows.shape[0])

    keys = jax.random.split(key, 6)
    h0 = jax.random.normal(keys[0], (N, F0), jnp.float32)
    x = jax.random.normal(keys[1], (N, 3), jnp.float32)
    edge_attr = jax.random.normal(keys[2], (E, Fe), jnp.float32)
    edge_mask = (jax.random.uniform(keys[3], (E, 1)) > 0.1).astype(jnp.float32)
    # node_mask is accepted by EGNN.forward but unused for h (matches PyTorch)

    params = init_params(keys[4], F0, Fe, H, L)

    out = egnn_pallas(params, h0, x, rows, cols, edge_attr, edge_mask,
                      batch, nodes_per_graph, L)
    out = jax.block_until_ready(out)

    ref = egnn_reference(params, h0, x, rows, cols, edge_attr, edge_mask, L)
    assert out.shape == (N, H)

    # kernel runs bf16-input / f32-accumulate matmuls; reference is f32 HIGHEST.
    err_max = float(jnp.max(jnp.abs(out - ref)))
    err_mean = float(jnp.mean(jnp.abs(out - ref)))
    ref_max = float(jnp.max(jnp.abs(ref)))
    ref_mean = float(jnp.mean(jnp.abs(ref)))
    assert err_max < 5e-2 * (1.0 + ref_max), f"max mismatch {err_max} (ref max {ref_max})"
    assert err_mean < 1e-2 * (1.0 + ref_mean), f"mean mismatch {err_mean}"
    print("KERNEL_OK")
</pallas_src>

<mosaic_0001>
module attributes {stable_mosaic.version = 11 : i64} {
  func.func @egnn_kernel(%arg0: i32, %arg1: memref<1x128x8xf32, #tpu.memory_space<vmem>>, %arg2: memref<1x896x6xf32, #tpu.memory_space<vmem>>, %arg3: memref<1x896x128xbf16, #tpu.memory_space<vmem>>, %arg4: memref<1x896x128xbf16, #tpu.memory_space<vmem>>, %arg5: memref<1x128x896xbf16, #tpu.memory_space<vmem>>, %arg6: memref<8x640xbf16, #tpu.memory_space<vmem>>, %arg7: memref<1x128xf32, #tpu.memory_space<vmem>>, %arg8: memref<6x512xbf16, #tpu.memory_space<vmem>>, %arg9: memref<4x128x768xbf16, #tpu.memory_space<vmem>>, %arg10: memref<4x8x128xf32, #tpu.memory_space<vmem>>, %arg11: memref<1x128x128xf32, #tpu.memory_space<vmem>>, %arg12: memref<4x896x128xf32, #tpu.memory_space<vmem>>, %arg13: memref<4x128x128xf32, #tpu.memory_space<vmem>>) attributes {dimension_semantics = [#tpu.dimension_semantics<parallel>], iteration_bounds = array<i64: 2>, scalar_prefetch = 0 : i64, scratch_operands = 2 : i64, tpu.core_type = #tpu.core_type<tc>, window_params = [{transform_indices = @transform_0, window_bounds = array<i64: 1, 128, 8>}, {transform_indices = @transform_1, window_bounds = array<i64: 1, 896, 6>}, {transform_indices = @transform_2, window_bounds = array<i64: 1, 896, 128>}, {transform_indices = @transform_3, window_bounds = array<i64: 1, 896, 128>}, {transform_indices = @transform_4, window_bounds = array<i64: 1, 128, 896>}, {pipeline_mode = #tpu.pipeline_mode<synchronous>, transform_indices = @transform_5, window_bounds = array<i64: 8, 640>}, {pipeline_mode = #tpu.pipeline_mode<synchronous>, transform_indices = @transform_6, window_bounds = array<i64: 1, 128>}, {pipeline_mode = #tpu.pipeline_mode<synchronous>, transform_indices = @transform_7, window_bounds = array<i64: 6, 512>}, {pipeline_mode = #tpu.pipeline_mode<synchronous>, transform_indices = @transform_8, window_bounds = array<i64: 4, 128, 768>}, {pipeline_mode = #tpu.pipeline_mode<synchronous>, transform_indices = @transform_9, window_bounds = array<i64: 4, 8, 128>}, {transform_indices = @transform_10, window_bounds = array<i64: 1, 128, 128>}]} {
    %c0 = arith.constant 0 : index
    %c0_0 = arith.constant 0 : index
    %c0_1 = arith.constant 0 : index
    %0 = vector.load %arg1[%c0, %c0_0, %c0_1] : memref<1x128x8xf32, #tpu.memory_space<vmem>>, vector<1x128x8xf32>
    %1 = vector.shape_cast %0 : vector<1x128x8xf32> to vector<128x8xf32>
    %2 = arith.truncf %1 : vector<128x8xf32> to vector<128x8xbf16>
    %c0_2 = arith.constant 0 : index
    %c0_3 = arith.constant 0 : index
    %c0_4 = arith.constant 0 : index
    %3 = vector.load %arg2[%c0_2, %c0_3, %c0_4] : memref<1x896x6xf32, #tpu.memory_space<vmem>>, vector<1x896x6xf32>
    %4 = vector.shape_cast %3 : vector<1x896x6xf32> to vector<896x6xf32>
    %5 = arith.truncf %4 : vector<896x6xf32> to vector<896x6xbf16>
    %c0_5 = arith.constant 0 : index
    %c0_6 = arith.constant 0 : index
    %c0_7 = arith.constant 0 : index
    %6 = vector.load %arg3[%c0_5, %c0_6, %c0_7] : memref<1x896x128xbf16, #tpu.memory_space<vmem>>, vector<1x896x128xbf16>
    %7 = vector.shape_cast %6 : vector<1x896x128xbf16> to vector<896x128xbf16>
    %c0_8 = arith.constant 0 : index
    %c0_9 = arith.constant 0 : index
    %c0_10 = arith.constant 0 : index
    %8 = vector.load %arg4[%c0_8, %c0_9, %c0_10] : memref<1x896x128xbf16, #tpu.memory_space<vmem>>, vector<1x896x128xbf16>
    %9 = vector.shape_cast %8 : vector<1x896x128xbf16> to vector<896x128xbf16>
    %c0_11 = arith.constant 0 : index
    %c0_12 = arith.constant 0 : index
    %c0_13 = arith.constant 0 : index
    %10 = vector.load %arg5[%c0_11, %c0_12, %c0_13] : memref<1x128x896xbf16, #tpu.memory_space<vmem>>, vector<1x128x896xbf16>
    %11 = vector.shape_cast %10 : vector<1x128x896xbf16> to vector<128x896xbf16>
    %c0_14 = arith.constant 0 : index
    %c0_15 = arith.constant 0 : index
    %12 = vector.load %arg6[%c0_14, %c0_15] : memref<8x640xbf16, #tpu.memory_space<vmem>>, vector<8x640xbf16>
    %cst = arith.constant dense<0.000000e+00> : vector<128x640xf32>
    %13 = tpu.matmul %2, %12, %cst {dimension_numbers = #tpu.dot_dimension_numbers<[1], [0], [0], [1], [0, 0, 1, 1], [], []>} : vector<128x8xbf16>, vector<8x640xbf16>, vector<128x640xf32> -> vector<128x640xf32>
    %c0_16 = arith.constant 0 : index
    %c0_17 = arith.constant 0 : index
    %14 = vector.load %arg8[%c0_16, %c0_17] : memref<6x512xbf16, #tpu.memory_space<vmem>>, vector<6x512xbf16>
    %cst_18 = arith.constant dense<0.000000e+00> : vector<896x512xf32>
    %15 = tpu.matmul %5, %14, %cst_18 {dimension_numbers = #tpu.dot_dimension_numbers<[1], [0], [0], [1], [0, 0, 1, 1], [], []>} : vector<896x6xbf16>, vector<6x512xbf16>, vector<896x512xf32> -> vector<896x512xf32>
    %16 = vector.extract_strided_slice %13 {offsets = [0, 0], sizes = [128, 128], strides = [1, 1]} : vector<128x640xf32> to vector<128x128xf32>
    %c0_19 = arith.constant 0 : index
    %c0_20 = arith.constant 0 : index
    %17 = vector.load %arg7[%c0_19, %c0_20] : memref<1x128xf32, #tpu.memory_space<vmem>>, vector<1x128xf32>
    %18 = vector.broadcast %17 : vector<1x128xf32> to vector<128x128xf32>
    %19 = arith.addf %16, %18 : vector<128x128xf32>
    %20 = vector.extract_strided_slice %15 {offsets = [0, 0], sizes = [896, 128], strides = [1, 1]} : vector<896x512xf32> to vector<896x128xf32>
    %c0_21 = arith.constant 0 : index
    %c0_22 = arith.constant 0 : index
    %c0_23 = arith.constant 0 : index
    %21 = vector.load %arg10[%c0_21, %c0_22, %c0_23] : memref<4x8x128xf32, #tpu.memory_space<vmem>>, vector<1x1x128xf32>
    %22 = vector.shape_cast %21 : vector<1x1x128xf32> to vector<1x128xf32>
    %23 = vector.broadcast %22 : vector<1x128xf32> to vector<896x128xf32>
    %24 = arith.addf %20, %23 : vector<896x128xf32>
    %c0_24 = arith.constant 0 : index
    %c0_25 = arith.constant 0 : index
    %c0_26 = arith.constant 0 : index
    %25 = vector.load %arg12[%c0_24, %c0_25, %c0_26] : memref<4x896x128xf32, #tpu.memory_space<vmem>>, vector<1x896x128xf32>
    %26 = vector.shape_cast %25 : vector<1x896x128xf32> to vector<896x128xf32>
    %27 = vector.shape_cast %24 : vector<896x128xf32> to vector<1x896x128xf32>
    tpu.vector_store %arg12[%c0_24, %c0_25, %c0_26], %27 {strides = array<i32>} : memref<4x896x128xf32, #tpu.memory_space<vmem>>, vector<1x896x128xf32>,
    %28 = vector.extract_strided_slice %13 {offsets = [0, 128], sizes = [128, 128], strides = [1, 1]} : vector<128x640xf32> to vector<128x128xf32>
    %c0_27 = arith.constant 0 : index
    %c2 = arith.constant 2 : index
    %c0_28 = arith.constant 0 : index
    %29 = vector.load %arg10[%c0_27, %c2, %c0_28] : memref<4x8x128xf32, #tpu.memory_space<vmem>>, vector<1x1x128xf32>
    %30 = vector.shape_cast %29 : vector<1x1x128xf32> to vector<1x128xf32>
    %31 = vector.broadcast %30 : vector<1x128xf32> to vector<128x128xf32>
    %32 = arith.addf %28, %31 : vector<128x128xf32>
    %c0_29 = arith.constant 0 : index
    %c0_30 = arith.constant 0 : index
    %c0_31 = arith.constant 0 : index
    %33 = vector.load %arg13[%c0_29, %c0_30, %c0_31] : memref<4x128x128xf32, #tpu.memory_space<vmem>>, vector<1x128x128xf32>
    %34 = vector.shape_cast %33 : vector<1x128x128xf32> to vector<128x128xf32>
    %35 = vector.shape_cast %32 : vector<128x128xf32> to vector<1x128x128xf32>
    tpu.vector_store %arg13[%c0_29, %c0_30, %c0_31], %35 {strides = array<i32>} : memref<4x128x128xf32, #tpu.memory_space<vmem>>, vector<1x128x128xf32>,
    %36 = vector.extract_strided_slice %15 {offsets = [0, 128], sizes = [896, 128], strides = [1, 1]} : vector<896x512xf32> to vector<896x128xf32>
    %c1 = arith.constant 1 : index
    %c0_32 = arith.constant 0 : index
    %c0_33 = arith.constant 0 : index
    %37 = vector.load %arg10[%c1, %c0_32, %c0_33] : memref<4x8x128xf32, #tpu.memory_space<vmem>>, vector<1x1x128xf32>
    %38 = vector.shape_cast %37 : vector<1x1x128xf32> to vector<1x128xf32>
    %39 = vector.broadcast %38 : vector<1x128xf32> to vector<896x128xf32>
    %40 = arith.addf %36, %39 : vector<896x128xf32>
    %c1_34 = arith.constant 1 : index
    %c0_35 = arith.constant 0 : index
    %c0_36 = arith.constant 0 : index
    %41 = vector.load %arg12[%c1_34, %c0_35, %c0_36] : memref<4x896x128xf32, #tpu.memory_space<vmem>>, vector<1x896x128xf32>
    %42 = vector.shape_cast %41 : vector<1x896x128xf32> to vector<896x128xf32>
    %43 = vector.shape_cast %40 : vector<896x128xf32> to vector<1x896x128xf32>
    tpu.vector_store %arg12[%c1_34, %c0_35, %c0_36], %43 {strides = array<i32>} : memref<4x896x128xf32, #tpu.memory_space<vmem>>, vector<1x896x128xf32>,
    %44 = vector.extract_strided_slice %13 {offsets = [0, 256], sizes = [128, 128], strides = [1, 1]} : vector<128x640xf32> to vector<128x128xf32>
    %c1_37 = arith.constant 1 : index
    %c2_38 = arith.constant 2 : index
    %c0_39 = arith.constant 0 : index
    %45 = vector.load %arg10[%c1_37, %c2_38, %c0_39] : memref<4x8x128xf32, #tpu.memory_space<vmem>>, vector<1x1x128xf32>
    %46 = vector.shape_cast %45 : vector<1x1x128xf32> to vector<1x128xf32>
    %47 = vector.broadcast %46 : vector<1x128xf32> to vector<128x128xf32>
    %48 = arith.addf %44, %47 : vector<128x128xf32>
    %c1_40 = arith.constant 1 : index
    %c0_41 = arith.constant 0 : index
    %c0_42 = arith.constant 0 : index
    %49 = vector.load %arg13[%c1_40, %c0_41, %c0_42] : memref<4x128x128xf32, #tpu.memory_space<vmem>>, vector<1x128x128xf32>
    %50 = vector.shape_cast %49 : vector<1x128x128xf32> to vector<128x128xf32>
    %51 = vector.shape_cast %48 : vector<128x128xf32> to vector<1x128x128xf32>
    tpu.vector_store %arg13[%c1_40, %c0_41, %c0_42], %51 {strides = array<i32>} : memref<4x128x128xf32, #tpu.memory_space<vmem>>, vector<1x128x128xf32>,
    %52 = vector.extract_strided_slice %15 {offsets = [0, 256], sizes = [896, 128], strides = [1, 1]} : vector<896x512xf32> to vector<896x128xf32>
    %c2_43 = arith.constant 2 : index
    %c0_44 = arith.constant 0 : index
    %c0_45 = arith.constant 0 : index
    %53 = vector.load %arg10[%c2_43, %c0_44, %c0_45] : memref<4x8x128xf32, #tpu.memory_space<vmem>>, vector<1x1x128xf32>
    %54 = vector.shape_cast %53 : vector<1x1x128xf32> to vector<1x128xf32>
    %55 = vector.broadcast %54 : vector<1x128xf32> to vector<896x128xf32>
    %56 = arith.addf %52, %55 : vector<896x128xf32>
    %c2_46 = arith.constant 2 : index
    %c0_47 = arith.constant 0 : index
    %c0_48 = arith.constant 0 : index
    %57 = vector.load %arg12[%c2_46, %c0_47, %c0_48] : memref<4x896x128xf32, #tpu.memory_space<vmem>>, vector<1x896x128xf32>
    %58 = vector.shape_cast %57 : vector<1x896x128xf32> to vector<896x128xf32>
    %59 = vector.shape_cast %56 : vector<896x128xf32> to vector<1x896x128xf32>
    tpu.vector_store %arg12[%c2_46, %c0_47, %c0_48], %59 {strides = array<i32>} : memref<4x896x128xf32, #tpu.memory_space<vmem>>, vector<1x896x128xf32>,
    %60 = vector.extract_strided_slice %13 {offsets = [0, 384], sizes = [128, 128], strides = [1, 1]} : vector<128x640xf32> to vector<128x128xf32>
    %c2_49 = arith.constant 2 : index
    %c2_50 = arith.constant 2 : index
    %c0_51 = arith.constant 0 : index
    %61 = vector.load %arg10[%c2_49, %c2_50, %c0_51] : memref<4x8x128xf32, #tpu.memory_space<vmem>>, vector<1x1x128xf32>
    %62 = vector.shape_cast %61 : vector<1x1x128xf32> to vector<1x128xf32>
    %63 = vector.broadcast %62 : vector<1x128xf32> to vector<128x128xf32>
    %64 = arith.addf %60, %63 : vector<128x128xf32>
    %c2_52 = arith.constant 2 : index
    %c0_53 = arith.constant 0 : index
    %c0_54 = arith.constant 0 : index
    %65 = vector.load %arg13[%c2_52, %c0_53, %c0_54] : memref<4x128x128xf32, #tpu.memory_space<vmem>>, vector<1x128x128xf32>
    %66 = vector.shape_cast %65 : vector<1x128x128xf32> to vector<128x128xf32>
    %67 = vector.shape_cast %64 : vector<128x128xf32> to vector<1x128x128xf32>
    tpu.vector_store %arg13[%c2_52, %c0_53, %c0_54], %67 {strides = array<i32>} : memref<4x128x128xf32, #tpu.memory_space<vmem>>, vector<1x128x128xf32>,
    %68 = vector.extract_strided_slice %15 {offsets = [0, 384], sizes = [896, 128], strides = [1, 1]} : vector<896x512xf32> to vector<896x128xf32>
    %c3 = arith.constant 3 : index
    %c0_55 = arith.constant 0 : index
    %c0_56 = arith.constant 0 : index
    %69 = vector.load %arg10[%c3, %c0_55, %c0_56] : memref<4x8x128xf32, #tpu.memory_space<vmem>>, vector<1x1x128xf32>
    %70 = vector.shape_cast %69 : vector<1x1x128xf32> to vector<1x128xf32>
    %71 = vector.broadcast %70 : vector<1x128xf32> to vector<896x128xf32>
    %72 = arith.addf %68, %71 : vector<896x128xf32>
    %c3_57 = arith.constant 3 : index
    %c0_58 = arith.constant 0 : index
    %c0_59 = arith.constant 0 : index
    %73 = vector.load %arg12[%c3_57, %c0_58, %c0_59] : memref<4x896x128xf32, #tpu.memory_space<vmem>>, vector<1x896x128xf32>
    %74 = vector.shape_cast %73 : vector<1x896x128xf32> to vector<896x128xf32>
    %75 = vector.shape_cast %72 : vector<896x128xf32> to vector<1x896x128xf32>
    tpu.vector_store %arg12[%c3_57, %c0_58, %c0_59], %75 {strides = array<i32>} : memref<4x896x128xf32, #tpu.memory_space<vmem>>, vector<1x896x128xf32>,
    %76 = vector.extract_strided_slice %13 {offsets = [0, 512], sizes = [128, 128], strides = [1, 1]} : vector<128x640xf32> to vector<128x128xf32>
    %c3_60 = arith.constant 3 : index
    %c2_61 = arith.constant 2 : index
    %c0_62 = arith.constant 0 : index
    %77 = vector.load %arg10[%c3_60, %c2_61, %c0_62] : memref<4x8x128xf32, #tpu.memory_space<vmem>>, vector<1x1x128xf32>
    %78 = vector.shape_cast %77 : vector<1x1x128xf32> to vector<1x128xf32>
    %79 = vector.broadcast %78 : vector<1x128xf32> to vector<128x128xf32>
    %80 = arith.addf %76, %79 : vector<128x128xf32>
    %c3_63 = arith.constant 3 : index
    %c0_64 = arith.constant 0 : index
    %c0_65 = arith.constant 0 : index
    %81 = vector.load %arg13[%c3_63, %c0_64, %c0_65] : memref<4x128x128xf32, #tpu.memory_space<vmem>>, vector<1x128x128xf32>
    %82 = vector.shape_cast %81 : vector<1x128x128xf32> to vector<128x128xf32>
    %83 = vector.shape_cast %80 : vector<128x128xf32> to vector<1x128x128xf32>
    tpu.vector_store %arg13[%c3_63, %c0_64, %c0_65], %83 {strides = array<i32>} : memref<4x128x128xf32, #tpu.memory_space<vmem>>, vector<1x128x128xf32>,
    %c0_i32 = arith.constant 0 : i32
    %c4_i32 = arith.constant 4 : i32
    %84 = arith.addi %c0_i32, %c4_i32 : i32
    %c1_i32 = arith.constant 1 : i32
    %85 = scf.for %arg14 = %c0_i32 to %84 step %c1_i32 iter_args(%arg15 = %19) -> (vector<128x128xf32>)  : i32 {
      %89 = arith.truncf %arg15 : vector<128x128xf32> to vector<128x128xbf16>
      %90 = arith.index_cast %arg14 : i32 to index
      %c0_70 = arith.constant 0 : index
      %c0_71 = arith.constant 0 : index
      %91 = vector.load %arg9[%90, %c0_70, %c0_71] : memref<4x128x768xbf16, #tpu.memory_space<vmem>>, vector<1x128x768xbf16>
      %92 = vector.shape_cast %91 : vector<1x128x768xbf16> to vector<128x768xbf16>
      %93 = arith.index_cast %arg14 : i32 to index
      %c0_72 = arith.constant 0 : index
      %c0_73 = arith.constant 0 : index
      %94 = vector.load %arg10[%93, %c0_72, %c0_73] : memref<4x8x128xf32, #tpu.memory_space<vmem>>, vector<1x8x128xf32>
      %95 = vector.shape_cast %94 : vector<1x8x128xf32> to vector<8x128xf32>
      %96 = vector.extract_strided_slice %92 {offsets = [0, 0], sizes = [128, 384], strides = [1, 1]} : vector<128x768xbf16> to vector<128x384xbf16>
      %cst_74 = arith.constant dense<0.000000e+00> : vector<128x384xf32>
      %97 = tpu.matmul %89, %96, %cst_74 {dimension_numbers = #tpu.dot_dimension_numbers<[1], [0], [0], [1], [0, 0, 1, 1], [], []>} : vector<128x128xbf16>, vector<128x384xbf16>, vector<128x384xf32> -> vector<128x384xf32>
      %98 = vector.extract_strided_slice %97 {offsets = [0, 0], sizes = [128, 128], strides = [1, 1]} : vector<128x384xf32> to vector<128x128xf32>
      %99 = arith.truncf %98 : vector<128x128xf32> to vector<128x128xbf16>
      %100 = vector.extract_strided_slice %97 {offsets = [0, 128], sizes = [128, 128], strides = [1, 1]} : vector<128x384xf32> to vector<128x128xf32>
      %101 = arith.truncf %100 : vector<128x128xf32> to vector<128x128xbf16>
      %102 = vector.extract_strided_slice %97 {offsets = [0, 256], sizes = [128, 128], strides = [1, 1]} : vector<128x384xf32> to vector<128x128xf32>
      %cst_75 = arith.constant dense<0.000000e+00> : vector<896x128xf32>
      %103 = tpu.matmul %7, %99, %cst_75 {dimension_numbers = #tpu.dot_dimension_numbers<[1], [0], [0], [1], [0, 0, 1, 1], [], []>} : vector<896x128xbf16>, vector<128x128xbf16>, vector<896x128xf32> -> vector<896x128xf32>
      %cst_76 = arith.constant dense<0.000000e+00> : vector<896x128xf32>
      %104 = tpu.matmul %9, %101, %cst_76 {dimension_numbers = #tpu.dot_dimension_numbers<[1], [0], [0], [1], [0, 0, 1, 1], [], []>} : vector<896x128xbf16>, vector<128x128xbf16>, vector<896x128xf32> -> vector<896x128xf32>
      %105 = arith.addf %103, %104 : vector<896x128xf32>
      %106 = arith.index_cast %arg14 : i32 to index
      %c0_77 = arith.constant 0 : index
      %c0_78 = arith.constant 0 : index
      %107 = vector.load %arg12[%106, %c0_77, %c0_78] : memref<4x896x128xf32, #tpu.memory_space<vmem>>, vector<1x896x128xf32>
      %108 = vector.shape_cast %107 : vector<1x896x128xf32> to vector<896x128xf32>
      %109 = arith.addf %105, %108 : vector<896x128xf32>
      %110 = arith.negf %109 : vector<896x128xf32>
      %111 = math.exp %110 : vector<896x128xf32>
      %cst_79 = arith.constant 1.000000e+00 : f32
      %112 = vector.broadcast %cst_79 : f32 to vector<896x128xf32>
      %113 = arith.addf %112, %111 : vector<896x128xf32>
      %114 = arith.divf %112, %113 : vector<896x128xf32>
      %115 = arith.mulf %109, %114 : vector<896x128xf32>
      %116 = arith.truncf %115 : vector<896x128xf32> to vector<896x128xbf16>
      %117 = vector.extract_strided_slice %92 {offsets = [0, 384], sizes = [128, 128], strides = [1, 1]} : vector<128x768xbf16> to vector<128x128xbf16>
      %cst_80 = arith.constant dense<0.000000e+00> : vector<896x128xf32>
      %118 = tpu.matmul %116, %117, %cst_80 {dimension_numbers = #tpu.dot_dimension_numbers<[1], [0], [0], [1], [0, 0, 1, 1], [], []>} : vector<896x128xbf16>, vector<128x128xbf16>, vector<896x128xf32> -> vector<896x128xf32>
      %119 = vector.extract_strided_slice %95 {offsets = [1, 0], sizes = [1, 128], strides = [1, 1]} : vector<8x128xf32> to vector<1x128xf32>
      %120 = vector.broadcast %119 : vector<1x128xf32> to vector<896x128xf32>
      %121 = arith.addf %118, %120 : vector<896x128xf32>
      %122 = arith.negf %121 : vector<896x128xf32>
      %123 = math.exp %122 : vector<896x128xf32>
      %cst_81 = arith.constant 1.000000e+00 : f32
      %124 = vector.broadcast %cst_81 : f32 to vector<896x128xf32>
      %125 = arith.addf %124, %123 : vector<896x128xf32>
      %126 = arith.divf %124, %125 : vector<896x128xf32>
      %127 = arith.mulf %121, %126 : vector<896x128xf32>
      %128 = arith.truncf %127 : vector<896x128xf32> to vector<896x128xbf16>
      %cst_82 = arith.constant dense<0.000000e+00> : vector<128x128xf32>
      %129 = tpu.matmul %11, %128, %cst_82 {dimension_numbers = #tpu.dot_dimension_numbers<[1], [0], [0], [1], [0, 0, 1, 1], [], []>} : vector<128x896xbf16>, vector<896x128xbf16>, vector<128x128xf32> -> vector<128x128xf32>
      %130 = arith.truncf %129 : vector<128x128xf32> to vector<128x128xbf16>
      %131 = vector.extract_strided_slice %92 {offsets = [0, 512], sizes = [128, 128], strides = [1, 1]} : vector<128x768xbf16> to vector<128x128xbf16>
      %cst_83 = arith.constant dense<0.000000e+00> : vector<128x128xf32>
      %132 = tpu.matmul %130, %131, %cst_83 {dimension_numbers = #tpu.dot_dimension_numbers<[1], [0], [0], [1], [0, 0, 1, 1], [], []>} : vector<128x128xbf16>, vector<128x128xbf16>, vector<128x128xf32> -> vector<128x128xf32>
      %133 = arith.addf %102, %132 : vector<128x128xf32>
      %134 = arith.index_cast %arg14 : i32 to index
      %c0_84 = arith.constant 0 : index
      %c0_85 = arith.constant 0 : index
      %135 = vector.load %arg13[%134, %c0_84, %c0_85] : memref<4x128x128xf32, #tpu.memory_space<vmem>>, vector<1x128x128xf32>
      %136 = vector.shape_cast %135 : vector<1x128x128xf32> to vector<128x128xf32>
      %137 = arith.addf %133, %136 : vector<128x128xf32>
      %138 = arith.negf %137 : vector<128x128xf32>
      %139 = math.exp %138 : vector<128x128xf32>
      %cst_86 = arith.constant 1.000000e+00 : f32
      %140 = vector.broadcast %cst_86 : f32 to vector<128x128xf32>
      %141 = arith.addf %140, %139 : vector<128x128xf32>
      %142 = arith.divf %140, %141 : vector<128x128xf32>
      %143 = arith.mulf %137, %142 : vector<128x128xf32>
      %144 = arith.truncf %143 : vector<128x128xf32> to vector<128x128xbf16>
      %145 = vector.extract_strided_slice %92 {offsets = [0, 640], sizes = [128, 128], strides = [1, 1]} : vector<128x768xbf16> to vector<128x128xbf16>
      %cst_87 = arith.constant dense<0.000000e+00> : vector<128x128xf32>
      %146 = tpu.matmul %144, %145, %cst_87 {dimension_numbers = #tpu.dot_dimension_numbers<[1], [0], [0], [1], [0, 0, 1, 1], [], []>} : vector<128x128xbf16>, vector<128x128xbf16>, vector<128x128xf32> -> vector<128x128xf32>
      %147 = arith.addf %arg15, %146 : vector<128x128xf32>
      %148 = vector.extract_strided_slice %95 {offsets = [3, 0], sizes = [1, 128], strides = [1, 1]} : vector<8x128xf32> to vector<1x128xf32>
      %149 = vector.broadcast %148 : vector<1x128xf32> to vector<128x128xf32>
      %150 = arith.addf %147, %149 : vector<128x128xf32>
      scf.yield %150 : vector<128x128xf32>
    }
    %c4_i32_66 = arith.constant 4 : i32
    %c0_67 = arith.constant 0 : index
    %c0_68 = arith.constant 0 : index
    %c0_69 = arith.constant 0 : index
    %86 = vector.load %arg11[%c0_67, %c0_68, %c0_69] : memref<1x128x128xf32, #tpu.memory_space<vmem>>, vector<1x128x128xf32>
    %87 = vector.shape_cast %86 : vector<1x128x128xf32> to vector<128x128xf32>
    %88 = vector.shape_cast %85 : vector<128x128xf32> to vector<1x128x128xf32>
    tpu.vector_store %arg11[%c0_67, %c0_68, %c0_69], %88 {strides = array<i32>} : memref<1x128x128xf32, #tpu.memory_space<vmem>>, vector<1x128x128xf32>,
    return
  }
  func.func @transform_0(%arg0: i32) -> (i32, i32, i32) {
    %c0_i32 = arith.constant 0 : i32
    %c0_i32_0 = arith.constant 0 : i32
    %c0_i32_1 = arith.constant 0 : i32
    return %arg0, %c0_i32, %c0_i32_0 : i32, i32, i32
  }
  func.func @transform_1(%arg0: i32) -> (i32, i32, i32) {
    %c0_i32 = arith.constant 0 : i32
    %c0_i32_0 = arith.constant 0 : i32
    %c0_i32_1 = arith.constant 0 : i32
    return %arg0, %c0_i32, %c0_i32_0 : i32, i32, i32
  }
  func.func @transform_2(%arg0: i32) -> (i32, i32, i32) {
    %c0_i32 = arith.constant 0 : i32
    %c0_i32_0 = arith.constant 0 : i32
    %c0_i32_1 = arith.constant 0 : i32
    return %arg0, %c0_i32, %c0_i32_0 : i32, i32, i32
  }
  func.func @transform_3(%arg0: i32) -> (i32, i32, i32) {
    %c0_i32 = arith.constant 0 : i32
    %c0_i32_0 = arith.constant 0 : i32
    %c0_i32_1 = arith.constant 0 : i32
    return %arg0, %c0_i32, %c0_i32_0 : i32, i32, i32
  }
  func.func @transform_4(%arg0: i32) -> (i32, i32, i32) {
    %c0_i32 = arith.constant 0 : i32
    %c0_i32_0 = arith.constant 0 : i32
    %c0_i32_1 = arith.constant 0 : i32
    return %arg0, %c0_i32, %c0_i32_0 : i32, i32, i32
  }
  func.func @transform_5(%arg0: i32) -> (i32, i32) {
    %c0_i32 = arith.constant 0 : i32
    %c0_i32_0 = arith.constant 0 : i32
    %c0_i32_1 = arith.constant 0 : i32
    return %c0_i32, %c0_i32_0 : i32, i32
  }
  func.func @transform_6(%arg0: i32) -> (i32, i32) {
    %c0_i32 = arith.constant 0 : i32
    %c0_i32_0 = arith.constant 0 : i32
    %c0_i32_1 = arith.constant 0 : i32
    return %c0_i32, %c0_i32_0 : i32, i32
  }
  func.func @transform_7(%arg0: i32) -> (i32, i32) {
    %c0_i32 = arith.constant 0 : i32
    %c0_i32_0 = arith.constant 0 : i32
    %c0_i32_1 = arith.constant 0 : i32
    return %c0_i32, %c0_i32_0 : i32, i32
  }
  func.func @transform_8(%arg0: i32) -> (i32, i32, i32) {
    %c0_i32 = arith.constant 0 : i32
    %c0_i32_0 = arith.constant 0 : i32
    %c0_i32_1 = arith.constant 0 : i32
    %c0_i32_2 = arith.constant 0 : i32
    return %c0_i32, %c0_i32_0, %c0_i32_1 : i32, i32, i32
  }
  func.func @transform_9(%arg0: i32) -> (i32, i32, i32) {
    %c0_i32 = arith.constant 0 : i32
    %c0_i32_0 = arith.constant 0 : i32
    %c0_i32_1 = arith.constant 0 : i32
    %c0_i32_2 = arith.constant 0 : i32
    return %c0_i32, %c0_i32_0, %c0_i32_1 : i32, i32, i32
  }
  func.func @transform_10(%arg0: i32) -> (i32, i32, i32) {
    %c0_i32 = arith.constant 0 : i32
    %c0_i32_0 = arith.constant 0 : i32
    %c0_i32_1 = arith.constant 0 : i32
    return %arg0, %c0_i32, %c0_i32_0 : i32, i32, i32
  }
}

</mosaic_0001>

<bundles_post_ra>
// kernel: tpu_custom_call.1
= control target key start
LH: loop header
LB: loop body
LE: loop exit
PB: predicated region body
PF: predicated region fallthrough
CT: control target
= control target key end

     0   :  { %s18113_s0 = inlined_call_operand.hbm [shape: f32[2,128,8], index: 0, kind: input, shape index: {}]   ;;  %s18114_s1 = inlined_call_operand.hbm [shape: f32[2,896,6], index: 1, kind: input, shape index: {}]   ;;  %s18115_s2 = inlined_call_operand.hbm [shape: bf16[2,896,128], index: 2, kind: input, shape index: {}]   ;;  %s18116_s3 = inlined_call_operand.hbm [shape: bf16[2,896,128], index: 3, kind: input, shape index: {}]   ;;  %s18117_s4 = inlined_call_operand.hbm [shape: bf16[2,128,896], index: 4, kind: input, shape index: {}]   ;;  %s18118_s5 = inlined_call_operand.hbm [shape: bf16[8,640], index: 5, kind: input, shape index: {}]   ;;  %s18119_s6 = inlined_call_operand.hbm [shape: f32[1,128], index: 6, kind: input, shape index: {}]   ;;  %s18120_s7 = inlined_call_operand.hbm [shape: bf16[6,512], index: 7, kind: input, shape index: {}]   ;;  %s18121_s8 = inlined_call_operand.hbm [shape: bf16[4,128,768], index: 8, kind: input, shape index: {}]   ;;  %s18122_s9 = inlined_call_operand.hbm [shape: f32[4,8,128], index: 9, kind: input, shape index: {}]   ;;  %s18123_s10 = inlined_call_operand.hbm [shape: f32[2,128,128], index: 10, kind: output, shape index: {}]  }
   0x1   :  { %18251 = sst [smem:[#allocation338_spill]] %s18114_s1 }
   0x2   :  { %18252 = sst [smem:[#allocation339_spill]] %s18116_s3 }
   0x3   :  { %18253 = sst [smem:[#allocation340_spill]] %s18118_s5 }
   0x4   :  { %18254 = sst [smem:[#allocation341_spill]] %s18120_s7 }
   0x5   :  { %18255 = sst [smem:[#allocation342_spill]] %s18123_s10 }
   0x6   :  { %15 = vsyncpa [#allocation5], 0 }
   0x7   :  { %17 = vsyncpa [#allocation5 + $0x1], 0 }
   0x8   :  { %18 = vsyncpa [#allocation8], 0 }
   0x9   :  { %20 = vsyncpa [#allocation8 + $0x1], 0 }
   0xa   :  { %21 = vsyncpa [#allocation11], 0 }
   0xb   :  { %23 = vsyncpa [#allocation11 + $0x1], 0 }
   0xc   :  { %24 = vsyncpa [#allocation14], 0 }
   0xd   :  { %25 = vsyncpa [#allocation17], 0 }
   0xe   :  { %26 = vsyncpa [#allocation20], 0 }
   0xf   :  { %27 = vsyncpa [#allocation6], 0 }
  0x10   :  { %29 = vsyncpa [#allocation6 + $0x1], 0  ;;  %s13592_s13 = smov 0   ;;  %s13594_s14 = smov 0  }
  0x11   :  { %s13596_s15 = smov 0   ;;  %s13598_s16 = smov 0  }
  0x12 LB: > { %18256 = sst [smem:[#allocation29_spill]] %s13432_s13  ;;  %s13613_s17 = sadd.s32 4294967295, %s13444_s16   ;;  %s13444_s16 = sphi %s13598_s16, %s18961_s16   ;;  %s13440_s15 = sphi %s13596_s15, %s18964_s15   ;;  %s13436_s14 = sphi %s13594_s14, %s18963_s14   ;;  %s13432_s13 = sphi %s13592_s13, %s18962_s13  }
  0x13   : > { %18257 = sst [smem:[#allocation30_spill]] %s13436_s14  ;;  %s9893_s18 = sadd.s32 4294967294, %s13444_s16  }
  0x14   : > { %18258 = sst [smem:[#allocation31_spill]] %s13440_s15  ;;  %p55_p0 = scmp.ne.s32.totalorder %s13436_s14, %s13432_s13 }
  0x15   : > { %18259 = sst [smem:[#allocation32_spill]] %s13613_s17  ;;  %p18125_p1 = scmp.eq.s32.totalorder %s13613_s17, 0 }
  0x16   : > { %p294_p3 = scmp.eq.s32.totalorder %s9893_s18, 1  ;;  %p9894_p5 = scmp.ge.s32.totalorder %s13444_s16, 1 }
  0x17   : > { %p13622_p4 = por %p18125_p1, %p55_p0  ;;  %p301_p7 = scmp.lt.s32.totalorder %s13444_s16, 3 }
  0x18   : > { %p13627_p6 = por %p294_p3, %p55_p0  ;;  %s13514_s22 = smov [#allocation13]  }
  0x19   : > { %s18260_s19 = scalar_select %p13622_p4, 1, 0 }
  0x1a   : > { %s18262_s20 = scalar_select %p13627_p6, 1, 0 }
  0x1b   : > { %18261 = sst [smem:[#allocation33_spill]] %s18260_s19  ;;  %p13632_p8 = pnand %p9894_p5, %p301_p7 }
  0x1c   : > { %18263 = sst [smem:[#allocation34_spill]] %s18262_s20  ;;  %s314_s23 = sshll.u32 %s13514_s22, 4  ;;  %s315_s23 = int_to_ptr.vmem [resolvable:$true] %s314_s23 }
  0x1d   : > { %s18264_s21 = scalar_select %p13632_p8, 1, 0 }
  0x1e   : > { %p11717_p10 = pneg %p13632_p8  ;;  %s13515_s24 = smov [#allocation16]  }
  0x1f   : > { %18265 = sst [smem:[#allocation35_spill]] %s18264_s21  ;;  %s336_s25 = sshll.u32 %s13515_s24, 4  ;;  %s13645_s25 = int_to_ptr.vmem [resolvable:$true] %s336_s25 }
  0x20   : > { %p13641_p11 = pnand %p11717_p10, %p18125_p1  ;;  %s13648_s27 = sadd.s32 1, %s13444_s16  }
  0x21   : > { %18267 = sst [smem:[#allocation36_spill]] %s13648_s27  ;;  %s18268_s5 = sld [smem:[#allocation340_spill]] }
  0x22   : > { %s18266_s26 = scalar_select %p13641_p11, 1, 0 }
  0x23   : > { %p13660_p13 = pneg %p13641_p11 }
  0x25   : > { %s18269_s22 = scalar_select %p13660_p13, 1, 0 }
  0x27   : > { %s13000_s11 = scalar_lea.hbm %s18268_s5, 320 }
  0x28   : > { %p13001_p12 = scmp.ne.s32.totalorder %s18268_s5, %s13000_s11  ;;  %p13007_p5 = scmp.lt.u32.totalorder %s13000_s11, %s18268_s5 }
  0x2a   : > { %p13003_p0 = pnand %p13660_p13, %p13001_p12 }
  0x2c   : > { %p13004_p3 = pneg %p13003_p0 }
  0x2e   : > { %p13009_p7 = pnand %p13007_p5, %p13004_p3 }
  0x30   : > { %13012 = shalt.err (!%p13009_p7)
}
  0x31   : > { %s13013_s29 = scalar_lea.vmem %s315_s23, 320  ;;  %p13021_p2 = scmp.lt.s32.totalorder %s315_s23, %s315_s23 }
  0x32   : > { %p13014_p10 = scmp.ne.s32.totalorder %s315_s23, %s13013_s29  ;;  %p13022_p6 = scmp.lt.s32.totalorder %s13013_s29, %s13013_s29 }
  0x34   : > { %p13016_p9 = pnand %p13014_p10, %p13660_p13  ;;  %p13023_p4 = por %p13022_p6, %p13021_p2 }
  0x36   : > { %p13017_p1 = pneg %p13016_p9 }
  0x38   : > { %p13024_p8 = pnand %p13023_p4, %p13017_p1 }
  0x3a   : > { %13027 = shalt.err (!%p13024_p8)
}
  0x3b   : > { %11720 = dma.hbm_to_vmem [thread:$0]  (!%p13641_p11), %s18268_s5, 320, %s315_s23, [#allocation14]  }
  0x3c   : > { %s18270_s7 = sld [smem:[#allocation341_spill]] }
  0x42   : > { %s13028_s18 = scalar_lea.hbm %s18270_s7, 256 }
  0x43   : > { %p13029_p9 = scmp.ne.s32.totalorder %s18270_s7, %s13028_s18  ;;  %p13035_p1 = scmp.lt.u32.totalorder %s13028_s18, %s18270_s7 }
  0x45   : > { %p13031_p12 = pnand %p13029_p9, %p13660_p13 }
  0x47   : > { %p13032_p2 = pneg %p13031_p12 }
  0x49   : > { %p13037_p4 = pnand %p13035_p1, %p13032_p2 }
  0x4b   : > { %13040 = shalt.err (!%p13037_p4)
}
  0x4c   : > { %s13041_s23 = scalar_lea.vmem %s13645_s25, 256  ;;  %p13049_p3 = scmp.lt.s32.totalorder %s13645_s25, %s13645_s25 }
  0x4d   : > { %p13042_p6 = scmp.ne.s32.totalorder %s13645_s25, %s13041_s23  ;;  %p13050_p5 = scmp.lt.s32.totalorder %s13041_s23, %s13041_s23 }
  0x4f   : > { %p13044_p8 = pnand %p13042_p6, %p13660_p13  ;;  %p13051_p7 = por %p13050_p5, %p13049_p3 }
  0x51   : > { %p13045_p0 = pneg %p13044_p8 }
  0x53   : > { %p13052_p10 = pnand %p13051_p7, %p13045_p0 }
  0x55   : > { %13055 = shalt.err (!%p13052_p10)
}
  0x56   : > { %11726 = dma.hbm_to_vmem [thread:$0]  (!%p13641_p11), %s18270_s7, 256, %s13645_s25, [#allocation17]  }
  0x57   : > { %s18271_s30 = ssub.s32 %s13444_s16, %s13648_s27  ;;  %s42_s12 = sadd.s32 1, %s13440_s15 }
  0x58   : > { %p40_p9 = scmp.eq.s32.totalorder %s18271_s30, 0  ;;  %p49_p12 = scmp.ne.s32.totalorder %s13440_s15, %s13436_s14 }
  0x59   : > { %p50_p2 = scmp.eq.s32.totalorder %s13444_s16, 0  ;;  %p18273_p4 = scmp.eq.s32.totalorder %s13613_s17, 1 }
  0x5a   : > { %s13707_s20 = scalar_select %p40_p9, %s13440_s15, %s42_s12  }
  0x5b   : > { %p51_p1 = por %p50_p2, %p49_p12  ;;  %p13711_p6 = por %p18273_p4, %p49_p12 }
  0x5c   : > { %18272 = sst [smem:[#allocation37_spill]] %s13707_s20  ;;  %p11758_p8 = scmp.lt.s32.totalorder %s13444_s16, 2 }
  0x5d   : > { %s18274_s11 = scalar_select %p13711_p6, 1, 0 }
  0x5e   : > { %s13717_s18 = sand.u32 1, %s13440_s15   ;;  %s18130_s24 = sand.u32 1, %s13444_s16  }
  0x5f   : > { %18275 = sst [smem:[#allocation38_spill]] %s18274_s11  ;;  %s11675_s25 = smul.u32 896, %s13717_s18 }
  0x60   : > { %p13721_p0 = pnand %p11758_p8, %p51_p1  ;;  %s11676_s23 = smul.u32 14336, %s13444_s16 }
  0x61   : > { %s398_s13 = scalar_lea.vmem [#allocation7], %s11675_s25  ;;  %s18277_s1 = sld [smem:[#allocation338_spill]] }
  0x62   : > { %s18276_s29 = scalar_select %p13721_p0, 1, 0 }
  0x63   : > { %s405_s28 = sshll.u32 %s398_s13, 4  ;;  %s13735_s7 = scalar_lea.sflag [#allocation8], %s18130_s24  ;;  %s13731_s28 = int_to_ptr.vmem [resolvable:$true] %s405_s28 }
  0x64   : > { %p13741_p5 = pneg %p13721_p0 }
  0x66   : > { %s18278_s25 = scalar_select %p13741_p5, 1, 0 }
  0x67   : > { %s13729_s5 = scalar_lea.hbm %s18277_s1, %s11676_s23  ;;  %s13061_s30 = scalar_lea.hbm %s18277_s1, 28672 }
  0x68   : > { %s13056_s20 = scalar_lea.hbm %s13729_s5, 14336  ;;  %p13062_p9 = scmp.lt.u32.totalorder %s13729_s5, %s18277_s1 }
  0x69   : > { %p13057_p3 = scmp.ne.s32.totalorder %s13729_s5, %s13056_s20  ;;  %p13063_p12 = scmp.lt.u32.totalorder %s13061_s30, %s13056_s20 }
  0x6a   : > { %p13065_p1 = scmp.lt.u32.totalorder %s13056_s20, %s13729_s5 }
  0x6b   : > { %p13059_p7 = pnand %p13741_p5, %p13057_p3  ;;  %p13064_p2 = por %p13063_p12, %p13062_p9 }
  0x6d   : > { %p13060_p10 = pneg %p13059_p7  ;;  %p13066_p4 = por %p13065_p1, %p13064_p2 }
  0x6f   : > { %p13067_p8 = pnand %p13066_p4, %p13060_p10 }
  0x71   : > { %13070 = shalt.err (!%p13067_p8)
}
  0x72   : > { %s13071_s24 = scalar_lea.vmem %s13731_s28, 14336  ;;  %s13516_s23 = smov [#allocation7]  }
  0x73   : > { %p13072_p3 = scmp.ne.s32.totalorder %s13731_s28, %s13071_s24  ;;  %s13076_s13 = sshll.u32 %s13516_s23, 4  ;;  %s13077_s13 = int_to_ptr.vmem [resolvable:$false] %s13076_s13 }
  0x74   : > { %s13078_s15 = scalar_lea.vmem %s13077_s13, 28672  ;;  %p13079_p11 = scmp.lt.s32.totalorder %s13731_s28, %s13077_s13 }
  0x75   : > { %p13074_p7 = pnand %p13072_p3, %p13741_p5  ;;  %p13080_p13 = scmp.lt.s32.totalorder %s13078_s15, %s13071_s24 }
  0x77   : > { %p13075_p6 = pneg %p13074_p7  ;;  %p13081_p9 = por %p13080_p13, %p13079_p11 }
  0x79   : > { %p13082_p12 = pnand %p13081_p9, %p13075_p6 }
  0x7b   : > { %13085 = shalt.err (!%p13082_p12)
}
  0x7c   : > { %s18138_s20 = smov 128   ;;  %s18140_s30 = smov 8  }
  0x7d   : > { %11739 = dma.hbm_to_vmem [thread:$0]  (!%p13721_p0), %s13729_s5, 14336, %s13731_s28, %s13735_s7, %s18138_s20, %s18138_s20, %s18140_s30  }
  0x7e   : > { %s13769_s12 = smul.u32 448, %s13717_s18  ;;  %s18279_s3 = sld [smem:[#allocation339_spill]] }
  0x7f   : > { %s13772_s24 = smul.u32 7168, %s13444_s16  ;;  %s18280_s5 = sand.u32 1, %s13444_s16  }
  0x80   : > { %s440_s1 = scalar_lea.vmem [#allocation10], %s13769_s12  ;;  %s13785_s28 = scalar_lea.sflag [#allocation11], %s18280_s5 }
  0x81   : > { %s447_s27 = sshll.u32 %s440_s1, 4  ;;  %s13781_s27 = int_to_ptr.vmem [resolvable:$true] %s447_s27 }
  0x84   : > { %s13778_s15 = scalar_lea.hbm %s18279_s3, %s13772_s24  ;;  %s13091_s13 = scalar_lea.hbm %s18279_s3, 14336 }
  0x85   : > { %s13086_s20 = scalar_lea.hbm %s13778_s15, 7168  ;;  %p13092_p10 = scmp.lt.u32.totalorder %s13778_s15, %s18279_s3 }
  0x86   : > { %p13087_p11 = scmp.ne.s32.totalorder %s13778_s15, %s13086_s20  ;;  %p13093_p2 = scmp.lt.u32.totalorder %s13091_s13, %s13086_s20 }
  0x87   : > { %p13095_p4 = scmp.lt.u32.totalorder %s13086_s20, %s13778_s15 }
  0x88   : > { %p13089_p13 = pnand %p13087_p11, %p13741_p5  ;;  %p13094_p1 = por %p13093_p2, %p13092_p10 }
  0x8a   : > { %p13090_p6 = pneg %p13089_p13  ;;  %p13096_p8 = por %p13095_p4, %p13094_p1 }
  0x8c   : > { %p13097_p3 = pnand %p13096_p8, %p13090_p6 }
  0x8e   : > { %13100 = shalt.err (!%p13097_p3)
}
  0x8f   : > { %s13101_s1 = scalar_lea.vmem %s13781_s27, 7168  ;;  %s13519_s30 = smov [#allocation10]  }
  0x90   : > { %p13102_p7 = scmp.ne.s32.totalorder %s13781_s27, %s13101_s1  ;;  %s13106_s5 = sshll.u32 %s13519_s30, 4  ;;  %s13107_s5 = int_to_ptr.vmem [resolvable:$false] %s13106_s5 }
  0x91   : > { %s13108_s10 = scalar_lea.vmem %s13107_s5, 14336  ;;  %p13109_p11 = scmp.lt.s32.totalorder %s13781_s27, %s13107_s5 }
  0x92   : > { %p13104_p9 = pnand %p13102_p7, %p13741_p5  ;;  %p13110_p13 = scmp.lt.s32.totalorder %s13108_s10, %s13101_s1 }
  0x94   : > { %p13105_p12 = pneg %p13104_p9  ;;  %p13111_p10 = por %p13110_p13, %p13109_p11 }
  0x96   : > { %p13112_p2 = pnand %p13111_p10, %p13105_p12 }
  0x98   : > { %13115 = shalt.err (!%p13112_p2)
}
  0x99   : > { %s18155_s11 = smov 64   ;;  %s18156_s20 = smov 4  }
  0x9a   : > { %11745 = dma.hbm_to_vmem [thread:$0]  (!%p13721_p0), %s13778_s15, 7168, %s13781_s27, %s13785_s28, %s18155_s11, %s18155_s11, %s18156_s20  }
  0x9b   : > { %s13522_s23 = smov [#allocation15]   ;;  %s13523_s30 = smov [#allocation18]  }
  0x9c   : > { %s325_s13 = sshll.u32 %s13522_s23, 4  ;;  %s346_s1 = sshll.u32 %s13523_s30, 4  ;;  %s326_s13 = int_to_ptr.vmem [resolvable:$true] %s325_s13  ;;  %s347_s1 = int_to_ptr.vmem [resolvable:$true] %s346_s1 }
  0x9d   : > { %s13116_s3 = scalar_lea.hbm %s18119_s6, 16  ;;  %p18281_p1 = scmp.ne.s32.totalorder %s18269_s22, 0 }
  0x9e   : > { %p13117_p6 = scmp.ne.s32.totalorder %s18119_s6, %s13116_s3  ;;  %p13123_p3 = scmp.lt.u32.totalorder %s13116_s3, %s18119_s6 }
  0xa0   : > { %p13119_p4 = pnand %p13117_p6, %p18281_p1 }
  0xa2   : > { %p13120_p8 = pneg %p13119_p4 }
  0xa4   : > { %p13125_p7 = pnand %p13123_p3, %p13120_p8 }
  0xa6   : > { %13128 = shalt.err (!%p13125_p7)
}
  0xa7   : > { %s13129_s27 = scalar_lea.vmem %s326_s13, 16  ;;  %s13136_s15 = scalar_lea.vmem %s326_s13, 32 }
  0xa8   : > { %p13130_p9 = scmp.ne.s32.totalorder %s326_s13, %s13129_s27  ;;  %p13137_p13 = scmp.lt.s32.totalorder %s326_s13, %s326_s13 }
  0xa9   : > { %p13138_p10 = scmp.lt.s32.totalorder %s13136_s15, %s13129_s27 }
  0xaa   : > { %p13132_p12 = pnand %p13130_p9, %p18281_p1 }
  0xab   : > { %p13139_p2 = por %p13138_p10, %p13137_p13 }
  0xac   : > { %p13133_p11 = pneg %p13132_p12 }
  0xae   : > { %p13140_p0 = pnand %p13139_p2, %p13133_p11 }
  0xb0   : > { %13143 = shalt.err (!%p13140_p0)
}
  0xb1   : > { %p18282_p6 = scmp.ne.s32.totalorder %s18266_s26, 0  ;;  %s13144_s21 = scalar_lea.hbm %s18121_s8, 24576 }
  0xb2   : > { %p13145_p4 = scmp.ne.s32.totalorder %s18121_s8, %s13144_s21  ;;  %p13151_p0 = scmp.lt.u32.totalorder %s13144_s21, %s18121_s8 }
  0xb3   : > { %11723 = dma.hbm_to_vmem [thread:$0]  (!%p18282_p6), %s18119_s6, 16, %s326_s13, [#allocation14]  }
  0xb4   : > { %p13147_p8 = pnand %p13145_p4, %p18281_p1 }
  0xb6   : > { %p13148_p3 = pneg %p13147_p8 }
  0xb8   : > { %p13153_p7 = pnand %p13151_p0, %p13148_p3 }
  0xba   : > { %13156 = shalt.err (!%p13153_p7)
}
  0xbb   : > { %s13157_s27 = scalar_lea.vmem %s347_s1, 24576  ;;  %p13165_p13 = scmp.lt.s32.totalorder %s347_s1, %s347_s1 }
  0xbc   : > { %p13158_p9 = scmp.ne.s32.totalorder %s347_s1, %s13157_s27  ;;  %p13166_p10 = scmp.lt.s32.totalorder %s13157_s27, %s13157_s27 }
  0xbe   : > { %p13160_p12 = pnand %p13158_p9, %p18281_p1  ;;  %p13167_p2 = por %p13166_p10, %p13165_p13 }
  0xc0   : > { %p13161_p11 = pneg %p13160_p12 }
  0xc2   : > { %p13168_p5 = pnand %p13167_p2, %p13161_p11 }
  0xc4   : > { %13171 = shalt.err (!%p13168_p5)
}
  0xc5   : > { %s13524_s13 = smov 384   ;;  %s13525_s15 = smov 24  }
  0xc6   : > { %11729 = dma.hbm_to_vmem [thread:$0]  (!%p18282_p6), %s18121_s8, 24576, %s347_s1, [#allocation17], %s13524_s13, %s13524_s13, %s13525_s15  }
  0xc7   : > { %s13526_s3 = smov [#allocation19]   ;;  %s9901_s21 = sshll.u32 %s13717_s18, 7 }
  0xc8   : > { %s359_s14 = sshll.u32 %s13526_s3, 4  ;;  %s13172_s5 = scalar_lea.hbm %s18122_s9, 512  ;;  %s360_s14 = int_to_ptr.vmem [resolvable:$true] %s359_s14 }
  0xc9   : > { %p13173_p5 = scmp.ne.s32.totalorder %s18122_s9, %s13172_s5  ;;  %p13179_p3 = scmp.lt.u32.totalorder %s13172_s5, %s18122_s9 }
  0xcb   : > { %p13175_p4 = pnand %p13173_p5, %p18281_p1 }
  0xcd   : > { %p13176_p8 = pneg %p13175_p4 }
  0xcf   : > { %p13181_p0 = pnand %p13179_p3, %p13176_p8 }
  0xd1   : > { %13184 = shalt.err (!%p13181_p0)
}
  0xd2   : > { %s13185_s1 = scalar_lea.vmem %s360_s14, 512  ;;  %p13193_p11 = scmp.lt.s32.totalorder %s360_s14, %s360_s14 }
  0xd3   : > { %p13186_p7 = scmp.ne.s32.totalorder %s360_s14, %s13185_s1  ;;  %p13194_p13 = scmp.lt.s32.totalorder %s13185_s1, %s13185_s1 }
  0xd5   : > { %p13188_p9 = pnand %p13186_p7, %p18281_p1  ;;  %p13195_p10 = por %p13194_p13, %p13193_p11 }
  0xd7   : > { %p13189_p12 = pneg %p13188_p9 }
  0xd9   : > { %p13196_p2 = pnand %p13195_p10, %p13189_p12 }
  0xdb   : > { %13199 = shalt.err (!%p13196_p2)
}
  0xdc   : > { %s18283_s13 = smov 8   ;;  %s18284_s15 = smov 128  }
  0xdd   : > { %11732 = dma.hbm_to_vmem [thread:$0]  (!%p18282_p6), %s18122_s9, 512, %s360_s14, [#allocation20], %s18284_s15, %s18284_s15, %s18283_s13  }
  0xde   : > { %s10538_s22 = sshll.u32 %s13444_s16, 11  ;;  %s377_s26 = scalar_lea.vmem [#allocation4], %s9901_s21 }
  0xdf   : > { %s13874_s3 = scalar_lea.hbm %s18113_s0, %s10538_s22  ;;  %s384_s23 = sshll.u32 %s377_s26, 4  ;;  %s13876_s23 = int_to_ptr.vmem [resolvable:$true] %s384_s23 }
  0xe0   : > { %s374_s30 = scalar_lea.sflag [#allocation5], %s13717_s18  ;;  %s13200_s5 = scalar_lea.hbm %s13874_s3, 2048 }
  0xe1   : > { %p13201_p1 = scmp.ne.s32.totalorder %s13874_s3, %s13200_s5  ;;  %p18285_p5 = scmp.ne.s32.totalorder %s18278_s25, 0 }
  0xe2   : > { %s13205_s27 = scalar_lea.hbm %s18113_s0, 4096  ;;  %p13206_p8 = scmp.lt.u32.totalorder %s13874_s3, %s18113_s0 }
  0xe3   : > { %p13203_p4 = pnand %p13201_p1, %p18285_p5  ;;  %p13207_p3 = scmp.lt.u32.totalorder %s13205_s27, %s13200_s5 }
  0xe4   : > { %p13209_p7 = scmp.lt.u32.totalorder %s13200_s5, %s13874_s3 }
  0xe5   : > { %p13204_p6 = pneg %p13203_p4  ;;  %p13208_p0 = por %p13207_p3, %p13206_p8 }
  0xe7   : > { %p13210_p9 = por %p13209_p7, %p13208_p0 }
  0xe9   : > { %p13211_p12 = pnand %p13210_p9, %p13204_p6 }
  0xeb   : > { %13214 = shalt.err (!%p13211_p12)
}
  0xec   : > { %s13215_s21 = scalar_lea.vmem %s13876_s23, 2048  ;;  %s13527_s20 = smov [#allocation4]  }
  0xed   : > { %p13216_p11 = scmp.ne.s32.totalorder %s13876_s23, %s13215_s21  ;;  %s13220_s22 = sshll.u32 %s13527_s20, 4  ;;  %s13221_s22 = int_to_ptr.vmem [resolvable:$false] %s13220_s22 }
  0xee   : > { %s13222_s17 = scalar_lea.vmem %s13221_s22, 4096  ;;  %p13223_p2 = scmp.lt.s32.totalorder %s13876_s23, %s13221_s22 }
  0xef   : > { %p13218_p13 = pnand %p13216_p11, %p18285_p5  ;;  %p13224_p1 = scmp.lt.s32.totalorder %s13222_s17, %s13215_s21 }
  0xf1   : > { %p13219_p10 = pneg %p13218_p13  ;;  %p13225_p4 = por %p13224_p1, %p13223_p2 }
  0xf3   : > { %p13226_p8 = pnand %p13225_p4, %p13219_p10 }
  0xf5   : > { %13229 = shalt.err (!%p13226_p8)
}
  0xf6   : > { %p18286_p6 = scmp.ne.s32.totalorder %s18276_s29, 0  ;;  %s13909_s5 = scalar_lea.hbm %s18115_s2, %s13772_s24 }
  0xf7   : > { %s419_s14 = scalar_lea.vmem [#allocation9], %s13769_s12  ;;  %s13230_s18 = scalar_lea.hbm %s13909_s5, 7168 }
  0xf8   : > { %11736 = dma.hbm_to_vmem [thread:$0]  (!%p18286_p6), %s13874_s3, 2048, %s13876_s23, %s374_s30, %s18284_s15, %s18284_s15, %s18283_s13  }
  0xf9   : > { %s426_s10 = sshll.u32 %s419_s14, 4  ;;  %p13231_p3 = scmp.ne.s32.totalorder %s13909_s5, %s13230_s18  ;;  %s13912_s10 = int_to_ptr.vmem [resolvable:$true] %s426_s10 }
  0xfa   : > { %s13235_s15 = scalar_lea.hbm %s18115_s2, 14336  ;;  %p13236_p9 = scmp.lt.u32.totalorder %s13909_s5, %s18115_s2 }
  0xfb   : > { %p13233_p0 = pnand %p13231_p3, %p18285_p5  ;;  %p13237_p12 = scmp.lt.u32.totalorder %s13235_s15, %s13230_s18 }
  0xfc   : > { %p13239_p13 = scmp.lt.u32.totalorder %s13230_s18, %s13909_s5 }
  0xfd   : > { %p13234_p7 = pneg %p13233_p0  ;;  %p13238_p11 = por %p13237_p12, %p13236_p9 }
  0xff   : > { %p13240_p10 = por %p13239_p13, %p13238_p11 }
 0x101   : > { %p13241_p2 = pnand %p13240_p10, %p13234_p7 }
 0x103   : > { %13244 = shalt.err (!%p13241_p2)
}
 0x104   : > { %s13245_s30 = scalar_lea.vmem %s13912_s10, 7168  ;;  %s13528_s1 = smov [#allocation9]  }
 0x105   : > { %p13246_p1 = scmp.ne.s32.totalorder %s13912_s10, %s13245_s30  ;;  %s13250_s11 = sshll.u32 %s13528_s1, 4  ;;  %s13251_s11 = int_to_ptr.vmem [resolvable:$false] %s13250_s11 }
 0x106   : > { %s13252_s21 = scalar_lea.vmem %s13251_s11, 14336  ;;  %p13253_p3 = scmp.lt.s32.totalorder %s13912_s10, %s13251_s11 }
 0x107   : > { %p13248_p4 = pnand %p13246_p1, %p18285_p5  ;;  %p13254_p0 = scmp.lt.s32.totalorder %s13252_s21, %s13245_s30 }
 0x109   : > { %p13249_p8 = pneg %p13248_p4  ;;  %p13255_p9 = por %p13254_p0, %p13253_p3 }
 0x10b   : > { %p13256_p12 = pnand %p13255_p9, %p13249_p8 }
 0x10d   : > { %13259 = shalt.err (!%p13256_p12)
}
 0x10e   : > { %s18287_s20 = smov 4   ;;  %s18288_s22 = smov 64  }
 0x10f   : > { %11742 = dma.hbm_to_vmem [thread:$0]  (!%p18286_p6), %s13909_s5, 7168, %s13912_s10, %s13735_s7, %s18288_s22, %s18288_s22, %s18287_s20  }
 0x110   : > { %s13943_s26 = scalar_lea.hbm %s18117_s4, %s13772_s24  ;;  %s461_s14 = scalar_lea.vmem [#allocation12], %s13769_s12 }
 0x111   : > { %s468_s18 = sshll.u32 %s461_s14, 4  ;;  %s13260_s27 = scalar_lea.hbm %s13943_s26, 7168  ;;  %s13946_s18 = int_to_ptr.vmem [resolvable:$true] %s468_s18 }
 0x112   : > { %p13261_p7 = scmp.ne.s32.totalorder %s13943_s26, %s13260_s27  ;;  %s13265_s5 = scalar_lea.hbm %s18117_s4, 14336 }
 0x113   : > { %p13266_p10 = scmp.lt.u32.totalorder %s13943_s26, %s18117_s4  ;;  %p13267_p2 = scmp.lt.u32.totalorder %s13265_s5, %s13260_s27 }
 0x114   : > { %p13263_p11 = pnand %p13261_p7, %p18285_p5  ;;  %p13269_p4 = scmp.lt.u32.totalorder %s13260_s27, %s13943_s26 }
 0x115   : > { %p13268_p1 = por %p13267_p2, %p13266_p10 }
 0x116   : > { %p13264_p13 = pneg %p13263_p11 }
 0x117   : > { %p13270_p8 = por %p13269_p4, %p13268_p1 }
 0x119   : > { %p13271_p3 = pnand %p13270_p8, %p13264_p13 }
 0x11b   : > { %13274 = shalt.err (!%p13271_p3)
}
 0x11c   : > { %s13275_s12 = scalar_lea.vmem %s13946_s18, 7168  ;;  %s13529_s15 = smov [#allocation12]  }
 0x11d   : > { %p13276_p0 = scmp.ne.s32.totalorder %s13946_s18, %s13275_s12  ;;  %s13280_s3 = sshll.u32 %s13529_s15, 4  ;;  %s13281_s3 = int_to_ptr.vmem [resolvable:$false] %s13280_s3 }
 0x11e   : > { %s13282_s23 = scalar_lea.vmem %s13281_s3, 14336  ;;  %p13283_p7 = scmp.lt.s32.totalorder %s13946_s18, %s13281_s3 }
 0x11f   : > { %p13278_p9 = pnand %p13276_p0, %p18285_p5  ;;  %p13284_p11 = scmp.lt.s32.totalorder %s13282_s23, %s13275_s12 }
 0x121   : > { %p13279_p12 = pneg %p13278_p9  ;;  %p13285_p10 = por %p13284_p11, %p13283_p7 }
 0x123   : > { %p13286_p2 = pnand %p13285_p10, %p13279_p12 }
 0x125   : > { %13289 = shalt.err (!%p13286_p2)
}
 0x126   : > { %s13530_s30 = smov 448   ;;  %s13531_s1 = smov 28  }
 0x127   : > { %11748 = dma.hbm_to_vmem [thread:$0]  (!%p18286_p6), %s13943_s26, 7168, %s13946_s18, %s13785_s28, %s13530_s30, %s13530_s30, %s13531_s1  }
 0x128   : > { %s18289_s25 = sld [smem:[#allocation35_spill]] }
 0x12e   : > { %p18290_p5 = scmp.ne.s32.totalorder %s18289_s25, 0 }
 0x130   : > { %480 = sbr.rel (%p18290_p5) target bundleno = 3260 (0xcbc), region = 60 }
 0x137   : > { %s18291_s11 = sld [smem:[#allocation30_spill]]  ;;  %s18292_s21 = sld [smem:[#allocation33_spill]] }
 0x13d   : > { %s13973_s20 = sand.u32 1, %s18291_s11   ;;  %p18293_p13 = scmp.ne.s32.totalorder %s18292_s21, 0 }
 0x13e   : > { %s9909_s22 = sshll.u32 %s13973_s20, 7  ;;  %s483_s17 = scalar_lea.sflag [#allocation5], %s13973_s20 }
 0x13f   : > { %s13979_s19 = scalar_lea.vmem [#allocation4], %s9909_s22 }
 0x140   : > { %13403 = dma.done.wait (%p18293_p13), %s483_s17, 2048  }
 0x141   : > { %13405 = vsyncadd (%p18293_p13), %s483_s17, 4294965248  ;;  %s18294_s29 = sld [smem:[#allocation32_spill]]  ;;  %s11683_s26 = smul.u32 896, %s13973_s20 }
 0x143   : > { %s13987_s18 = scalar_lea.vmem [#allocation7], %s11683_s26 }
 0x147   : > { %s491_s28 = sand.u32 1, %s18294_s29  }
 0x148   : > { %s492_s14 = scalar_lea.sflag [#allocation8], %s491_s28 }
 0x149   : > { %13407 = dma.done.wait (%p18293_p13), %s492_s14, 21504  }
 0x14a   : > { %13409 = vsyncadd (%p18293_p13), %s492_s14, 4294945792  ;;  %s11684_s27 = smul.u32 448, %s13973_s20  ;;  %s510_s7 = scalar_lea.sflag [#allocation11], %s491_s28 }
 0x14c   : > { %s13994_s13 = scalar_lea.vmem [#allocation9], %s11684_s27  ;;  %s13996_s5 = scalar_lea.vmem [#allocation10], %s11684_s27 }
 0x14d   : > { %13411 = dma.done.wait (%p18293_p13), %s510_s7, 14336  }
 0x14e   : > { %13413 = vsyncadd (%p18293_p13), %s510_s7, 4294952960  ;;  %s14002_s10 = scalar_lea.vmem [#allocation12], %s11684_s27  ;;  %p18295_p6 = scmp.eq.s32.totalorder %s18294_s29, 0 }
 0x150   : > { %13415 = dma.done.wait (%p18295_p6), [#allocation14], 336   ;;  %p18296_p1 = pmov %p18295_p6 }
 0x152   : > { %13417 = vsyncadd (%p18296_p1), [#allocation14], 4294966960  ;;  %p18297_p4 = pmov %p18296_p1 }
 0x153   : > { %p18298_p8 = pmov %p18296_p1 }
 0x154   : > { %13419 = dma.done.wait (%p18297_p4), [#allocation17], 24832  }
 0x155   : > { %13421 = vsyncadd (%p18298_p8), [#allocation17], 4294942464  ;;  %p18299_p3 = pmov %p18296_p1 }
 0x156   : > { %p18300_p0 = pmov %p18296_p1 }
 0x157   : > { %13423 = dma.done.wait (%p18299_p3), [#allocation20], 512  }
 0x158   : > { %13425 = vsyncadd (%p18300_p0), [#allocation20], 4294966784  ;;  %v18157_v0 = vmov 0   ;;  %v14019_v1 = vld [vmem:[%s13994_s13] sm:$0xf]  ;;  %vm1121_vm0 = vcmask 1043456  }
 0x159   : > { %1169 = vmatprep.mubr.bf16.mxu0 %v18157_v0  ;;  %1229 = vmatprep.mubr.bf16.mxu1 %v18157_v0  ;;  %18301 = vst [vmem:[#allocation39_spill] sm:$0xff] %v14019_v1  ;;  %v14022_v2 = vld [vmem:[%s13994_s13 + $0x4] sm:$0xf]  ;;  %v14025_v3 = vld [vmem:[%s13994_s13 + $0x8] sm:$0xf]  ;;  %vm1096_vm1 = vcmask 64512  }
 0x15a   : > { %18302 = vst [vmem:[#allocation40_spill] sm:$0xff] %v14022_v2  ;;  %18303 = vst [vmem:[#allocation41_spill] sm:$0xff] %v14025_v3  ;;  %v14028_v4 = vld [vmem:[%s13994_s13 + $0xc] sm:$0xf]  ;;  %v14031_v5 = vld [vmem:[%s13994_s13 + $0x10] sm:$0xf] }
 0x15b   : > { %18304 = vst [vmem:[#allocation42_spill] sm:$0xff] %v14028_v4  ;;  %18305 = vst [vmem:[#allocation43_spill] sm:$0xff] %v14031_v5  ;;  %v14034_v6 = vld [vmem:[%s13994_s13 + $0x14] sm:$0xf]  ;;  %v14037_v7 = vld [vmem:[%s13994_s13 + $0x18] sm:$0xf] }
 0x15c   : > { %18306 = vst [vmem:[#allocation44_spill] sm:$0xff] %v14034_v6  ;;  %18307 = vst [vmem:[#allocation45_spill] sm:$0xff] %v14037_v7  ;;  %v14040_v8 = vld [vmem:[%s13994_s13 + $0x1c] sm:$0xf]  ;;  %v14043_v9 = vld [vmem:[%s13994_s13 + $0x20] sm:$0xf] }
 0x15d   : > { %18308 = vst [vmem:[#allocation46_spill] sm:$0xff] %v14040_v8  ;;  %18309 = vst [vmem:[#allocation47_spill] sm:$0xff] %v14043_v9  ;;  %v14046_v10 = vld [vmem:[%s13994_s13 + $0x24] sm:$0xf]  ;;  %v14049_v11 = vld [vmem:[%s13994_s13 + $0x28] sm:$0xf] }
 0x15e   : > { %18310 = vst [vmem:[#allocation48_spill] sm:$0xff] %v14046_v10  ;;  %18311 = vst [vmem:[#allocation49_spill] sm:$0xff] %v14049_v11  ;;  %v14052_v12 = vld [vmem:[%s13994_s13 + $0x2c] sm:$0xf]  ;;  %v14055_v13 = vld [vmem:[%s13994_s13 + $0x30] sm:$0xf] }
 0x15f   : > { %18312 = vst [vmem:[#allocation50_spill] sm:$0xff] %v14052_v12  ;;  %18313 = vst [vmem:[#allocation51_spill] sm:$0xff] %v14055_v13  ;;  %v14058_v14 = vld [vmem:[%s13994_s13 + $0x34] sm:$0xf]  ;;  %v14061_v15 = vld [vmem:[%s13994_s13 + $0x38] sm:$0xf] }
 0x160   : > { %18314 = vst [vmem:[#allocation52_spill] sm:$0xff] %v14058_v14  ;;  %18315 = vst [vmem:[#allocation53_spill] sm:$0xff] %v14061_v15  ;;  %v14064_v16 = vld [vmem:[%s13994_s13 + $0x3c] sm:$0xf]  ;;  %v14067_v17 = vld [vmem:[%s13994_s13 + $0x40] sm:$0xf] }
 0x161   : > { %18316 = vst [vmem:[#allocation54_spill] sm:$0xff] %v14064_v16  ;;  %18317 = vst [vmem:[#allocation55_spill] sm:$0xff] %v14067_v17  ;;  %v14070_v18 = vld [vmem:[%s13994_s13 + $0x44] sm:$0xf]  ;;  %v14073_v19 = vld [vmem:[%s13994_s13 + $0x48] sm:$0xf] }
 0x162   : > { %18318 = vst [vmem:[#allocation56_spill] sm:$0xff] %v14070_v18  ;;  %18319 = vst [vmem:[#allocation57_spill] sm:$0xff] %v14073_v19  ;;  %v14076_v20 = vld [vmem:[%s13994_s13 + $0x4c] sm:$0xf]  ;;  %v14079_v21 = vld [vmem:[%s13994_s13 + $0x50] sm:$0xf] }
 0x163   : > { %18320 = vst [vmem:[#allocation58_spill] sm:$0xff] %v14076_v20  ;;  %18321 = vst [vmem:[#allocation59_spill] sm:$0xff] %v14079_v21  ;;  %v14082_v22 = vld [vmem:[%s13994_s13 + $0x54] sm:$0xf]  ;;  %v14085_v23 = vld [vmem:[%s13994_s13 + $0x58] sm:$0xf] }
 0x164   : > { %18322 = vst [vmem:[#allocation60_spill] sm:$0xff] %v14082_v22  ;;  %18323 = vst [vmem:[#allocation61_spill] sm:$0xff] %v14085_v23  ;;  %v14088_v24 = vld [vmem:[%s13994_s13 + $0x5c] sm:$0xf]  ;;  %v14091_v25 = vld [vmem:[%s13994_s13 + $0x60] sm:$0xf] }
 0x165   : > { %18324 = vst [vmem:[#allocation62_spill] sm:$0xff] %v14088_v24  ;;  %18325 = vst [vmem:[#allocation63_spill] sm:$0xff] %v14091_v25  ;;  %v14094_v26 = vld [vmem:[%s13994_s13 + $0x64] sm:$0xf]  ;;  %v14097_v27 = vld [vmem:[%s13994_s13 + $0x68] sm:$0xf] }
 0x166   : > { %18326 = vst [vmem:[#allocation64_spill] sm:$0xff] %v14094_v26  ;;  %18327 = vst [vmem:[#allocation65_spill] sm:$0xff] %v14097_v27  ;;  %v14100_v28 = vld [vmem:[%s13994_s13 + $0x6c] sm:$0xf]  ;;  %v14103_v29 = vld [vmem:[%s13994_s13 + $0x70] sm:$0xf] }
 0x167   : > { %18328 = vst [vmem:[#allocation66_spill] sm:$0xff] %v14100_v28  ;;  %18329 = vst [vmem:[#allocation67_spill] sm:$0xff] %v14103_v29  ;;  %v14106_v30 = vld [vmem:[%s13994_s13 + $0x74] sm:$0xf]  ;;  %v14109_v31 = vld [vmem:[%s13994_s13 + $0x78] sm:$0xf] }
 0x168   : > { %18330 = vst [vmem:[#allocation68_spill] sm:$0xff] %v14106_v30  ;;  %18331 = vst [vmem:[#allocation69_spill] sm:$0xff] %v14109_v31  ;;  %v14112_v32 = vld [vmem:[%s13994_s13 + $0x7c] sm:$0xf]  ;;  %v14115_v33 = vld [vmem:[%s13994_s13 + $0x80] sm:$0xf] }
 0x169   : > { %18332 = vst [vmem:[#allocation70_spill] sm:$0xff] %v14112_v32  ;;  %18333 = vst [vmem:[#allocation71_spill] sm:$0xff] %v14115_v33  ;;  %v14118_v34 = vld [vmem:[%s13994_s13 + $0x84] sm:$0xf]  ;;  %v14121_v35 = vld [vmem:[%s13994_s13 + $0x88] sm:$0xf] }
 0x16a   : > { %18334 = vst [vmem:[#allocation72_spill] sm:$0xff] %v14118_v34  ;;  %18335 = vst [vmem:[#allocation73_spill] sm:$0xff] %v14121_v35  ;;  %v14124_v36 = vld [vmem:[%s13994_s13 + $0x8c] sm:$0xf]  ;;  %v14127_v37 = vld [vmem:[%s13994_s13 + $0x90] sm:$0xf] }
 0x16b   : > { %18336 = vst [vmem:[#allocation74_spill] sm:$0xff] %v14124_v36  ;;  %18337 = vst [vmem:[#allocation75_spill] sm:$0xff] %v14127_v37  ;;  %v14130_v38 = vld [vmem:[%s13994_s13 + $0x94] sm:$0xf]  ;;  %v14133_v39 = vld [vmem:[%s13994_s13 + $0x98] sm:$0xf] }
 0x16c   : > { %18338 = vst [vmem:[#allocation76_spill] sm:$0xff] %v14130_v38  ;;  %18339 = vst [vmem:[#allocation77_spill] sm:$0xff] %v14133_v39  ;;  %v14136_v40 = vld [vmem:[%s13994_s13 + $0x9c] sm:$0xf]  ;;  %v14139_v41 = vld [vmem:[%s13994_s13 + $0xa0] sm:$0xf] }
 0x16d   : > { %18340 = vst [vmem:[#allocation78_spill] sm:$0xff] %v14136_v40  ;;  %18341 = vst [vmem:[#allocation79_spill] sm:$0xff] %v14139_v41  ;;  %v14142_v42 = vld [vmem:[%s13994_s13 + $0xa4] sm:$0xf]  ;;  %v14145_v43 = vld [vmem:[%s13994_s13 + $0xa8] sm:$0xf] }
 0x16e   : > { %18342 = vst [vmem:[#allocation80_spill] sm:$0xff] %v14142_v42  ;;  %18343 = vst [vmem:[#allocation81_spill] sm:$0xff] %v14145_v43  ;;  %v14148_v44 = vld [vmem:[%s13994_s13 + $0xac] sm:$0xf]  ;;  %v14151_v45 = vld [vmem:[%s13994_s13 + $0xb0] sm:$0xf] }
 0x16f   : > { %18344 = vst [vmem:[#allocation82_spill] sm:$0xff] %v14148_v44  ;;  %18345 = vst [vmem:[#allocation83_spill] sm:$0xff] %v14151_v45  ;;  %v14154_v46 = vld [vmem:[%s13994_s13 + $0xb4] sm:$0xf]  ;;  %v14157_v47 = vld [vmem:[%s13994_s13 + $0xb8] sm:$0xf] }
 0x170   : > { %18346 = vst [vmem:[#allocation84_spill] sm:$0xff] %v14154_v46  ;;  %18347 = vst [vmem:[#allocation85_spill] sm:$0xff] %v14157_v47  ;;  %v14160_v48 = vld [vmem:[%s13994_s13 + $0xbc] sm:$0xf]  ;;  %v14163_v49 = vld [vmem:[%s13994_s13 + $0xc0] sm:$0xf] }
 0x171   : > { %18348 = vst [vmem:[#allocation86_spill] sm:$0xff] %v14160_v48  ;;  %18349 = vst [vmem:[#allocation87_spill] sm:$0xff] %v14163_v49  ;;  %v14166_v50 = vld [vmem:[%s13994_s13 + $0xc4] sm:$0xf]  ;;  %v14169_v51 = vld [vmem:[%s13994_s13 + $0xc8] sm:$0xf] }
 0x172   : > { %18350 = vst [vmem:[#allocation88_spill] sm:$0xff] %v14166_v50  ;;  %18351 = vst [vmem:[#allocation89_spill] sm:$0xff] %v14169_v51  ;;  %v14172_v52 = vld [vmem:[%s13994_s13 + $0xcc] sm:$0xf]  ;;  %v14175_v53 = vld [vmem:[%s13994_s13 + $0xd0] sm:$0xf] }
 0x173   : > { %18352 = vst [vmem:[#allocation90_spill] sm:$0xff] %v14172_v52  ;;  %18353 = vst [vmem:[#allocation91_spill] sm:$0xff] %v14175_v53  ;;  %v14178_v54 = vld [vmem:[%s13994_s13 + $0xd4] sm:$0xf]  ;;  %v14181_v55 = vld [vmem:[%s13994_s13 + $0xd8] sm:$0xf] }
 0x174   : > { %18354 = vst [vmem:[#allocation92_spill] sm:$0xff] %v14178_v54  ;;  %18355 = vst [vmem:[#allocation93_spill] sm:$0xff] %v14181_v55  ;;  %v14184_v56 = vld [vmem:[%s13994_s13 + $0xdc] sm:$0xf]  ;;  %v14187_v57 = vld [vmem:[%s13994_s13 + $0xe0] sm:$0xf] }
 0x175   : > { %18356 = vst [vmem:[#allocation94_spill] sm:$0xff] %v14184_v56  ;;  %18357 = vst [vmem:[#allocation95_spill] sm:$0xff] %v14187_v57  ;;  %v14190_v58 = vld [vmem:[%s13994_s13 + $0xe4] sm:$0xf]  ;;  %v14193_v59 = vld [vmem:[%s13994_s13 + $0xe8] sm:$0xf] }
 0x176   : > { %18358 = vst [vmem:[#allocation96_spill] sm:$0xff] %v14190_v58  ;;  %18359 = vst [vmem:[#allocation97_spill] sm:$0xff] %v14193_v59  ;;  %v14196_v60 = vld [vmem:[%s13994_s13 + $0xec] sm:$0xf]  ;;  %v14199_v61 = vld [vmem:[%s13994_s13 + $0xf0] sm:$0xf] }
 0x177   : > { %18360 = vst [vmem:[#allocation98_spill] sm:$0xff] %v14196_v60  ;;  %18361 = vst [vmem:[#allocation99_spill] sm:$0xff] %v14199_v61  ;;  %v14202_v62 = vld [vmem:[%s13994_s13 + $0xf4] sm:$0xf]  ;;  %v14205_v63 = vld [vmem:[%s13994_s13 + $0xf8] sm:$0xf] }
 0x178   : > { %18362 = vst [vmem:[#allocation100_spill] sm:$0xff] %v14202_v62  ;;  %18363 = vst [vmem:[#allocation101_spill] sm:$0xff] %v14205_v63  ;;  %v14208_v0 = vld [vmem:[%s13994_s13 + $0xfc] sm:$0xf]  ;;  %v14211_v57 = vld [vmem:[%s13994_s13 + $0x100] sm:$0xf] }
 0x179   : > { %18364 = vst [vmem:[#allocation102_spill] sm:$0xff] %v14208_v0  ;;  %18365 = vst [vmem:[#allocation103_spill] sm:$0xff] %v14211_v57  ;;  %v14214_v59 = vld [vmem:[%s13994_s13 + $0x104] sm:$0xf]  ;;  %v14217_v60 = vld [vmem:[%s13994_s13 + $0x108] sm:$0xf] }
 0x17a   : > { %18366 = vst [vmem:[#allocation104_spill] sm:$0xff] %v14214_v59  ;;  %18367 = vst [vmem:[#allocation105_spill] sm:$0xff] %v14217_v60  ;;  %v14220_v61 = vld [vmem:[%s13994_s13 + $0x10c] sm:$0xf]  ;;  %v14223_v62 = vld [vmem:[%s13994_s13 + $0x110] sm:$0xf] }
 0x17b   : > { %18368 = vst [vmem:[#allocation106_spill] sm:$0xff] %v14220_v61  ;;  %18369 = vst [vmem:[#allocation107_spill] sm:$0xff] %v14223_v62  ;;  %v14226_v63 = vld [vmem:[%s13994_s13 + $0x114] sm:$0xf]  ;;  %v14229_v0 = vld [vmem:[%s13994_s13 + $0x118] sm:$0xf] }
 0x17c   : > { %18370 = vst [vmem:[#allocation108_spill] sm:$0xff] %v14226_v63  ;;  %18371 = vst [vmem:[#allocation109_spill] sm:$0xff] %v14229_v0  ;;  %v14232_v57 = vld [vmem:[%s13994_s13 + $0x11c] sm:$0xf]  ;;  %v14235_v59 = vld [vmem:[%s13994_s13 + $0x120] sm:$0xf] }
 0x17d   : > { %18372 = vst [vmem:[#allocation110_spill] sm:$0xff] %v14232_v57  ;;  %18373 = vst [vmem:[#allocation111_spill] sm:$0xff] %v14235_v59  ;;  %v14238_v60 = vld [vmem:[%s13994_s13 + $0x124] sm:$0xf]  ;;  %v14241_v61 = vld [vmem:[%s13994_s13 + $0x128] sm:$0xf] }
 0x17e   : > { %18374 = vst [vmem:[#allocation112_spill] sm:$0xff] %v14238_v60  ;;  %18375 = vst [vmem:[#allocation113_spill] sm:$0xff] %v14241_v61  ;;  %v14244_v62 = vld [vmem:[%s13994_s13 + $0x12c] sm:$0xf]  ;;  %v14247_v63 = vld [vmem:[%s13994_s13 + $0x130] sm:$0xf] }
 0x17f   : > { %18376 = vst [vmem:[#allocation114_spill] sm:$0xff] %v14244_v62  ;;  %18377 = vst [vmem:[#allocation115_spill] sm:$0xff] %v14247_v63  ;;  %v14250_v0 = vld [vmem:[%s13994_s13 + $0x134] sm:$0xf]  ;;  %v14253_v57 = vld [vmem:[%s13994_s13 + $0x138] sm:$0xf] }
 0x180   : > { %18378 = vst [vmem:[#allocation116_spill] sm:$0xff] %v14250_v0  ;;  %18379 = vst [vmem:[#allocation117_spill] sm:$0xff] %v14253_v57  ;;  %v14256_v59 = vld [vmem:[%s13994_s13 + $0x13c] sm:$0xf]  ;;  %v14259_v60 = vld [vmem:[%s13994_s13 + $0x140] sm:$0xf] }
 0x181   : > { %18380 = vst [vmem:[#allocation118_spill] sm:$0xff] %v14256_v59  ;;  %18381 = vst [vmem:[#allocation119_spill] sm:$0xff] %v14259_v60  ;;  %v14262_v61 = vld [vmem:[%s13994_s13 + $0x144] sm:$0xf]  ;;  %v14265_v62 = vld [vmem:[%s13994_s13 + $0x148] sm:$0xf] }
 0x182   : > { %18382 = vst [vmem:[#allocation120_spill] sm:$0xff] %v14262_v61  ;;  %18383 = vst [vmem:[#allocation121_spill] sm:$0xff] %v14265_v62  ;;  %v14268_v63 = vld [vmem:[%s13994_s13 + $0x14c] sm:$0xf]  ;;  %v14271_v0 = vld [vmem:[%s13994_s13 + $0x150] sm:$0xf] }
 0x183   : > { %18384 = vst [vmem:[#allocation122_spill] sm:$0xff] %v14268_v63  ;;  %18385 = vst [vmem:[#allocation123_spill] sm:$0xff] %v14271_v0  ;;  %v14274_v57 = vld [vmem:[%s13994_s13 + $0x154] sm:$0xf]  ;;  %v14277_v59 = vld [vmem:[%s13994_s13 + $0x158] sm:$0xf] }
 0x184   : > { %18386 = vst [vmem:[#allocation124_spill] sm:$0xff] %v14274_v57  ;;  %18387 = vst [vmem:[#allocation125_spill] sm:$0xff] %v14277_v59  ;;  %v14280_v60 = vld [vmem:[%s13994_s13 + $0x15c] sm:$0xf]  ;;  %v14283_v61 = vld [vmem:[%s13994_s13 + $0x160] sm:$0xf] }
 0x185   : > { %18388 = vst [vmem:[#allocation126_spill] sm:$0xff] %v14280_v60  ;;  %18389 = vst [vmem:[#allocation127_spill] sm:$0xff] %v14283_v61  ;;  %v14286_v62 = vld [vmem:[%s13994_s13 + $0x164] sm:$0xf]  ;;  %v14289_v63 = vld [vmem:[%s13994_s13 + $0x168] sm:$0xf] }
 0x186   : > { %18390 = vst [vmem:[#allocation128_spill] sm:$0xff] %v14286_v62  ;;  %18391 = vst [vmem:[#allocation129_spill] sm:$0xff] %v14289_v63  ;;  %v14292_v0 = vld [vmem:[%s13994_s13 + $0x16c] sm:$0xf]  ;;  %v14295_v57 = vld [vmem:[%s13994_s13 + $0x170] sm:$0xf] }
 0x187   : > { %18392 = vst [vmem:[#allocation130_spill] sm:$0xff] %v14292_v0  ;;  %18393 = vst [vmem:[#allocation131_spill] sm:$0xff] %v14295_v57  ;;  %v14298_v59 = vld [vmem:[%s13994_s13 + $0x174] sm:$0xf]  ;;  %v14301_v60 = vld [vmem:[%s13994_s13 + $0x178] sm:$0xf] }
 0x188   : > { %18394 = vst [vmem:[#allocation132_spill] sm:$0xff] %v14298_v59  ;;  %18395 = vst [vmem:[#allocation133_spill] sm:$0xff] %v14301_v60  ;;  %v14304_v61 = vld [vmem:[%s13994_s13 + $0x17c] sm:$0xf]  ;;  %v14307_v62 = vld [vmem:[%s13994_s13 + $0x180] sm:$0xf] }
 0x189   : > { %18396 = vst [vmem:[#allocation134_spill] sm:$0xff] %v14304_v61  ;;  %18397 = vst [vmem:[#allocation135_spill] sm:$0xff] %v14307_v62  ;;  %v14310_v63 = vld [vmem:[%s13994_s13 + $0x184] sm:$0xf]  ;;  %v14313_v0 = vld [vmem:[%s13994_s13 + $0x188] sm:$0xf] }
 0x18a   : > { %18398 = vst [vmem:[#allocation136_spill] sm:$0xff] %v14310_v63  ;;  %18399 = vst [vmem:[#allocation137_spill] sm:$0xff] %v14313_v0  ;;  %v14316_v57 = vld [vmem:[%s13994_s13 + $0x18c] sm:$0xf]  ;;  %v14319_v59 = vld [vmem:[%s13994_s13 + $0x190] sm:$0xf] }
 0x18b   : > { %18400 = vst [vmem:[#allocation138_spill] sm:$0xff] %v14316_v57  ;;  %18401 = vst [vmem:[#allocation139_spill] sm:$0xff] %v14319_v59  ;;  %v14322_v60 = vld [vmem:[%s13994_s13 + $0x194] sm:$0xf]  ;;  %v14325_v61 = vld [vmem:[%s13994_s13 + $0x198] sm:$0xf] }
 0x18c   : > { %18402 = vst [vmem:[#allocation140_spill] sm:$0xff] %v14322_v60  ;;  %18403 = vst [vmem:[#allocation141_spill] sm:$0xff] %v14325_v61  ;;  %v14328_v62 = vld [vmem:[%s13994_s13 + $0x19c] sm:$0xf]  ;;  %v14331_v63 = vld [vmem:[%s13994_s13 + $0x1a0] sm:$0xf] }
 0x18d   : > { %18404 = vst [vmem:[#allocation142_spill] sm:$0xff] %v14328_v62  ;;  %18405 = vst [vmem:[#allocation143_spill] sm:$0xff] %v14331_v63  ;;  %v14334_v0 = vld [vmem:[%s13994_s13 + $0x1a4] sm:$0xf]  ;;  %v14337_v57 = vld [vmem:[%s13994_s13 + $0x1a8] sm:$0xf] }
 0x18e   : > { %18406 = vst [vmem:[#allocation144_spill] sm:$0xff] %v14334_v0  ;;  %18407 = vst [vmem:[#allocation145_spill] sm:$0xff] %v14337_v57  ;;  %v14340_v59 = vld [vmem:[%s13994_s13 + $0x1ac] sm:$0xf]  ;;  %v14343_v60 = vld [vmem:[%s13994_s13 + $0x1b0] sm:$0xf] }
 0x18f   : > { %18408 = vst [vmem:[#allocation146_spill] sm:$0xff] %v14340_v59  ;;  %18409 = vst [vmem:[#allocation147_spill] sm:$0xff] %v14343_v60  ;;  %v14346_v61 = vld [vmem:[%s13994_s13 + $0x1b4] sm:$0xf]  ;;  %v14349_v62 = vld [vmem:[%s13994_s13 + $0x1b8] sm:$0xf] }
 0x190   : > { %18410 = vst [vmem:[#allocation148_spill] sm:$0xff] %v14346_v61  ;;  %18411 = vst [vmem:[#allocation149_spill] sm:$0xff] %v14349_v62  ;;  %v14352_v63 = vld [vmem:[%s13994_s13 + $0x1bc] sm:$0xf]  ;;  %v14355_v0 = vld [vmem:[%s13996_s5] sm:$0xf] }
 0x191   : > { %18412 = vst [vmem:[#allocation150_spill] sm:$0xff] %v14352_v63  ;;  %18413 = vst [vmem:[#allocation151_spill] sm:$0xff] %v14355_v0  ;;  %v14358_v57 = vld [vmem:[%s13996_s5 + $0x4] sm:$0xf]  ;;  %v14361_v59 = vld [vmem:[%s13996_s5 + $0x8] sm:$0xf] }
 0x192   : > { %18414 = vst [vmem:[#allocation152_spill] sm:$0xff] %v14358_v57  ;;  %18415 = vst [vmem:[#allocation153_spill] sm:$0xff] %v14361_v59  ;;  %v14364_v60 = vld [vmem:[%s13996_s5 + $0xc] sm:$0xf]  ;;  %v14367_v61 = vld [vmem:[%s13996_s5 + $0x10] sm:$0xf] }
 0x193   : > { %18416 = vst [vmem:[#allocation154_spill] sm:$0xff] %v14364_v60  ;;  %18417 = vst [vmem:[#allocation155_spill] sm:$0xff] %v14367_v61  ;;  %v14370_v62 = vld [vmem:[%s13996_s5 + $0x14] sm:$0xf]  ;;  %v14373_v63 = vld [vmem:[%s13996_s5 + $0x18] sm:$0xf] }
 0x194   : > { %18418 = vst [vmem:[#allocation156_spill] sm:$0xff] %v14370_v62  ;;  %18419 = vst [vmem:[#allocation157_spill] sm:$0xff] %v14373_v63  ;;  %v14376_v58 = vld [vmem:[%s13996_s5 + $0x1c] sm:$0xf]  ;;  %v14379_v55 = vld [vmem:[%s13996_s5 + $0x20] sm:$0xf] }
 0x195   : > { %18420 = vst [vmem:[#allocation158_spill] sm:$0xff] %v14376_v58  ;;  %18421 = vst [vmem:[#allocation159_spill] sm:$0xff] %v14379_v55  ;;  %v14382_v56 = vld [vmem:[%s13996_s5 + $0x24] sm:$0xf]  ;;  %v14385_v53 = vld [vmem:[%s13996_s5 + $0x28] sm:$0xf] }
 0x196   : > { %18422 = vst [vmem:[#allocation160_spill] sm:$0xff] %v14382_v56  ;;  %18423 = vst [vmem:[#allocation161_spill] sm:$0xff] %v14385_v53  ;;  %v14388_v54 = vld [vmem:[%s13996_s5 + $0x2c] sm:$0xf]  ;;  %v14391_v51 = vld [vmem:[%s13996_s5 + $0x30] sm:$0xf] }
 0x197   : > { %18424 = vst [vmem:[#allocation162_spill] sm:$0xff] %v14388_v54  ;;  %18425 = vst [vmem:[#allocation163_spill] sm:$0xff] %v14391_v51  ;;  %v14394_v52 = vld [vmem:[%s13996_s5 + $0x34] sm:$0xf]  ;;  %v14397_v49 = vld [vmem:[%s13996_s5 + $0x38] sm:$0xf] }
 0x198   : > { %18426 = vst [vmem:[#allocation164_spill] sm:$0xff] %v14394_v52  ;;  %18427 = vst [vmem:[#allocation165_spill] sm:$0xff] %v14397_v49  ;;  %v14400_v50 = vld [vmem:[%s13996_s5 + $0x3c] sm:$0xf]  ;;  %v14403_v47 = vld [vmem:[%s13996_s5 + $0x40] sm:$0xf] }
 0x199   : > { %18428 = vst [vmem:[#allocation166_spill] sm:$0xff] %v14400_v50  ;;  %18429 = vst [vmem:[#allocation167_spill] sm:$0xff] %v14403_v47  ;;  %v14406_v48 = vld [vmem:[%s13996_s5 + $0x44] sm:$0xf]  ;;  %v14409_v45 = vld [vmem:[%s13996_s5 + $0x48] sm:$0xf] }
 0x19a   : > { %18430 = vst [vmem:[#allocation168_spill] sm:$0xff] %v14406_v48  ;;  %18431 = vst [vmem:[#allocation169_spill] sm:$0xff] %v14409_v45  ;;  %v14412_v46 = vld [vmem:[%s13996_s5 + $0x4c] sm:$0xf]  ;;  %v14415_v43 = vld [vmem:[%s13996_s5 + $0x50] sm:$0xf] }
 0x19b   : > { %18432 = vst [vmem:[#allocation170_spill] sm:$0xff] %v14412_v46  ;;  %18433 = vst [vmem:[#allocation171_spill] sm:$0xff] %v14415_v43  ;;  %v14418_v44 = vld [vmem:[%s13996_s5 + $0x54] sm:$0xf]  ;;  %v14421_v41 = vld [vmem:[%s13996_s5 + $0x58] sm:$0xf] }
 0x19c   : > { %18434 = vst [vmem:[#allocation172_spill] sm:$0xff] %v14418_v44  ;;  %18435 = vst [vmem:[#allocation173_spill] sm:$0xff] %v14421_v41  ;;  %v14424_v42 = vld [vmem:[%s13996_s5 + $0x5c] sm:$0xf]  ;;  %v14427_v39 = vld [vmem:[%s13996_s5 + $0x60] sm:$0xf] }
 0x19d   : > { %18436 = vst [vmem:[#allocation174_spill] sm:$0xff] %v14424_v42  ;;  %18437 = vst [vmem:[#allocation175_spill] sm:$0xff] %v14427_v39  ;;  %v14430_v40 = vld [vmem:[%s13996_s5 + $0x64] sm:$0xf]  ;;  %v14433_v37 = vld [vmem:[%s13996_s5 + $0x68] sm:$0xf] }
 0x19e   : > { %18438 = vst [vmem:[#allocation176_spill] sm:$0xff] %v14430_v40  ;;  %18439 = vst [vmem:[#allocation177_spill] sm:$0xff] %v14433_v37  ;;  %v14436_v38 = vld [vmem:[%s13996_s5 + $0x6c] sm:$0xf]  ;;  %v14439_v35 = vld [vmem:[%s13996_s5 + $0x70] sm:$0xf] }
 0x19f   : > { %18440 = vst [vmem:[#allocation178_spill] sm:$0xff] %v14436_v38  ;;  %18441 = vst [vmem:[#allocation179_spill] sm:$0xff] %v14439_v35  ;;  %v14442_v36 = vld [vmem:[%s13996_s5 + $0x74] sm:$0xf]  ;;  %v14445_v33 = vld [vmem:[%s13996_s5 + $0x78] sm:$0xf] }
 0x1a0   : > { %18442 = vst [vmem:[#allocation180_spill] sm:$0xff] %v14442_v36  ;;  %18443 = vst [vmem:[#allocation181_spill] sm:$0xff] %v14445_v33  ;;  %v14448_v34 = vld [vmem:[%s13996_s5 + $0x7c] sm:$0xf]  ;;  %v14451_v31 = vld [vmem:[%s13996_s5 + $0x80] sm:$0xf] }
 0x1a1   : > { %18444 = vst [vmem:[#allocation182_spill] sm:$0xff] %v14448_v34  ;;  %18445 = vst [vmem:[#allocation183_spill] sm:$0xff] %v14451_v31  ;;  %v14454_v32 = vld [vmem:[%s13996_s5 + $0x84] sm:$0xf]  ;;  %v14457_v29 = vld [vmem:[%s13996_s5 + $0x88] sm:$0xf] }
 0x1a2   : > { %18446 = vst [vmem:[#allocation184_spill] sm:$0xff] %v14454_v32  ;;  %18447 = vst [vmem:[#allocation185_spill] sm:$0xff] %v14457_v29  ;;  %v14460_v30 = vld [vmem:[%s13996_s5 + $0x8c] sm:$0xf]  ;;  %v14463_v27 = vld [vmem:[%s13996_s5 + $0x90] sm:$0xf] }
 0x1a3   : > { %18448 = vst [vmem:[#allocation186_spill] sm:$0xff] %v14460_v30  ;;  %18449 = vst [vmem:[#allocation187_spill] sm:$0xff] %v14463_v27  ;;  %v14466_v28 = vld [vmem:[%s13996_s5 + $0x94] sm:$0xf]  ;;  %v14469_v25 = vld [vmem:[%s13996_s5 + $0x98] sm:$0xf] }
 0x1a4   : > { %18450 = vst [vmem:[#allocation188_spill] sm:$0xff] %v14466_v28  ;;  %18451 = vst [vmem:[#allocation189_spill] sm:$0xff] %v14469_v25  ;;  %v14472_v26 = vld [vmem:[%s13996_s5 + $0x9c] sm:$0xf]  ;;  %v14475_v23 = vld [vmem:[%s13996_s5 + $0xa0] sm:$0xf] }
 0x1a5   : > { %18452 = vst [vmem:[#allocation190_spill] sm:$0xff] %v14472_v26  ;;  %18453 = vst [vmem:[#allocation191_spill] sm:$0xff] %v14475_v23  ;;  %v14478_v24 = vld [vmem:[%s13996_s5 + $0xa4] sm:$0xf]  ;;  %v14481_v21 = vld [vmem:[%s13996_s5 + $0xa8] sm:$0xf] }
 0x1a6   : > { %18454 = vst [vmem:[#allocation192_spill] sm:$0xff] %v14478_v24  ;;  %18455 = vst [vmem:[#allocation193_spill] sm:$0xff] %v14481_v21  ;;  %v14484_v22 = vld [vmem:[%s13996_s5 + $0xac] sm:$0xf]  ;;  %v14487_v19 = vld [vmem:[%s13996_s5 + $0xb0] sm:$0xf] }
 0x1a7   : > { %18456 = vst [vmem:[#allocation194_spill] sm:$0xff] %v14484_v22  ;;  %18457 = vst [vmem:[#allocation195_spill] sm:$0xff] %v14487_v19  ;;  %v14490_v20 = vld [vmem:[%s13996_s5 + $0xb4] sm:$0xf]  ;;  %v14493_v17 = vld [vmem:[%s13996_s5 + $0xb8] sm:$0xf] }
 0x1a8   : > { %18458 = vst [vmem:[#allocation196_spill] sm:$0xff] %v14490_v20  ;;  %18459 = vst [vmem:[#allocation197_spill] sm:$0xff] %v14493_v17  ;;  %v14496_v18 = vld [vmem:[%s13996_s5 + $0xbc] sm:$0xf]  ;;  %v14499_v15 = vld [vmem:[%s13996_s5 + $0xc0] sm:$0xf] }
 0x1a9   : > { %18460 = vst [vmem:[#allocation198_spill] sm:$0xff] %v14496_v18  ;;  %18461 = vst [vmem:[#allocation199_spill] sm:$0xff] %v14499_v15  ;;  %v14502_v16 = vld [vmem:[%s13996_s5 + $0xc4] sm:$0xf]  ;;  %v14505_v13 = vld [vmem:[%s13996_s5 + $0xc8] sm:$0xf] }
 0x1aa   : > { %18462 = vst [vmem:[#allocation200_spill] sm:$0xff] %v14502_v16  ;;  %18463 = vst [vmem:[#allocation201_spill] sm:$0xff] %v14505_v13  ;;  %v14508_v14 = vld [vmem:[%s13996_s5 + $0xcc] sm:$0xf]  ;;  %v14511_v11 = vld [vmem:[%s13996_s5 + $0xd0] sm:$0xf] }
 0x1ab   : > { %18464 = vst [vmem:[#allocation202_spill] sm:$0xff] %v14508_v14  ;;  %18465 = vst [vmem:[#allocation203_spill] sm:$0xff] %v14511_v11  ;;  %v14514_v12 = vld [vmem:[%s13996_s5 + $0xd4] sm:$0xf]  ;;  %v14517_v9 = vld [vmem:[%s13996_s5 + $0xd8] sm:$0xf] }
 0x1ac   : > { %18466 = vst [vmem:[#allocation204_spill] sm:$0xff] %v14514_v12  ;;  %18467 = vst [vmem:[#allocation205_spill] sm:$0xff] %v14517_v9  ;;  %v14520_v10 = vld [vmem:[%s13996_s5 + $0xdc] sm:$0xf]  ;;  %v14523_v7 = vld [vmem:[%s13996_s5 + $0xe0] sm:$0xf] }
 0x1ad   : > { %18468 = vst [vmem:[#allocation206_spill] sm:$0xff] %v14520_v10  ;;  %18469 = vst [vmem:[#allocation207_spill] sm:$0xff] %v14523_v7  ;;  %v14526_v8 = vld [vmem:[%s13996_s5 + $0xe4] sm:$0xf]  ;;  %v14529_v5 = vld [vmem:[%s13996_s5 + $0xe8] sm:$0xf] }
 0x1ae   : > { %18470 = vst [vmem:[#allocation208_spill] sm:$0xff] %v14526_v8  ;;  %18471 = vst [vmem:[#allocation209_spill] sm:$0xff] %v14529_v5  ;;  %v14532_v6 = vld [vmem:[%s13996_s5 + $0xec] sm:$0xf]  ;;  %v14535_v3 = vld [vmem:[%s13996_s5 + $0xf0] sm:$0xf] }
 0x1af   : > { %18472 = vst [vmem:[#allocation210_spill] sm:$0xff] %v14532_v6  ;;  %18473 = vst [vmem:[#allocation211_spill] sm:$0xff] %v14535_v3  ;;  %v14538_v4 = vld [vmem:[%s13996_s5 + $0xf4] sm:$0xf]  ;;  %v14541_v1 = vld [vmem:[%s13996_s5 + $0xf8] sm:$0xf] }
 0x1b0   : > { %18474 = vst [vmem:[#allocation212_spill] sm:$0xff] %v14538_v4  ;;  %18475 = vst [vmem:[#allocation213_spill] sm:$0xff] %v14541_v1  ;;  %v14544_v2 = vld [vmem:[%s13996_s5 + $0xfc] sm:$0xf]  ;;  %v14547_v7 = vld [vmem:[%s13996_s5 + $0x100] sm:$0xf] }
 0x1b1   : > { %18476 = vst [vmem:[#allocation214_spill] sm:$0xff] %v14544_v2  ;;  %18477 = vst [vmem:[#allocation215_spill] sm:$0xff] %v14547_v7  ;;  %v14550_v5 = vld [vmem:[%s13996_s5 + $0x104] sm:$0xf]  ;;  %v14553_v6 = vld [vmem:[%s13996_s5 + $0x108] sm:$0xf] }
 0x1b2   : > { %18478 = vst [vmem:[#allocation216_spill] sm:$0xff] %v14550_v5  ;;  %18479 = vst [vmem:[#allocation217_spill] sm:$0xff] %v14553_v6  ;;  %v14556_v3 = vld [vmem:[%s13996_s5 + $0x10c] sm:$0xf]  ;;  %v14559_v4 = vld [vmem:[%s13996_s5 + $0x110] sm:$0xf] }
 0x1b3   : > { %18480 = vst [vmem:[#allocation218_spill] sm:$0xff] %v14556_v3  ;;  %18481 = vst [vmem:[#allocation219_spill] sm:$0xff] %v14559_v4  ;;  %v14562_v1 = vld [vmem:[%s13996_s5 + $0x114] sm:$0xf]  ;;  %v14565_v2 = vld [vmem:[%s13996_s5 + $0x118] sm:$0xf] }
 0x1b4   : > { %18482 = vst [vmem:[#allocation220_spill] sm:$0xff] %v14562_v1  ;;  %18483 = vst [vmem:[#allocation221_spill] sm:$0xff] %v14565_v2  ;;  %v14568_v7 = vld [vmem:[%s13996_s5 + $0x11c] sm:$0xf]  ;;  %v14571_v5 = vld [vmem:[%s13996_s5 + $0x120] sm:$0xf] }
 0x1b5   : > { %18484 = vst [vmem:[#allocation222_spill] sm:$0xff] %v14568_v7  ;;  %18485 = vst [vmem:[#allocation223_spill] sm:$0xff] %v14571_v5  ;;  %v14574_v6 = vld [vmem:[%s13996_s5 + $0x124] sm:$0xf]  ;;  %v14577_v3 = vld [vmem:[%s13996_s5 + $0x128] sm:$0xf] }
 0x1b6   : > { %18486 = vst [vmem:[#allocation224_spill] sm:$0xff] %v14574_v6  ;;  %18487 = vst [vmem:[#allocation225_spill] sm:$0xff] %v14577_v3  ;;  %v14580_v4 = vld [vmem:[%s13996_s5 + $0x12c] sm:$0xf]  ;;  %v14583_v1 = vld [vmem:[%s13996_s5 + $0x130] sm:$0xf] }
 0x1b7   : > { %18488 = vst [vmem:[#allocation226_spill] sm:$0xff] %v14580_v4  ;;  %18489 = vst [vmem:[#allocation227_spill] sm:$0xff] %v14583_v1  ;;  %v14586_v2 = vld [vmem:[%s13996_s5 + $0x134] sm:$0xf]  ;;  %v14589_v7 = vld [vmem:[%s13996_s5 + $0x138] sm:$0xf] }
 0x1b8   : > { %18490 = vst [vmem:[#allocation228_spill] sm:$0xff] %v14586_v2  ;;  %18491 = vst [vmem:[#allocation229_spill] sm:$0xff] %v14589_v7  ;;  %v14592_v5 = vld [vmem:[%s13996_s5 + $0x13c] sm:$0xf]  ;;  %v14595_v6 = vld [vmem:[%s13996_s5 + $0x140] sm:$0xf] }
 0x1b9   : > { %18492 = vst [vmem:[#allocation230_spill] sm:$0xff] %v14592_v5  ;;  %18493 = vst [vmem:[#allocation231_spill] sm:$0xff] %v14595_v6  ;;  %v14598_v3 = vld [vmem:[%s13996_s5 + $0x144] sm:$0xf]  ;;  %v14601_v4 = vld [vmem:[%s13996_s5 + $0x148] sm:$0xf] }
 0x1ba   : > { %18494 = vst [vmem:[#allocation232_spill] sm:$0xff] %v14598_v3  ;;  %18495 = vst [vmem:[#allocation233_spill] sm:$0xff] %v14601_v4  ;;  %v14604_v1 = vld [vmem:[%s13996_s5 + $0x14c] sm:$0xf]  ;;  %v14607_v2 = vld [vmem:[%s13996_s5 + $0x150] sm:$0xf] }
 0x1bb   : > { %18496 = vst [vmem:[#allocation234_spill] sm:$0xff] %v14604_v1  ;;  %18497 = vst [vmem:[#allocation235_spill] sm:$0xff] %v14607_v2  ;;  %v14610_v7 = vld [vmem:[%s13996_s5 + $0x154] sm:$0xf]  ;;  %v14613_v5 = vld [vmem:[%s13996_s5 + $0x158] sm:$0xf] }
 0x1bc   : > { %18498 = vst [vmem:[#allocation236_spill] sm:$0xff] %v14610_v7  ;;  %18499 = vst [vmem:[#allocation237_spill] sm:$0xff] %v14613_v5  ;;  %v14616_v6 = vld [vmem:[%s13996_s5 + $0x15c] sm:$0xf]  ;;  %v14619_v3 = vld [vmem:[%s13996_s5 + $0x160] sm:$0xf] }
 0x1bd   : > { %18500 = vst [vmem:[#allocation238_spill] sm:$0xff] %v14616_v6  ;;  %18501 = vst [vmem:[#allocation239_spill] sm:$0xff] %v14619_v3  ;;  %v14622_v4 = vld [vmem:[%s13996_s5 + $0x164] sm:$0xf]  ;;  %v14625_v1 = vld [vmem:[%s13996_s5 + $0x168] sm:$0xf] }
 0x1be   : > { %18502 = vst [vmem:[#allocation240_spill] sm:$0xff] %v14622_v4  ;;  %18503 = vst [vmem:[#allocation241_spill] sm:$0xff] %v14625_v1  ;;  %v14628_v2 = vld [vmem:[%s13996_s5 + $0x16c] sm:$0xf]  ;;  %v14631_v7 = vld [vmem:[%s13996_s5 + $0x170] sm:$0xf] }
 0x1bf   : > { %18504 = vst [vmem:[#allocation242_spill] sm:$0xff] %v14628_v2  ;;  %18505 = vst [vmem:[#allocation243_spill] sm:$0xff] %v14631_v7  ;;  %v14634_v5 = vld [vmem:[%s13996_s5 + $0x174] sm:$0xf]  ;;  %v14637_v6 = vld [vmem:[%s13996_s5 + $0x178] sm:$0xf] }
 0x1c0   : > { %18506 = vst [vmem:[#allocation244_spill] sm:$0xff] %v14634_v5  ;;  %18507 = vst [vmem:[#allocation245_spill] sm:$0xff] %v14637_v6  ;;  %v14640_v3 = vld [vmem:[%s13996_s5 + $0x17c] sm:$0xf]  ;;  %v14643_v4 = vld [vmem:[%s13996_s5 + $0x180] sm:$0xf] }
 0x1c1   : > { %18508 = vst [vmem:[#allocation246_spill] sm:$0xff] %v14640_v3  ;;  %18509 = vst [vmem:[#allocation247_spill] sm:$0xff] %v14643_v4  ;;  %v14646_v1 = vld [vmem:[%s13996_s5 + $0x184] sm:$0xf]  ;;  %v14649_v2 = vld [vmem:[%s13996_s5 + $0x188] sm:$0xf] }
 0x1c2   : > { %18510 = vst [vmem:[#allocation248_spill] sm:$0xff] %v14646_v1  ;;  %18511 = vst [vmem:[#allocation249_spill] sm:$0xff] %v14649_v2  ;;  %v14652_v7 = vld [vmem:[%s13996_s5 + $0x18c] sm:$0xf]  ;;  %v14655_v5 = vld [vmem:[%s13996_s5 + $0x190] sm:$0xf] }
 0x1c3   : > { %18512 = vst [vmem:[#allocation250_spill] sm:$0xff] %v14652_v7  ;;  %18513 = vst [vmem:[#allocation251_spill] sm:$0xff] %v14655_v5  ;;  %v14658_v6 = vld [vmem:[%s13996_s5 + $0x194] sm:$0xf]  ;;  %v14661_v3 = vld [vmem:[%s13996_s5 + $0x198] sm:$0xf] }
 0x1c4   : > { %18514 = vst [vmem:[#allocation252_spill] sm:$0xff] %v14658_v6  ;;  %18515 = vst [vmem:[#allocation253_spill] sm:$0xff] %v14661_v3  ;;  %v14664_v4 = vld [vmem:[%s13996_s5 + $0x19c] sm:$0xf]  ;;  %v14667_v1 = vld [vmem:[%s13996_s5 + $0x1a0] sm:$0xf] }
 0x1c5   : > { %18516 = vst [vmem:[#allocation254_spill] sm:$0xff] %v14664_v4  ;;  %18517 = vst [vmem:[#allocation255_spill] sm:$0xff] %v14667_v1  ;;  %v14670_v2 = vld [vmem:[%s13996_s5 + $0x1a4] sm:$0xf]  ;;  %v14673_v7 = vld [vmem:[%s13996_s5 + $0x1a8] sm:$0xf] }
 0x1c6   : > { %18518 = vst [vmem:[#allocation256_spill] sm:$0xff] %v14670_v2  ;;  %18519 = vst [vmem:[#allocation257_spill] sm:$0xff] %v14673_v7  ;;  %v14676_v5 = vld [vmem:[%s13996_s5 + $0x1ac] sm:$0xf]  ;;  %v14679_v6 = vld [vmem:[%s13996_s5 + $0x1b0] sm:$0xf] }
 0x1c7   : > { %18520 = vst [vmem:[#allocation258_spill] sm:$0xff] %v14676_v5  ;;  %18521 = vst [vmem:[#allocation259_spill] sm:$0xff] %v14679_v6  ;;  %v14682_v3 = vld [vmem:[%s13996_s5 + $0x1b4] sm:$0xf]  ;;  %v14685_v4 = vld [vmem:[%s13996_s5 + $0x1b8] sm:$0xf] }
 0x1c8   : > { %18522 = vst [vmem:[#allocation260_spill] sm:$0xff] %v14682_v3  ;;  %18523 = vst [vmem:[#allocation261_spill] sm:$0xff] %v14685_v4  ;;  %v14688_v1 = vld [vmem:[%s13996_s5 + $0x1bc] sm:$0xf]  ;;  %v14691_v2 = vld [vmem:[%s14002_s10] sm:$0xff]  ;;  %vm1641_vm2 = vcmask 1042432  }
 0x1c9   : > { %18524 = vst [vmem:[#allocation262_spill] sm:$0xff] %v14688_v1  ;;  %18525 = vst [vmem:[#allocation263_spill] sm:$0xff] %v14691_v2  ;;  %v14694_v7 = vld [vmem:[%s14002_s10 + $0x8] sm:$0xff]  ;;  %v14697_v5 = vld [vmem:[%s14002_s10 + $0x10] sm:$0xff]  ;;  %vm1472_vm3 = vcmask 48128   ;;  %s15884_s24 = scalar_lea.vmem [#allocation21], %s9909_s22 }
 0x1ca   : > { %18526 = vst [vmem:[#allocation264_spill] sm:$0xff] %v14694_v7  ;;  %18527 = vst [vmem:[#allocation265_spill] sm:$0xff] %v14697_v5  ;;  %v14700_v6 = vld [vmem:[%s14002_s10 + $0x18] sm:$0xf]  ;;  %v14703_v3 = vld [vmem:[%s14002_s10 + $0x1c] sm:$0xff]  ;;  %s15934_s12 = smov 0  }
 0x1cb   : > { %18528 = vst [vmem:[#allocation266_spill] sm:$0xff] %v14700_v6  ;;  %18529 = vst [vmem:[#allocation267_spill] sm:$0xff] %v14703_v3  ;;  %v14706_v4 = vld [vmem:[%s14002_s10 + $0x24] sm:$0xff]  ;;  %v14709_v1 = vld [vmem:[%s14002_s10 + $0x2c] sm:$0xff] }
 0x1cc   : > { %18530 = vst [vmem:[#allocation268_spill] sm:$0xff] %v14706_v4  ;;  %18531 = vst [vmem:[#allocation269_spill] sm:$0xff] %v14709_v1  ;;  %v14712_v2 = vld [vmem:[%s14002_s10 + $0x34] sm:$0xf]  ;;  %v14715_v7 = vld [vmem:[%s14002_s10 + $0x38] sm:$0xff] }
 0x1cd   : > { %18532 = vst [vmem:[#allocation270_spill] sm:$0xff] %v14712_v2  ;;  %18533 = vst [vmem:[#allocation271_spill] sm:$0xff] %v14715_v7  ;;  %v14718_v5 = vld [vmem:[%s14002_s10 + $0x40] sm:$0xff]  ;;  %v14721_v6 = vld [vmem:[%s14002_s10 + $0x48] sm:$0xff] }
 0x1ce   : > { %18534 = vst [vmem:[#allocation272_spill] sm:$0xff] %v14718_v5  ;;  %18535 = vst [vmem:[#allocation273_spill] sm:$0xff] %v14721_v6  ;;  %v14724_v3 = vld [vmem:[%s14002_s10 + $0x50] sm:$0xf]  ;;  %v14727_v4 = vld [vmem:[%s14002_s10 + $0x54] sm:$0xff] }
 0x1cf   : > { %18536 = vst [vmem:[#allocation274_spill] sm:$0xff] %v14724_v3  ;;  %18537 = vst [vmem:[#allocation275_spill] sm:$0xff] %v14727_v4  ;;  %v14730_v1 = vld [vmem:[%s14002_s10 + $0x5c] sm:$0xff]  ;;  %v14733_v2 = vld [vmem:[%s14002_s10 + $0x64] sm:$0xff] }
 0x1d0   : > { %18538 = vst [vmem:[#allocation276_spill] sm:$0xff] %v14730_v1  ;;  %18539 = vst [vmem:[#allocation277_spill] sm:$0xff] %v14733_v2  ;;  %v14736_v7 = vld [vmem:[%s14002_s10 + $0x6c] sm:$0xf]  ;;  %v14739_v5 = vld [vmem:[%s14002_s10 + $0x70] sm:$0xff] }
 0x1d1   : > { %18540 = vst [vmem:[#allocation278_spill] sm:$0xff] %v14736_v7  ;;  %18541 = vst [vmem:[#allocation279_spill] sm:$0xff] %v14739_v5  ;;  %v14742_v6 = vld [vmem:[%s14002_s10 + $0x78] sm:$0xff]  ;;  %v14745_v3 = vld [vmem:[%s14002_s10 + $0x80] sm:$0xff] }
 0x1d2   : > { %18542 = vst [vmem:[#allocation280_spill] sm:$0xff] %v14742_v6  ;;  %18543 = vst [vmem:[#allocation281_spill] sm:$0xff] %v14745_v3  ;;  %v14748_v4 = vld [vmem:[%s14002_s10 + $0x88] sm:$0xf]  ;;  %v14751_v1 = vld [vmem:[%s14002_s10 + $0x8c] sm:$0xff] }
 0x1d3   : > { %18544 = vst [vmem:[#allocation282_spill] sm:$0xff] %v14748_v4  ;;  %18545 = vst [vmem:[#allocation283_spill] sm:$0xff] %v14751_v1  ;;  %v14754_v2 = vld [vmem:[%s14002_s10 + $0x94] sm:$0xff]  ;;  %v14757_v7 = vld [vmem:[%s14002_s10 + $0x9c] sm:$0xff] }
 0x1d4   : > { %18546 = vst [vmem:[#allocation284_spill] sm:$0xff] %v14754_v2  ;;  %18547 = vst [vmem:[#allocation285_spill] sm:$0xff] %v14757_v7  ;;  %v14760_v5 = vld [vmem:[%s14002_s10 + $0xa4] sm:$0xf]  ;;  %v14763_v6 = vld [vmem:[%s14002_s10 + $0xa8] sm:$0xff] }
 0x1d5   : > { %18548 = vst [vmem:[#allocation286_spill] sm:$0xff] %v14760_v5  ;;  %18549 = vst [vmem:[#allocation287_spill] sm:$0xff] %v14763_v6  ;;  %v14766_v3 = vld [vmem:[%s14002_s10 + $0xb0] sm:$0xff]  ;;  %v14769_v4 = vld [vmem:[%s14002_s10 + $0xb8] sm:$0xff] }
 0x1d6   : > { %18550 = vst [vmem:[#allocation288_spill] sm:$0xff] %v14766_v3  ;;  %18551 = vst [vmem:[#allocation289_spill] sm:$0xff] %v14769_v4  ;;  %v14772_v1 = vld [vmem:[%s14002_s10 + $0xc0] sm:$0xf]  ;;  %v14775_v2 = vld [vmem:[%s14002_s10 + $0xc4] sm:$0xff] }
 0x1d7   : > { %18552 = vst [vmem:[#allocation290_spill] sm:$0xff] %v14772_v1  ;;  %18553 = vst [vmem:[#allocation291_spill] sm:$0xff] %v14775_v2  ;;  %v14778_v7 = vld [vmem:[%s14002_s10 + $0xcc] sm:$0xff]  ;;  %v14781_v5 = vld [vmem:[%s14002_s10 + $0xd4] sm:$0xff] }
 0x1d8   : > { %18554 = vst [vmem:[#allocation292_spill] sm:$0xff] %v14778_v7  ;;  %18555 = vst [vmem:[#allocation293_spill] sm:$0xff] %v14781_v5  ;;  %v14784_v6 = vld [vmem:[%s14002_s10 + $0xdc] sm:$0xf]  ;;  %v14787_v3 = vld [vmem:[%s14002_s10 + $0xe0] sm:$0xff] }
 0x1d9   : > { %18556 = vst [vmem:[#allocation294_spill] sm:$0xff] %v14784_v6  ;;  %18557 = vst [vmem:[#allocation295_spill] sm:$0xff] %v14787_v3  ;;  %v14790_v4 = vld [vmem:[%s14002_s10 + $0xe8] sm:$0xff]  ;;  %v14793_v1 = vld [vmem:[%s14002_s10 + $0xf0] sm:$0xff] }
 0x1da   : > { %18558 = vst [vmem:[#allocation296_spill] sm:$0xff] %v14790_v4  ;;  %18559 = vst [vmem:[#allocation297_spill] sm:$0xff] %v14793_v1  ;;  %v14796_v2 = vld [vmem:[%s14002_s10 + $0xf8] sm:$0xf]  ;;  %v14799_v7 = vld [vmem:[%s14002_s10 + $0xfc] sm:$0xff] }
 0x1db   : > { %18560 = vst [vmem:[#allocation298_spill] sm:$0xff] %v14796_v2  ;;  %18561 = vst [vmem:[#allocation299_spill] sm:$0xff] %v14799_v7  ;;  %v14802_v5 = vld [vmem:[%s14002_s10 + $0x104] sm:$0xff]  ;;  %v14805_v6 = vld [vmem:[%s14002_s10 + $0x10c] sm:$0xff] }
 0x1dc   : > { %18562 = vst [vmem:[#allocation300_spill] sm:$0xff] %v14802_v5  ;;  %18563 = vst [vmem:[#allocation301_spill] sm:$0xff] %v14805_v6  ;;  %v14808_v3 = vld [vmem:[%s14002_s10 + $0x114] sm:$0xf]  ;;  %v14811_v4 = vld [vmem:[%s14002_s10 + $0x118] sm:$0xff] }
 0x1dd   : > { %18564 = vst [vmem:[#allocation302_spill] sm:$0xff] %v14808_v3  ;;  %18565 = vst [vmem:[#allocation303_spill] sm:$0xff] %v14811_v4  ;;  %v14814_v1 = vld [vmem:[%s14002_s10 + $0x120] sm:$0xff]  ;;  %v14817_v2 = vld [vmem:[%s14002_s10 + $0x128] sm:$0xff] }
 0x1de   : > { %18566 = vst [vmem:[#allocation304_spill] sm:$0xff] %v14814_v1  ;;  %18567 = vst [vmem:[#allocation305_spill] sm:$0xff] %v14817_v2  ;;  %v14820_v7 = vld [vmem:[%s14002_s10 + $0x130] sm:$0xf]  ;;  %v14823_v5 = vld [vmem:[%s14002_s10 + $0x134] sm:$0xff] }
 0x1df   : > { %18568 = vst [vmem:[#allocation306_spill] sm:$0xff] %v14820_v7  ;;  %18569 = vst [vmem:[#allocation307_spill] sm:$0xff] %v14823_v5  ;;  %v14826_v6 = vld [vmem:[%s14002_s10 + $0x13c] sm:$0xff]  ;;  %v14829_v3 = vld [vmem:[%s14002_s10 + $0x144] sm:$0xff] }
 0x1e0   : > { %18570 = vst [vmem:[#allocation308_spill] sm:$0xff] %v14826_v6  ;;  %18571 = vst [vmem:[#allocation309_spill] sm:$0xff] %v14829_v3  ;;  %v14832_v4 = vld [vmem:[%s14002_s10 + $0x14c] sm:$0xf]  ;;  %v14835_v1 = vld [vmem:[%s14002_s10 + $0x150] sm:$0xff] }
 0x1e1   : > { %18572 = vst [vmem:[#allocation310_spill] sm:$0xff] %v14832_v4  ;;  %18573 = vst [vmem:[#allocation311_spill] sm:$0xff] %v14835_v1  ;;  %v14838_v8 = vld [vmem:[%s14002_s10 + $0x158] sm:$0xff]  ;;  %v14841_v2 = vld [vmem:[%s14002_s10 + $0x160] sm:$0xff] }
 0x1e2   : > { %18574 = vst [vmem:[#allocation312_spill] sm:$0xff] %v14838_v8  ;;  %18575 = vst [vmem:[#allocation313_spill] sm:$0xff] %v14841_v2  ;;  %v14844_v7 = vld [vmem:[%s14002_s10 + $0x168] sm:$0xf]  ;;  %v14847_v5 = vld [vmem:[%s14002_s10 + $0x16c] sm:$0xff] }
 0x1e3   : > { %18576 = vst [vmem:[#allocation314_spill] sm:$0xff] %v14844_v7  ;;  %18577 = vst [vmem:[#allocation315_spill] sm:$0xff] %v14847_v5  ;;  %v14850_v6 = vld [vmem:[%s14002_s10 + $0x174] sm:$0xff]  ;;  %v14853_v9 = vld [vmem:[%s14002_s10 + $0x17c] sm:$0xff] }
 0x1e4   : > { %18578 = vst [vmem:[#allocation316_spill] sm:$0xff] %v14850_v6  ;;  %18579 = vst [vmem:[#allocation317_spill] sm:$0xff] %v14853_v9  ;;  %v14856_v3 = vld [vmem:[%s14002_s10 + $0x184] sm:$0xf]  ;;  %v14859_v4 = vld [vmem:[%s14002_s10 + $0x188] sm:$0xff] }
 0x1e5   : > { %18580 = vst [vmem:[#allocation318_spill] sm:$0xff] %v14856_v3  ;;  %18581 = vst [vmem:[#allocation319_spill] sm:$0xff] %v14859_v4  ;;  %v14862_v1 = vld [vmem:[%s14002_s10 + $0x190] sm:$0xff]  ;;  %v14865_v8 = vld [vmem:[%s14002_s10 + $0x198] sm:$0xff] }
 0x1e6   : > { %18582 = vst [vmem:[#allocation320_spill] sm:$0xff] %v14862_v1  ;;  %18583 = vst [vmem:[#allocation321_spill] sm:$0xff] %v14865_v8  ;;  %v14868_v2 = vld [vmem:[%s14002_s10 + $0x1a0] sm:$0xf]  ;;  %v14871_v7 = vld [vmem:[%s14002_s10 + $0x1a4] sm:$0xff] }
 0x1e7   : > { %18584 = vst [vmem:[#allocation322_spill] sm:$0xff] %v14868_v2  ;;  %18585 = vst [vmem:[#allocation323_spill] sm:$0xff] %v14871_v7  ;;  %v14874_v10 = vld [vmem:[%s14002_s10 + $0x1ac] sm:$0xff]  ;;  %v14877_v5 = vld [vmem:[%s14002_s10 + $0x1b4] sm:$0xff] }
 0x1e8   : > { %18586 = vst [vmem:[#allocation324_spill] sm:$0xff] %v14874_v10  ;;  %18587 = vst [vmem:[#allocation325_spill] sm:$0xff] %v14877_v5  ;;  %v14880_v6 = vld [vmem:[%s14002_s10 + $0x1bc] sm:$0xf]  ;;  %v1080_v9 = vld [vmem:[#allocation13] sm:$0xff] }
 0x1e9   : > { %18588 = vst [vmem:[#allocation326_spill] sm:$0xff] %v14880_v6  ;;  %v600_v3 = vld [vmem:[%s13979_s19] sm:$0xff]  ;;  %v601_v11 = vld [vmem:[%s13979_s19 + $0x8] sm:$0xff]  ;;  %v9917_v12 = vcombine.high %v1080_v9, %v1080_v9  ;;  %v9916_v4 = vcombine.low %v1080_v9, %v1080_v9  ;;  %v11953_v15 = vld [vmem:[#allocation13 + $0x10] ss:$0 sps:$4 sm:$0xff]  }
 0x1ea   : > { %v612_v13 = vld [vmem:[%s13979_s19 + $0x60] sm:$0xff]  ;;  %v613_v1 = vld [vmem:[%s13979_s19 + $0x68] sm:$0xff]  ;;  %v616_v6 = vpack.c.bf16 %v601_v11, %v600_v3  ;;  %v1460_v9 = vld [vmem:[#allocation16] sm:$0x77] }
 0x1eb   : > { %v1081_v14 = vld [vmem:[#allocation13 + $0x8] sm:$0xff]  ;;  %9921 = vmatprep.subr.msk.bf16.mxu0 %vm1121_vm0, %v9917_v12  ;;  %11528 = vmatprep.subr.msk.bf16.mxu1 %vm1121_vm0, %v9917_v12  ;;  %v1123_v5 = vsel %vm1121_vm0, %v9916_v4, 0  ;;  %v14889_v10 = vpack.c.bf16 %v613_v1, %v612_v13  ;;  %v1135_v12 = vsel %vm1121_vm0, %v11953_v15, 0  ;;  %v9948_v7 = vcombine.high %v1460_v9, %v1460_v9  ;;  %v602_v1 = vld [vmem:[%s13979_s19 + $0x10] sm:$0xff]  ;;  %v1461_v3 = vld [vmem:[#allocation16 + $0x8] sm:$0x77] }
 0x1ec   : > { %v9919_v8 = vcombine.high %v1081_v14, %v1081_v14  ;;  %v9918_v2 = vcombine.low %v1081_v14, %v1081_v14  ;;  %1138 = vmatpush1.bf16.msra.mxu0 %v1123_v5  ;;  %11529 = vmatpush1.bf16.msra.mxu1 %v1123_v5  ;;  %v603_v4 = vld [vmem:[%s13979_s19 + $0x18] sm:$0xff]  ;;  %v614_v5 = vld [vmem:[%s13979_s19 + $0x70] sm:$0xff]  ;;  %v9950_v11 = vcombine.high %v1461_v3, %v1461_v3 }
 0x1ed   : > { %11674 = vmatprep.subr.msk.bf16.mxu0 %vm1121_vm0, %v11953_v15  ;;  %v617_v13 = vpack.c.bf16 %v603_v4, %v602_v1  ;;  %v9947_v16 = vcombine.low %v1460_v9, %v1460_v9  ;;  %v606_v1 = vld [vmem:[%s13979_s19 + $0x30] sm:$0xff]  ;;  %v607_v4 = vld [vmem:[%s13979_s19 + $0x38] sm:$0xff]  ;;  %v609_v9 = vld [vmem:[%s13979_s19 + $0x48] sm:$0xff] }
 0x1ee   : > { %9930 = vmatprep.subr.msk.bf16.mxu1 %vm1121_vm0, %v9919_v8  ;;  %v1129_v14 = vsel %vm1121_vm0, %v9918_v2, 0  ;;  %v615_v8 = vld [vmem:[%s13979_s19 + $0x78] sm:$0xff]  ;;  %v18589_v2 = vmov 0  }
 0x1ef   : > { %9922 = vmatmul.mubr.msk.bf16.vlgmr.msra.gmra.mrb[0].mxu0 %vm1096_vm1, %v616_v6  ;;  %9928 = vmatmul.mubr.msk.bf16.vlgmr.msra.gmra.mrb[0].mxu1 %vm1096_vm1, %v14889_v10  ;;  %v623_v15 = vpack.c.bf16 %v615_v8, %v614_v5  ;;  %v619_v5 = vpack.c.bf16 %v607_v4, %v606_v1  ;;  %v9949_v1 = vcombine.low %v1461_v3, %v1461_v3  ;;  %v625_v3 = vld [vmem:[%s13987_s18 + $0x8] sm:$0xff] }
 0x1f0   : > { %1251 = vmatpush1.bf16.msra.mxu1 %v1129_v14  ;;  %10999 = vmatpush3.bf16.msra.mxu0 %v1135_v12  ;;  %v604_v14 = vld [vmem:[%s13979_s19 + $0x20] sm:$0xff]  ;;  %v605_v12 = vld [vmem:[%s13979_s19 + $0x28] sm:$0xff] }
 0x1f1   : > { %1179 = vmatprep.mubr.bf16.mxu0 %v18589_v2  ;;  %1239 = vmatprep.mubr.bf16.mxu1 %v18589_v2  ;;  %v1649_v4 = vsel %vm1641_vm2, %v9949_v1, 0  ;;  %v633_v1 = vld [vmem:[%s13987_s18 + $0x48] sm:$0xff] }
 0x1f2   : > { %9951 = vmatprep.subr.msk.bf16.mxu1 %vm1641_vm2, %v9948_v7  ;;  %10008 = vmatprep.subr.msk.bf16.mxu0 %vm1641_vm2, %v9950_v11  ;;  %v618_v7 = vpack.c.bf16 %v605_v12, %v604_v14  ;;  %v1643_v11 = vsel %vm1641_vm2, %v9947_v16, 0  ;;  %v608_v16 = vld [vmem:[%s13979_s19 + $0x40] sm:$0xff]  ;;  %v610_v14 = vld [vmem:[%s13979_s19 + $0x50] sm:$0xff]  ;;  %v611_v12 = vld [vmem:[%s13979_s19 + $0x58] sm:$0xff] }
 0x1f3   : > { %v620_v8 = vpack.c.bf16 %v609_v9, %v608_v16  ;;  %v629_v16 = vld [vmem:[%s13987_s18 + $0x28] sm:$0xff] }
 0x1f7   : > { %9923 = vmatmul.mubr.msk.bf16.gmra.mrb[4].mxu0 %vm1096_vm1, %v617_v13  ;;  %9929 = vmatmul.mubr.msk.bf16.gmra.mrb[4].mxu1 %vm1096_vm1, %v623_v15 }
 0x1f8   : > { %1189 = vmatprep.mubr.bf16.mxu0 %v18589_v2  ;;  %1282 = vmatprep.mubr.bf16.mxu1 %v18589_v2 }
 0x1ff   : > { %9924 = vmatmul.mubr.msk.bf16.gmra.mrb[8].mxu0 %vm1096_vm1, %v618_v7  ;;  %9931 = vmatmul.mubr.msk.bf16.vlgmr.msra.gmra.mrb[8].mxu1 %vm1096_vm1, %v616_v6 }
 0x200   : > { %1655 = vmatpush1.bf16.msra.mxu1 %v1643_v11  ;;  %1199 = vmatprep.mubr.bf16.mxu0 %v18589_v2  ;;  %v621_v11 = vpack.c.bf16 %v611_v12, %v610_v14  ;;  %v631_v14 = vld [vmem:[%s13987_s18 + $0x38] sm:$0xff] }
 0x201   : > { %1292 = vmatprep.mubr.bf16.mxu1 %v18589_v2 }
 0x207   : > { %9925 = vmatmul.mubr.msk.bf16.gmra.mrb[12].mxu0 %vm1096_vm1, %v619_v5  ;;  %9932 = vmatmul.mubr.msk.bf16.gmra.mrb[12].mxu1 %vm1096_vm1, %v617_v13 }
 0x208   : > { %1209 = vmatprep.mubr.bf16.mxu0 %v18589_v2  ;;  %1302 = vmatprep.mubr.bf16.mxu1 %v18589_v2 }
 0x20f   : > { %9926 = vmatmul.mubr.msk.bf16.gmra.mrb[16].mxu0 %vm1096_vm1, %v620_v8  ;;  %9933 = vmatmul.mubr.msk.bf16.gmra.mrb[16].mxu1 %vm1096_vm1, %v618_v7 }
 0x210   : > { %1219 = vmatprep.mubr.bf16.mxu0 %v18589_v2  ;;  %1312 = vmatprep.mubr.bf16.mxu1 %v18589_v2 }
 0x217   : > { %9927 = vmatmul.mubr.msk.bf16.gmra.mrb[20].mxu0 %vm1096_vm1, %v621_v11  ;;  %9934 = vmatmul.mubr.msk.bf16.gmra.mrb[20].mxu1 %vm1096_vm1, %v619_v5 }
 0x218   : > { %1322 = vmatprep.mubr.bf16.mxu1 %v18589_v2  ;;  %11000 = vmatprep.mubr.msk.bf16.mxu0 %vm1096_vm1, %v616_v6  ;;  %v624_v6 = vld [vmem:[%s13987_s18] sm:$0xff] }
 0x21f   : > { %9935 = vmatmul.mubr.msk.bf16.gmra.mrb[24].mxu1 %vm1096_vm1, %v620_v8  ;;  %11001 = vmatmul.mubr.msk.bf16.vlgmr.msra.gmra.mrb[24].mxu0 %vm1096_vm1, %v617_v13  ;;  %v736_v13 = vpack.c.bf16 %v625_v3, %v624_v6  ;;  %v634_v6 = vld [vmem:[%s13987_s18 + $0x50] sm:$0xff]  ;;  %v635_v3 = vld [vmem:[%s13987_s18 + $0x58] sm:$0xff] }
 0x220   : > { %2248 = vmatpush1.bf16.msra.mxu0 %v1649_v4  ;;  %1332 = vmatprep.mubr.bf16.mxu1 %v18589_v2 }
 0x221   : > { %11004 = vmatprep.mubr.msk.bf16.mxu0 %vm1096_vm1, %v618_v7 }
 0x227   : > { %9936 = vmatmul.mubr.msk.bf16.gmra.mrb[28].mxu1 %vm1096_vm1, %v621_v11  ;;  %11005 = vmatmul.mubr.msk.bf16.gmra.mrb[28].mxu0 %vm1096_vm1, %v619_v5  ;;  %v628_v5 = vld [vmem:[%s13987_s18 + $0x20] sm:$0xff] }
 0x228   : > { %1342 = vmatprep.mubr.bf16.mxu1 %v18589_v2  ;;  %11008 = vmatprep.mubr.msk.bf16.mxu0 %vm1096_vm1, %v620_v8  ;;  %v738_v9 = vpack.c.bf16 %v629_v16, %v628_v5  ;;  %v630_v8 = vld [vmem:[%s13987_s18 + $0x30] sm:$0xff]  ;;  %v639_v16 = vld [vmem:[%s13987_s18 + $0x78] sm:$0xff] }
 0x229   : > { %v739_v12 = vpack.c.bf16 %v631_v14, %v630_v8  ;;  %v638_v5 = vld [vmem:[%s13987_s18 + $0x70] sm:$0xff]  ;;  %v640_v8 = vld [vmem:[%s13987_s18 + $0x80] sm:$0xff]  ;;  %v641_v14 = vld [vmem:[%s13987_s18 + $0x88] sm:$0xff] }
 0x22f   : > { %9937 = vmatmul.mubr.msk.bf16.gmra.mrb[32].mxu1 %vm1096_vm1, %v14889_v10  ;;  %11009 = vmatmul.mubr.msk.bf16.gmra.mrb[32].mxu0 %vm1096_vm1, %v621_v11  ;;  %v632_v11 = vld [vmem:[%s13987_s18 + $0x40] sm:$0xff] }
 0x230   : > { %1352 = vmatprep.mubr.bf16.mxu1 %v18589_v2  ;;  %11012 = vmatprep.mubr.msk.bf16.mxu0 %vm1096_vm1, %v14889_v10  ;;  %v626_v10 = vld [vmem:[%s13987_s18 + $0x10] sm:$0xff]  ;;  %v740_v4 = vpack.c.bf16 %v633_v1, %v632_v11  ;;  %v643_v1 = vld [vmem:[%s13987_s18 + $0x98] sm:$0xff] }
 0x231   : > { %v642_v11 = vld [vmem:[%s13987_s18 + $0x90] sm:$0xff] }
 0x237   : > { %9938 = vmatmul.mubr.msk.bf16.gmra.mrb[36].mxu1 %vm1096_vm1, %v623_v15  ;;  %11013 = vmatmul.mubr.msk.bf16.gmra.mrb[36].mxu0 %vm1096_vm1, %v623_v15  ;;  %v627_v15 = vld [vmem:[%s13987_s18 + $0x18] sm:$0xff] }
 0x238   : > { %1686 = vmatprep.mubr.bf16.mxu1 %v18589_v2  ;;  %2279 = vmatprep.mubr.bf16.mxu0 %v18589_v2  ;;  %v737_v7 = vpack.c.bf16 %v627_v15, %v626_v10  ;;  %v636_v10 = vld [vmem:[%s13987_s18 + $0x60] sm:$0xff]  ;;  %v637_v15 = vld [vmem:[%s13987_s18 + $0x68] sm:$0xff] }
 0x23f   : > { %9952 = vmatmul.mubr.msk.bf16.vlgmr.msra.gmra.mrb[40].mxu1 %vm1472_vm3, %v736_v13  ;;  %10009 = vmatmul.mubr.msk.bf16.vlgmr.msra.gmra.mrb[40].mxu0 %vm1472_vm3, %v736_v13  ;;  %v741_v13 = vpack.c.bf16 %v635_v3, %v634_v6  ;;  %v644_v6 = vld [vmem:[%s13987_s18 + $0xa0] sm:$0xff]  ;;  %v645_v3 = vld [vmem:[%s13987_s18 + $0xa8] sm:$0xff] }
 0x240   : > { %1696 = vmatprep.mubr.bf16.mxu1 %v18589_v2  ;;  %2289 = vmatprep.mubr.bf16.mxu0 %v18589_v2 }
 0x247   : > { %9953 = vmatmul.mubr.msk.bf16.gmra.mrb[44].mxu1 %vm1472_vm3, %v737_v7  ;;  %10010 = vmatmul.mubr.msk.bf16.gmra.mrb[44].mxu0 %vm1472_vm3, %v737_v7  ;;  %v742_v7 = vpack.c.bf16 %v637_v15, %v636_v10  ;;  %v646_v10 = vld [vmem:[%s13987_s18 + $0xb0] sm:$0xff]  ;;  %v647_v15 = vld [vmem:[%s13987_s18 + $0xb8] sm:$0xff] }
 0x248   : > { %1706 = vmatprep.mubr.bf16.mxu1 %v18589_v2  ;;  %2299 = vmatprep.mubr.bf16.mxu0 %v18589_v2 }
 0x24f   : > { %9954 = vmatmul.mubr.msk.bf16.gmra.mrb[48].mxu1 %vm1472_vm3, %v738_v9  ;;  %10011 = vmatmul.mubr.msk.bf16.gmra.mrb[48].mxu0 %vm1472_vm3, %v738_v9  ;;  %v743_v9 = vpack.c.bf16 %v639_v16, %v638_v5  ;;  %v648_v5 = vld [vmem:[%s13987_s18 + $0xc0] sm:$0xff]  ;;  %v649_v16 = vld [vmem:[%s13987_s18 + $0xc8] sm:$0xff] }
 0x250   : > { %1716 = vmatprep.mubr.bf16.mxu1 %v18589_v2  ;;  %2309 = vmatprep.mubr.bf16.mxu0 %v18589_v2 }
 0x257   : > { %9955 = vmatmul.mubr.msk.bf16.gmra.mrb[52].mxu1 %vm1472_vm3, %v739_v12  ;;  %10012 = vmatmul.mubr.msk.bf16.gmra.mrb[52].mxu0 %vm1472_vm3, %v739_v12  ;;  %v744_v12 = vpack.c.bf16 %v641_v14, %v640_v8  ;;  %v650_v8 = vld [vmem:[%s13987_s18 + $0xd0] sm:$0xff]  ;;  %v651_v14 = vld [vmem:[%s13987_s18 + $0xd8] sm:$0xff] }
 0x258   : > { %1726 = vmatprep.mubr.bf16.mxu1 %v18589_v2  ;;  %2319 = vmatprep.mubr.bf16.mxu0 %v18589_v2 }
 0x25f   : > { %9956 = vmatmul.mubr.msk.bf16.gmra.mrb[56].mxu1 %vm1472_vm3, %v740_v4  ;;  %10013 = vmatmul.mubr.msk.bf16.gmra.mrb[56].mxu0 %vm1472_vm3, %v740_v4  ;;  %v745_v4 = vpack.c.bf16 %v643_v1, %v642_v11  ;;  %v652_v11 = vld [vmem:[%s13987_s18 + $0xe0] sm:$0xff]  ;;  %v653_v1 = vld [vmem:[%s13987_s18 + $0xe8] sm:$0xff] }
 0x260   : > { %1736 = vmatprep.mubr.bf16.mxu1 %v18589_v2  ;;  %2329 = vmatprep.mubr.bf16.mxu0 %v18589_v2 }
 0x267   : > { %9957 = vmatmul.mubr.msk.bf16.gmra.mrb[60].mxu1 %vm1472_vm3, %v741_v13  ;;  %10014 = vmatmul.mubr.msk.bf16.gmra.mrb[60].mxu0 %vm1472_vm3, %v741_v13  ;;  %v746_v13 = vpack.c.bf16 %v645_v3, %v644_v6  ;;  %v654_v6 = vld [vmem:[%s13987_s18 + $0xf0] sm:$0xff]  ;;  %v655_v3 = vld [vmem:[%s13987_s18 + $0xf8] sm:$0xff] }
 0x268   : > { %1746 = vmatprep.mubr.bf16.mxu1 %v18589_v2  ;;  %2339 = vmatprep.mubr.bf16.mxu0 %v18589_v2 }
 0x26f   : > { %9958 = vmatmul.mubr.msk.bf16.gmra.mrb[64].mxu1 %vm1472_vm3, %v742_v7  ;;  %10015 = vmatmul.mubr.msk.bf16.gmra.mrb[64].mxu0 %vm1472_vm3, %v742_v7  ;;  %v747_v7 = vpack.c.bf16 %v647_v15, %v646_v10  ;;  %v656_v10 = vld [vmem:[%s13987_s18 + $0x100] sm:$0xff]  ;;  %v657_v15 = vld [vmem:[%s13987_s18 + $0x108] sm:$0xff] }
 0x270   : > { %1756 = vmatprep.mubr.bf16.mxu1 %v18589_v2  ;;  %2349 = vmatprep.mubr.bf16.mxu0 %v18589_v2 }
 0x277   : > { %9959 = vmatmul.mubr.msk.bf16.gmra.mrb[68].mxu1 %vm1472_vm3, %v743_v9  ;;  %10016 = vmatmul.mubr.msk.bf16.gmra.mrb[68].mxu0 %vm1472_vm3, %v743_v9  ;;  %v748_v9 = vpack.c.bf16 %v649_v16, %v648_v5  ;;  %v15054_v5 = vld [vmem:[#allocation15] ss:$0 sm:$0xff] }
 0x278   : > { %1766 = vmatprep.mubr.bf16.mxu1 %v18589_v2  ;;  %2359 = vmatprep.mubr.bf16.mxu0 %v18589_v2  ;;  %v658_v16 = vld [vmem:[%s13987_s18 + $0x110] sm:$0xff] }
 0x27f   : > { %9960 = vmatmul.mubr.msk.bf16.gmra.mrb[72].mxu1 %vm1472_vm3, %v744_v12  ;;  %10017 = vmatmul.mubr.msk.bf16.gmra.mrb[72].mxu0 %vm1472_vm3, %v744_v12  ;;  %v749_v12 = vpack.c.bf16 %v651_v14, %v650_v8  ;;  %v15060_v8 = vld [vmem:[#allocation19 + $0x2] ss:$0 sm:$0xff] }
 0x280   : > { %1776 = vmatprep.mubr.bf16.mxu1 %v18589_v2  ;;  %2369 = vmatprep.mubr.bf16.mxu0 %v18589_v2 }
 0x287   : > { %9961 = vmatmul.mubr.msk.bf16.gmra.mrb[76].mxu1 %vm1472_vm3, %v745_v4  ;;  %10018 = vmatmul.mubr.msk.bf16.gmra.mrb[76].mxu0 %vm1472_vm3, %v745_v4  ;;  %v750_v4 = vpack.c.bf16 %v653_v1, %v652_v11 }
 0x288   : > { %1786 = vmatprep.mubr.bf16.mxu1 %v18589_v2  ;;  %2379 = vmatprep.mubr.bf16.mxu0 %v18589_v2 }
 0x28f   : > { %9962 = vmatmul.mubr.msk.bf16.gmra.mrb[80].mxu1 %vm1472_vm3, %v746_v13  ;;  %10019 = vmatmul.mubr.msk.bf16.gmra.mrb[80].mxu0 %vm1472_vm3, %v746_v13  ;;  %v751_v13 = vpack.c.bf16 %v655_v3, %v654_v6 }
 0x290   : > { %1796 = vmatprep.mubr.bf16.mxu1 %v18589_v2  ;;  %2389 = vmatprep.mubr.bf16.mxu0 %v18589_v2 }
 0x297   : > { %9963 = vmatmul.mubr.msk.bf16.gmra.mrb[84].mxu1 %vm1472_vm3, %v747_v7  ;;  %10020 = vmatmul.mubr.msk.bf16.gmra.mrb[84].mxu0 %vm1472_vm3, %v747_v7  ;;  %v752_v7 = vpack.c.bf16 %v657_v15, %v656_v10 }
 0x298   : > { %1806 = vmatprep.mubr.bf16.mxu1 %v18589_v2  ;;  %2399 = vmatprep.mubr.bf16.mxu0 %v18589_v2 }
 0x29f   : > { %9964 = vmatmul.mubr.msk.bf16.gmra.mrb[88].mxu1 %vm1472_vm3, %v748_v9  ;;  %10021 = vmatmul.mubr.msk.bf16.gmra.mrb[88].mxu0 %vm1472_vm3, %v748_v9  ;;  %v659_v9 = vld [vmem:[%s13987_s18 + $0x118] sm:$0xff] }
 0x2a0   : > { %1816 = vmatprep.mubr.bf16.mxu1 %v18589_v2  ;;  %2409 = vmatprep.mubr.bf16.mxu0 %v18589_v2  ;;  %v753_v3 = vpack.c.bf16 %v659_v9, %v658_v16 }
 0x2a7   : > { %9965 = vmatmul.mubr.msk.bf16.gmra.mrb[92].mxu1 %vm1472_vm3, %v749_v12  ;;  %10022 = vmatmul.mubr.msk.bf16.gmra.mrb[92].mxu0 %vm1472_vm3, %v749_v12 }
 0x2a8   : > { %1826 = vmatprep.mubr.bf16.mxu1 %v18589_v2  ;;  %2419 = vmatprep.mubr.bf16.mxu0 %v18589_v2 }
 0x2af   : > { %9966 = vmatmul.mubr.msk.bf16.gmra.mrb[96].mxu1 %vm1472_vm3, %v750_v4  ;;  %10023 = vmatmul.mubr.msk.bf16.gmra.mrb[96].mxu0 %vm1472_vm3, %v750_v4 }
 0x2b0   : > { %1836 = vmatprep.mubr.bf16.mxu1 %v18589_v2  ;;  %2429 = vmatprep.mubr.bf16.mxu0 %v18589_v2 }
 0x2b7   : > { %9967 = vmatmul.mubr.msk.bf16.gmra.mrb[100].mxu1 %vm1472_vm3, %v751_v13  ;;  %10024 = vmatmul.mubr.msk.bf16.gmra.mrb[100].mxu0 %vm1472_vm3, %v751_v13 }
 0x2b8   : > { %1846 = vmatprep.mubr.bf16.mxu1 %v18589_v2  ;;  %2439 = vmatprep.mubr.bf16.mxu0 %v18589_v2 }
 0x2bf   : > { %9968 = vmatmul.mubr.msk.bf16.gmra.mrb[104].mxu1 %vm1472_vm3, %v752_v7  ;;  %10025 = vmatmul.mubr.msk.bf16.gmra.mrb[104].mxu0 %vm1472_vm3, %v752_v7 }
 0x2c0   : > { %1856 = vmatprep.mubr.bf16.mxu1 %v18589_v2  ;;  %2449 = vmatprep.mubr.bf16.mxu0 %v18589_v2 }
 0x2c2   : > { %v1171_v14 = vpop.f32.mrb[0].mxu0  ;;  %v1231_v12 = vpop.f32.mrb[0].mxu1 }
 0x2c3   : > { %v15063_v11 = vadd.f32 %v15054_v5, %v1171_v14   ;;  %v15066_v1 = vadd.f32 %v15054_v5, %v1231_v12   ;;  %v1173_v4 = vpop.f32.mrb[1].mxu0  ;;  %v1233_v6 = vpop.f32.mrb[1].mxu1 }
 0x2c4   : > { %v3097_v13 = vadd.f32 %v15060_v8, %v1173_v4  ;;  %v3109_v10 = vadd.f32 %v15060_v8, %v1233_v6  ;;  %v1175_v15 = vpop.f32.mrb[2].mxu0  ;;  %v1235_v7 = vpop.f32.mrb[2].mxu1  ;;  %v660_v4 = vld [vmem:[%s13987_s18 + $0x120] sm:$0xff]  ;;  %v661_v6 = vld [vmem:[%s13987_s18 + $0x128] sm:$0xff] }
 0x2c5   : > { %v15071_v17 = vadd.f32 %v15054_v5, %v1175_v15   ;;  %v15074_v14 = vadd.f32 %v15054_v5, %v1235_v7   ;;  %v1177_v18 = vpop.f32.mrb[3].mxu0  ;;  %v1237_v12 = vpop.f32.mrb[3].mxu1  ;;  %v754_v19 = vpack.c.bf16 %v661_v6, %v660_v4 }
 0x2c6   : > { %3113 = vst [vmem:[#allocation3] sm:$0xff] %v3097_v13  ;;  %3125 = vst [vmem:[#allocation3 + $0x60] sm:$0xff] %v3109_v10  ;;  %v3098_v16 = vadd.f32 %v15060_v8, %v1177_v18  ;;  %v3110_v9 = vadd.f32 %v15060_v8, %v1237_v12 }
 0x2c7   : > { %9969 = vmatmul.mubr.msk.bf16.gmra.mrb[108].mxu1 %vm1472_vm3, %v753_v3  ;;  %10026 = vmatmul.mubr.msk.bf16.gmra.mrb[108].mxu0 %vm1472_vm3, %v753_v3 }
 0x2c8   : > { %3114 = vst [vmem:[#allocation3 + $0x8] sm:$0xff] %v3098_v16  ;;  %3126 = vst [vmem:[#allocation3 + $0x68] sm:$0xff] %v3110_v9  ;;  %1866 = vmatprep.mubr.bf16.mxu1 %v18589_v2  ;;  %2459 = vmatprep.mubr.bf16.mxu0 %v18589_v2 }
 0x2ca   : > { %v1181_v15 = vpop.f32.mrb[4].mxu0  ;;  %v1241_v7 = vpop.f32.mrb[4].mxu1 }
 0x2cb   : > { %v15085_v13 = vadd.f32 %v15054_v5, %v1181_v15   ;;  %v15088_v18 = vadd.f32 %v15054_v5, %v1241_v7   ;;  %v1183_v10 = vpop.f32.mrb[5].mxu0  ;;  %v1243_v12 = vpop.f32.mrb[5].mxu1 }
 0x2cc   : > { %v3099_v3 = vadd.f32 %v15060_v8, %v1183_v10  ;;  %v3111_v16 = vadd.f32 %v15060_v8, %v1243_v12  ;;  %v1185_v9 = vpop.f32.mrb[6].mxu0  ;;  %v1245_v20 = vpop.f32.mrb[6].mxu1  ;;  %v15102_v10 = vld [vmem:[#allocation19 + $0xa] ss:$0 sm:$0xff]  ;;  %v663_v12 = vld [vmem:[%s13987_s18 + $0x138] sm:$0xff] }
 0x2cd   : > { %v15093_v21 = vadd.f32 %v15054_v5, %v1185_v9   ;;  %v15096_v15 = vadd.f32 %v15054_v5, %v1245_v20   ;;  %v1187_v22 = vpop.f32.mrb[7].mxu0  ;;  %v1247_v7 = vpop.f32.mrb[7].mxu1  ;;  %v662_v20 = vld [vmem:[%s13987_s18 + $0x130] sm:$0xff] }
 0x2ce   : > { %3115 = vst [vmem:[#allocation3 + $0x10] sm:$0xff] %v3099_v3  ;;  %3127 = vst [vmem:[#allocation3 + $0x70] sm:$0xff] %v3111_v16  ;;  %v3100_v4 = vadd.f32 %v15060_v8, %v1187_v22  ;;  %v3112_v6 = vadd.f32 %v15060_v8, %v1247_v7  ;;  %v15108_v3 = vld [vmem:[#allocation19 + $0x12] ss:$0 sm:$0xff] }
 0x2cf   : > { %9970 = vmatmul.mubr.msk.bf16.gmra.mrb[112].mxu1 %vm1472_vm3, %v754_v19  ;;  %10027 = vmatmul.mubr.msk.bf16.gmra.mrb[112].mxu0 %vm1472_vm3, %v754_v19 }
 0x2d0   : > { %3116 = vst [vmem:[#allocation3 + $0x18] sm:$0xff] %v3100_v4  ;;  %3128 = vst [vmem:[#allocation3 + $0x78] sm:$0xff] %v3112_v6  ;;  %1876 = vmatprep.mubr.bf16.mxu1 %v18589_v2  ;;  %2469 = vmatprep.mubr.bf16.mxu0 %v18589_v2  ;;  %v755_v6 = vpack.c.bf16 %v663_v12, %v662_v20 }
 0x2d2   : > { %v1191_v16 = vpop.f32.mrb[8].mxu0  ;;  %v1284_v22 = vpop.f32.mrb[8].mxu1 }
 0x2d3   : > { %v15111_v9 = vadd.f32 %v15054_v5, %v1191_v16   ;;  %v3365_v7 = vadd.f32 %v15102_v10, %v1284_v22  ;;  %v1193_v19 = vpop.f32.mrb[9].mxu0  ;;  %v1286_v4 = vpop.f32.mrb[9].mxu1 }
 0x2d4   : > { %v3101_v23 = vadd.f32 %v15060_v8, %v1193_v19  ;;  %v3634_v24 = vadd.f32 %v15108_v3, %v1286_v4  ;;  %v1195_v25 = vpop.f32.mrb[10].mxu0  ;;  %v1288_v26 = vpop.f32.mrb[10].mxu1 }
 0x2d5   : > { %3382 = vst [vmem:[#allocation3 + $0x80] sm:$0xff] %v3365_v7  ;;  %v15117_v27 = vadd.f32 %v15054_v5, %v1195_v25   ;;  %v3366_v16 = vadd.f32 %v15102_v10, %v1288_v26  ;;  %v1197_v28 = vpop.f32.mrb[11].mxu0  ;;  %v1290_v29 = vpop.f32.mrb[11].mxu1  ;;  %v664_v25 = vld [vmem:[%s13987_s18 + $0x140] sm:$0xff]  ;;  %v665_v26 = vld [vmem:[%s13987_s18 + $0x148] sm:$0xff] }
 0x2d6   : > { %3117 = vst [vmem:[#allocation3 + $0x20] sm:$0xff] %v3101_v23  ;;  %3651 = vst [vmem:[#allocation3 + $0x100] sm:$0xff] %v3634_v24  ;;  %v3102_v20 = vadd.f32 %v15060_v8, %v1197_v28  ;;  %v3635_v12 = vadd.f32 %v15108_v3, %v1290_v29  ;;  %v756_v19 = vpack.c.bf16 %v665_v26, %v664_v25 }
 0x2d7   : > { %3383 = vst [vmem:[#allocation3 + $0x88] sm:$0xff] %v3366_v16  ;;  %9971 = vmatmul.mubr.msk.bf16.gmra.mrb[116].mxu1 %vm1472_vm3, %v755_v6  ;;  %10028 = vmatmul.mubr.msk.bf16.gmra.mrb[116].mxu0 %vm1472_vm3, %v755_v6 }
 0x2d8   : > { %3118 = vst [vmem:[#allocation3 + $0x28] sm:$0xff] %v3102_v20  ;;  %3652 = vst [vmem:[#allocation3 + $0x108] sm:$0xff] %v3635_v12  ;;  %1886 = vmatprep.mubr.bf16.mxu1 %v18589_v2  ;;  %2479 = vmatprep.mubr.bf16.mxu0 %v18589_v2 }
 0x2da   : > { %v1201_v22 = vpop.f32.mrb[12].mxu0  ;;  %v1294_v23 = vpop.f32.mrb[12].mxu1 }
 0x2db   : > { %v15129_v24 = vadd.f32 %v15054_v5, %v1201_v22   ;;  %v3367_v28 = vadd.f32 %v15102_v10, %v1294_v23  ;;  %v1203_v29 = vpop.f32.mrb[13].mxu0  ;;  %v1296_v7 = vpop.f32.mrb[13].mxu1  ;;  %v666_v23 = vld [vmem:[%s13987_s18 + $0x150] sm:$0xff] }
 0x2dc   : > { %v3103_v4 = vadd.f32 %v15060_v8, %v1203_v29  ;;  %v3636_v6 = vadd.f32 %v15108_v3, %v1296_v7  ;;  %v1205_v16 = vpop.f32.mrb[14].mxu0  ;;  %v1298_v20 = vpop.f32.mrb[14].mxu1 }
 0x2dd   : > { %3384 = vst [vmem:[#allocation3 + $0x90] sm:$0xff] %v3367_v28  ;;  %v15135_v12 = vadd.f32 %v15054_v5, %v1205_v16   ;;  %v3368_v22 = vadd.f32 %v15102_v10, %v1298_v20  ;;  %v1207_v30 = vpop.f32.mrb[15].mxu0  ;;  %v1300_v31 = vpop.f32.mrb[15].mxu1  ;;  %v667_v28 = vld [vmem:[%s13987_s18 + $0x158] sm:$0xff] }
 0x2de   : > { %3119 = vst [vmem:[#allocation3 + $0x30] sm:$0xff] %v3103_v4  ;;  %3653 = vst [vmem:[#allocation3 + $0x110] sm:$0xff] %v3636_v6  ;;  %v3104_v25 = vadd.f32 %v15060_v8, %v1207_v30  ;;  %v3637_v26 = vadd.f32 %v15108_v3, %v1300_v31  ;;  %v757_v16 = vpack.c.bf16 %v667_v28, %v666_v23 }
 0x2df   : > { %3385 = vst [vmem:[#allocation3 + $0x98] sm:$0xff] %v3368_v22  ;;  %9972 = vmatmul.mubr.msk.bf16.gmra.mrb[120].mxu1 %vm1472_vm3, %v756_v19  ;;  %10029 = vmatmul.mubr.msk.bf16.gmra.mrb[120].mxu0 %vm1472_vm3, %v756_v19 }
 0x2e0   : > { %3120 = vst [vmem:[#allocation3 + $0x38] sm:$0xff] %v3104_v25  ;;  %3654 = vst [vmem:[#allocation3 + $0x118] sm:$0xff] %v3637_v26  ;;  %1896 = vmatprep.mubr.bf16.mxu1 %v18589_v2  ;;  %2489 = vmatprep.mubr.bf16.mxu0 %v18589_v2 }
 0x2e2   : > { %v1211_v29 = vpop.f32.mrb[16].mxu0  ;;  %v1304_v7 = vpop.f32.mrb[16].mxu1 }
 0x2e3   : > { %v15147_v4 = vadd.f32 %v15054_v5, %v1211_v29   ;;  %v3369_v30 = vadd.f32 %v15102_v10, %v1304_v7  ;;  %v1213_v31 = vpop.f32.mrb[17].mxu0  ;;  %v1306_v6 = vpop.f32.mrb[17].mxu1  ;;  %v668_v7 = vld [vmem:[%s13987_s18 + $0x160] sm:$0xff] }
 0x2e4   : > { %v3105_v19 = vadd.f32 %v15060_v8, %v1213_v31  ;;  %v3638_v20 = vadd.f32 %v15108_v3, %v1306_v6  ;;  %v1215_v22 = vpop.f32.mrb[18].mxu0  ;;  %v1308_v25 = vpop.f32.mrb[18].mxu1 }
 0x2e5   : > { %3386 = vst [vmem:[#allocation3 + $0xa0] sm:$0xff] %v3369_v30  ;;  %v15153_v26 = vadd.f32 %v15054_v5, %v1215_v22   ;;  %v3370_v29 = vadd.f32 %v15102_v10, %v1308_v25  ;;  %v1217_v32 = vpop.f32.mrb[19].mxu0  ;;  %v1310_v33 = vpop.f32.mrb[19].mxu1  ;;  %v669_v30 = vld [vmem:[%s13987_s18 + $0x168] sm:$0xff] }
 0x2e6   : > { %3121 = vst [vmem:[#allocation3 + $0x40] sm:$0xff] %v3105_v19  ;;  %3655 = vst [vmem:[#allocation3 + $0x120] sm:$0xff] %v3638_v20  ;;  %v3106_v23 = vadd.f32 %v15060_v8, %v1217_v32  ;;  %v3639_v28 = vadd.f32 %v15108_v3, %v1310_v33  ;;  %v758_v22 = vpack.c.bf16 %v669_v30, %v668_v7 }
 0x2e7   : > { %3387 = vst [vmem:[#allocation3 + $0xa8] sm:$0xff] %v3370_v29  ;;  %9973 = vmatmul.mubr.msk.bf16.gmra.mrb[124].mxu1 %vm1472_vm3, %v757_v16  ;;  %10030 = vmatmul.mubr.msk.bf16.gmra.mrb[124].mxu0 %vm1472_vm3, %v757_v16 }
 0x2e8   : > { %3122 = vst [vmem:[#allocation3 + $0x48] sm:$0xff] %v3106_v23  ;;  %3656 = vst [vmem:[#allocation3 + $0x128] sm:$0xff] %v3639_v28  ;;  %1906 = vmatprep.mubr.bf16.mxu1 %v18589_v2  ;;  %2499 = vmatprep.mubr.bf16.mxu0 %v18589_v2 }
 0x2ea   : > { %v1221_v31 = vpop.f32.mrb[20].mxu0  ;;  %v1314_v6 = vpop.f32.mrb[20].mxu1 }
 0x2eb   : > { %v15165_v19 = vadd.f32 %v15054_v5, %v1221_v31   ;;  %v3371_v32 = vadd.f32 %v15102_v10, %v1314_v6  ;;  %v1223_v33 = vpop.f32.mrb[21].mxu0  ;;  %v1316_v20 = vpop.f32.mrb[21].mxu1  ;;  %v670_v6 = vld [vmem:[%s13987_s18 + $0x170] sm:$0xff] }
 0x2ec   : > { %v3107_v16 = vadd.f32 %v15060_v8, %v1223_v33  ;;  %v3640_v25 = vadd.f32 %v15108_v3, %v1316_v20  ;;  %v1225_v29 = vpop.f32.mrb[22].mxu0  ;;  %v1318_v23 = vpop.f32.mrb[22].mxu1 }
 0x2ed   : > { %3388 = vst [vmem:[#allocation3 + $0xb0] sm:$0xff] %v3371_v32  ;;  %v15171_v28 = vadd.f32 %v15054_v5, %v1225_v29   ;;  %v3372_v34 = vadd.f32 %v15102_v10, %v1318_v23  ;;  %v1227_v31 = vpop.f32.mrb[23].mxu0  ;;  %v1320_v35 = vpop.f32.mrb[23].mxu1  ;;  %v15178_v5 = vld [vmem:[#allocation19 + $0x1a] ss:$0 sm:$0xff]  ;;  %v671_v32 = vld [vmem:[%s13987_s18 + $0x178] sm:$0xff] }
 0x2ee   : > { %3123 = vst [vmem:[#allocation3 + $0x50] sm:$0xff] %v3107_v16  ;;  %3657 = vst [vmem:[#allocation3 + $0x130] sm:$0xff] %v3640_v25  ;;  %v3108_v7 = vadd.f32 %v15060_v8, %v1227_v31  ;;  %v3641_v30 = vadd.f32 %v15108_v3, %v1320_v35  ;;  %v759_v25 = vpack.c.bf16 %v671_v32, %v670_v6 }
 0x2ef   : > { %3389 = vst [vmem:[#allocation3 + $0xb8] sm:$0xff] %v3372_v34  ;;  %9974 = vmatmul.mubr.msk.bf16.gmra.mrb[128].mxu1 %vm1472_vm3, %v758_v22  ;;  %10031 = vmatmul.mubr.msk.bf16.gmra.mrb[128].mxu0 %vm1472_vm3, %v758_v22 }
 0x2f0   : > { %3124 = vst [vmem:[#allocation3 + $0x58] sm:$0xff] %v3108_v7  ;;  %3658 = vst [vmem:[#allocation3 + $0x138] sm:$0xff] %v3641_v30  ;;  %1916 = vmatprep.mubr.bf16.mxu1 %v18589_v2  ;;  %2509 = vmatprep.mubr.bf16.mxu0 %v18589_v2 }
 0x2f2   : > { %v1324_v33 = vpop.f32.mrb[24].mxu1  ;;  %v11002_v20 = vpop.f32.mrb[24].mxu0 }
 0x2f3   : > { %v3373_v8 = vadd.f32 %v15102_v10, %v1324_v33  ;;  %v3905_v34 = vadd.f32 %v11002_v20, %v15178_v5  ;;  %v1326_v35 = vpop.f32.mrb[25].mxu1  ;;  %v1397_v16 = vpop.f32.mrb[25].mxu0  ;;  %v672_v20 = vld [vmem:[%s13987_s18 + $0x180] sm:$0xff] }
 0x2f4   : > { %v3642_v22 = vadd.f32 %v15108_v3, %v1326_v35  ;;  %v3903_v29 = vadd.f32 %v15178_v5, %v1397_v16  ;;  %v1328_v23 = vpop.f32.mrb[26].mxu1  ;;  %v11003_v31 = vpop.f32.mrb[26].mxu0 }
 0x2f5   : > { %3390 = vst [vmem:[#allocation3 + $0xc0] sm:$0xff] %v3373_v8  ;;  %3922 = vst [vmem:[#allocation3 + $0x190] sm:$0xff] %v3905_v34  ;;  %v3374_v7 = vadd.f32 %v15102_v10, %v1328_v23  ;;  %v3906_v30 = vadd.f32 %v11003_v31, %v15178_v5  ;;  %v1330_v33 = vpop.f32.mrb[27].mxu1  ;;  %v1400_v36 = vpop.f32.mrb[27].mxu0  ;;  %v673_v8 = vld [vmem:[%s13987_s18 + $0x188] sm:$0xff] }
 0x2f6   : > { %3659 = vst [vmem:[#allocation3 + $0x140] sm:$0xff] %v3642_v22  ;;  %3920 = vst [vmem:[#allocation3 + $0x180] sm:$0xff] %v3903_v29  ;;  %v3643_v6 = vadd.f32 %v15108_v3, %v1330_v33  ;;  %v3904_v32 = vadd.f32 %v15178_v5, %v1400_v36  ;;  %v760_v23 = vpack.c.bf16 %v673_v8, %v672_v20 }
 0x2f7   : > { %3391 = vst [vmem:[#allocation3 + $0xc8] sm:$0xff] %v3374_v7  ;;  %3923 = vst [vmem:[#allocation3 + $0x198] sm:$0xff] %v3906_v30  ;;  %9975 = vmatmul.mubr.msk.bf16.gmra.mrb[132].mxu1 %vm1472_vm3, %v759_v25  ;;  %10032 = vmatmul.mubr.msk.bf16.gmra.mrb[132].mxu0 %vm1472_vm3, %v759_v25 }
 0x2f8   : > { %3660 = vst [vmem:[#allocation3 + $0x148] sm:$0xff] %v3643_v6  ;;  %3921 = vst [vmem:[#allocation3 + $0x188] sm:$0xff] %v3904_v32  ;;  %1926 = vmatprep.mubr.bf16.mxu1 %v18589_v2  ;;  %2519 = vmatprep.mubr.bf16.mxu0 %v18589_v2 }
 0x2fa   : > { %v1334_v34 = vpop.f32.mrb[28].mxu1  ;;  %v11006_v35 = vpop.f32.mrb[28].mxu0 }
 0x2fb   : > { %v3375_v16 = vadd.f32 %v15102_v10, %v1334_v34  ;;  %v3909_v36 = vadd.f32 %v11006_v35, %v15178_v5  ;;  %v1336_v22 = vpop.f32.mrb[29].mxu1  ;;  %v1413_v29 = vpop.f32.mrb[29].mxu0  ;;  %v674_v35 = vld [vmem:[%s13987_s18 + $0x190] sm:$0xff] }
 0x2fc   : > { %v3644_v31 = vadd.f32 %v15108_v3, %v1336_v22  ;;  %v3907_v25 = vadd.f32 %v15178_v5, %v1413_v29  ;;  %v1338_v7 = vpop.f32.mrb[30].mxu1  ;;  %v11007_v30 = vpop.f32.mrb[30].mxu0 }
 0x2fd   : > { %3392 = vst [vmem:[#allocation3 + $0xd0] sm:$0xff] %v3375_v16  ;;  %3926 = vst [vmem:[#allocation3 + $0x1b0] sm:$0xff] %v3909_v36  ;;  %v3376_v33 = vadd.f32 %v15102_v10, %v1338_v7  ;;  %v3910_v6 = vadd.f32 %v11007_v30, %v15178_v5  ;;  %v1340_v32 = vpop.f32.mrb[31].mxu1  ;;  %v1416_v34 = vpop.f32.mrb[31].mxu0  ;;  %v675_v16 = vld [vmem:[%s13987_s18 + $0x198] sm:$0xff] }
 0x2fe   : > { %3661 = vst [vmem:[#allocation3 + $0x150] sm:$0xff] %v3644_v31  ;;  %3924 = vst [vmem:[#allocation3 + $0x1a0] sm:$0xff] %v3907_v25  ;;  %v3645_v20 = vadd.f32 %v15108_v3, %v1340_v32  ;;  %v3908_v8 = vadd.f32 %v15178_v5, %v1416_v34  ;;  %v761_v30 = vpack.c.bf16 %v675_v16, %v674_v35 }
 0x2ff   : > { %3393 = vst [vmem:[#allocation3 + $0xd8] sm:$0xff] %v3376_v33  ;;  %3927 = vst [vmem:[#allocation3 + $0x1b8] sm:$0xff] %v3910_v6  ;;  %9976 = vmatmul.mubr.msk.bf16.gmra.mrb[136].mxu1 %vm1472_vm3, %v760_v23  ;;  %10033 = vmatmul.mubr.msk.bf16.gmra.mrb[136].mxu0 %vm1472_vm3, %v760_v23 }
 0x300   : > { %3662 = vst [vmem:[#allocation3 + $0x158] sm:$0xff] %v3645_v20  ;;  %3925 = vst [vmem:[#allocation3 + $0x1a8] sm:$0xff] %v3908_v8  ;;  %1936 = vmatprep.mubr.bf16.mxu1 %v18589_v2  ;;  %2529 = vmatprep.mubr.bf16.mxu0 %v18589_v2 }
 0x302   : > { %v1344_v36 = vpop.f32.mrb[32].mxu1  ;;  %v11010_v22 = vpop.f32.mrb[32].mxu0 }
 0x303   : > { %v3377_v29 = vadd.f32 %v15102_v10, %v1344_v36  ;;  %v3913_v31 = vadd.f32 %v11010_v22, %v15178_v5  ;;  %v1346_v25 = vpop.f32.mrb[33].mxu1  ;;  %v1429_v7 = vpop.f32.mrb[33].mxu0  ;;  %v676_v22 = vld [vmem:[%s13987_s18 + $0x1a0] sm:$0xff] }
 0x304   : > { %v3646_v33 = vadd.f32 %v15108_v3, %v1346_v25  ;;  %v3911_v23 = vadd.f32 %v15178_v5, %v1429_v7  ;;  %v1348_v6 = vpop.f32.mrb[34].mxu1  ;;  %v11011_v32 = vpop.f32.mrb[34].mxu0 }
 0x305   : > { %3394 = vst [vmem:[#allocation3 + $0xe0] sm:$0xff] %v3377_v29  ;;  %3930 = vst [vmem:[#allocation3 + $0x1d0] sm:$0xff] %v3913_v31  ;;  %v3378_v34 = vadd.f32 %v15102_v10, %v1348_v6  ;;  %v3914_v20 = vadd.f32 %v11011_v32, %v15178_v5  ;;  %v1350_v8 = vpop.f32.mrb[35].mxu1  ;;  %v1432_v36 = vpop.f32.mrb[35].mxu0  ;;  %v677_v29 = vld [vmem:[%s13987_s18 + $0x1a8] sm:$0xff] }
 0x306   : > { %3663 = vst [vmem:[#allocation3 + $0x160] sm:$0xff] %v3646_v33  ;;  %3928 = vst [vmem:[#allocation3 + $0x1c0] sm:$0xff] %v3911_v23  ;;  %v3647_v35 = vadd.f32 %v15108_v3, %v1350_v8  ;;  %v3912_v16 = vadd.f32 %v15178_v5, %v1432_v36  ;;  %v762_v32 = vpack.c.bf16 %v677_v29, %v676_v22 }
 0x307   : > { %3395 = vst [vmem:[#allocation3 + $0xe8] sm:$0xff] %v3378_v34  ;;  %3931 = vst [vmem:[#allocation3 + $0x1d8] sm:$0xff] %v3914_v20  ;;  %9977 = vmatmul.mubr.msk.bf16.gmra.mrb[140].mxu1 %vm1472_vm3, %v761_v30  ;;  %10034 = vmatmul.mubr.msk.bf16.gmra.mrb[140].mxu0 %vm1472_vm3, %v761_v30 }
 0x308   : > { %3664 = vst [vmem:[#allocation3 + $0x168] sm:$0xff] %v3647_v35  ;;  %3929 = vst [vmem:[#allocation3 + $0x1c8] sm:$0xff] %v3912_v16  ;;  %1946 = vmatprep.mubr.bf16.mxu1 %v18589_v2  ;;  %2539 = vmatprep.mubr.bf16.mxu0 %v18589_v2 }
 0x30a   : > { %v1354_v31 = vpop.f32.mrb[36].mxu1  ;;  %v11014_v25 = vpop.f32.mrb[36].mxu0 }
 0x30b   : > { %v3379_v7 = vadd.f32 %v15102_v10, %v1354_v31  ;;  %v3917_v33 = vadd.f32 %v11014_v25, %v15178_v5  ;;  %v1356_v23 = vpop.f32.mrb[37].mxu1  ;;  %v1445_v6 = vpop.f32.mrb[37].mxu0  ;;  %v15236_v25 = vld [vmem:[#allocation19] ss:$0 sm:$0xff] }
 0x30c   : > { %v3648_v34 = vadd.f32 %v15108_v3, %v1356_v23  ;;  %v3915_v30 = vadd.f32 %v15178_v5, %v1445_v6  ;;  %v1358_v20 = vpop.f32.mrb[38].mxu1  ;;  %v11015_v8 = vpop.f32.mrb[38].mxu0 }
 0x30d   : > { %3396 = vst [vmem:[#allocation3 + $0xf0] sm:$0xff] %v3379_v7  ;;  %3934 = vst [vmem:[#allocation3 + $0x1f0] sm:$0xff] %v3917_v33  ;;  %v3380_v36 = vadd.f32 %v15102_v10, %v1358_v20  ;;  %v3918_v35 = vadd.f32 %v11015_v8, %v15178_v5  ;;  %v1360_v16 = vpop.f32.mrb[39].mxu1  ;;  %v1448_v31 = vpop.f32.mrb[39].mxu0  ;;  %v15238_v10 = vld [vmem:[#allocation19 + $0x10] ss:$0 sm:$0xff] }
 0x30e   : > { %3665 = vst [vmem:[#allocation3 + $0x170] sm:$0xff] %v3648_v34  ;;  %3932 = vst [vmem:[#allocation3 + $0x1e0] sm:$0xff] %v3915_v30  ;;  %v3649_v22 = vadd.f32 %v15108_v3, %v1360_v16  ;;  %v3916_v29 = vadd.f32 %v15178_v5, %v1448_v31  ;;  %v678_v7 = vld [vmem:[%s13987_s18 + $0x1b0] sm:$0xff]  ;;  %v679_v3 = vld [vmem:[%s13987_s18 + $0x1b8] sm:$0xff] }
 0x30f   : > { %3397 = vst [vmem:[#allocation3 + $0xf8] sm:$0xff] %v3380_v36  ;;  %3935 = vst [vmem:[#allocation3 + $0x1f8] sm:$0xff] %v3918_v35  ;;  %9978 = vmatmul.mubr.msk.bf16.gmra.mrb[144].mxu1 %vm1472_vm3, %v762_v32  ;;  %10035 = vmatmul.mubr.msk.bf16.gmra.mrb[144].mxu0 %vm1472_vm3, %v762_v32  ;;  %v15244_v33 = vld [vmem:[#allocation19 + $0x8] ss:$0 sm:$0xff]  ;;  %v15246_v5 = vld [vmem:[#allocation19 + $0x18] ss:$0 sm:$0xff]  ;;  %v763_v8 = vpack.c.bf16 %v679_v3, %v678_v7 }
 0x310   : > { %3666 = vst [vmem:[#allocation3 + $0x178] sm:$0xff] %v3649_v22  ;;  %3933 = vst [vmem:[#allocation3 + $0x1e8] sm:$0xff] %v3916_v29  ;;  %1956 = vmatprep.mubr.bf16.mxu1 %v18589_v2  ;;  %2549 = vmatprep.mubr.bf16.mxu0 %v18589_v2 }
 0x312   : > { %v1688_v23 = vpop.f32.mrb[40].mxu1  ;;  %v2281_v6 = vpop.f32.mrb[40].mxu0 }
 0x313   : > { %v2868_v32 = vadd.f32 %v15236_v25, %v1688_v23  ;;  %v3404_v34 = vadd.f32 %v15238_v10, %v2281_v6  ;;  %v1690_v30 = vpop.f32.mrb[41].mxu1  ;;  %v2283_v20 = vpop.f32.mrb[41].mxu0  ;;  %v680_v6 = vld [vmem:[%s13987_s18 + $0x1c0] sm:$0xff] }
 0x314   : > { %v3135_v36 = vadd.f32 %v15244_v33, %v1690_v30  ;;  %v3673_v35 = vadd.f32 %v15246_v5, %v2283_v20  ;;  %v1692_v16 = vpop.f32.mrb[42].mxu1  ;;  %v2285_v31 = vpop.f32.mrb[42].mxu0 }
 0x315   : > { %2980 = vst [vmem:[#allocation2] sm:$0xff] %v2868_v32  ;;  %3517 = vst [vmem:[#allocation2 + $0x700] sm:$0xff] %v3404_v34  ;;  %v2869_v22 = vadd.f32 %v15236_v25, %v1692_v16  ;;  %v3405_v29 = vadd.f32 %v15238_v10, %v2285_v31  ;;  %v1694_v23 = vpop.f32.mrb[43].mxu1  ;;  %v2287_v37 = vpop.f32.mrb[43].mxu0  ;;  %v681_v32 = vld [vmem:[%s13987_s18 + $0x1c8] sm:$0xff] }
 0x316   : > { %3248 = vst [vmem:[#allocation2 + $0x380] sm:$0xff] %v3135_v36  ;;  %3786 = vst [vmem:[#allocation2 + $0xa80] sm:$0xff] %v3673_v35  ;;  %v3136_v7 = vadd.f32 %v15244_v33, %v1694_v23  ;;  %v3674_v3 = vadd.f32 %v15246_v5, %v2287_v37  ;;  %v764_v16 = vpack.c.bf16 %v681_v32, %v680_v6 }
 0x317   : > { %2981 = vst [vmem:[#allocation2 + $0x8] sm:$0xff] %v2869_v22  ;;  %3518 = vst [vmem:[#allocation2 + $0x708] sm:$0xff] %v3405_v29  ;;  %9979 = vmatmul.mubr.msk.bf16.gmra.mrb[148].mxu1 %vm1472_vm3, %v763_v8  ;;  %10036 = vmatmul.mubr.msk.bf16.gmra.mrb[148].mxu0 %vm1472_vm3, %v763_v8 }
 0x318   : > { %3249 = vst [vmem:[#allocation2 + $0x388] sm:$0xff] %v3136_v7  ;;  %3787 = vst [vmem:[#allocation2 + $0xa88] sm:$0xff] %v3674_v3  ;;  %1966 = vmatprep.mubr.bf16.mxu1 %v18589_v2  ;;  %2559 = vmatprep.mubr.bf16.mxu0 %v18589_v2 }
 0x31a   : > { %v1698_v34 = vpop.f32.mrb[44].mxu1  ;;  %v2291_v30 = vpop.f32.mrb[44].mxu0 }
 0x31b   : > { %v2870_v20 = vadd.f32 %v15236_v25, %v1698_v34  ;;  %v3406_v37 = vadd.f32 %v15238_v10, %v2291_v30  ;;  %v1700_v36 = vpop.f32.mrb[45].mxu1  ;;  %v2293_v35 = vpop.f32.mrb[45].mxu0  ;;  %v682_v30 = vld [vmem:[%s13987_s18 + $0x1d0] sm:$0xff] }
 0x31c   : > { %v3137_v31 = vadd.f32 %v15244_v33, %v1700_v36  ;;  %v3675_v8 = vadd.f32 %v15246_v5, %v2293_v35  ;;  %v1702_v22 = vpop.f32.mrb[46].mxu1  ;;  %v2295_v29 = vpop.f32.mrb[46].mxu0 }
 0x31d   : > { %2982 = vst [vmem:[#allocation2 + $0x10] sm:$0xff] %v2870_v20  ;;  %3519 = vst [vmem:[#allocation2 + $0x710] sm:$0xff] %v3406_v37  ;;  %v2871_v23 = vadd.f32 %v15236_v25, %v1702_v22  ;;  %v3407_v7 = vadd.f32 %v15238_v10, %v2295_v29  ;;  %v1704_v3 = vpop.f32.mrb[47].mxu1  ;;  %v2297_v34 = vpop.f32.mrb[47].mxu0  ;;  %v683_v20 = vld [vmem:[%s13987_s18 + $0x1d8] sm:$0xff] }
 0x31e   : > { %3250 = vst [vmem:[#allocation2 + $0x390] sm:$0xff] %v3137_v31  ;;  %3788 = vst [vmem:[#allocation2 + $0xa90] sm:$0xff] %v3675_v8  ;;  %v3138_v6 = vadd.f32 %v15244_v33, %v1704_v3  ;;  %v3676_v32 = vadd.f32 %v15246_v5, %v2297_v34  ;;  %v765_v29 = vpack.c.bf16 %v683_v20, %v682_v30 }
 0x31f   : > { %2983 = vst [vmem:[#allocation2 + $0x18] sm:$0xff] %v2871_v23  ;;  %3520 = vst [vmem:[#allocation2 + $0x718] sm:$0xff] %v3407_v7  ;;  %9980 = vmatmul.mubr.msk.bf16.gmra.mrb[152].mxu1 %vm1472_vm3, %v764_v16  ;;  %10037 = vmatmul.mubr.msk.bf16.gmra.mrb[152].mxu0 %vm1472_vm3, %v764_v16 }
 0x320   : > { %3251 = vst [vmem:[#allocation2 + $0x398] sm:$0xff] %v3138_v6  ;;  %3789 = vst [vmem:[#allocation2 + $0xa98] sm:$0xff] %v3676_v32  ;;  %1976 = vmatprep.mubr.bf16.mxu1 %v18589_v2  ;;  %2569 = vmatprep.mubr.bf16.mxu0 %v18589_v2 }
 0x322   : > { %v1708_v37 = vpop.f32.mrb[48].mxu1  ;;  %v2301_v36 = vpop.f32.mrb[48].mxu0 }
 0x323   : > { %v2872_v35 = vadd.f32 %v15236_v25, %v1708_v37  ;;  %v3408_v31 = vadd.f32 %v15238_v10, %v2301_v36  ;;  %v1710_v8 = vpop.f32.mrb[49].mxu1  ;;  %v2303_v22 = vpop.f32.mrb[49].mxu0  ;;  %v684_v36 = vld [vmem:[%s13987_s18 + $0x1e0] sm:$0xff] }
 0x324   : > { %v3139_v23 = vadd.f32 %v15244_v33, %v1710_v8  ;;  %v3677_v16 = vadd.f32 %v15246_v5, %v2303_v22  ;;  %v1712_v7 = vpop.f32.mrb[50].mxu1  ;;  %v2305_v3 = vpop.f32.mrb[50].mxu0 }
 0x325   : > { %2984 = vst [vmem:[#allocation2 + $0x20] sm:$0xff] %v2872_v35  ;;  %3521 = vst [vmem:[#allocation2 + $0x720] sm:$0xff] %v3408_v31  ;;  %v2873_v34 = vadd.f32 %v15236_v25, %v1712_v7  ;;  %v3409_v6 = vadd.f32 %v15238_v10, %v2305_v3  ;;  %v1714_v32 = vpop.f32.mrb[51].mxu1  ;;  %v2307_v37 = vpop.f32.mrb[51].mxu0  ;;  %v685_v35 = vld [vmem:[%s13987_s18 + $0x1e8] sm:$0xff] }
 0x326   : > { %3252 = vst [vmem:[#allocation2 + $0x3a0] sm:$0xff] %v3139_v23  ;;  %3790 = vst [vmem:[#allocation2 + $0xaa0] sm:$0xff] %v3677_v16  ;;  %v3140_v30 = vadd.f32 %v15244_v33, %v1714_v32  ;;  %v3678_v20 = vadd.f32 %v15246_v5, %v2307_v37  ;;  %v766_v3 = vpack.c.bf16 %v685_v35, %v684_v36 }
 0x327   : > { %2985 = vst [vmem:[#allocation2 + $0x28] sm:$0xff] %v2873_v34  ;;  %3522 = vst [vmem:[#allocation2 + $0x728] sm:$0xff] %v3409_v6  ;;  %9981 = vmatmul.mubr.msk.bf16.gmra.mrb[156].mxu1 %vm1472_vm3, %v765_v29  ;;  %10038 = vmatmul.mubr.msk.bf16.gmra.mrb[156].mxu0 %vm1472_vm3, %v765_v29 }
 0x328   : > { %3253 = vst [vmem:[#allocation2 + $0x3a8] sm:$0xff] %v3140_v30  ;;  %3791 = vst [vmem:[#allocation2 + $0xaa8] sm:$0xff] %v3678_v20  ;;  %1986 = vmatprep.mubr.bf16.mxu1 %v18589_v2  ;;  %2579 = vmatprep.mubr.bf16.mxu0 %v18589_v2 }
 0x32a   : > { %v1718_v31 = vpop.f32.mrb[52].mxu1  ;;  %v2311_v8 = vpop.f32.mrb[52].mxu0 }
 0x32b   : > { %v2874_v22 = vadd.f32 %v15236_v25, %v1718_v31  ;;  %v3410_v23 = vadd.f32 %v15238_v10, %v2311_v8  ;;  %v1720_v16 = vpop.f32.mrb[53].mxu1  ;;  %v2313_v7 = vpop.f32.mrb[53].mxu0  ;;  %v686_v8 = vld [vmem:[%s13987_s18 + $0x1f0] sm:$0xff] }
 0x32c   : > { %v3141_v34 = vadd.f32 %v15244_v33, %v1720_v16  ;;  %v3679_v29 = vadd.f32 %v15246_v5, %v2313_v7  ;;  %v1722_v6 = vpop.f32.mrb[54].mxu1  ;;  %v2315_v32 = vpop.f32.mrb[54].mxu0 }
 0x32d   : > { %2986 = vst [vmem:[#allocation2 + $0x30] sm:$0xff] %v2874_v22  ;;  %3523 = vst [vmem:[#allocation2 + $0x730] sm:$0xff] %v3410_v23  ;;  %v2875_v37 = vadd.f32 %v15236_v25, %v1722_v6  ;;  %v3411_v30 = vadd.f32 %v15238_v10, %v2315_v32  ;;  %v1724_v20 = vpop.f32.mrb[55].mxu1  ;;  %v2317_v31 = vpop.f32.mrb[55].mxu0  ;;  %v687_v22 = vld [vmem:[%s13987_s18 + $0x1f8] sm:$0xff] }
 0x32e   : > { %3254 = vst [vmem:[#allocation2 + $0x3b0] sm:$0xff] %v3141_v34  ;;  %3792 = vst [vmem:[#allocation2 + $0xab0] sm:$0xff] %v3679_v29  ;;  %v3142_v36 = vadd.f32 %v15244_v33, %v1724_v20  ;;  %v3680_v35 = vadd.f32 %v15246_v5, %v2317_v31  ;;  %v767_v32 = vpack.c.bf16 %v687_v22, %v686_v8 }
 0x32f   : > { %2987 = vst [vmem:[#allocation2 + $0x38] sm:$0xff] %v2875_v37  ;;  %3524 = vst [vmem:[#allocation2 + $0x738] sm:$0xff] %v3411_v30  ;;  %9982 = vmatmul.mubr.msk.bf16.gmra.mrb[160].mxu1 %vm1472_vm3, %v766_v3  ;;  %10039 = vmatmul.mubr.msk.bf16.gmra.mrb[160].mxu0 %vm1472_vm3, %v766_v3 }
 0x330   : > { %3255 = vst [vmem:[#allocation2 + $0x3b8] sm:$0xff] %v3142_v36  ;;  %3793 = vst [vmem:[#allocation2 + $0xab8] sm:$0xff] %v3680_v35  ;;  %1996 = vmatprep.mubr.bf16.mxu1 %v18589_v2  ;;  %2589 = vmatprep.mubr.bf16.mxu0 %v18589_v2 }
 0x332   : > { %v1728_v23 = vpop.f32.mrb[56].mxu1  ;;  %v2321_v16 = vpop.f32.mrb[56].mxu0 }
 0x333   : > { %v2876_v7 = vadd.f32 %v15236_v25, %v1728_v23  ;;  %v3412_v34 = vadd.f32 %v15238_v10, %v2321_v16  ;;  %v1730_v29 = vpop.f32.mrb[57].mxu1  ;;  %v2323_v6 = vpop.f32.mrb[57].mxu0  ;;  %v688_v16 = vld [vmem:[%s13987_s18 + $0x200] sm:$0xff] }
 0x334   : > { %v3143_v37 = vadd.f32 %v15244_v33, %v1730_v29  ;;  %v3681_v3 = vadd.f32 %v15246_v5, %v2323_v6  ;;  %v1732_v30 = vpop.f32.mrb[58].mxu1  ;;  %v2325_v20 = vpop.f32.mrb[58].mxu0 }
 0x335   : > { %2988 = vst [vmem:[#allocation2 + $0x40] sm:$0xff] %v2876_v7  ;;  %3525 = vst [vmem:[#allocation2 + $0x740] sm:$0xff] %v3412_v34  ;;  %v2877_v31 = vadd.f32 %v15236_v25, %v1732_v30  ;;  %v3413_v36 = vadd.f32 %v15238_v10, %v2325_v20  ;;  %v1734_v35 = vpop.f32.mrb[59].mxu1  ;;  %v2327_v23 = vpop.f32.mrb[59].mxu0  ;;  %v689_v7 = vld [vmem:[%s13987_s18 + $0x208] sm:$0xff] }
 0x336   : > { %3256 = vst [vmem:[#allocation2 + $0x3c0] sm:$0xff] %v3143_v37  ;;  %3794 = vst [vmem:[#allocation2 + $0xac0] sm:$0xff] %v3681_v3  ;;  %v3144_v8 = vadd.f32 %v15244_v33, %v1734_v35  ;;  %v3682_v22 = vadd.f32 %v15246_v5, %v2327_v23  ;;  %v768_v20 = vpack.c.bf16 %v689_v7, %v688_v16 }
 0x337   : > { %2989 = vst [vmem:[#allocation2 + $0x48] sm:$0xff] %v2877_v31  ;;  %3526 = vst [vmem:[#allocation2 + $0x748] sm:$0xff] %v3413_v36  ;;  %9983 = vmatmul.mubr.msk.bf16.gmra.mrb[164].mxu1 %vm1472_vm3, %v767_v32  ;;  %10040 = vmatmul.mubr.msk.bf16.gmra.mrb[164].mxu0 %vm1472_vm3, %v767_v32 }
 0x338   : > { %3257 = vst [vmem:[#allocation2 + $0x3c8] sm:$0xff] %v3144_v8  ;;  %3795 = vst [vmem:[#allocation2 + $0xac8] sm:$0xff] %v3682_v22  ;;  %2006 = vmatprep.mubr.bf16.mxu1 %v18589_v2  ;;  %2599 = vmatprep.mubr.bf16.mxu0 %v18589_v2 }
 0x33a   : > { %v1738_v34 = vpop.f32.mrb[60].mxu1  ;;  %v2331_v29 = vpop.f32.mrb[60].mxu0 }
 0x33b   : > { %v2878_v6 = vadd.f32 %v15236_v25, %v1738_v34  ;;  %v3414_v37 = vadd.f32 %v15238_v10, %v2331_v29  ;;  %v1740_v3 = vpop.f32.mrb[61].mxu1  ;;  %v2333_v30 = vpop.f32.mrb[61].mxu0  ;;  %v690_v29 = vld [vmem:[%s13987_s18 + $0x210] sm:$0xff] }
 0x33c   : > { %v3145_v31 = vadd.f32 %v15244_v33, %v1740_v3  ;;  %v3683_v32 = vadd.f32 %v15246_v5, %v2333_v30  ;;  %v1742_v36 = vpop.f32.mrb[62].mxu1  ;;  %v2335_v35 = vpop.f32.mrb[62].mxu0 }
 0x33d   : > { %2990 = vst [vmem:[#allocation2 + $0x50] sm:$0xff] %v2878_v6  ;;  %3527 = vst [vmem:[#allocation2 + $0x750] sm:$0xff] %v3414_v37  ;;  %v2879_v23 = vadd.f32 %v15236_v25, %v1742_v36  ;;  %v3415_v8 = vadd.f32 %v15238_v10, %v2335_v35  ;;  %v1744_v22 = vpop.f32.mrb[63].mxu1  ;;  %v2337_v34 = vpop.f32.mrb[63].mxu0  ;;  %v691_v6 = vld [vmem:[%s13987_s18 + $0x218] sm:$0xff] }
 0x33e   : > { %3258 = vst [vmem:[#allocation2 + $0x3d0] sm:$0xff] %v3145_v31  ;;  %3796 = vst [vmem:[#allocation2 + $0xad0] sm:$0xff] %v3683_v32  ;;  %v3146_v16 = vadd.f32 %v15244_v33, %v1744_v22  ;;  %v3684_v7 = vadd.f32 %v15246_v5, %v2337_v34  ;;  %v769_v35 = vpack.c.bf16 %v691_v6, %v690_v29 }
 0x33f   : > { %2991 = vst [vmem:[#allocation2 + $0x58] sm:$0xff] %v2879_v23  ;;  %3528 = vst [vmem:[#allocation2 + $0x758] sm:$0xff] %v3415_v8  ;;  %9984 = vmatmul.mubr.msk.bf16.gmra.mrb[168].mxu1 %vm1472_vm3, %v768_v20  ;;  %10041 = vmatmul.mubr.msk.bf16.gmra.mrb[168].mxu0 %vm1472_vm3, %v768_v20 }
 0x340   : > { %3259 = vst [vmem:[#allocation2 + $0x3d8] sm:$0xff] %v3146_v16  ;;  %3797 = vst [vmem:[#allocation2 + $0xad8] sm:$0xff] %v3684_v7  ;;  %2016 = vmatprep.mubr.bf16.mxu1 %v18589_v2  ;;  %2609 = vmatprep.mubr.bf16.mxu0 %v18589_v2 }
 0x342   : > { %v1748_v37 = vpop.f32.mrb[64].mxu1  ;;  %v2341_v3 = vpop.f32.mrb[64].mxu0 }
 0x343   : > { %v2880_v30 = vadd.f32 %v15236_v25, %v1748_v37  ;;  %v3416_v31 = vadd.f32 %v15238_v10, %v2341_v3  ;;  %v1750_v32 = vpop.f32.mrb[65].mxu1  ;;  %v2343_v36 = vpop.f32.mrb[65].mxu0  ;;  %v692_v3 = vld [vmem:[%s13987_s18 + $0x220] sm:$0xff] }
 0x344   : > { %v3147_v23 = vadd.f32 %v15244_v33, %v1750_v32  ;;  %v3685_v20 = vadd.f32 %v15246_v5, %v2343_v36  ;;  %v1752_v8 = vpop.f32.mrb[66].mxu1  ;;  %v2345_v22 = vpop.f32.mrb[66].mxu0 }
 0x345   : > { %2992 = vst [vmem:[#allocation2 + $0x60] sm:$0xff] %v2880_v30  ;;  %3529 = vst [vmem:[#allocation2 + $0x760] sm:$0xff] %v3416_v31  ;;  %v2881_v34 = vadd.f32 %v15236_v25, %v1752_v8  ;;  %v3417_v16 = vadd.f32 %v15238_v10, %v2345_v22  ;;  %v1754_v7 = vpop.f32.mrb[67].mxu1  ;;  %v2347_v37 = vpop.f32.mrb[67].mxu0  ;;  %v693_v30 = vld [vmem:[%s13987_s18 + $0x228] sm:$0xff] }
 0x346   : > { %3260 = vst [vmem:[#allocation2 + $0x3e0] sm:$0xff] %v3147_v23  ;;  %3798 = vst [vmem:[#allocation2 + $0xae0] sm:$0xff] %v3685_v20  ;;  %v3148_v29 = vadd.f32 %v15244_v33, %v1754_v7  ;;  %v3686_v6 = vadd.f32 %v15246_v5, %v2347_v37  ;;  %v770_v22 = vpack.c.bf16 %v693_v30, %v692_v3 }
 0x347   : > { %2993 = vst [vmem:[#allocation2 + $0x68] sm:$0xff] %v2881_v34  ;;  %3530 = vst [vmem:[#allocation2 + $0x768] sm:$0xff] %v3417_v16  ;;  %9985 = vmatmul.mubr.msk.bf16.gmra.mrb[172].mxu1 %vm1472_vm3, %v769_v35  ;;  %10042 = vmatmul.mubr.msk.bf16.gmra.mrb[172].mxu0 %vm1472_vm3, %v769_v35 }
 0x348   : > { %3261 = vst [vmem:[#allocation2 + $0x3e8] sm:$0xff] %v3148_v29  ;;  %3799 = vst [vmem:[#allocation2 + $0xae8] sm:$0xff] %v3686_v6  ;;  %2026 = vmatprep.mubr.bf16.mxu1 %v18589_v2  ;;  %2619 = vmatprep.mubr.bf16.mxu0 %v18589_v2 }
 0x34a   : > { %v1758_v31 = vpop.f32.mrb[68].mxu1  ;;  %v2351_v32 = vpop.f32.mrb[68].mxu0 }
 0x34b   : > { %v2882_v36 = vadd.f32 %v15236_v25, %v1758_v31  ;;  %v3418_v23 = vadd.f32 %v15238_v10, %v2351_v32  ;;  %v1760_v20 = vpop.f32.mrb[69].mxu1  ;;  %v2353_v8 = vpop.f32.mrb[69].mxu0  ;;  %v694_v32 = vld [vmem:[%s13987_s18 + $0x230] sm:$0xff] }
 0x34c   : > { %v3149_v34 = vadd.f32 %v15244_v33, %v1760_v20  ;;  %v3687_v35 = vadd.f32 %v15246_v5, %v2353_v8  ;;  %v1762_v16 = vpop.f32.mrb[70].mxu1  ;;  %v2355_v7 = vpop.f32.mrb[70].mxu0 }
 0x34d   : > { %2994 = vst [vmem:[#allocation2 + $0x70] sm:$0xff] %v2882_v36  ;;  %3531 = vst [vmem:[#allocation2 + $0x770] sm:$0xff] %v3418_v23  ;;  %v2883_v37 = vadd.f32 %v15236_v25, %v1762_v16  ;;  %v3419_v29 = vadd.f32 %v15238_v10, %v2355_v7  ;;  %v1764_v6 = vpop.f32.mrb[71].mxu1  ;;  %v2357_v31 = vpop.f32.mrb[71].mxu0  ;;  %v695_v36 = vld [vmem:[%s13987_s18 + $0x238] sm:$0xff] }
 0x34e   : > { %3262 = vst [vmem:[#allocation2 + $0x3f0] sm:$0xff] %v3149_v34  ;;  %3800 = vst [vmem:[#allocation2 + $0xaf0] sm:$0xff] %v3687_v35  ;;  %v3150_v3 = vadd.f32 %v15244_v33, %v1764_v6  ;;  %v3688_v30 = vadd.f32 %v15246_v5, %v2357_v31  ;;  %v771_v7 = vpack.c.bf16 %v695_v36, %v694_v32 }
 0x34f   : > { %2995 = vst [vmem:[#allocation2 + $0x78] sm:$0xff] %v2883_v37  ;;  %3532 = vst [vmem:[#allocation2 + $0x778] sm:$0xff] %v3419_v29  ;;  %9986 = vmatmul.mubr.msk.bf16.gmra.mrb[176].mxu1 %vm1472_vm3, %v770_v22  ;;  %10043 = vmatmul.mubr.msk.bf16.gmra.mrb[176].mxu0 %vm1472_vm3, %v770_v22 }
 0x350   : > { %3263 = vst [vmem:[#allocation2 + $0x3f8] sm:$0xff] %v3150_v3  ;;  %3801 = vst [vmem:[#allocation2 + $0xaf8] sm:$0xff] %v3688_v30  ;;  %2036 = vmatprep.mubr.bf16.mxu1 %v18589_v2  ;;  %2629 = vmatprep.mubr.bf16.mxu0 %v18589_v2 }
 0x352   : > { %v1768_v23 = vpop.f32.mrb[72].mxu1  ;;  %v2361_v20 = vpop.f32.mrb[72].mxu0 }
 0x353   : > { %v2884_v8 = vadd.f32 %v15236_v25, %v1768_v23  ;;  %v3420_v34 = vadd.f32 %v15238_v10, %v2361_v20  ;;  %v1770_v35 = vpop.f32.mrb[73].mxu1  ;;  %v2363_v16 = vpop.f32.mrb[73].mxu0  ;;  %v696_v20 = vld [vmem:[%s13987_s18 + $0x240] sm:$0xff] }
 0x354   : > { %v3151_v37 = vadd.f32 %v15244_v33, %v1770_v35  ;;  %v3689_v22 = vadd.f32 %v15246_v5, %v2363_v16  ;;  %v1772_v29 = vpop.f32.mrb[74].mxu1  ;;  %v2365_v6 = vpop.f32.mrb[74].mxu0 }
 0x355   : > { %2996 = vst [vmem:[#allocation2 + $0x80] sm:$0xff] %v2884_v8  ;;  %3533 = vst [vmem:[#allocation2 + $0x780] sm:$0xff] %v3420_v34  ;;  %v2885_v31 = vadd.f32 %v15236_v25, %v1772_v29  ;;  %v3421_v3 = vadd.f32 %v15238_v10, %v2365_v6  ;;  %v1774_v30 = vpop.f32.mrb[75].mxu1  ;;  %v2367_v23 = vpop.f32.mrb[75].mxu0  ;;  %v697_v8 = vld [vmem:[%s13987_s18 + $0x248] sm:$0xff] }
 0x356   : > { %3264 = vst [vmem:[#allocation2 + $0x400] sm:$0xff] %v3151_v37  ;;  %3802 = vst [vmem:[#allocation2 + $0xb00] sm:$0xff] %v3689_v22  ;;  %v3152_v32 = vadd.f32 %v15244_v33, %v1774_v30  ;;  %v3690_v36 = vadd.f32 %v15246_v5, %v2367_v23  ;;  %v772_v6 = vpack.c.bf16 %v697_v8, %v696_v20 }
 0x357   : > { %2997 = vst [vmem:[#allocation2 + $0x88] sm:$0xff] %v2885_v31  ;;  %3534 = vst [vmem:[#allocation2 + $0x788] sm:$0xff] %v3421_v3  ;;  %9987 = vmatmul.mubr.msk.bf16.gmra.mrb[180].mxu1 %vm1472_vm3, %v771_v7  ;;  %10044 = vmatmul.mubr.msk.bf16.gmra.mrb[180].mxu0 %vm1472_vm3, %v771_v7 }
 0x358   : > { %3265 = vst [vmem:[#allocation2 + $0x408] sm:$0xff] %v3152_v32  ;;  %3803 = vst [vmem:[#allocation2 + $0xb08] sm:$0xff] %v3690_v36  ;;  %2046 = vmatprep.mubr.bf16.mxu1 %v18589_v2  ;;  %2639 = vmatprep.mubr.bf16.mxu0 %v18589_v2 }
 0x35a   : > { %v1778_v34 = vpop.f32.mrb[76].mxu1  ;;  %v2371_v35 = vpop.f32.mrb[76].mxu0 }
 0x35b   : > { %v2886_v16 = vadd.f32 %v15236_v25, %v1778_v34  ;;  %v3422_v37 = vadd.f32 %v15238_v10, %v2371_v35  ;;  %v1780_v22 = vpop.f32.mrb[77].mxu1  ;;  %v2373_v29 = vpop.f32.mrb[77].mxu0  ;;  %v698_v35 = vld [vmem:[%s13987_s18 + $0x250] sm:$0xff] }
 0x35c   : > { %v3153_v31 = vadd.f32 %v15244_v33, %v1780_v22  ;;  %v3691_v7 = vadd.f32 %v15246_v5, %v2373_v29  ;;  %v1782_v3 = vpop.f32.mrb[78].mxu1  ;;  %v2375_v30 = vpop.f32.mrb[78].mxu0 }
 0x35d   : > { %2998 = vst [vmem:[#allocation2 + $0x90] sm:$0xff] %v2886_v16  ;;  %3535 = vst [vmem:[#allocation2 + $0x790] sm:$0xff] %v3422_v37  ;;  %v2887_v23 = vadd.f32 %v15236_v25, %v1782_v3  ;;  %v3423_v32 = vadd.f32 %v15238_v10, %v2375_v30  ;;  %v1784_v36 = vpop.f32.mrb[79].mxu1  ;;  %v2377_v34 = vpop.f32.mrb[79].mxu0  ;;  %v699_v16 = vld [vmem:[%s13987_s18 + $0x258] sm:$0xff] }
 0x35e   : > { %3266 = vst [vmem:[#allocation2 + $0x410] sm:$0xff] %v3153_v31  ;;  %3804 = vst [vmem:[#allocation2 + $0xb10] sm:$0xff] %v3691_v7  ;;  %v3154_v20 = vadd.f32 %v15244_v33, %v1784_v36  ;;  %v3692_v8 = vadd.f32 %v15246_v5, %v2377_v34  ;;  %v773_v30 = vpack.c.bf16 %v699_v16, %v698_v35 }
 0x35f   : > { %2999 = vst [vmem:[#allocation2 + $0x98] sm:$0xff] %v2887_v23  ;;  %3536 = vst [vmem:[#allocation2 + $0x798] sm:$0xff] %v3423_v32  ;;  %9988 = vmatmul.mubr.msk.bf16.gmra.mrb[184].mxu1 %vm1472_vm3, %v772_v6  ;;  %10045 = vmatmul.mubr.msk.bf16.gmra.mrb[184].mxu0 %vm1472_vm3, %v772_v6 }
 0x360   : > { %3267 = vst [vmem:[#allocation2 + $0x418] sm:$0xff] %v3154_v20  ;;  %3805 = vst [vmem:[#allocation2 + $0xb18] sm:$0xff] %v3692_v8  ;;  %2056 = vmatprep.mubr.bf16.mxu1 %v18589_v2  ;;  %2649 = vmatprep.mubr.bf16.mxu0 %v18589_v2 }
 0x362   : > { %v1788_v37 = vpop.f32.mrb[80].mxu1  ;;  %v2381_v22 = vpop.f32.mrb[80].mxu0 }
 0x363   : > { %v2888_v29 = vadd.f32 %v15236_v25, %v1788_v37  ;;  %v3424_v31 = vadd.f32 %v15238_v10, %v2381_v22  ;;  %v1790_v7 = vpop.f32.mrb[81].mxu1  ;;  %v2383_v3 = vpop.f32.mrb[81].mxu0  ;;  %v700_v22 = vld [vmem:[%s13987_s18 + $0x260] sm:$0xff] }
 0x364   : > { %v3155_v23 = vadd.f32 %v15244_v33, %v1790_v7  ;;  %v3693_v6 = vadd.f32 %v15246_v5, %v2383_v3  ;;  %v1792_v32 = vpop.f32.mrb[82].mxu1  ;;  %v2385_v36 = vpop.f32.mrb[82].mxu0 }
 0x365   : > { %3000 = vst [vmem:[#allocation2 + $0xa0] sm:$0xff] %v2888_v29  ;;  %3537 = vst [vmem:[#allocation2 + $0x7a0] sm:$0xff] %v3424_v31  ;;  %v2889_v34 = vadd.f32 %v15236_v25, %v1792_v32  ;;  %v3425_v20 = vadd.f32 %v15238_v10, %v2385_v36  ;;  %v1794_v8 = vpop.f32.mrb[83].mxu1  ;;  %v2387_v37 = vpop.f32.mrb[83].mxu0  ;;  %v701_v29 = vld [vmem:[%s13987_s18 + $0x268] sm:$0xff] }
 0x366   : > { %3268 = vst [vmem:[#allocation2 + $0x420] sm:$0xff] %v3155_v23  ;;  %3806 = vst [vmem:[#allocation2 + $0xb20] sm:$0xff] %v3693_v6  ;;  %v3156_v35 = vadd.f32 %v15244_v33, %v1794_v8  ;;  %v3694_v16 = vadd.f32 %v15246_v5, %v2387_v37  ;;  %v774_v36 = vpack.c.bf16 %v701_v29, %v700_v22 }
 0x367   : > { %3001 = vst [vmem:[#allocation2 + $0xa8] sm:$0xff] %v2889_v34  ;;  %3538 = vst [vmem:[#allocation2 + $0x7a8] sm:$0xff] %v3425_v20  ;;  %9989 = vmatmul.mubr.msk.bf16.gmra.mrb[188].mxu1 %vm1472_vm3, %v773_v30  ;;  %10046 = vmatmul.mubr.msk.bf16.gmra.mrb[188].mxu0 %vm1472_vm3, %v773_v30 }
 0x368   : > { %3269 = vst [vmem:[#allocation2 + $0x428] sm:$0xff] %v3156_v35  ;;  %3807 = vst [vmem:[#allocation2 + $0xb28] sm:$0xff] %v3694_v16  ;;  %2066 = vmatprep.mubr.bf16.mxu1 %v18589_v2  ;;  %2659 = vmatprep.mubr.bf16.mxu0 %v18589_v2 }
 0x36a   : > { %v1798_v31 = vpop.f32.mrb[84].mxu1  ;;  %v2391_v7 = vpop.f32.mrb[84].mxu0 }
 0x36b   : > { %v2890_v3 = vadd.f32 %v15236_v25, %v1798_v31  ;;  %v3426_v23 = vadd.f32 %v15238_v10, %v2391_v7  ;;  %v1800_v6 = vpop.f32.mrb[85].mxu1  ;;  %v2393_v32 = vpop.f32.mrb[85].mxu0  ;;  %v702_v7 = vld [vmem:[%s13987_s18 + $0x270] sm:$0xff] }
 0x36c   : > { %v3157_v34 = vadd.f32 %v15244_v33, %v1800_v6  ;;  %v3695_v30 = vadd.f32 %v15246_v5, %v2393_v32  ;;  %v1802_v20 = vpop.f32.mrb[86].mxu1  ;;  %v2395_v8 = vpop.f32.mrb[86].mxu0 }
 0x36d   : > { %3002 = vst [vmem:[#allocation2 + $0xb0] sm:$0xff] %v2890_v3  ;;  %3539 = vst [vmem:[#allocation2 + $0x7b0] sm:$0xff] %v3426_v23  ;;  %v2891_v37 = vadd.f32 %v15236_v25, %v1802_v20  ;;  %v3427_v35 = vadd.f32 %v15238_v10, %v2395_v8  ;;  %v1804_v16 = vpop.f32.mrb[87].mxu1  ;;  %v2397_v31 = vpop.f32.mrb[87].mxu0  ;;  %v703_v3 = vld [vmem:[%s13987_s18 + $0x278] sm:$0xff] }
 0x36e   : > { %3270 = vst [vmem:[#allocation2 + $0x430] sm:$0xff] %v3157_v34  ;;  %3808 = vst [vmem:[#allocation2 + $0xb30] sm:$0xff] %v3695_v30  ;;  %v3158_v22 = vadd.f32 %v15244_v33, %v1804_v16  ;;  %v3696_v29 = vadd.f32 %v15246_v5, %v2397_v31  ;;  %v775_v8 = vpack.c.bf16 %v703_v3, %v702_v7 }
 0x36f   : > { %3003 = vst [vmem:[#allocation2 + $0xb8] sm:$0xff] %v2891_v37  ;;  %3540 = vst [vmem:[#allocation2 + $0x7b8] sm:$0xff] %v3427_v35  ;;  %9990 = vmatmul.mubr.msk.bf16.gmra.mrb[192].mxu1 %vm1472_vm3, %v774_v36  ;;  %10047 = vmatmul.mubr.msk.bf16.gmra.mrb[192].mxu0 %vm1472_vm3, %v774_v36 }
 0x370   : > { %3271 = vst [vmem:[#allocation2 + $0x438] sm:$0xff] %v3158_v22  ;;  %3809 = vst [vmem:[#allocation2 + $0xb38] sm:$0xff] %v3696_v29  ;;  %2076 = vmatprep.mubr.bf16.mxu1 %v18589_v2  ;;  %2669 = vmatprep.mubr.bf16.mxu0 %v18589_v2 }
 0x372   : > { %v1808_v23 = vpop.f32.mrb[88].mxu1  ;;  %v2401_v6 = vpop.f32.mrb[88].mxu0 }
 0x373   : > { %v2892_v32 = vadd.f32 %v15236_v25, %v1808_v23  ;;  %v3428_v34 = vadd.f32 %v15238_v10, %v2401_v6  ;;  %v1810_v30 = vpop.f32.mrb[89].mxu1  ;;  %v2403_v20 = vpop.f32.mrb[89].mxu0  ;;  %v704_v6 = vld [vmem:[%s13987_s18 + $0x280] sm:$0xff] }
 0x374   : > { %v3159_v37 = vadd.f32 %v15244_v33, %v1810_v30  ;;  %v3697_v36 = vadd.f32 %v15246_v5, %v2403_v20  ;;  %v1812_v35 = vpop.f32.mrb[90].mxu1  ;;  %v2405_v16 = vpop.f32.mrb[90].mxu0 }
 0x375   : > { %3004 = vst [vmem:[#allocation2 + $0xc0] sm:$0xff] %v2892_v32  ;;  %3541 = vst [vmem:[#allocation2 + $0x7c0] sm:$0xff] %v3428_v34  ;;  %v2893_v31 = vadd.f32 %v15236_v25, %v1812_v35  ;;  %v3429_v22 = vadd.f32 %v15238_v10, %v2405_v16  ;;  %v1814_v29 = vpop.f32.mrb[91].mxu1  ;;  %v2407_v23 = vpop.f32.mrb[91].mxu0  ;;  %v705_v32 = vld [vmem:[%s13987_s18 + $0x288] sm:$0xff] }
 0x376   : > { %3272 = vst [vmem:[#allocation2 + $0x440] sm:$0xff] %v3159_v37  ;;  %3810 = vst [vmem:[#allocation2 + $0xb40] sm:$0xff] %v3697_v36  ;;  %v3160_v7 = vadd.f32 %v15244_v33, %v1814_v29  ;;  %v3698_v3 = vadd.f32 %v15246_v5, %v2407_v23  ;;  %v776_v16 = vpack.c.bf16 %v705_v32, %v704_v6 }
 0x377   : > { %3005 = vst [vmem:[#allocation2 + $0xc8] sm:$0xff] %v2893_v31  ;;  %3542 = vst [vmem:[#allocation2 + $0x7c8] sm:$0xff] %v3429_v22  ;;  %9991 = vmatmul.mubr.msk.bf16.gmra.mrb[196].mxu1 %vm1472_vm3, %v775_v8  ;;  %10048 = vmatmul.mubr.msk.bf16.gmra.mrb[196].mxu0 %vm1472_vm3, %v775_v8 }
 0x378   : > { %3273 = vst [vmem:[#allocation2 + $0x448] sm:$0xff] %v3160_v7  ;;  %3811 = vst [vmem:[#allocation2 + $0xb48] sm:$0xff] %v3698_v3  ;;  %2086 = vmatprep.mubr.bf16.mxu1 %v18589_v2  ;;  %2679 = vmatprep.mubr.bf16.mxu0 %v18589_v2 }
 0x37a   : > { %v1818_v34 = vpop.f32.mrb[92].mxu1  ;;  %v2411_v30 = vpop.f32.mrb[92].mxu0 }
 0x37b   : > { %v2894_v20 = vadd.f32 %v15236_v25, %v1818_v34  ;;  %v3430_v37 = vadd.f32 %v15238_v10, %v2411_v30  ;;  %v1820_v36 = vpop.f32.mrb[93].mxu1  ;;  %v2413_v35 = vpop.f32.mrb[93].mxu0  ;;  %v706_v30 = vld [vmem:[%s13987_s18 + $0x290] sm:$0xff] }
 0x37c   : > { %v3161_v31 = vadd.f32 %v15244_v33, %v1820_v36  ;;  %v3699_v8 = vadd.f32 %v15246_v5, %v2413_v35  ;;  %v1822_v22 = vpop.f32.mrb[94].mxu1  ;;  %v2415_v29 = vpop.f32.mrb[94].mxu0 }
 0x37d   : > { %3006 = vst [vmem:[#allocation2 + $0xd0] sm:$0xff] %v2894_v20  ;;  %3543 = vst [vmem:[#allocation2 + $0x7d0] sm:$0xff] %v3430_v37  ;;  %v2895_v23 = vadd.f32 %v15236_v25, %v1822_v22  ;;  %v3431_v7 = vadd.f32 %v15238_v10, %v2415_v29  ;;  %v1824_v3 = vpop.f32.mrb[95].mxu1  ;;  %v2417_v34 = vpop.f32.mrb[95].mxu0  ;;  %v707_v20 = vld [vmem:[%s13987_s18 + $0x298] sm:$0xff] }
 0x37e   : > { %3274 = vst [vmem:[#allocation2 + $0x450] sm:$0xff] %v3161_v31  ;;  %3812 = vst [vmem:[#allocation2 + $0xb50] sm:$0xff] %v3699_v8  ;;  %v3162_v6 = vadd.f32 %v15244_v33, %v1824_v3  ;;  %v3700_v32 = vadd.f32 %v15246_v5, %v2417_v34  ;;  %v777_v29 = vpack.c.bf16 %v707_v20, %v706_v30 }
 0x37f   : > { %3007 = vst [vmem:[#allocation2 + $0xd8] sm:$0xff] %v2895_v23  ;;  %3544 = vst [vmem:[#allocation2 + $0x7d8] sm:$0xff] %v3431_v7  ;;  %9992 = vmatmul.mubr.msk.bf16.gmra.mrb[200].mxu1 %vm1472_vm3, %v776_v16  ;;  %10049 = vmatmul.mubr.msk.bf16.gmra.mrb[200].mxu0 %vm1472_vm3, %v776_v16 }
 0x380   : > { %3275 = vst [vmem:[#allocation2 + $0x458] sm:$0xff] %v3162_v6  ;;  %3813 = vst [vmem:[#allocation2 + $0xb58] sm:$0xff] %v3700_v32  ;;  %2096 = vmatprep.mubr.bf16.mxu1 %v18589_v2  ;;  %2689 = vmatprep.mubr.bf16.mxu0 %v18589_v2 }
 0x382   : > { %v1828_v37 = vpop.f32.mrb[96].mxu1  ;;  %v2421_v36 = vpop.f32.mrb[96].mxu0 }
 0x383   : > { %v2896_v35 = vadd.f32 %v15236_v25, %v1828_v37  ;;  %v3432_v31 = vadd.f32 %v15238_v10, %v2421_v36  ;;  %v1830_v8 = vpop.f32.mrb[97].mxu1  ;;  %v2423_v22 = vpop.f32.mrb[97].mxu0  ;;  %v708_v36 = vld [vmem:[%s13987_s18 + $0x2a0] sm:$0xff] }
 0x384   : > { %v3163_v23 = vadd.f32 %v15244_v33, %v1830_v8  ;;  %v3701_v16 = vadd.f32 %v15246_v5, %v2423_v22  ;;  %v1832_v7 = vpop.f32.mrb[98].mxu1  ;;  %v2425_v3 = vpop.f32.mrb[98].mxu0 }
 0x385   : > { %3008 = vst [vmem:[#allocation2 + $0xe0] sm:$0xff] %v2896_v35  ;;  %3545 = vst [vmem:[#allocation2 + $0x7e0] sm:$0xff] %v3432_v31  ;;  %v2897_v34 = vadd.f32 %v15236_v25, %v1832_v7  ;;  %v3433_v6 = vadd.f32 %v15238_v10, %v2425_v3  ;;  %v1834_v32 = vpop.f32.mrb[99].mxu1  ;;  %v2427_v37 = vpop.f32.mrb[99].mxu0  ;;  %v709_v35 = vld [vmem:[%s13987_s18 + $0x2a8] sm:$0xff] }
 0x386   : > { %3276 = vst [vmem:[#allocation2 + $0x460] sm:$0xff] %v3163_v23  ;;  %3814 = vst [vmem:[#allocation2 + $0xb60] sm:$0xff] %v3701_v16  ;;  %v3164_v30 = vadd.f32 %v15244_v33, %v1834_v32  ;;  %v3702_v20 = vadd.f32 %v15246_v5, %v2427_v37  ;;  %v778_v3 = vpack.c.bf16 %v709_v35, %v708_v36 }
 0x387   : > { %3009 = vst [vmem:[#allocation2 + $0xe8] sm:$0xff] %v2897_v34  ;;  %3546 = vst [vmem:[#allocation2 + $0x7e8] sm:$0xff] %v3433_v6  ;;  %9993 = vmatmul.mubr.msk.bf16.gmra.mrb[204].mxu1 %vm1472_vm3, %v777_v29  ;;  %10050 = vmatmul.mubr.msk.bf16.gmra.mrb[204].mxu0 %vm1472_vm3, %v777_v29 }
 0x388   : > { %3277 = vst [vmem:[#allocation2 + $0x468] sm:$0xff] %v3164_v30  ;;  %3815 = vst [vmem:[#allocation2 + $0xb68] sm:$0xff] %v3702_v20  ;;  %2106 = vmatprep.mubr.bf16.mxu1 %v18589_v2  ;;  %2699 = vmatprep.mubr.bf16.mxu0 %v18589_v2 }
 0x38a   : > { %v1838_v31 = vpop.f32.mrb[100].mxu1  ;;  %v2431_v8 = vpop.f32.mrb[100].mxu0 }
 0x38b   : > { %v2898_v22 = vadd.f32 %v15236_v25, %v1838_v31  ;;  %v3434_v23 = vadd.f32 %v15238_v10, %v2431_v8  ;;  %v1840_v16 = vpop.f32.mrb[101].mxu1  ;;  %v2433_v7 = vpop.f32.mrb[101].mxu0  ;;  %v710_v8 = vld [vmem:[%s13987_s18 + $0x2b0] sm:$0xff] }
 0x38c   : > { %v3165_v34 = vadd.f32 %v15244_v33, %v1840_v16  ;;  %v3703_v29 = vadd.f32 %v15246_v5, %v2433_v7  ;;  %v1842_v6 = vpop.f32.mrb[102].mxu1  ;;  %v2435_v32 = vpop.f32.mrb[102].mxu0 }
 0x38d   : > { %3010 = vst [vmem:[#allocation2 + $0xf0] sm:$0xff] %v2898_v22  ;;  %3547 = vst [vmem:[#allocation2 + $0x7f0] sm:$0xff] %v3434_v23  ;;  %v2899_v37 = vadd.f32 %v15236_v25, %v1842_v6  ;;  %v3435_v30 = vadd.f32 %v15238_v10, %v2435_v32  ;;  %v1844_v20 = vpop.f32.mrb[103].mxu1  ;;  %v2437_v31 = vpop.f32.mrb[103].mxu0  ;;  %v711_v22 = vld [vmem:[%s13987_s18 + $0x2b8] sm:$0xff] }
 0x38e   : > { %3278 = vst [vmem:[#allocation2 + $0x470] sm:$0xff] %v3165_v34  ;;  %3816 = vst [vmem:[#allocation2 + $0xb70] sm:$0xff] %v3703_v29  ;;  %v3166_v36 = vadd.f32 %v15244_v33, %v1844_v20  ;;  %v3704_v35 = vadd.f32 %v15246_v5, %v2437_v31  ;;  %v779_v32 = vpack.c.bf16 %v711_v22, %v710_v8  ;;  %v15476_v31 = vld [vmem:[#allocation19] ss:$0 sm:$0xff]  ;;  %v15485_v8 = vld [vmem:[#allocation19 + $0x18] ss:$0 sm:$0xff] }
 0x38f   : > { %3011 = vst [vmem:[#allocation2 + $0xf8] sm:$0xff] %v2899_v37  ;;  %3548 = vst [vmem:[#allocation2 + $0x7f8] sm:$0xff] %v3435_v30  ;;  %9994 = vmatmul.mubr.msk.bf16.gmra.mrb[208].mxu1 %vm1472_vm3, %v778_v3  ;;  %10051 = vmatmul.mubr.msk.bf16.gmra.mrb[208].mxu0 %vm1472_vm3, %v778_v3 }
 0x390   : > { %3279 = vst [vmem:[#allocation2 + $0x478] sm:$0xff] %v3166_v36  ;;  %3817 = vst [vmem:[#allocation2 + $0xb78] sm:$0xff] %v3704_v35  ;;  %2116 = vmatprep.mubr.bf16.mxu1 %v18589_v2  ;;  %2709 = vmatprep.mubr.bf16.mxu0 %v18589_v2  ;;  %v15479_v35 = vld [vmem:[#allocation19 + $0x10] ss:$0 sm:$0xff] }
 0x392   : > { %v1848_v23 = vpop.f32.mrb[104].mxu1  ;;  %v2441_v16 = vpop.f32.mrb[104].mxu0 }
 0x393   : > { %v2900_v7 = vadd.f32 %v15236_v25, %v1848_v23  ;;  %v3436_v34 = vadd.f32 %v15238_v10, %v2441_v16  ;;  %v1850_v29 = vpop.f32.mrb[105].mxu1  ;;  %v2443_v6 = vpop.f32.mrb[105].mxu0  ;;  %v712_v16 = vld [vmem:[%s13987_s18 + $0x2c0] sm:$0xff] }
 0x394   : > { %v3167_v37 = vadd.f32 %v15244_v33, %v1850_v29  ;;  %v3705_v3 = vadd.f32 %v15246_v5, %v2443_v6  ;;  %v1852_v30 = vpop.f32.mrb[106].mxu1  ;;  %v2445_v20 = vpop.f32.mrb[106].mxu0  ;;  %v15482_v33 = vld [vmem:[#allocation19 + $0x8] ss:$0 sm:$0xff] }
 0x395   : > { %3012 = vst [vmem:[#allocation2 + $0x100] sm:$0xff] %v2900_v7  ;;  %3549 = vst [vmem:[#allocation2 + $0x800] sm:$0xff] %v3436_v34  ;;  %v2901_v36 = vadd.f32 %v15476_v31, %v1852_v30  ;;  %v3437_v25 = vadd.f32 %v15479_v35, %v2445_v20  ;;  %v1854_v10 = vpop.f32.mrb[107].mxu1  ;;  %v2447_v23 = vpop.f32.mrb[107].mxu0  ;;  %v713_v7 = vld [vmem:[%s13987_s18 + $0x2c8] sm:$0xff] }
 0x396   : > { %3280 = vst [vmem:[#allocation2 + $0x480] sm:$0xff] %v3167_v37  ;;  %3818 = vst [vmem:[#allocation2 + $0xb80] sm:$0xff] %v3705_v3  ;;  %v3168_v5 = vadd.f32 %v15482_v33, %v1854_v10  ;;  %v3706_v22 = vadd.f32 %v15485_v8, %v2447_v23  ;;  %v780_v20 = vpack.c.bf16 %v713_v7, %v712_v16 }
 0x397   : > { %3013 = vst [vmem:[#allocation2 + $0x108] sm:$0xff] %v2901_v36  ;;  %3550 = vst [vmem:[#allocation2 + $0x808] sm:$0xff] %v3437_v25  ;;  %9995 = vmatmul.mubr.msk.bf16.gmra.mrb[212].mxu1 %vm1472_vm3, %v779_v32  ;;  %10052 = vmatmul.mubr.msk.bf16.gmra.mrb[212].mxu0 %vm1472_vm3, %v779_v32 }
 0x398   : > { %3281 = vst [vmem:[#allocation2 + $0x488] sm:$0xff] %v3168_v5  ;;  %3819 = vst [vmem:[#allocation2 + $0xb88] sm:$0xff] %v3706_v22  ;;  %2126 = vmatprep.mubr.bf16.mxu1 %v18589_v2  ;;  %2719 = vmatprep.mubr.bf16.mxu0 %v18589_v2 }
 0x39a   : > { %v1858_v34 = vpop.f32.mrb[108].mxu1  ;;  %v2451_v29 = vpop.f32.mrb[108].mxu0 }
 0x39b   : > { %v2902_v6 = vadd.f32 %v15476_v31, %v1858_v34  ;;  %v3438_v37 = vadd.f32 %v15479_v35, %v2451_v29  ;;  %v1860_v3 = vpop.f32.mrb[109].mxu1  ;;  %v2453_v30 = vpop.f32.mrb[109].mxu0  ;;  %v714_v29 = vld [vmem:[%s13987_s18 + $0x2d0] sm:$0xff] }
 0x39c   : > { %v3169_v36 = vadd.f32 %v15482_v33, %v1860_v3  ;;  %v3707_v32 = vadd.f32 %v15485_v8, %v2453_v30  ;;  %v1862_v25 = vpop.f32.mrb[110].mxu1  ;;  %v2455_v10 = vpop.f32.mrb[110].mxu0 }
 0x39d   : > { %3014 = vst [vmem:[#allocation2 + $0x110] sm:$0xff] %v2902_v6  ;;  %3551 = vst [vmem:[#allocation2 + $0x810] sm:$0xff] %v3438_v37  ;;  %v2903_v23 = vadd.f32 %v15476_v31, %v1862_v25  ;;  %v3439_v5 = vadd.f32 %v15479_v35, %v2455_v10  ;;  %v1864_v22 = vpop.f32.mrb[111].mxu1  ;;  %v2457_v34 = vpop.f32.mrb[111].mxu0  ;;  %v715_v6 = vld [vmem:[%s13987_s18 + $0x2d8] sm:$0xff] }
 0x39e   : > { %3282 = vst [vmem:[#allocation2 + $0x490] sm:$0xff] %v3169_v36  ;;  %3820 = vst [vmem:[#allocation2 + $0xb90] sm:$0xff] %v3707_v32  ;;  %v3170_v16 = vadd.f32 %v15482_v33, %v1864_v22  ;;  %v3708_v7 = vadd.f32 %v15485_v8, %v2457_v34  ;;  %v781_v10 = vpack.c.bf16 %v715_v6, %v714_v29 }
 0x39f   : > { %3015 = vst [vmem:[#allocation2 + $0x118] sm:$0xff] %v2903_v23  ;;  %3552 = vst [vmem:[#allocation2 + $0x818] sm:$0xff] %v3439_v5  ;;  %9996 = vmatmul.mubr.msk.bf16.gmra.mrb[216].mxu1 %vm1472_vm3, %v780_v20  ;;  %10053 = vmatmul.mubr.msk.bf16.gmra.mrb[216].mxu0 %vm1472_vm3, %v780_v20 }
 0x3a0   : > { %3283 = vst [vmem:[#allocation2 + $0x498] sm:$0xff] %v3170_v16  ;;  %3821 = vst [vmem:[#allocation2 + $0xb98] sm:$0xff] %v3708_v7  ;;  %2136 = vmatprep.mubr.bf16.mxu1 %v18589_v2  ;;  %2729 = vmatprep.mubr.bf16.mxu0 %v18589_v2 }
 0x3a2   : > { %v1868_v37 = vpop.f32.mrb[112].mxu1  ;;  %v2461_v3 = vpop.f32.mrb[112].mxu0 }
 0x3a3   : > { %v2904_v30 = vadd.f32 %v15476_v31, %v1868_v37  ;;  %v3440_v36 = vadd.f32 %v15479_v35, %v2461_v3  ;;  %v1870_v32 = vpop.f32.mrb[113].mxu1  ;;  %v2463_v25 = vpop.f32.mrb[113].mxu0  ;;  %v716_v3 = vld [vmem:[%s13987_s18 + $0x2e0] sm:$0xff] }
 0x3a4   : > { %v3171_v23 = vadd.f32 %v15482_v33, %v1870_v32  ;;  %v3709_v20 = vadd.f32 %v15485_v8, %v2463_v25  ;;  %v1872_v5 = vpop.f32.mrb[114].mxu1  ;;  %v2465_v22 = vpop.f32.mrb[114].mxu0 }
 0x3a5   : > { %3016 = vst [vmem:[#allocation2 + $0x120] sm:$0xff] %v2904_v30  ;;  %3553 = vst [vmem:[#allocation2 + $0x820] sm:$0xff] %v3440_v36  ;;  %v2905_v34 = vadd.f32 %v15476_v31, %v1872_v5  ;;  %v3441_v16 = vadd.f32 %v15479_v35, %v2465_v22  ;;  %v1874_v7 = vpop.f32.mrb[115].mxu1  ;;  %v2467_v37 = vpop.f32.mrb[115].mxu0  ;;  %v717_v30 = vld [vmem:[%s13987_s18 + $0x2e8] sm:$0xff] }
 0x3a6   : > { %3284 = vst [vmem:[#allocation2 + $0x4a0] sm:$0xff] %v3171_v23  ;;  %3822 = vst [vmem:[#allocation2 + $0xba0] sm:$0xff] %v3709_v20  ;;  %v3172_v29 = vadd.f32 %v15482_v33, %v1874_v7  ;;  %v3710_v6 = vadd.f32 %v15485_v8, %v2467_v37  ;;  %v782_v22 = vpack.c.bf16 %v717_v30, %v716_v3 }
 0x3a7   : > { %3017 = vst [vmem:[#allocation2 + $0x128] sm:$0xff] %v2905_v34  ;;  %3554 = vst [vmem:[#allocation2 + $0x828] sm:$0xff] %v3441_v16  ;;  %9997 = vmatmul.mubr.msk.bf16.gmra.mrb[220].mxu1 %vm1472_vm3, %v781_v10  ;;  %10054 = vmatmul.mubr.msk.bf16.gmra.mrb[220].mxu0 %vm1472_vm3, %v781_v10 }
 0x3a8   : > { %3285 = vst [vmem:[#allocation2 + $0x4a8] sm:$0xff] %v3172_v29  ;;  %3823 = vst [vmem:[#allocation2 + $0xba8] sm:$0xff] %v3710_v6  ;;  %2146 = vmatprep.mubr.bf16.mxu1 %v18589_v2  ;;  %2739 = vmatprep.mubr.bf16.mxu0 %v18589_v2 }
 0x3aa   : > { %v1878_v36 = vpop.f32.mrb[116].mxu1  ;;  %v2471_v32 = vpop.f32.mrb[116].mxu0 }
 0x3ab   : > { %v2906_v25 = vadd.f32 %v15476_v31, %v1878_v36  ;;  %v3442_v23 = vadd.f32 %v15479_v35, %v2471_v32  ;;  %v1880_v20 = vpop.f32.mrb[117].mxu1  ;;  %v2473_v5 = vpop.f32.mrb[117].mxu0  ;;  %v718_v32 = vld [vmem:[%s13987_s18 + $0x2f0] sm:$0xff] }
 0x3ac   : > { %v3173_v34 = vadd.f32 %v15482_v33, %v1880_v20  ;;  %v3711_v10 = vadd.f32 %v15485_v8, %v2473_v5  ;;  %v1882_v16 = vpop.f32.mrb[118].mxu1  ;;  %v2475_v7 = vpop.f32.mrb[118].mxu0 }
 0x3ad   : > { %3018 = vst [vmem:[#allocation2 + $0x130] sm:$0xff] %v2906_v25  ;;  %3555 = vst [vmem:[#allocation2 + $0x830] sm:$0xff] %v3442_v23  ;;  %v2907_v37 = vadd.f32 %v15476_v31, %v1882_v16  ;;  %v3443_v29 = vadd.f32 %v15479_v35, %v2475_v7  ;;  %v1884_v6 = vpop.f32.mrb[119].mxu1  ;;  %v2477_v36 = vpop.f32.mrb[119].mxu0  ;;  %v719_v25 = vld [vmem:[%s13987_s18 + $0x2f8] sm:$0xff] }
 0x3ae   : > { %3286 = vst [vmem:[#allocation2 + $0x4b0] sm:$0xff] %v3173_v34  ;;  %3824 = vst [vmem:[#allocation2 + $0xbb0] sm:$0xff] %v3711_v10  ;;  %v3174_v3 = vadd.f32 %v15482_v33, %v1884_v6  ;;  %v3712_v30 = vadd.f32 %v15485_v8, %v2477_v36  ;;  %v783_v7 = vpack.c.bf16 %v719_v25, %v718_v32 }
 0x3af   : > { %3019 = vst [vmem:[#allocation2 + $0x138] sm:$0xff] %v2907_v37  ;;  %3556 = vst [vmem:[#allocation2 + $0x838] sm:$0xff] %v3443_v29  ;;  %9998 = vmatmul.mubr.msk.bf16.gmra.mrb[224].mxu1 %vm1472_vm3, %v782_v22  ;;  %10055 = vmatmul.mubr.msk.bf16.gmra.mrb[224].mxu0 %vm1472_vm3, %v782_v22 }
 0x3b0   : > { %3287 = vst [vmem:[#allocation2 + $0x4b8] sm:$0xff] %v3174_v3  ;;  %3825 = vst [vmem:[#allocation2 + $0xbb8] sm:$0xff] %v3712_v30  ;;  %2156 = vmatprep.mubr.bf16.mxu1 %v18589_v2  ;;  %2749 = vmatprep.mubr.bf16.mxu0 %v18589_v2 }
 0x3b2   : > { %v1888_v23 = vpop.f32.mrb[120].mxu1  ;;  %v2481_v20 = vpop.f32.mrb[120].mxu0 }
 0x3b3   : > { %v2908_v5 = vadd.f32 %v15476_v31, %v1888_v23  ;;  %v3444_v34 = vadd.f32 %v15479_v35, %v2481_v20  ;;  %v1890_v10 = vpop.f32.mrb[121].mxu1  ;;  %v2483_v16 = vpop.f32.mrb[121].mxu0  ;;  %v720_v20 = vld [vmem:[%s13987_s18 + $0x300] sm:$0xff] }
 0x3b4   : > { %v3175_v37 = vadd.f32 %v15482_v33, %v1890_v10  ;;  %v3713_v22 = vadd.f32 %v15485_v8, %v2483_v16  ;;  %v1892_v29 = vpop.f32.mrb[122].mxu1  ;;  %v2485_v6 = vpop.f32.mrb[122].mxu0 }
 0x3b5   : > { %3020 = vst [vmem:[#allocation2 + $0x140] sm:$0xff] %v2908_v5  ;;  %3557 = vst [vmem:[#allocation2 + $0x840] sm:$0xff] %v3444_v34  ;;  %v2909_v36 = vadd.f32 %v15476_v31, %v1892_v29  ;;  %v3445_v3 = vadd.f32 %v15479_v35, %v2485_v6  ;;  %v1894_v30 = vpop.f32.mrb[123].mxu1  ;;  %v2487_v23 = vpop.f32.mrb[123].mxu0  ;;  %v721_v5 = vld [vmem:[%s13987_s18 + $0x308] sm:$0xff] }
 0x3b6   : > { %3288 = vst [vmem:[#allocation2 + $0x4c0] sm:$0xff] %v3175_v37  ;;  %3826 = vst [vmem:[#allocation2 + $0xbc0] sm:$0xff] %v3713_v22  ;;  %v3176_v32 = vadd.f32 %v15482_v33, %v1894_v30  ;;  %v3714_v25 = vadd.f32 %v15485_v8, %v2487_v23  ;;  %v784_v6 = vpack.c.bf16 %v721_v5, %v720_v20 }
 0x3b7   : > { %3021 = vst [vmem:[#allocation2 + $0x148] sm:$0xff] %v2909_v36  ;;  %3558 = vst [vmem:[#allocation2 + $0x848] sm:$0xff] %v3445_v3  ;;  %9999 = vmatmul.mubr.msk.bf16.gmra.mrb[228].mxu1 %vm1472_vm3, %v783_v7  ;;  %10056 = vmatmul.mubr.msk.bf16.gmra.mrb[228].mxu0 %vm1472_vm3, %v783_v7 }
 0x3b8   : > { %3289 = vst [vmem:[#allocation2 + $0x4c8] sm:$0xff] %v3176_v32  ;;  %3827 = vst [vmem:[#allocation2 + $0xbc8] sm:$0xff] %v3714_v25  ;;  %2166 = vmatprep.mubr.bf16.mxu1 %v18589_v2  ;;  %2759 = vmatprep.mubr.bf16.mxu0 %v18589_v2 }
 0x3ba   : > { %v1898_v34 = vpop.f32.mrb[124].mxu1  ;;  %v2491_v10 = vpop.f32.mrb[124].mxu0 }
 0x3bb   : > { %v2910_v16 = vadd.f32 %v15476_v31, %v1898_v34  ;;  %v3446_v37 = vadd.f32 %v15479_v35, %v2491_v10  ;;  %v1900_v22 = vpop.f32.mrb[125].mxu1  ;;  %v2493_v29 = vpop.f32.mrb[125].mxu0  ;;  %v722_v10 = vld [vmem:[%s13987_s18 + $0x310] sm:$0xff] }
 0x3bc   : > { %v3177_v36 = vadd.f32 %v15482_v33, %v1900_v22  ;;  %v3715_v7 = vadd.f32 %v15485_v8, %v2493_v29  ;;  %v1902_v3 = vpop.f32.mrb[126].mxu1  ;;  %v2495_v30 = vpop.f32.mrb[126].mxu0 }
 0x3bd   : > { %3022 = vst [vmem:[#allocation2 + $0x150] sm:$0xff] %v2910_v16  ;;  %3559 = vst [vmem:[#allocation2 + $0x850] sm:$0xff] %v3446_v37  ;;  %v2911_v23 = vadd.f32 %v15476_v31, %v1902_v3  ;;  %v3447_v32 = vadd.f32 %v15479_v35, %v2495_v30  ;;  %v1904_v25 = vpop.f32.mrb[127].mxu1  ;;  %v2497_v34 = vpop.f32.mrb[127].mxu0  ;;  %v723_v16 = vld [vmem:[%s13987_s18 + $0x318] sm:$0xff] }
 0x3be   : > { %3290 = vst [vmem:[#allocation2 + $0x4d0] sm:$0xff] %v3177_v36  ;;  %3828 = vst [vmem:[#allocation2 + $0xbd0] sm:$0xff] %v3715_v7  ;;  %v3178_v20 = vadd.f32 %v15482_v33, %v1904_v25  ;;  %v3716_v5 = vadd.f32 %v15485_v8, %v2497_v34  ;;  %v785_v30 = vpack.c.bf16 %v723_v16, %v722_v10 }
 0x3bf   : > { %3023 = vst [vmem:[#allocation2 + $0x158] sm:$0xff] %v2911_v23  ;;  %3560 = vst [vmem:[#allocation2 + $0x858] sm:$0xff] %v3447_v32  ;;  %10000 = vmatmul.mubr.msk.bf16.gmra.mrb[232].mxu1 %vm1472_vm3, %v784_v6  ;;  %10057 = vmatmul.mubr.msk.bf16.gmra.mrb[232].mxu0 %vm1472_vm3, %v784_v6 }
 0x3c0   : > { %3291 = vst [vmem:[#allocation2 + $0x4d8] sm:$0xff] %v3178_v20  ;;  %3829 = vst [vmem:[#allocation2 + $0xbd8] sm:$0xff] %v3716_v5  ;;  %2176 = vmatprep.mubr.bf16.mxu1 %v18589_v2  ;;  %2769 = vmatprep.mubr.bf16.mxu0 %v18589_v2 }
 0x3c2   : > { %v1908_v37 = vpop.f32.mrb[128].mxu1  ;;  %v2501_v22 = vpop.f32.mrb[128].mxu0 }
 0x3c3   : > { %v2912_v29 = vadd.f32 %v15476_v31, %v1908_v37  ;;  %v3448_v36 = vadd.f32 %v15479_v35, %v2501_v22  ;;  %v1910_v7 = vpop.f32.mrb[129].mxu1  ;;  %v2503_v3 = vpop.f32.mrb[129].mxu0  ;;  %v724_v22 = vld [vmem:[%s13987_s18 + $0x320] sm:$0xff] }
 0x3c4   : > { %v3179_v23 = vadd.f32 %v15482_v33, %v1910_v7  ;;  %v3717_v6 = vadd.f32 %v15485_v8, %v2503_v3  ;;  %v1912_v32 = vpop.f32.mrb[130].mxu1  ;;  %v2505_v25 = vpop.f32.mrb[130].mxu0 }
 0x3c5   : > { %3024 = vst [vmem:[#allocation2 + $0x160] sm:$0xff] %v2912_v29  ;;  %3561 = vst [vmem:[#allocation2 + $0x860] sm:$0xff] %v3448_v36  ;;  %v2913_v34 = vadd.f32 %v15476_v31, %v1912_v32  ;;  %v3449_v20 = vadd.f32 %v15479_v35, %v2505_v25  ;;  %v1914_v5 = vpop.f32.mrb[131].mxu1  ;;  %v2507_v37 = vpop.f32.mrb[131].mxu0  ;;  %v725_v29 = vld [vmem:[%s13987_s18 + $0x328] sm:$0xff] }
 0x3c6   : > { %3292 = vst [vmem:[#allocation2 + $0x4e0] sm:$0xff] %v3179_v23  ;;  %3830 = vst [vmem:[#allocation2 + $0xbe0] sm:$0xff] %v3717_v6  ;;  %v3180_v10 = vadd.f32 %v15482_v33, %v1914_v5  ;;  %v3718_v16 = vadd.f32 %v15485_v8, %v2507_v37  ;;  %v786_v25 = vpack.c.bf16 %v725_v29, %v724_v22 }
 0x3c7   : > { %3025 = vst [vmem:[#allocation2 + $0x168] sm:$0xff] %v2913_v34  ;;  %3562 = vst [vmem:[#allocation2 + $0x868] sm:$0xff] %v3449_v20  ;;  %10001 = vmatmul.mubr.msk.bf16.gmra.mrb[236].mxu1 %vm1472_vm3, %v785_v30  ;;  %10058 = vmatmul.mubr.msk.bf16.gmra.mrb[236].mxu0 %vm1472_vm3, %v785_v30 }
 0x3c8   : > { %3293 = vst [vmem:[#allocation2 + $0x4e8] sm:$0xff] %v3180_v10  ;;  %3831 = vst [vmem:[#allocation2 + $0xbe8] sm:$0xff] %v3718_v16  ;;  %2186 = vmatprep.mubr.bf16.mxu1 %v18589_v2  ;;  %2779 = vmatprep.mubr.bf16.mxu0 %v18589_v2 }
 0x3ca   : > { %v1918_v36 = vpop.f32.mrb[132].mxu1  ;;  %v2511_v7 = vpop.f32.mrb[132].mxu0 }
 0x3cb   : > { %v2914_v3 = vadd.f32 %v15476_v31, %v1918_v36  ;;  %v3450_v23 = vadd.f32 %v15479_v35, %v2511_v7  ;;  %v1920_v6 = vpop.f32.mrb[133].mxu1  ;;  %v2513_v32 = vpop.f32.mrb[133].mxu0  ;;  %v726_v7 = vld [vmem:[%s13987_s18 + $0x330] sm:$0xff] }
 0x3cc   : > { %v3181_v34 = vadd.f32 %v15482_v33, %v1920_v6  ;;  %v3719_v30 = vadd.f32 %v15485_v8, %v2513_v32  ;;  %v1922_v20 = vpop.f32.mrb[134].mxu1  ;;  %v2515_v5 = vpop.f32.mrb[134].mxu0 }
 0x3cd   : > { %3026 = vst [vmem:[#allocation2 + $0x170] sm:$0xff] %v2914_v3  ;;  %3563 = vst [vmem:[#allocation2 + $0x870] sm:$0xff] %v3450_v23  ;;  %v2915_v37 = vadd.f32 %v15476_v31, %v1922_v20  ;;  %v3451_v10 = vadd.f32 %v15479_v35, %v2515_v5  ;;  %v1924_v16 = vpop.f32.mrb[135].mxu1  ;;  %v2517_v36 = vpop.f32.mrb[135].mxu0  ;;  %v727_v3 = vld [vmem:[%s13987_s18 + $0x338] sm:$0xff] }
 0x3ce   : > { %3294 = vst [vmem:[#allocation2 + $0x4f0] sm:$0xff] %v3181_v34  ;;  %3832 = vst [vmem:[#allocation2 + $0xbf0] sm:$0xff] %v3719_v30  ;;  %v3182_v22 = vadd.f32 %v15482_v33, %v1924_v16  ;;  %v3720_v29 = vadd.f32 %v15485_v8, %v2517_v36  ;;  %v787_v5 = vpack.c.bf16 %v727_v3, %v726_v7 }
 0x3cf   : > { %3027 = vst [vmem:[#allocation2 + $0x178] sm:$0xff] %v2915_v37  ;;  %3564 = vst [vmem:[#allocation2 + $0x878] sm:$0xff] %v3451_v10  ;;  %10002 = vmatmul.mubr.msk.bf16.gmra.mrb[240].mxu1 %vm1472_vm3, %v786_v25  ;;  %10059 = vmatmul.mubr.msk.bf16.gmra.mrb[240].mxu0 %vm1472_vm3, %v786_v25 }
 0x3d0   : > { %3295 = vst [vmem:[#allocation2 + $0x4f8] sm:$0xff] %v3182_v22  ;;  %3833 = vst [vmem:[#allocation2 + $0xbf8] sm:$0xff] %v3720_v29  ;;  %2196 = vmatprep.mubr.bf16.mxu1 %v18589_v2  ;;  %2789 = vmatprep.mubr.bf16.mxu0 %v18589_v2 }
 0x3d2   : > { %v1928_v23 = vpop.f32.mrb[136].mxu1  ;;  %v2521_v6 = vpop.f32.mrb[136].mxu0 }
 0x3d3   : > { %v2916_v32 = vadd.f32 %v15476_v31, %v1928_v23  ;;  %v3452_v34 = vadd.f32 %v15479_v35, %v2521_v6  ;;  %v1930_v30 = vpop.f32.mrb[137].mxu1  ;;  %v2523_v20 = vpop.f32.mrb[137].mxu0  ;;  %v728_v6 = vld [vmem:[%s13987_s18 + $0x340] sm:$0xff] }
 0x3d4   : > { %v3183_v37 = vadd.f32 %v15482_v33, %v1930_v30  ;;  %v3721_v25 = vadd.f32 %v15485_v8, %v2523_v20  ;;  %v1932_v10 = vpop.f32.mrb[138].mxu1  ;;  %v2525_v16 = vpop.f32.mrb[138].mxu0 }
 0x3d5   : > { %3028 = vst [vmem:[#allocation2 + $0x180] sm:$0xff] %v2916_v32  ;;  %3565 = vst [vmem:[#allocation2 + $0x880] sm:$0xff] %v3452_v34  ;;  %v2917_v36 = vadd.f32 %v15476_v31, %v1932_v10  ;;  %v3453_v22 = vadd.f32 %v15479_v35, %v2525_v16  ;;  %v1934_v29 = vpop.f32.mrb[139].mxu1  ;;  %v2527_v23 = vpop.f32.mrb[139].mxu0  ;;  %v729_v32 = vld [vmem:[%s13987_s18 + $0x348] sm:$0xff] }
 0x3d6   : > { %3296 = vst [vmem:[#allocation2 + $0x500] sm:$0xff] %v3183_v37  ;;  %3834 = vst [vmem:[#allocation2 + $0xc00] sm:$0xff] %v3721_v25  ;;  %v3184_v7 = vadd.f32 %v15482_v33, %v1934_v29  ;;  %v3722_v3 = vadd.f32 %v15485_v8, %v2527_v23  ;;  %v788_v16 = vpack.c.bf16 %v729_v32, %v728_v6 }
 0x3d7   : > { %3029 = vst [vmem:[#allocation2 + $0x188] sm:$0xff] %v2917_v36  ;;  %3566 = vst [vmem:[#allocation2 + $0x888] sm:$0xff] %v3453_v22  ;;  %10003 = vmatmul.mubr.msk.bf16.gmra.mrb[244].mxu1 %vm1472_vm3, %v787_v5  ;;  %10060 = vmatmul.mubr.msk.bf16.gmra.mrb[244].mxu0 %vm1472_vm3, %v787_v5 }
 0x3d8   : > { %3297 = vst [vmem:[#allocation2 + $0x508] sm:$0xff] %v3184_v7  ;;  %3835 = vst [vmem:[#allocation2 + $0xc08] sm:$0xff] %v3722_v3  ;;  %2206 = vmatprep.mubr.bf16.mxu1 %v18589_v2  ;;  %2799 = vmatprep.mubr.bf16.mxu0 %v18589_v2 }
 0x3da   : > { %v1938_v34 = vpop.f32.mrb[140].mxu1  ;;  %v2531_v30 = vpop.f32.mrb[140].mxu0 }
 0x3db   : > { %v2918_v20 = vadd.f32 %v15476_v31, %v1938_v34  ;;  %v3454_v37 = vadd.f32 %v15479_v35, %v2531_v30  ;;  %v1940_v25 = vpop.f32.mrb[141].mxu1  ;;  %v2533_v10 = vpop.f32.mrb[141].mxu0  ;;  %v730_v30 = vld [vmem:[%s13987_s18 + $0x350] sm:$0xff] }
 0x3dc   : > { %v3185_v36 = vadd.f32 %v15482_v33, %v1940_v25  ;;  %v3723_v5 = vadd.f32 %v15485_v8, %v2533_v10  ;;  %v1942_v22 = vpop.f32.mrb[142].mxu1  ;;  %v2535_v29 = vpop.f32.mrb[142].mxu0 }
 0x3dd   : > { %3030 = vst [vmem:[#allocation2 + $0x190] sm:$0xff] %v2918_v20  ;;  %3567 = vst [vmem:[#allocation2 + $0x890] sm:$0xff] %v3454_v37  ;;  %v2919_v23 = vadd.f32 %v15476_v31, %v1942_v22  ;;  %v3455_v7 = vadd.f32 %v15479_v35, %v2535_v29  ;;  %v1944_v3 = vpop.f32.mrb[143].mxu1  ;;  %v2537_v34 = vpop.f32.mrb[143].mxu0  ;;  %v731_v20 = vld [vmem:[%s13987_s18 + $0x358] sm:$0xff] }
 0x3de   : > { %3298 = vst [vmem:[#allocation2 + $0x510] sm:$0xff] %v3185_v36  ;;  %3836 = vst [vmem:[#allocation2 + $0xc10] sm:$0xff] %v3723_v5  ;;  %v3186_v6 = vadd.f32 %v15482_v33, %v1944_v3  ;;  %v3724_v32 = vadd.f32 %v15485_v8, %v2537_v34  ;;  %v789_v29 = vpack.c.bf16 %v731_v20, %v730_v30 }
 0x3df   : > { %3031 = vst [vmem:[#allocation2 + $0x198] sm:$0xff] %v2919_v23  ;;  %3568 = vst [vmem:[#allocation2 + $0x898] sm:$0xff] %v3455_v7  ;;  %10004 = vmatmul.mubr.msk.bf16.gmra.mrb[248].mxu1 %vm1472_vm3, %v788_v16  ;;  %10061 = vmatmul.mubr.msk.bf16.gmra.mrb[248].mxu0 %vm1472_vm3, %v788_v16 }
 0x3e0   : > { %3299 = vst [vmem:[#allocation2 + $0x518] sm:$0xff] %v3186_v6  ;;  %3837 = vst [vmem:[#allocation2 + $0xc18] sm:$0xff] %v3724_v32  ;;  %2216 = vmatprep.mubr.bf16.mxu1 %v18589_v2  ;;  %2809 = vmatprep.mubr.bf16.mxu0 %v18589_v2 }
 0x3e2   : > { %v1948_v37 = vpop.f32.mrb[144].mxu1  ;;  %v2541_v25 = vpop.f32.mrb[144].mxu0 }
 0x3e3   : > { %v2920_v10 = vadd.f32 %v15476_v31, %v1948_v37  ;;  %v3456_v36 = vadd.f32 %v15479_v35, %v2541_v25  ;;  %v1950_v5 = vpop.f32.mrb[145].mxu1  ;;  %v2543_v22 = vpop.f32.mrb[145].mxu0  ;;  %v732_v25 = vld [vmem:[%s13987_s18 + $0x360] sm:$0xff] }
 0x3e4   : > { %v3187_v23 = vadd.f32 %v15482_v33, %v1950_v5  ;;  %v3725_v16 = vadd.f32 %v15485_v8, %v2543_v22  ;;  %v1952_v7 = vpop.f32.mrb[146].mxu1  ;;  %v2545_v3 = vpop.f32.mrb[146].mxu0 }
 0x3e5   : > { %3032 = vst [vmem:[#allocation2 + $0x1a0] sm:$0xff] %v2920_v10  ;;  %3569 = vst [vmem:[#allocation2 + $0x8a0] sm:$0xff] %v3456_v36  ;;  %v2921_v34 = vadd.f32 %v15476_v31, %v1952_v7  ;;  %v3457_v6 = vadd.f32 %v15479_v35, %v2545_v3  ;;  %v1954_v32 = vpop.f32.mrb[147].mxu1  ;;  %v2547_v37 = vpop.f32.mrb[147].mxu0  ;;  %v733_v10 = vld [vmem:[%s13987_s18 + $0x368] sm:$0xff] }
 0x3e6   : > { %3300 = vst [vmem:[#allocation2 + $0x520] sm:$0xff] %v3187_v23  ;;  %3838 = vst [vmem:[#allocation2 + $0xc20] sm:$0xff] %v3725_v16  ;;  %v3188_v30 = vadd.f32 %v15482_v33, %v1954_v32  ;;  %v3726_v20 = vadd.f32 %v15485_v8, %v2547_v37  ;;  %v790_v3 = vpack.c.bf16 %v733_v10, %v732_v25 }
 0x3e7   : > { %3033 = vst [vmem:[#allocation2 + $0x1a8] sm:$0xff] %v2921_v34  ;;  %3570 = vst [vmem:[#allocation2 + $0x8a8] sm:$0xff] %v3457_v6  ;;  %10005 = vmatmul.mubr.msk.bf16.gmra.mrb[252].mxu1 %vm1472_vm3, %v789_v29  ;;  %10062 = vmatmul.mubr.msk.bf16.gmra.mrb[252].mxu0 %vm1472_vm3, %v789_v29 }
 0x3e8   : > { %3301 = vst [vmem:[#allocation2 + $0x528] sm:$0xff] %v3188_v30  ;;  %3839 = vst [vmem:[#allocation2 + $0xc28] sm:$0xff] %v3726_v20  ;;  %2226 = vmatprep.mubr.bf16.mxu1 %v18589_v2  ;;  %2819 = vmatprep.mubr.bf16.mxu0 %v18589_v2 }
 0x3ea   : > { %v1958_v36 = vpop.f32.mrb[148].mxu1  ;;  %v2551_v5 = vpop.f32.mrb[148].mxu0 }
 0x3eb   : > { %v2922_v22 = vadd.f32 %v15476_v31, %v1958_v36  ;;  %v3458_v23 = vadd.f32 %v15479_v35, %v2551_v5  ;;  %v1960_v16 = vpop.f32.mrb[149].mxu1  ;;  %v2553_v7 = vpop.f32.mrb[149].mxu0  ;;  %v734_v5 = vld [vmem:[%s13987_s18 + $0x370] sm:$0xff] }
 0x3ec   : > { %v3189_v34 = vadd.f32 %v15482_v33, %v1960_v16  ;;  %v3727_v29 = vadd.f32 %v15485_v8, %v2553_v7  ;;  %v1962_v6 = vpop.f32.mrb[150].mxu1  ;;  %v2555_v32 = vpop.f32.mrb[150].mxu0 }
 0x3ed   : > { %3034 = vst [vmem:[#allocation2 + $0x1b0] sm:$0xff] %v2922_v22  ;;  %3571 = vst [vmem:[#allocation2 + $0x8b0] sm:$0xff] %v3458_v23  ;;  %v2923_v37 = vadd.f32 %v15476_v31, %v1962_v6  ;;  %v3459_v30 = vadd.f32 %v15479_v35, %v2555_v32  ;;  %v1964_v20 = vpop.f32.mrb[151].mxu1  ;;  %v2557_v36 = vpop.f32.mrb[151].mxu0  ;;  %v735_v22 = vld [vmem:[%s13987_s18 + $0x378] sm:$0xff] }
 0x3ee   : > { %3302 = vst [vmem:[#allocation2 + $0x530] sm:$0xff] %v3189_v34  ;;  %3840 = vst [vmem:[#allocation2 + $0xc30] sm:$0xff] %v3727_v29  ;;  %v3190_v25 = vadd.f32 %v15482_v33, %v1964_v20  ;;  %v3728_v10 = vadd.f32 %v15485_v8, %v2557_v36  ;;  %v791_v32 = vpack.c.bf16 %v735_v22, %v734_v5 }
 0x3ef   : > { %3035 = vst [vmem:[#allocation2 + $0x1b8] sm:$0xff] %v2923_v37  ;;  %3572 = vst [vmem:[#allocation2 + $0x8b8] sm:$0xff] %v3459_v30  ;;  %10006 = vmatmul.mubr.msk.bf16.gmra.mrb[0].mxu1 %vm1472_vm3, %v790_v3  ;;  %10063 = vmatmul.mubr.msk.bf16.gmra.mrb[0].mxu0 %vm1472_vm3, %v790_v3 }
 0x3f0   : > { %3303 = vst [vmem:[#allocation2 + $0x538] sm:$0xff] %v3190_v25  ;;  %3841 = vst [vmem:[#allocation2 + $0xc38] sm:$0xff] %v3728_v10  ;;  %2236 = vmatprep.mubr.bf16.mxu1 %v18589_v2  ;;  %2829 = vmatprep.mubr.bf16.mxu0 %v18589_v2 }
 0x3f2   : > { %v1968_v23 = vpop.f32.mrb[152].mxu1  ;;  %v2561_v16 = vpop.f32.mrb[152].mxu0 }
 0x3f3   : > { %v2924_v7 = vadd.f32 %v15476_v31, %v1968_v23  ;;  %v3460_v34 = vadd.f32 %v15479_v35, %v2561_v16  ;;  %v1970_v29 = vpop.f32.mrb[153].mxu1  ;;  %v2563_v6 = vpop.f32.mrb[153].mxu0 }
 0x3f4   : > { %v3191_v37 = vadd.f32 %v15482_v33, %v1970_v29  ;;  %v3729_v3 = vadd.f32 %v15485_v8, %v2563_v6  ;;  %v1972_v30 = vpop.f32.mrb[154].mxu1  ;;  %v2565_v20 = vpop.f32.mrb[154].mxu0 }
 0x3f5   : > { %3036 = vst [vmem:[#allocation2 + $0x1c0] sm:$0xff] %v2924_v7  ;;  %3573 = vst [vmem:[#allocation2 + $0x8c0] sm:$0xff] %v3460_v34  ;;  %v2925_v2 = vadd.f32 %v15476_v31, %v1972_v30  ;;  %v3461_v36 = vadd.f32 %v15479_v35, %v2565_v20  ;;  %v1974_v25 = vpop.f32.mrb[155].mxu1  ;;  %v2567_v10 = vpop.f32.mrb[155].mxu0 }
 0x3f6   : > { %3304 = vst [vmem:[#allocation2 + $0x540] sm:$0xff] %v3191_v37  ;;  %3842 = vst [vmem:[#allocation2 + $0xc40] sm:$0xff] %v3729_v3  ;;  %v3192_v23 = vadd.f32 %v15482_v33, %v1974_v25  ;;  %v3730_v5 = vadd.f32 %v15485_v8, %v2567_v10 }
 0x3f7   : > { %3037 = vst [vmem:[#allocation2 + $0x1c8] sm:$0xff] %v2925_v2  ;;  %3574 = vst [vmem:[#allocation2 + $0x8c8] sm:$0xff] %v3461_v36  ;;  %10007 = vmatmul.mubr.msk.bf16.gmra.mrb[4].mxu1 %vm1472_vm3, %v791_v32  ;;  %10064 = vmatmul.mubr.msk.bf16.gmra.mrb[4].mxu0 %vm1472_vm3, %v791_v32 }
 0x3f8   : > { %3305 = vst [vmem:[#allocation2 + $0x548] sm:$0xff] %v3192_v23  ;;  %3843 = vst [vmem:[#allocation2 + $0xc48] sm:$0xff] %v3730_v5 }
 0x3fa   : > { %v1978_v22 = vpop.f32.mrb[156].mxu1  ;;  %v2571_v16 = vpop.f32.mrb[156].mxu0 }
 0x3fb   : > { %v2926_v7 = vadd.f32 %v15476_v31, %v1978_v22  ;;  %v3462_v34 = vadd.f32 %v15479_v35, %v2571_v16  ;;  %v1980_v29 = vpop.f32.mrb[157].mxu1  ;;  %v2573_v6 = vpop.f32.mrb[157].mxu0 }
 0x3fc   : > { %v3193_v37 = vadd.f32 %v15482_v33, %v1980_v29  ;;  %v3731_v3 = vadd.f32 %v15485_v8, %v2573_v6  ;;  %v1982_v30 = vpop.f32.mrb[158].mxu1  ;;  %v2575_v20 = vpop.f32.mrb[158].mxu0 }
 0x3fd   : > { %3038 = vst [vmem:[#allocation2 + $0x1d0] sm:$0xff] %v2926_v7  ;;  %3575 = vst [vmem:[#allocation2 + $0x8d0] sm:$0xff] %v3462_v34  ;;  %v2927_v32 = vadd.f32 %v15476_v31, %v1982_v30  ;;  %v3463_v2 = vadd.f32 %v15479_v35, %v2575_v20  ;;  %v1984_v36 = vpop.f32.mrb[159].mxu1  ;;  %v2577_v25 = vpop.f32.mrb[159].mxu0 }
 0x3fe   : > { %3306 = vst [vmem:[#allocation2 + $0x550] sm:$0xff] %v3193_v37  ;;  %3844 = vst [vmem:[#allocation2 + $0xc50] sm:$0xff] %v3731_v3  ;;  %v3194_v10 = vadd.f32 %v15482_v33, %v1984_v36  ;;  %v3732_v23 = vadd.f32 %v15485_v8, %v2577_v25 }
 0x3ff   : > { %3039 = vst [vmem:[#allocation2 + $0x1d8] sm:$0xff] %v2927_v32  ;;  %3576 = vst [vmem:[#allocation2 + $0x8d8] sm:$0xff] %v3463_v2 }
 0x400   : > { %3307 = vst [vmem:[#allocation2 + $0x558] sm:$0xff] %v3194_v10  ;;  %3845 = vst [vmem:[#allocation2 + $0xc58] sm:$0xff] %v3732_v23 }
 0x402   : > { %v1988_v5 = vpop.f32.mrb[160].mxu1  ;;  %v2581_v22 = vpop.f32.mrb[160].mxu0 }
 0x403   : > { %v2928_v16 = vadd.f32 %v15476_v31, %v1988_v5  ;;  %v3464_v7 = vadd.f32 %v15479_v35, %v2581_v22  ;;  %v1990_v34 = vpop.f32.mrb[161].mxu1  ;;  %v2583_v29 = vpop.f32.mrb[161].mxu0 }
 0x404   : > { %v3195_v6 = vadd.f32 %v15482_v33, %v1990_v34  ;;  %v3733_v37 = vadd.f32 %v15485_v8, %v2583_v29  ;;  %v1992_v3 = vpop.f32.mrb[162].mxu1  ;;  %v2585_v30 = vpop.f32.mrb[162].mxu0 }
 0x405   : > { %3040 = vst [vmem:[#allocation2 + $0x1e0] sm:$0xff] %v2928_v16  ;;  %3577 = vst [vmem:[#allocation2 + $0x8e0] sm:$0xff] %v3464_v7  ;;  %v2929_v20 = vadd.f32 %v15476_v31, %v1992_v3  ;;  %v3465_v32 = vadd.f32 %v15479_v35, %v2585_v30  ;;  %v1994_v2 = vpop.f32.mrb[163].mxu1  ;;  %v2587_v36 = vpop.f32.mrb[163].mxu0 }
 0x406   : > { %3308 = vst [vmem:[#allocation2 + $0x560] sm:$0xff] %v3195_v6  ;;  %3846 = vst [vmem:[#allocation2 + $0xc60] sm:$0xff] %v3733_v37  ;;  %v3196_v25 = vadd.f32 %v15482_v33, %v1994_v2  ;;  %v3734_v10 = vadd.f32 %v15485_v8, %v2587_v36 }
 0x407   : > { %3041 = vst [vmem:[#allocation2 + $0x1e8] sm:$0xff] %v2929_v20  ;;  %3578 = vst [vmem:[#allocation2 + $0x8e8] sm:$0xff] %v3465_v32 }
 0x408   : > { %3309 = vst [vmem:[#allocation2 + $0x568] sm:$0xff] %v3196_v25  ;;  %3847 = vst [vmem:[#allocation2 + $0xc68] sm:$0xff] %v3734_v10 }
 0x40a   : > { %v1998_v23 = vpop.f32.mrb[164].mxu1  ;;  %v2591_v5 = vpop.f32.mrb[164].mxu0 }
 0x40b   : > { %v2930_v22 = vadd.f32 %v15476_v31, %v1998_v23  ;;  %v3466_v16 = vadd.f32 %v15479_v35, %v2591_v5  ;;  %v2000_v7 = vpop.f32.mrb[165].mxu1  ;;  %v2593_v34 = vpop.f32.mrb[165].mxu0 }
 0x40c   : > { %v3197_v29 = vadd.f32 %v15482_v33, %v2000_v7  ;;  %v3735_v6 = vadd.f32 %v15485_v8, %v2593_v34  ;;  %v2002_v37 = vpop.f32.mrb[166].mxu1  ;;  %v2595_v3 = vpop.f32.mrb[166].mxu0 }
 0x40d   : > { %3042 = vst [vmem:[#allocation2 + $0x1f0] sm:$0xff] %v2930_v22  ;;  %3579 = vst [vmem:[#allocation2 + $0x8f0] sm:$0xff] %v3466_v16  ;;  %v2931_v30 = vadd.f32 %v15476_v31, %v2002_v37  ;;  %v3467_v20 = vadd.f32 %v15479_v35, %v2595_v3  ;;  %v2004_v32 = vpop.f32.mrb[167].mxu1  ;;  %v2597_v2 = vpop.f32.mrb[167].mxu0 }
 0x40e   : > { %3310 = vst [vmem:[#allocation2 + $0x570] sm:$0xff] %v3197_v29  ;;  %3848 = vst [vmem:[#allocation2 + $0xc70] sm:$0xff] %v3735_v6  ;;  %v3198_v36 = vadd.f32 %v15482_v33, %v2004_v32  ;;  %v3736_v25 = vadd.f32 %v15485_v8, %v2597_v2 }
 0x40f   : > { %3043 = vst [vmem:[#allocation2 + $0x1f8] sm:$0xff] %v2931_v30  ;;  %3580 = vst [vmem:[#allocation2 + $0x8f8] sm:$0xff] %v3467_v20 }
 0x410   : > { %3311 = vst [vmem:[#allocation2 + $0x578] sm:$0xff] %v3198_v36  ;;  %3849 = vst [vmem:[#allocation2 + $0xc78] sm:$0xff] %v3736_v25 }
 0x412   : > { %v2008_v10 = vpop.f32.mrb[168].mxu1  ;;  %v2601_v23 = vpop.f32.mrb[168].mxu0 }
 0x413   : > { %v2932_v5 = vadd.f32 %v15476_v31, %v2008_v10  ;;  %v3468_v22 = vadd.f32 %v15479_v35, %v2601_v23  ;;  %v2010_v16 = vpop.f32.mrb[169].mxu1  ;;  %v2603_v7 = vpop.f32.mrb[169].mxu0 }
 0x414   : > { %v3199_v34 = vadd.f32 %v15482_v33, %v2010_v16  ;;  %v3737_v29 = vadd.f32 %v15485_v8, %v2603_v7  ;;  %v2012_v6 = vpop.f32.mrb[170].mxu1  ;;  %v2605_v37 = vpop.f32.mrb[170].mxu0 }
 0x415   : > { %3044 = vst [vmem:[#allocation2 + $0x200] sm:$0xff] %v2932_v5  ;;  %3581 = vst [vmem:[#allocation2 + $0x900] sm:$0xff] %v3468_v22  ;;  %v2933_v3 = vadd.f32 %v15476_v31, %v2012_v6  ;;  %v3469_v30 = vadd.f32 %v15479_v35, %v2605_v37  ;;  %v2014_v20 = vpop.f32.mrb[171].mxu1  ;;  %v2607_v32 = vpop.f32.mrb[171].mxu0 }
 0x416   : > { %3312 = vst [vmem:[#allocation2 + $0x580] sm:$0xff] %v3199_v34  ;;  %3850 = vst [vmem:[#allocation2 + $0xc80] sm:$0xff] %v3737_v29  ;;  %v3200_v2 = vadd.f32 %v15482_v33, %v2014_v20  ;;  %v3738_v36 = vadd.f32 %v15485_v8, %v2607_v32 }
 0x417   : > { %3045 = vst [vmem:[#allocation2 + $0x208] sm:$0xff] %v2933_v3  ;;  %3582 = vst [vmem:[#allocation2 + $0x908] sm:$0xff] %v3469_v30 }
 0x418   : > { %3313 = vst [vmem:[#allocation2 + $0x588] sm:$0xff] %v3200_v2  ;;  %3851 = vst [vmem:[#allocation2 + $0xc88] sm:$0xff] %v3738_v36 }
 0x41a   : > { %v2018_v25 = vpop.f32.mrb[172].mxu1  ;;  %v2611_v10 = vpop.f32.mrb[172].mxu0 }
 0x41b   : > { %v2934_v23 = vadd.f32 %v15476_v31, %v2018_v25  ;;  %v3470_v5 = vadd.f32 %v15479_v35, %v2611_v10  ;;  %v2020_v22 = vpop.f32.mrb[173].mxu1  ;;  %v2613_v16 = vpop.f32.mrb[173].mxu0 }
 0x41c   : > { %v3201_v7 = vadd.f32 %v15482_v33, %v2020_v22  ;;  %v3739_v34 = vadd.f32 %v15485_v8, %v2613_v16  ;;  %v2022_v29 = vpop.f32.mrb[174].mxu1  ;;  %v2615_v6 = vpop.f32.mrb[174].mxu0 }
 0x41d   : > { %3046 = vst [vmem:[#allocation2 + $0x210] sm:$0xff] %v2934_v23  ;;  %3583 = vst [vmem:[#allocation2 + $0x910] sm:$0xff] %v3470_v5  ;;  %v2935_v37 = vadd.f32 %v15476_v31, %v2022_v29  ;;  %v3471_v3 = vadd.f32 %v15479_v35, %v2615_v6  ;;  %v2024_v30 = vpop.f32.mrb[175].mxu1  ;;  %v2617_v20 = vpop.f32.mrb[175].mxu0  ;;  %v15702_v6 = vld [vmem:[#allocation19] ss:$0 sm:$0xff] }
 0x41e   : > { %3314 = vst [vmem:[#allocation2 + $0x590] sm:$0xff] %v3201_v7  ;;  %3852 = vst [vmem:[#allocation2 + $0xc90] sm:$0xff] %v3739_v34  ;;  %v3202_v32 = vadd.f32 %v15482_v33, %v2024_v30  ;;  %v3740_v2 = vadd.f32 %v15485_v8, %v2617_v20  ;;  %v15708_v20 = vld [vmem:[#allocation19 + $0x8] ss:$0 sm:$0xff] }
 0x41f   : > { %3047 = vst [vmem:[#allocation2 + $0x218] sm:$0xff] %v2935_v37  ;;  %3584 = vst [vmem:[#allocation2 + $0x918] sm:$0xff] %v3471_v3  ;;  %v15705_v3 = vld [vmem:[#allocation19 + $0x10] ss:$0 sm:$0xff] }
 0x420   : > { %3315 = vst [vmem:[#allocation2 + $0x598] sm:$0xff] %v3202_v32  ;;  %3853 = vst [vmem:[#allocation2 + $0xc98] sm:$0xff] %v3740_v2 }
 0x422   : > { %v2028_v36 = vpop.f32.mrb[176].mxu1  ;;  %v2621_v25 = vpop.f32.mrb[176].mxu0 }
 0x423   : > { %v2936_v10 = vadd.f32 %v15476_v31, %v2028_v36  ;;  %v3472_v23 = vadd.f32 %v15479_v35, %v2621_v25  ;;  %v2030_v5 = vpop.f32.mrb[177].mxu1  ;;  %v2623_v22 = vpop.f32.mrb[177].mxu0 }
 0x424   : > { %v3203_v16 = vadd.f32 %v15482_v33, %v2030_v5  ;;  %v3741_v7 = vadd.f32 %v15485_v8, %v2623_v22  ;;  %v2032_v34 = vpop.f32.mrb[178].mxu1  ;;  %v2625_v29 = vpop.f32.mrb[178].mxu0  ;;  %v15711_v8 = vld [vmem:[#allocation19 + $0x18] ss:$0 sm:$0xff] }
 0x425   : > { %3048 = vst [vmem:[#allocation2 + $0x220] sm:$0xff] %v2936_v10  ;;  %3585 = vst [vmem:[#allocation2 + $0x920] sm:$0xff] %v3472_v23  ;;  %v2937_v37 = vadd.f32 %v15702_v6, %v2032_v34  ;;  %v3473_v31 = vadd.f32 %v15705_v3, %v2625_v29  ;;  %v2034_v30 = vpop.f32.mrb[179].mxu1  ;;  %v2627_v35 = vpop.f32.mrb[179].mxu0 }
 0x426   : > { %3316 = vst [vmem:[#allocation2 + $0x5a0] sm:$0xff] %v3203_v16  ;;  %3854 = vst [vmem:[#allocation2 + $0xca0] sm:$0xff] %v3741_v7  ;;  %v3204_v33 = vadd.f32 %v15708_v20, %v2034_v30  ;;  %v3742_v32 = vadd.f32 %v15711_v8, %v2627_v35 }
 0x427   : > { %3049 = vst [vmem:[#allocation2 + $0x228] sm:$0xff] %v2937_v37  ;;  %3586 = vst [vmem:[#allocation2 + $0x928] sm:$0xff] %v3473_v31 }
 0x428   : > { %3317 = vst [vmem:[#allocation2 + $0x5a8] sm:$0xff] %v3204_v33  ;;  %3855 = vst [vmem:[#allocation2 + $0xca8] sm:$0xff] %v3742_v32 }
 0x42a   : > { %v2038_v2 = vpop.f32.mrb[180].mxu1  ;;  %v2631_v36 = vpop.f32.mrb[180].mxu0 }
 0x42b   : > { %v2938_v25 = vadd.f32 %v15702_v6, %v2038_v2  ;;  %v3474_v10 = vadd.f32 %v15705_v3, %v2631_v36  ;;  %v2040_v23 = vpop.f32.mrb[181].mxu1  ;;  %v2633_v5 = vpop.f32.mrb[181].mxu0 }
 0x42c   : > { %v3205_v22 = vadd.f32 %v15708_v20, %v2040_v23  ;;  %v3743_v16 = vadd.f32 %v15711_v8, %v2633_v5  ;;  %v2042_v7 = vpop.f32.mrb[182].mxu1  ;;  %v2635_v34 = vpop.f32.mrb[182].mxu0 }
 0x42d   : > { %3050 = vst [vmem:[#allocation2 + $0x230] sm:$0xff] %v2938_v25  ;;  %3587 = vst [vmem:[#allocation2 + $0x930] sm:$0xff] %v3474_v10  ;;  %v2939_v29 = vadd.f32 %v15702_v6, %v2042_v7  ;;  %v3475_v37 = vadd.f32 %v15705_v3, %v2635_v34  ;;  %v2044_v31 = vpop.f32.mrb[183].mxu1  ;;  %v2637_v30 = vpop.f32.mrb[183].mxu0 }
 0x42e   : > { %3318 = vst [vmem:[#allocation2 + $0x5b0] sm:$0xff] %v3205_v22  ;;  %3856 = vst [vmem:[#allocation2 + $0xcb0] sm:$0xff] %v3743_v16  ;;  %v3206_v35 = vadd.f32 %v15708_v20, %v2044_v31  ;;  %v3744_v33 = vadd.f32 %v15711_v8, %v2637_v30 }
 0x42f   : > { %3051 = vst [vmem:[#allocation2 + $0x238] sm:$0xff] %v2939_v29  ;;  %3588 = vst [vmem:[#allocation2 + $0x938] sm:$0xff] %v3475_v37 }
 0x430   : > { %3319 = vst [vmem:[#allocation2 + $0x5b8] sm:$0xff] %v3206_v35  ;;  %3857 = vst [vmem:[#allocation2 + $0xcb8] sm:$0xff] %v3744_v33 }
 0x432   : > { %v2048_v32 = vpop.f32.mrb[184].mxu1  ;;  %v2641_v2 = vpop.f32.mrb[184].mxu0 }
 0x433   : > { %v2940_v36 = vadd.f32 %v15702_v6, %v2048_v32  ;;  %v3476_v25 = vadd.f32 %v15705_v3, %v2641_v2  ;;  %v2050_v10 = vpop.f32.mrb[185].mxu1  ;;  %v2643_v23 = vpop.f32.mrb[185].mxu0 }
 0x434   : > { %v3207_v5 = vadd.f32 %v15708_v20, %v2050_v10  ;;  %v3745_v22 = vadd.f32 %v15711_v8, %v2643_v23  ;;  %v2052_v16 = vpop.f32.mrb[186].mxu1  ;;  %v2645_v7 = vpop.f32.mrb[186].mxu0 }
 0x435   : > { %3052 = vst [vmem:[#allocation2 + $0x240] sm:$0xff] %v2940_v36  ;;  %3589 = vst [vmem:[#allocation2 + $0x940] sm:$0xff] %v3476_v25  ;;  %v2941_v34 = vadd.f32 %v15702_v6, %v2052_v16  ;;  %v3477_v29 = vadd.f32 %v15705_v3, %v2645_v7  ;;  %v2054_v37 = vpop.f32.mrb[187].mxu1  ;;  %v2647_v31 = vpop.f32.mrb[187].mxu0 }
 0x436   : > { %3320 = vst [vmem:[#allocation2 + $0x5c0] sm:$0xff] %v3207_v5  ;;  %3858 = vst [vmem:[#allocation2 + $0xcc0] sm:$0xff] %v3745_v22  ;;  %v3208_v30 = vadd.f32 %v15708_v20, %v2054_v37  ;;  %v3746_v35 = vadd.f32 %v15711_v8, %v2647_v31 }
 0x437   : > { %3053 = vst [vmem:[#allocation2 + $0x248] sm:$0xff] %v2941_v34  ;;  %3590 = vst [vmem:[#allocation2 + $0x948] sm:$0xff] %v3477_v29 }
 0x438   : > { %3321 = vst [vmem:[#allocation2 + $0x5c8] sm:$0xff] %v3208_v30  ;;  %3859 = vst [vmem:[#allocation2 + $0xcc8] sm:$0xff] %v3746_v35 }
 0x43a   : > { %v2058_v33 = vpop.f32.mrb[188].mxu1  ;;  %v2651_v32 = vpop.f32.mrb[188].mxu0 }
 0x43b   : > { %v2942_v2 = vadd.f32 %v15702_v6, %v2058_v33  ;;  %v3478_v36 = vadd.f32 %v15705_v3, %v2651_v32  ;;  %v2060_v25 = vpop.f32.mrb[189].mxu1  ;;  %v2653_v10 = vpop.f32.mrb[189].mxu0 }
 0x43c   : > { %v3209_v23 = vadd.f32 %v15708_v20, %v2060_v25  ;;  %v3747_v5 = vadd.f32 %v15711_v8, %v2653_v10  ;;  %v2062_v22 = vpop.f32.mrb[190].mxu1  ;;  %v2655_v16 = vpop.f32.mrb[190].mxu0 }
 0x43d   : > { %3054 = vst [vmem:[#allocation2 + $0x250] sm:$0xff] %v2942_v2  ;;  %3591 = vst [vmem:[#allocation2 + $0x950] sm:$0xff] %v3478_v36  ;;  %v2943_v7 = vadd.f32 %v15702_v6, %v2062_v22  ;;  %v3479_v34 = vadd.f32 %v15705_v3, %v2655_v16  ;;  %v2064_v29 = vpop.f32.mrb[191].mxu1  ;;  %v2657_v37 = vpop.f32.mrb[191].mxu0 }
 0x43e   : > { %3322 = vst [vmem:[#allocation2 + $0x5d0] sm:$0xff] %v3209_v23  ;;  %3860 = vst [vmem:[#allocation2 + $0xcd0] sm:$0xff] %v3747_v5  ;;  %v3210_v31 = vadd.f32 %v15708_v20, %v2064_v29  ;;  %v3748_v30 = vadd.f32 %v15711_v8, %v2657_v37 }
 0x43f   : > { %3055 = vst [vmem:[#allocation2 + $0x258] sm:$0xff] %v2943_v7  ;;  %3592 = vst [vmem:[#allocation2 + $0x958] sm:$0xff] %v3479_v34 }
 0x440   : > { %3323 = vst [vmem:[#allocation2 + $0x5d8] sm:$0xff] %v3210_v31  ;;  %3861 = vst [vmem:[#allocation2 + $0xcd8] sm:$0xff] %v3748_v30 }
 0x442   : > { %v2068_v35 = vpop.f32.mrb[192].mxu1  ;;  %v2661_v33 = vpop.f32.mrb[192].mxu0 }
 0x443   : > { %v2944_v32 = vadd.f32 %v15702_v6, %v2068_v35  ;;  %v3480_v2 = vadd.f32 %v15705_v3, %v2661_v33  ;;  %v2070_v36 = vpop.f32.mrb[193].mxu1  ;;  %v2663_v25 = vpop.f32.mrb[193].mxu0 }
 0x444   : > { %v3211_v10 = vadd.f32 %v15708_v20, %v2070_v36  ;;  %v3749_v23 = vadd.f32 %v15711_v8, %v2663_v25  ;;  %v2072_v5 = vpop.f32.mrb[194].mxu1  ;;  %v2665_v22 = vpop.f32.mrb[194].mxu0 }
 0x445   : > { %3056 = vst [vmem:[#allocation2 + $0x260] sm:$0xff] %v2944_v32  ;;  %3593 = vst [vmem:[#allocation2 + $0x960] sm:$0xff] %v3480_v2  ;;  %v2945_v16 = vadd.f32 %v15702_v6, %v2072_v5  ;;  %v3481_v7 = vadd.f32 %v15705_v3, %v2665_v22  ;;  %v2074_v34 = vpop.f32.mrb[195].mxu1  ;;  %v2667_v29 = vpop.f32.mrb[195].mxu0 }
 0x446   : > { %3324 = vst [vmem:[#allocation2 + $0x5e0] sm:$0xff] %v3211_v10  ;;  %3862 = vst [vmem:[#allocation2 + $0xce0] sm:$0xff] %v3749_v23  ;;  %v3212_v37 = vadd.f32 %v15708_v20, %v2074_v34  ;;  %v3750_v31 = vadd.f32 %v15711_v8, %v2667_v29 }
 0x447   : > { %3057 = vst [vmem:[#allocation2 + $0x268] sm:$0xff] %v2945_v16  ;;  %3594 = vst [vmem:[#allocation2 + $0x968] sm:$0xff] %v3481_v7 }
 0x448   : > { %3325 = vst [vmem:[#allocation2 + $0x5e8] sm:$0xff] %v3212_v37  ;;  %3863 = vst [vmem:[#allocation2 + $0xce8] sm:$0xff] %v3750_v31 }
 0x44a   : > { %v2078_v30 = vpop.f32.mrb[196].mxu1  ;;  %v2671_v35 = vpop.f32.mrb[196].mxu0 }
 0x44b   : > { %v2946_v33 = vadd.f32 %v15702_v6, %v2078_v30  ;;  %v3482_v32 = vadd.f32 %v15705_v3, %v2671_v35  ;;  %v2080_v2 = vpop.f32.mrb[197].mxu1  ;;  %v2673_v36 = vpop.f32.mrb[197].mxu0 }
 0x44c   : > { %v3213_v25 = vadd.f32 %v15708_v20, %v2080_v2  ;;  %v3751_v10 = vadd.f32 %v15711_v8, %v2673_v36  ;;  %v2082_v23 = vpop.f32.mrb[198].mxu1  ;;  %v2675_v5 = vpop.f32.mrb[198].mxu0 }
 0x44d   : > { %3058 = vst [vmem:[#allocation2 + $0x270] sm:$0xff] %v2946_v33  ;;  %3595 = vst [vmem:[#allocation2 + $0x970] sm:$0xff] %v3482_v32  ;;  %v2947_v22 = vadd.f32 %v15702_v6, %v2082_v23  ;;  %v3483_v16 = vadd.f32 %v15705_v3, %v2675_v5  ;;  %v2084_v7 = vpop.f32.mrb[199].mxu1  ;;  %v2677_v34 = vpop.f32.mrb[199].mxu0 }
 0x44e   : > { %3326 = vst [vmem:[#allocation2 + $0x5f0] sm:$0xff] %v3213_v25  ;;  %3864 = vst [vmem:[#allocation2 + $0xcf0] sm:$0xff] %v3751_v10  ;;  %v3214_v29 = vadd.f32 %v15708_v20, %v2084_v7  ;;  %v3752_v37 = vadd.f32 %v15711_v8, %v2677_v34 }
 0x44f   : > { %3059 = vst [vmem:[#allocation2 + $0x278] sm:$0xff] %v2947_v22  ;;  %3596 = vst [vmem:[#allocation2 + $0x978] sm:$0xff] %v3483_v16 }
 0x450   : > { %3327 = vst [vmem:[#allocation2 + $0x5f8] sm:$0xff] %v3214_v29  ;;  %3865 = vst [vmem:[#allocation2 + $0xcf8] sm:$0xff] %v3752_v37 }
 0x452   : > { %v2088_v31 = vpop.f32.mrb[200].mxu1  ;;  %v2681_v30 = vpop.f32.mrb[200].mxu0 }
 0x453   : > { %v2948_v35 = vadd.f32 %v15702_v6, %v2088_v31  ;;  %v3484_v33 = vadd.f32 %v15705_v3, %v2681_v30  ;;  %v2090_v32 = vpop.f32.mrb[201].mxu1  ;;  %v2683_v2 = vpop.f32.mrb[201].mxu0 }
 0x454   : > { %v3215_v36 = vadd.f32 %v15708_v20, %v2090_v32  ;;  %v3753_v25 = vadd.f32 %v15711_v8, %v2683_v2  ;;  %v2092_v10 = vpop.f32.mrb[202].mxu1  ;;  %v2685_v23 = vpop.f32.mrb[202].mxu0 }
 0x455   : > { %3060 = vst [vmem:[#allocation2 + $0x280] sm:$0xff] %v2948_v35  ;;  %3597 = vst [vmem:[#allocation2 + $0x980] sm:$0xff] %v3484_v33  ;;  %v2949_v5 = vadd.f32 %v15702_v6, %v2092_v10  ;;  %v3485_v22 = vadd.f32 %v15705_v3, %v2685_v23  ;;  %v2094_v16 = vpop.f32.mrb[203].mxu1  ;;  %v2687_v7 = vpop.f32.mrb[203].mxu0 }
 0x456   : > { %3328 = vst [vmem:[#allocation2 + $0x600] sm:$0xff] %v3215_v36  ;;  %3866 = vst [vmem:[#allocation2 + $0xd00] sm:$0xff] %v3753_v25  ;;  %v3216_v34 = vadd.f32 %v15708_v20, %v2094_v16  ;;  %v3754_v29 = vadd.f32 %v15711_v8, %v2687_v7 }
 0x457   : > { %3061 = vst [vmem:[#allocation2 + $0x288] sm:$0xff] %v2949_v5  ;;  %3598 = vst [vmem:[#allocation2 + $0x988] sm:$0xff] %v3485_v22 }
 0x458   : > { %3329 = vst [vmem:[#allocation2 + $0x608] sm:$0xff] %v3216_v34  ;;  %3867 = vst [vmem:[#allocation2 + $0xd08] sm:$0xff] %v3754_v29 }
 0x45a   : > { %v2098_v37 = vpop.f32.mrb[204].mxu1  ;;  %v2691_v31 = vpop.f32.mrb[204].mxu0 }
 0x45b   : > { %v2950_v30 = vadd.f32 %v15702_v6, %v2098_v37  ;;  %v3486_v35 = vadd.f32 %v15705_v3, %v2691_v31  ;;  %v2100_v33 = vpop.f32.mrb[205].mxu1  ;;  %v2693_v32 = vpop.f32.mrb[205].mxu0 }
 0x45c   : > { %v3217_v2 = vadd.f32 %v15708_v20, %v2100_v33  ;;  %v3755_v36 = vadd.f32 %v15711_v8, %v2693_v32  ;;  %v2102_v25 = vpop.f32.mrb[206].mxu1  ;;  %v2695_v10 = vpop.f32.mrb[206].mxu0 }
 0x45d   : > { %3062 = vst [vmem:[#allocation2 + $0x290] sm:$0xff] %v2950_v30  ;;  %3599 = vst [vmem:[#allocation2 + $0x990] sm:$0xff] %v3486_v35  ;;  %v2951_v23 = vadd.f32 %v15702_v6, %v2102_v25  ;;  %v3487_v5 = vadd.f32 %v15705_v3, %v2695_v10  ;;  %v2104_v22 = vpop.f32.mrb[207].mxu1  ;;  %v2697_v16 = vpop.f32.mrb[207].mxu0 }
 0x45e   : > { %3330 = vst [vmem:[#allocation2 + $0x610] sm:$0xff] %v3217_v2  ;;  %3868 = vst [vmem:[#allocation2 + $0xd10] sm:$0xff] %v3755_v36  ;;  %v3218_v7 = vadd.f32 %v15708_v20, %v2104_v22  ;;  %v3756_v34 = vadd.f32 %v15711_v8, %v2697_v16 }
 0x45f   : > { %3063 = vst [vmem:[#allocation2 + $0x298] sm:$0xff] %v2951_v23  ;;  %3600 = vst [vmem:[#allocation2 + $0x998] sm:$0xff] %v3487_v5 }
 0x460   : > { %3331 = vst [vmem:[#allocation2 + $0x618] sm:$0xff] %v3218_v7  ;;  %3869 = vst [vmem:[#allocation2 + $0xd18] sm:$0xff] %v3756_v34 }
 0x462   : > { %v2108_v29 = vpop.f32.mrb[208].mxu1  ;;  %v2701_v37 = vpop.f32.mrb[208].mxu0 }
 0x463   : > { %v2952_v31 = vadd.f32 %v15702_v6, %v2108_v29  ;;  %v3488_v30 = vadd.f32 %v15705_v3, %v2701_v37  ;;  %v2110_v35 = vpop.f32.mrb[209].mxu1  ;;  %v2703_v33 = vpop.f32.mrb[209].mxu0 }
 0x464   : > { %v3219_v32 = vadd.f32 %v15708_v20, %v2110_v35  ;;  %v3757_v2 = vadd.f32 %v15711_v8, %v2703_v33  ;;  %v2112_v36 = vpop.f32.mrb[210].mxu1  ;;  %v2705_v25 = vpop.f32.mrb[210].mxu0 }
 0x465   : > { %3064 = vst [vmem:[#allocation2 + $0x2a0] sm:$0xff] %v2952_v31  ;;  %3601 = vst [vmem:[#allocation2 + $0x9a0] sm:$0xff] %v3488_v30  ;;  %v2953_v10 = vadd.f32 %v15702_v6, %v2112_v36  ;;  %v3489_v23 = vadd.f32 %v15705_v3, %v2705_v25  ;;  %v2114_v5 = vpop.f32.mrb[211].mxu1  ;;  %v2707_v22 = vpop.f32.mrb[211].mxu0 }
 0x466   : > { %3332 = vst [vmem:[#allocation2 + $0x620] sm:$0xff] %v3219_v32  ;;  %3870 = vst [vmem:[#allocation2 + $0xd20] sm:$0xff] %v3757_v2  ;;  %v3220_v16 = vadd.f32 %v15708_v20, %v2114_v5  ;;  %v3758_v7 = vadd.f32 %v15711_v8, %v2707_v22 }
 0x467   : > { %3065 = vst [vmem:[#allocation2 + $0x2a8] sm:$0xff] %v2953_v10  ;;  %3602 = vst [vmem:[#allocation2 + $0x9a8] sm:$0xff] %v3489_v23 }
 0x468   : > { %3333 = vst [vmem:[#allocation2 + $0x628] sm:$0xff] %v3220_v16  ;;  %3871 = vst [vmem:[#allocation2 + $0xd28] sm:$0xff] %v3758_v7 }
 0x46a   : > { %v2118_v34 = vpop.f32.mrb[212].mxu1  ;;  %v2711_v29 = vpop.f32.mrb[212].mxu0 }
 0x46b   : > { %v2954_v37 = vadd.f32 %v15702_v6, %v2118_v34  ;;  %v3490_v31 = vadd.f32 %v15705_v3, %v2711_v29  ;;  %v2120_v30 = vpop.f32.mrb[213].mxu1  ;;  %v2713_v35 = vpop.f32.mrb[213].mxu0 }
 0x46c   : > { %v3221_v33 = vadd.f32 %v15708_v20, %v2120_v30  ;;  %v3759_v32 = vadd.f32 %v15711_v8, %v2713_v35  ;;  %v2122_v2 = vpop.f32.mrb[214].mxu1  ;;  %v2715_v36 = vpop.f32.mrb[214].mxu0 }
 0x46d   : > { %3066 = vst [vmem:[#allocation2 + $0x2b0] sm:$0xff] %v2954_v37  ;;  %3603 = vst [vmem:[#allocation2 + $0x9b0] sm:$0xff] %v3490_v31  ;;  %v2955_v25 = vadd.f32 %v15702_v6, %v2122_v2  ;;  %v3491_v10 = vadd.f32 %v15705_v3, %v2715_v36  ;;  %v2124_v23 = vpop.f32.mrb[215].mxu1  ;;  %v2717_v5 = vpop.f32.mrb[215].mxu0 }
 0x46e   : > { %3334 = vst [vmem:[#allocation2 + $0x630] sm:$0xff] %v3221_v33  ;;  %3872 = vst [vmem:[#allocation2 + $0xd30] sm:$0xff] %v3759_v32  ;;  %v3222_v22 = vadd.f32 %v15708_v20, %v2124_v23  ;;  %v3760_v16 = vadd.f32 %v15711_v8, %v2717_v5 }
 0x46f   : > { %3067 = vst [vmem:[#allocation2 + $0x2b8] sm:$0xff] %v2955_v25  ;;  %3604 = vst [vmem:[#allocation2 + $0x9b8] sm:$0xff] %v3491_v10 }
 0x470   : > { %3335 = vst [vmem:[#allocation2 + $0x638] sm:$0xff] %v3222_v22  ;;  %3873 = vst [vmem:[#allocation2 + $0xd38] sm:$0xff] %v3760_v16 }
 0x472   : > { %v2128_v7 = vpop.f32.mrb[216].mxu1  ;;  %v2721_v34 = vpop.f32.mrb[216].mxu0 }
 0x473   : > { %v2956_v29 = vadd.f32 %v15702_v6, %v2128_v7  ;;  %v3492_v37 = vadd.f32 %v15705_v3, %v2721_v34  ;;  %v2130_v31 = vpop.f32.mrb[217].mxu1  ;;  %v2723_v30 = vpop.f32.mrb[217].mxu0 }
 0x474   : > { %v3223_v35 = vadd.f32 %v15708_v20, %v2130_v31  ;;  %v3761_v33 = vadd.f32 %v15711_v8, %v2723_v30  ;;  %v2132_v32 = vpop.f32.mrb[218].mxu1  ;;  %v2725_v2 = vpop.f32.mrb[218].mxu0 }
 0x475   : > { %3068 = vst [vmem:[#allocation2 + $0x2c0] sm:$0xff] %v2956_v29  ;;  %3605 = vst [vmem:[#allocation2 + $0x9c0] sm:$0xff] %v3492_v37  ;;  %v2957_v36 = vadd.f32 %v15702_v6, %v2132_v32  ;;  %v3493_v25 = vadd.f32 %v15705_v3, %v2725_v2  ;;  %v2134_v10 = vpop.f32.mrb[219].mxu1  ;;  %v2727_v23 = vpop.f32.mrb[219].mxu0 }
 0x476   : > { %3336 = vst [vmem:[#allocation2 + $0x640] sm:$0xff] %v3223_v35  ;;  %3874 = vst [vmem:[#allocation2 + $0xd40] sm:$0xff] %v3761_v33  ;;  %v3224_v5 = vadd.f32 %v15708_v20, %v2134_v10  ;;  %v3762_v22 = vadd.f32 %v15711_v8, %v2727_v23 }
 0x477   : > { %3069 = vst [vmem:[#allocation2 + $0x2c8] sm:$0xff] %v2957_v36  ;;  %3606 = vst [vmem:[#allocation2 + $0x9c8] sm:$0xff] %v3493_v25 }
 0x478   : > { %3337 = vst [vmem:[#allocation2 + $0x648] sm:$0xff] %v3224_v5  ;;  %3875 = vst [vmem:[#allocation2 + $0xd48] sm:$0xff] %v3762_v22 }
 0x47a   : > { %v2138_v16 = vpop.f32.mrb[220].mxu1  ;;  %v2731_v7 = vpop.f32.mrb[220].mxu0 }
 0x47b   : > { %v2958_v34 = vadd.f32 %v15702_v6, %v2138_v16  ;;  %v3494_v29 = vadd.f32 %v15705_v3, %v2731_v7  ;;  %v2140_v37 = vpop.f32.mrb[221].mxu1  ;;  %v2733_v31 = vpop.f32.mrb[221].mxu0 }
 0x47c   : > { %v3225_v30 = vadd.f32 %v15708_v20, %v2140_v37  ;;  %v3763_v35 = vadd.f32 %v15711_v8, %v2733_v31  ;;  %v2142_v33 = vpop.f32.mrb[222].mxu1  ;;  %v2735_v32 = vpop.f32.mrb[222].mxu0 }
 0x47d   : > { %3070 = vst [vmem:[#allocation2 + $0x2d0] sm:$0xff] %v2958_v34  ;;  %3607 = vst [vmem:[#allocation2 + $0x9d0] sm:$0xff] %v3494_v29  ;;  %v2959_v2 = vadd.f32 %v15702_v6, %v2142_v33  ;;  %v3495_v36 = vadd.f32 %v15705_v3, %v2735_v32  ;;  %v2144_v25 = vpop.f32.mrb[223].mxu1  ;;  %v2737_v10 = vpop.f32.mrb[223].mxu0 }
 0x47e   : > { %3338 = vst [vmem:[#allocation2 + $0x650] sm:$0xff] %v3225_v30  ;;  %3876 = vst [vmem:[#allocation2 + $0xd50] sm:$0xff] %v3763_v35  ;;  %v3226_v23 = vadd.f32 %v15708_v20, %v2144_v25  ;;  %v3764_v5 = vadd.f32 %v15711_v8, %v2737_v10 }
 0x47f   : > { %3071 = vst [vmem:[#allocation2 + $0x2d8] sm:$0xff] %v2959_v2  ;;  %3608 = vst [vmem:[#allocation2 + $0x9d8] sm:$0xff] %v3495_v36 }
 0x480   : > { %3339 = vst [vmem:[#allocation2 + $0x658] sm:$0xff] %v3226_v23  ;;  %3877 = vst [vmem:[#allocation2 + $0xd58] sm:$0xff] %v3764_v5 }
 0x482   : > { %v2148_v22 = vpop.f32.mrb[224].mxu1  ;;  %v2741_v16 = vpop.f32.mrb[224].mxu0 }
 0x483   : > { %v2960_v7 = vadd.f32 %v15702_v6, %v2148_v22  ;;  %v3496_v34 = vadd.f32 %v15705_v3, %v2741_v16  ;;  %v2150_v29 = vpop.f32.mrb[225].mxu1  ;;  %v2743_v37 = vpop.f32.mrb[225].mxu0 }
 0x484   : > { %v3227_v31 = vadd.f32 %v15708_v20, %v2150_v29  ;;  %v3765_v30 = vadd.f32 %v15711_v8, %v2743_v37  ;;  %v2152_v35 = vpop.f32.mrb[226].mxu1  ;;  %v2745_v33 = vpop.f32.mrb[226].mxu0 }
 0x485   : > { %3072 = vst [vmem:[#allocation2 + $0x2e0] sm:$0xff] %v2960_v7  ;;  %3609 = vst [vmem:[#allocation2 + $0x9e0] sm:$0xff] %v3496_v34  ;;  %v2961_v32 = vadd.f32 %v15702_v6, %v2152_v35  ;;  %v3497_v2 = vadd.f32 %v15705_v3, %v2745_v33  ;;  %v2154_v36 = vpop.f32.mrb[227].mxu1  ;;  %v2747_v25 = vpop.f32.mrb[227].mxu0 }
 0x486   : > { %3340 = vst [vmem:[#allocation2 + $0x660] sm:$0xff] %v3227_v31  ;;  %3878 = vst [vmem:[#allocation2 + $0xd60] sm:$0xff] %v3765_v30  ;;  %v3228_v10 = vadd.f32 %v15708_v20, %v2154_v36  ;;  %v3766_v23 = vadd.f32 %v15711_v8, %v2747_v25 }
 0x487   : > { %3073 = vst [vmem:[#allocation2 + $0x2e8] sm:$0xff] %v2961_v32  ;;  %3610 = vst [vmem:[#allocation2 + $0x9e8] sm:$0xff] %v3497_v2 }
 0x488   : > { %3341 = vst [vmem:[#allocation2 + $0x668] sm:$0xff] %v3228_v10  ;;  %3879 = vst [vmem:[#allocation2 + $0xd68] sm:$0xff] %v3766_v23 }
 0x48a   : > { %v2158_v5 = vpop.f32.mrb[228].mxu1  ;;  %v2751_v22 = vpop.f32.mrb[228].mxu0 }
 0x48b   : > { %v2962_v16 = vadd.f32 %v15702_v6, %v2158_v5  ;;  %v3498_v7 = vadd.f32 %v15705_v3, %v2751_v22  ;;  %v2160_v34 = vpop.f32.mrb[229].mxu1  ;;  %v2753_v29 = vpop.f32.mrb[229].mxu0 }
 0x48c   : > { %v3229_v37 = vadd.f32 %v15708_v20, %v2160_v34  ;;  %v3767_v31 = vadd.f32 %v15711_v8, %v2753_v29  ;;  %v2162_v30 = vpop.f32.mrb[230].mxu1  ;;  %v2755_v35 = vpop.f32.mrb[230].mxu0 }
 0x48d   : > { %3074 = vst [vmem:[#allocation2 + $0x2f0] sm:$0xff] %v2962_v16  ;;  %3611 = vst [vmem:[#allocation2 + $0x9f0] sm:$0xff] %v3498_v7  ;;  %v2963_v33 = vadd.f32 %v15702_v6, %v2162_v30  ;;  %v3499_v32 = vadd.f32 %v15705_v3, %v2755_v35  ;;  %v2164_v2 = vpop.f32.mrb[231].mxu1  ;;  %v2757_v36 = vpop.f32.mrb[231].mxu0 }
 0x48e   : > { %3342 = vst [vmem:[#allocation2 + $0x670] sm:$0xff] %v3229_v37  ;;  %3880 = vst [vmem:[#allocation2 + $0xd70] sm:$0xff] %v3767_v31  ;;  %v3230_v25 = vadd.f32 %v15708_v20, %v2164_v2  ;;  %v3768_v10 = vadd.f32 %v15711_v8, %v2757_v36 }
 0x48f   : > { %3075 = vst [vmem:[#allocation2 + $0x2f8] sm:$0xff] %v2963_v33  ;;  %3612 = vst [vmem:[#allocation2 + $0x9f8] sm:$0xff] %v3499_v32 }
 0x490   : > { %3343 = vst [vmem:[#allocation2 + $0x678] sm:$0xff] %v3230_v25  ;;  %3881 = vst [vmem:[#allocation2 + $0xd78] sm:$0xff] %v3768_v10 }
 0x492   : > { %v2168_v23 = vpop.f32.mrb[232].mxu1  ;;  %v2761_v5 = vpop.f32.mrb[232].mxu0 }
 0x493   : > { %v2964_v22 = vadd.f32 %v15702_v6, %v2168_v23  ;;  %v3500_v16 = vadd.f32 %v15705_v3, %v2761_v5  ;;  %v2170_v7 = vpop.f32.mrb[233].mxu1  ;;  %v2763_v34 = vpop.f32.mrb[233].mxu0 }
 0x494   : > { %v3231_v29 = vadd.f32 %v15708_v20, %v2170_v7  ;;  %v3769_v37 = vadd.f32 %v15711_v8, %v2763_v34  ;;  %v2172_v31 = vpop.f32.mrb[234].mxu1  ;;  %v2765_v30 = vpop.f32.mrb[234].mxu0 }
 0x495   : > { %3076 = vst [vmem:[#allocation2 + $0x300] sm:$0xff] %v2964_v22  ;;  %3613 = vst [vmem:[#allocation2 + $0xa00] sm:$0xff] %v3500_v16  ;;  %v2965_v35 = vadd.f32 %v15702_v6, %v2172_v31  ;;  %v3501_v33 = vadd.f32 %v15705_v3, %v2765_v30  ;;  %v2174_v32 = vpop.f32.mrb[235].mxu1  ;;  %v2767_v2 = vpop.f32.mrb[235].mxu0 }
 0x496   : > { %3344 = vst [vmem:[#allocation2 + $0x680] sm:$0xff] %v3231_v29  ;;  %3882 = vst [vmem:[#allocation2 + $0xd80] sm:$0xff] %v3769_v37  ;;  %v3232_v36 = vadd.f32 %v15708_v20, %v2174_v32  ;;  %v3770_v25 = vadd.f32 %v15711_v8, %v2767_v2 }
 0x497   : > { %3077 = vst [vmem:[#allocation2 + $0x308] sm:$0xff] %v2965_v35  ;;  %3614 = vst [vmem:[#allocation2 + $0xa08] sm:$0xff] %v3501_v33 }
 0x498   : > { %3345 = vst [vmem:[#allocation2 + $0x688] sm:$0xff] %v3232_v36  ;;  %3883 = vst [vmem:[#allocation2 + $0xd88] sm:$0xff] %v3770_v25 }
 0x49a   : > { %v2178_v10 = vpop.f32.mrb[236].mxu1  ;;  %v2771_v23 = vpop.f32.mrb[236].mxu0 }
 0x49b   : > { %v2966_v5 = vadd.f32 %v15702_v6, %v2178_v10  ;;  %v3502_v22 = vadd.f32 %v15705_v3, %v2771_v23  ;;  %v2180_v16 = vpop.f32.mrb[237].mxu1  ;;  %v2773_v7 = vpop.f32.mrb[237].mxu0 }
 0x49c   : > { %v3233_v34 = vadd.f32 %v15708_v20, %v2180_v16  ;;  %v3771_v29 = vadd.f32 %v15711_v8, %v2773_v7  ;;  %v2182_v37 = vpop.f32.mrb[238].mxu1  ;;  %v2775_v31 = vpop.f32.mrb[238].mxu0 }
 0x49d   : > { %3078 = vst [vmem:[#allocation2 + $0x310] sm:$0xff] %v2966_v5  ;;  %3615 = vst [vmem:[#allocation2 + $0xa10] sm:$0xff] %v3502_v22  ;;  %v2967_v30 = vadd.f32 %v15702_v6, %v2182_v37  ;;  %v3503_v35 = vadd.f32 %v15705_v3, %v2775_v31  ;;  %v2184_v33 = vpop.f32.mrb[239].mxu1  ;;  %v2777_v32 = vpop.f32.mrb[239].mxu0 }
 0x49e   : > { %3346 = vst [vmem:[#allocation2 + $0x690] sm:$0xff] %v3233_v34  ;;  %3884 = vst [vmem:[#allocation2 + $0xd90] sm:$0xff] %v3771_v29  ;;  %v3234_v2 = vadd.f32 %v15708_v20, %v2184_v33  ;;  %v3772_v36 = vadd.f32 %v15711_v8, %v2777_v32 }
 0x49f   : > { %3079 = vst [vmem:[#allocation2 + $0x318] sm:$0xff] %v2967_v30  ;;  %3616 = vst [vmem:[#allocation2 + $0xa18] sm:$0xff] %v3503_v35 }
 0x4a0   : > { %3347 = vst [vmem:[#allocation2 + $0x698] sm:$0xff] %v3234_v2  ;;  %3885 = vst [vmem:[#allocation2 + $0xd98] sm:$0xff] %v3772_v36 }
 0x4a2   : > { %v2188_v25 = vpop.f32.mrb[240].mxu1  ;;  %v2781_v10 = vpop.f32.mrb[240].mxu0 }
 0x4a3   : > { %v2968_v23 = vadd.f32 %v15702_v6, %v2188_v25  ;;  %v3504_v5 = vadd.f32 %v15705_v3, %v2781_v10  ;;  %v2190_v22 = vpop.f32.mrb[241].mxu1  ;;  %v2783_v16 = vpop.f32.mrb[241].mxu0 }
 0x4a4   : > { %v3235_v7 = vadd.f32 %v15708_v20, %v2190_v22  ;;  %v3773_v34 = vadd.f32 %v15711_v8, %v2783_v16  ;;  %v2192_v29 = vpop.f32.mrb[242].mxu1  ;;  %v2785_v37 = vpop.f32.mrb[242].mxu0 }
 0x4a5   : > { %3080 = vst [vmem:[#allocation2 + $0x320] sm:$0xff] %v2968_v23  ;;  %3617 = vst [vmem:[#allocation2 + $0xa20] sm:$0xff] %v3504_v5  ;;  %v2969_v31 = vadd.f32 %v15702_v6, %v2192_v29  ;;  %v3505_v30 = vadd.f32 %v15705_v3, %v2785_v37  ;;  %v2194_v35 = vpop.f32.mrb[243].mxu1  ;;  %v2787_v33 = vpop.f32.mrb[243].mxu0 }
 0x4a6   : > { %3348 = vst [vmem:[#allocation2 + $0x6a0] sm:$0xff] %v3235_v7  ;;  %3886 = vst [vmem:[#allocation2 + $0xda0] sm:$0xff] %v3773_v34  ;;  %v3236_v32 = vadd.f32 %v15708_v20, %v2194_v35  ;;  %v3774_v2 = vadd.f32 %v15711_v8, %v2787_v33 }
 0x4a7   : > { %3081 = vst [vmem:[#allocation2 + $0x328] sm:$0xff] %v2969_v31  ;;  %3618 = vst [vmem:[#allocation2 + $0xa28] sm:$0xff] %v3505_v30 }
 0x4a8   : > { %3349 = vst [vmem:[#allocation2 + $0x6a8] sm:$0xff] %v3236_v32  ;;  %3887 = vst [vmem:[#allocation2 + $0xda8] sm:$0xff] %v3774_v2 }
 0x4aa   : > { %v2198_v36 = vpop.f32.mrb[244].mxu1  ;;  %v2791_v25 = vpop.f32.mrb[244].mxu0 }
 0x4ab   : > { %v2970_v10 = vadd.f32 %v15702_v6, %v2198_v36  ;;  %v3506_v23 = vadd.f32 %v15705_v3, %v2791_v25  ;;  %v2200_v5 = vpop.f32.mrb[245].mxu1  ;;  %v2793_v22 = vpop.f32.mrb[245].mxu0 }
 0x4ac   : > { %v3237_v16 = vadd.f32 %v15708_v20, %v2200_v5  ;;  %v3775_v7 = vadd.f32 %v15711_v8, %v2793_v22  ;;  %v2202_v34 = vpop.f32.mrb[246].mxu1  ;;  %v2795_v29 = vpop.f32.mrb[246].mxu0 }
 0x4ad   : > { %3082 = vst [vmem:[#allocation2 + $0x330] sm:$0xff] %v2970_v10  ;;  %3619 = vst [vmem:[#allocation2 + $0xa30] sm:$0xff] %v3506_v23  ;;  %v2971_v37 = vadd.f32 %v15702_v6, %v2202_v34  ;;  %v3507_v31 = vadd.f32 %v15705_v3, %v2795_v29  ;;  %v2204_v30 = vpop.f32.mrb[247].mxu1  ;;  %v2797_v35 = vpop.f32.mrb[247].mxu0 }
 0x4ae   : > { %3350 = vst [vmem:[#allocation2 + $0x6b0] sm:$0xff] %v3237_v16  ;;  %3888 = vst [vmem:[#allocation2 + $0xdb0] sm:$0xff] %v3775_v7  ;;  %v3238_v33 = vadd.f32 %v15708_v20, %v2204_v30  ;;  %v3776_v32 = vadd.f32 %v15711_v8, %v2797_v35 }
 0x4af   : > { %3083 = vst [vmem:[#allocation2 + $0x338] sm:$0xff] %v2971_v37  ;;  %3620 = vst [vmem:[#allocation2 + $0xa38] sm:$0xff] %v3507_v31 }
 0x4b0   : > { %3351 = vst [vmem:[#allocation2 + $0x6b8] sm:$0xff] %v3238_v33  ;;  %3889 = vst [vmem:[#allocation2 + $0xdb8] sm:$0xff] %v3776_v32 }
 0x4b2   : > { %v2208_v2 = vpop.f32.mrb[248].mxu1  ;;  %v2801_v36 = vpop.f32.mrb[248].mxu0 }
 0x4b3   : > { %v2972_v25 = vadd.f32 %v15702_v6, %v2208_v2  ;;  %v3508_v10 = vadd.f32 %v15705_v3, %v2801_v36  ;;  %v2210_v23 = vpop.f32.mrb[249].mxu1  ;;  %v2803_v5 = vpop.f32.mrb[249].mxu0 }
 0x4b4   : > { %v3239_v22 = vadd.f32 %v15708_v20, %v2210_v23  ;;  %v3777_v16 = vadd.f32 %v15711_v8, %v2803_v5  ;;  %v2212_v7 = vpop.f32.mrb[250].mxu1  ;;  %v2805_v34 = vpop.f32.mrb[250].mxu0 }
 0x4b5   : > { %3084 = vst [vmem:[#allocation2 + $0x340] sm:$0xff] %v2972_v25  ;;  %3621 = vst [vmem:[#allocation2 + $0xa40] sm:$0xff] %v3508_v10  ;;  %v2973_v29 = vadd.f32 %v15702_v6, %v2212_v7  ;;  %v3509_v37 = vadd.f32 %v15705_v3, %v2805_v34  ;;  %v2214_v31 = vpop.f32.mrb[251].mxu1  ;;  %v2807_v30 = vpop.f32.mrb[251].mxu0 }
 0x4b6   : > { %3352 = vst [vmem:[#allocation2 + $0x6c0] sm:$0xff] %v3239_v22  ;;  %3890 = vst [vmem:[#allocation2 + $0xdc0] sm:$0xff] %v3777_v16  ;;  %v3240_v35 = vadd.f32 %v15708_v20, %v2214_v31  ;;  %v3778_v33 = vadd.f32 %v15711_v8, %v2807_v30 }
 0x4b7   : > { %3085 = vst [vmem:[#allocation2 + $0x348] sm:$0xff] %v2973_v29  ;;  %3622 = vst [vmem:[#allocation2 + $0xa48] sm:$0xff] %v3509_v37 }
 0x4b8   : > { %3353 = vst [vmem:[#allocation2 + $0x6c8] sm:$0xff] %v3240_v35  ;;  %3891 = vst [vmem:[#allocation2 + $0xdc8] sm:$0xff] %v3778_v33 }
 0x4ba   : > { %v2218_v32 = vpop.f32.mrb[252].mxu1  ;;  %v2811_v2 = vpop.f32.mrb[252].mxu0 }
 0x4bb   : > { %v2974_v36 = vadd.f32 %v15702_v6, %v2218_v32  ;;  %v3510_v25 = vadd.f32 %v15705_v3, %v2811_v2  ;;  %v2220_v10 = vpop.f32.mrb[253].mxu1  ;;  %v2813_v23 = vpop.f32.mrb[253].mxu0 }
 0x4bc   : > { %v3241_v5 = vadd.f32 %v15708_v20, %v2220_v10  ;;  %v3779_v22 = vadd.f32 %v15711_v8, %v2813_v23  ;;  %v2222_v16 = vpop.f32.mrb[254].mxu1  ;;  %v2815_v7 = vpop.f32.mrb[254].mxu0 }
 0x4bd   : > { %3086 = vst [vmem:[#allocation2 + $0x350] sm:$0xff] %v2974_v36  ;;  %3623 = vst [vmem:[#allocation2 + $0xa50] sm:$0xff] %v3510_v25  ;;  %v2975_v34 = vadd.f32 %v15702_v6, %v2222_v16  ;;  %v3511_v29 = vadd.f32 %v15705_v3, %v2815_v7  ;;  %v2224_v37 = vpop.f32.mrb[255].mxu1  ;;  %v2817_v31 = vpop.f32.mrb[255].mxu0 }
 0x4be   : > { %3354 = vst [vmem:[#allocation2 + $0x6d0] sm:$0xff] %v3241_v5  ;;  %3892 = vst [vmem:[#allocation2 + $0xdd0] sm:$0xff] %v3779_v22  ;;  %v3242_v30 = vadd.f32 %v15708_v20, %v2224_v37  ;;  %v3780_v35 = vadd.f32 %v15711_v8, %v2817_v31 }
 0x4bf   : > { %3087 = vst [vmem:[#allocation2 + $0x358] sm:$0xff] %v2975_v34  ;;  %3624 = vst [vmem:[#allocation2 + $0xa58] sm:$0xff] %v3511_v29 }
 0x4c0   : > { %3355 = vst [vmem:[#allocation2 + $0x6d8] sm:$0xff] %v3242_v30  ;;  %3893 = vst [vmem:[#allocation2 + $0xdd8] sm:$0xff] %v3780_v35 }
 0x4c2   : > { %v2228_v33 = vpop.f32.mrb[0].mxu1  ;;  %v2821_v32 = vpop.f32.mrb[0].mxu0 }
 0x4c3   : > { %v2976_v2 = vadd.f32 %v15702_v6, %v2228_v33  ;;  %v3512_v36 = vadd.f32 %v15705_v3, %v2821_v32  ;;  %v2230_v25 = vpop.f32.mrb[1].mxu1  ;;  %v2823_v10 = vpop.f32.mrb[1].mxu0 }
 0x4c4   : > { %v3243_v23 = vadd.f32 %v15708_v20, %v2230_v25  ;;  %v3781_v5 = vadd.f32 %v15711_v8, %v2823_v10  ;;  %v2232_v22 = vpop.f32.mrb[2].mxu1  ;;  %v2825_v16 = vpop.f32.mrb[2].mxu0 }
 0x4c5   : > { %3088 = vst [vmem:[#allocation2 + $0x360] sm:$0xff] %v2976_v2  ;;  %3625 = vst [vmem:[#allocation2 + $0xa60] sm:$0xff] %v3512_v36  ;;  %v2977_v7 = vadd.f32 %v15702_v6, %v2232_v22  ;;  %v3513_v34 = vadd.f32 %v15705_v3, %v2825_v16  ;;  %v2234_v29 = vpop.f32.mrb[3].mxu1  ;;  %v2827_v37 = vpop.f32.mrb[3].mxu0 }
 0x4c6   : > { %3356 = vst [vmem:[#allocation2 + $0x6e0] sm:$0xff] %v3243_v23  ;;  %3894 = vst [vmem:[#allocation2 + $0xde0] sm:$0xff] %v3781_v5  ;;  %v3244_v31 = vadd.f32 %v15708_v20, %v2234_v29  ;;  %v3782_v30 = vadd.f32 %v15711_v8, %v2827_v37 }
 0x4c7   : > { %3089 = vst [vmem:[#allocation2 + $0x368] sm:$0xff] %v2977_v7  ;;  %3626 = vst [vmem:[#allocation2 + $0xa68] sm:$0xff] %v3513_v34 }
 0x4c8   : > { %3357 = vst [vmem:[#allocation2 + $0x6e8] sm:$0xff] %v3244_v31  ;;  %3895 = vst [vmem:[#allocation2 + $0xde8] sm:$0xff] %v3782_v30 }
 0x4ca   : > { %v2238_v35 = vpop.f32.mrb[4].mxu1  ;;  %v2831_v33 = vpop.f32.mrb[4].mxu0 }
 0x4cb   : > { %v2978_v32 = vadd.f32 %v15702_v6, %v2238_v35  ;;  %v3514_v2 = vadd.f32 %v15705_v3, %v2831_v33  ;;  %v2240_v36 = vpop.f32.mrb[5].mxu1  ;;  %v2833_v25 = vpop.f32.mrb[5].mxu0 }
 0x4cc   : > { %v3245_v10 = vadd.f32 %v15708_v20, %v2240_v36  ;;  %v3783_v23 = vadd.f32 %v15711_v8, %v2833_v25  ;;  %v2242_v5 = vpop.f32.mrb[6].mxu1  ;;  %v2835_v22 = vpop.f32.mrb[6].mxu0 }
 0x4cd   : > { %3090 = vst [vmem:[#allocation2 + $0x370] sm:$0xff] %v2978_v32  ;;  %3627 = vst [vmem:[#allocation2 + $0xa70] sm:$0xff] %v3514_v2  ;;  %v2979_v16 = vadd.f32 %v15702_v6, %v2242_v5  ;;  %v3515_v7 = vadd.f32 %v15705_v3, %v2835_v22  ;;  %v2244_v34 = vpop.f32.mrb[7].mxu1  ;;  %v2837_v29 = vpop.f32.mrb[7].mxu0 }
 0x4ce   : > { %3358 = vst [vmem:[#allocation2 + $0x6f0] sm:$0xff] %v3245_v10  ;;  %3896 = vst [vmem:[#allocation2 + $0xdf0] sm:$0xff] %v3783_v23  ;;  %v3246_v37 = vadd.f32 %v15708_v20, %v2244_v34  ;;  %v3784_v31 = vadd.f32 %v15711_v8, %v2837_v29 }
 0x4cf   : > { %3091 = vst [vmem:[#allocation2 + $0x378] sm:$0xff] %v2979_v16  ;;  %3628 = vst [vmem:[#allocation2 + $0xa78] sm:$0xff] %v3515_v7 }
 0x4d0   : > { %3359 = vst [vmem:[#allocation2 + $0x6f8] sm:$0xff] %v3246_v37  ;;  %3897 = vst [vmem:[#allocation2 + $0xdf8] sm:$0xff] %v3784_v31 }
 0x4d1 LB: >> { %18590 = vst [vmem:[#allocation327_spill] sm:$0xff] %v13448_v15  ;;  %18591 = vst [vmem:[#allocation328_spill] sm:$0xff] %v13452_v18  ;;  %v13533_v6 = vmov 0   ;;  %s10539_s15 = smul.u32 384, %s13512_s12  ;;  %v3958_v3 = vpack.c.bf16 %v13504_v17, %v13508_v11  ;;  %v18601_v57 = vld [vmem:[#allocation152_spill] sm:$0xff]  ;;  %v18602_v0 = vld [vmem:[#allocation151_spill] sm:$0xff]  ;;  %s13512_s12 = sphi %s15934_s12, %s3941_s12   ;;  %v13508_v11 = vphi %v15063_v11, %v18951_v11   ;;  %v13504_v17 = vphi %v15071_v17, %v18950_v17   ;;  %v13500_v13 = vphi %v15085_v13, %v18949_v13   ;;  %v13496_v21 = vphi %v15093_v21, %v18948_v21   ;;  %v13492_v9 = vphi %v15111_v9, %v18947_v9   ;;  %v13488_v27 = vphi %v15117_v27, %v18946_v27   ;;  %v13484_v24 = vphi %v15129_v24, %v18945_v24   ;;  %v13480_v12 = vphi %v15135_v12, %v18944_v12   ;;  %v13476_v4 = vphi %v15147_v4, %v18943_v4   ;;  %v13472_v26 = vphi %v15153_v26, %v18942_v26   ;;  %v13468_v19 = vphi %v15165_v19, %v18941_v19   ;;  %v13464_v28 = vphi %v15171_v28, %v18940_v28   ;;  %v13460_v1 = vphi %v15066_v1, %v18939_v1   ;;  %v13456_v14 = vphi %v15074_v14, %v18938_v14   ;;  %v13452_v18 = vphi %v15088_v18, %v18937_v18   ;;  %v13448_v15 = vphi %v15096_v15, %v18936_v15  }
 0x4d2   : >> { %18592 = vst [vmem:[#allocation329_spill] sm:$0xff] %v13456_v14  ;;  %18593 = vst [vmem:[#allocation330_spill] sm:$0xff] %v13460_v1  ;;  %4180 = vmatprep.mubr.bf16.mxu0 %v13533_v6  ;;  %v18603_v60 = vld [vmem:[#allocation154_spill] sm:$0xff]  ;;  %v18604_v59 = vld [vmem:[#allocation153_spill] sm:$0xff]  ;;  %s6008_s23 = smul.u32 896, %s13512_s12  ;;  %s10075_s1 = sshll.u32 %s13512_s12, 3 }
 0x4d3   : >> { %18594 = vst [vmem:[#allocation331_spill] sm:$0xff] %v13464_v28  ;;  %18595 = vst [vmem:[#allocation332_spill] sm:$0xff] %v13468_v19  ;;  %11032 = vmatprep.mubr.bf16.mxu1 %v3958_v3  ;;  %s15991_s3 = scalar_lea.vmem [#allocation18], %s10539_s15  ;;  %v18605_v62 = vld [vmem:[#allocation156_spill] sm:$0xff]  ;;  %v18606_v61 = vld [vmem:[#allocation155_spill] sm:$0xff]  ;;  %s16836_s25 = scalar_lea.vmem [#allocation19], %s10075_s1 }
 0x4d4   : >> { %18596 = vst [vmem:[#allocation333_spill] sm:$0xff] %v13472_v26  ;;  %18597 = vst [vmem:[#allocation334_spill] sm:$0xff] %v13476_v4  ;;  %v11967_v20 = vld [vmem:[%s15991_s3 + $0x4] ss:$24 sps:$4 sm:$0xff]   ;;  %v11969_v8 = vld [vmem:[%s15991_s3] ss:$24 sps:$4 sm:$0xff]  }
 0x4d5   : >> { %18598 = vst [vmem:[#allocation335_spill] sm:$0xff] %v13480_v12  ;;  %18599 = vst [vmem:[#allocation336_spill] sm:$0xff] %v13488_v27  ;;  %4148 = vmatprep.subr.bf16.mxu0 %v11967_v20  ;;  %v11970_v30 = vld [vmem:[%s15991_s3 + $0x34] ss:$24 sps:$4 sm:$0xff]   ;;  %v11972_v35 = vld [vmem:[%s15991_s3 + $0x30] ss:$24 sps:$4 sm:$0xff]  }
 0x4d6   : >> { %18600 = vst [vmem:[#allocation337_spill] sm:$0xff] %v13492_v9  ;;  %4149 = vmatpush1.bf16.msra.mxu0 %v11969_v8  ;;  %v11973_v33 = vld [vmem:[%s15991_s3 + $0x64] ss:$24 sps:$4 sm:$0xff]   ;;  %v11975_v32 = vld [vmem:[%s15991_s3 + $0x60] ss:$24 sps:$4 sm:$0xff]   ;;  %v18609_v56 = vld [vmem:[#allocation160_spill] sm:$0xff] }
 0x4d7   : >> { %4150 = vmatprep.subr.bf16.mxu0 %v11970_v30  ;;  %v11976_v2 = vld [vmem:[%s15991_s3 + $0x94] ss:$24 sps:$4 sm:$0xff]   ;;  %v11978_v36 = vld [vmem:[%s15991_s3 + $0x90] ss:$24 sps:$4 sm:$0xff]   ;;  %v11979_v25 = vld [vmem:[%s15991_s3 + $0xc4] ss:$24 sps:$4 sm:$0xff]  }
 0x4d8   : >> { %v11991_v10 = vld [vmem:[%s15991_s3 + $0x8] ss:$24 sps:$4 sm:$0xff]   ;;  %v11994_v23 = vld [vmem:[%s15991_s3 + $0x38] ss:$24 sps:$4 sm:$0xff]   ;;  %v11982_v16 = vld [vmem:[%s15991_s3 + $0xf4] ss:$24 sps:$4 sm:$0xff]  }
 0x4d9   : >> { %11016 = vmatprep.subr.bf16.mxu1 %v11991_v10  ;;  %v11981_v5 = vld [vmem:[%s15991_s3 + $0xc0] ss:$24 sps:$4 sm:$0xff]   ;;  %v11984_v7 = vld [vmem:[%s15991_s3 + $0xf0] ss:$24 sps:$4 sm:$0xff]   ;;  %v11985_v29 = vld [vmem:[%s15991_s3 + $0x124] ss:$24 sps:$4 sm:$0xff]  }
 0x4da   : >> { %4151 = vmatpush1.bf16.msra.mxu0 %v11972_v35  ;;  %11017 = vmatpush3.bf16.msra.mxu1 %v11991_v10  ;;  %v11996_v22 = vld [vmem:[%s15991_s3 + $0x68] ss:$24 sps:$4 sm:$0xff]   ;;  %v11998_v34 = vld [vmem:[%s15991_s3 + $0x98] ss:$24 sps:$4 sm:$0xff]   ;;  %v11988_v20 = vld [vmem:[%s15991_s3 + $0x154] ss:$24 sps:$4 sm:$0xff]   ;;  %v3964_v10 = vpack.c.bf16 %v13456_v14, %v13460_v1 }
 0x4db   : >> { %4152 = vmatprep.subr.bf16.mxu0 %v11973_v33  ;;  %11018 = vmatprep.subr.bf16.mxu1 %v11994_v23  ;;  %v11987_v37 = vld [vmem:[%s15991_s3 + $0x120] ss:$24 sps:$4 sm:$0xff]   ;;  %v11990_v8 = vld [vmem:[%s15991_s3 + $0x150] ss:$24 sps:$4 sm:$0xff]   ;;  %v11993_v35 = vld [vmem:[%s15991_s3 + $0xc] ss:$24 sps:$4 sm:$0xff]  }
 0x4dc   : >> { %v12000_v31 = vld [vmem:[%s15991_s3 + $0xc8] ss:$24 sps:$4 sm:$0xff]   ;;  %v12002_v30 = vld [vmem:[%s15991_s3 + $0xf8] ss:$24 sps:$4 sm:$0xff]   ;;  %s16273_s30 = scalar_lea.vmem [#allocation2], %s6008_s23  ;;  %s10508_s11 = sshll.u32 %s13512_s12, 7 }
 0x4dd   : >> { %v12004_v33 = vld [vmem:[%s15991_s3 + $0x128] ss:$24 sps:$4 sm:$0xff]   ;;  %v18608_v63 = vld [vmem:[#allocation157_spill] sm:$0xff]  ;;  %v18613_v52 = vld [vmem:[#allocation164_spill] sm:$0xff]  ;;  %s17901_s21 = scalar_lea.vmem [#allocation3], %s10508_s11  ;;  %s3941_s12 = sadd.s32 1, %s13512_s12  }
 0x4de   : >> { %4153 = vmatpush1.bf16.msra.mxu0 %v11975_v32  ;;  %11019 = vmatpush3.bf16.msra.mxu1 %v11994_v23  ;;  %v3959_v32 = vpack.c.bf16 %v13496_v21, %v13500_v13  ;;  %v3965_v23 = vpack.c.bf16 %v13448_v15, %v13452_v18  ;;  %v18607_v58 = vld [vmem:[#allocation158_spill] sm:$0xff]  ;;  %v18610_v55 = vld [vmem:[#allocation159_spill] sm:$0xff]  ;;  %v18612_v53 = vld [vmem:[#allocation161_spill] sm:$0xff]  ;;  %p18004_p9 = scmp.ge.s32.totalorder %s3941_s12, 4  }
 0x4df   : >> { %4154 = vmatprep.subr.bf16.mxu0 %v11976_v2  ;;  %11020 = vmatprep.subr.bf16.mxu1 %v11996_v22  ;;  %v3960_v2 = vpack.c.bf16 %v13488_v27, %v13492_v9  ;;  %v18611_v54 = vld [vmem:[#allocation162_spill] sm:$0xff]  ;;  %v18614_v51 = vld [vmem:[#allocation163_spill] sm:$0xff]  ;;  %v18616_v49 = vld [vmem:[#allocation165_spill] sm:$0xff]  ;;  %s18952_s17 = sld [smem:[#allocation32_spill]] (%p18004_p9)  ;;  %s18953_s19 = sld [smem:[#allocation38_spill]] (%p18004_p9) }
 0x4e0   : >> { %v18615_v50 = vld [vmem:[#allocation166_spill] sm:$0xff]  ;;  %v18617_v48 = vld [vmem:[#allocation168_spill] sm:$0xff]  ;;  %v18618_v47 = vld [vmem:[#allocation167_spill] sm:$0xff]  ;;  %s18954_s14 = sld [smem:[#allocation342_spill]] (%p18004_p9)  ;;  %s9625_s13 = sshll.u32 (%p18004_p9), %s15884_s24, 4  ;;  %s18069_s13 = int_to_ptr.vmem [resolvable:$true] %s9625_s13 }
 0x4e1   : >> { %v18619_v46 = vld [vmem:[#allocation170_spill] sm:$0xff]  ;;  %v18620_v45 = vld [vmem:[#allocation169_spill] sm:$0xff]  ;;  %v18621_v44 = vld [vmem:[#allocation172_spill] sm:$0xff]  ;;  %s9612_s7 = scalar_lea.sflag (%p18004_p9), [#allocation6], %s13973_s20  ;;  %s13290_s5 = scalar_lea.vmem (%p18004_p9), %s18069_s13, 2048 }
 0x4e2   : >> { %4155 = vmatpush1.bf16.msra.mxu0 %v11978_v36  ;;  %11021 = vmatpush3.bf16.msra.mxu1 %v11996_v22  ;;  %v3962_v36 = vpack.c.bf16 %v13472_v26, %v13476_v4  ;;  %v10100_v22 = vcombine.low %v18602_v0, %v18601_v57  ;;  %v18622_v43 = vld [vmem:[#allocation171_spill] sm:$0xff]  ;;  %v18623_v42 = vld [vmem:[#allocation174_spill] sm:$0xff]  ;;  %v18624_v41 = vld [vmem:[#allocation173_spill] sm:$0xff]  ;;  %p13291_p12 = scmp.ne.s32.totalorder (%p18004_p9), %s18069_s13, %s13290_s5  ;;  %s13534_s10 = smov (%p18004_p9), [#allocation21]  }
 0x4e3   : >> { %4156 = vmatprep.subr.bf16.mxu0 %v11979_v25  ;;  %11022 = vmatprep.subr.bf16.mxu1 %v11998_v34  ;;  %v3963_v25 = vpack.c.bf16 %v13464_v28, %v13468_v19  ;;  %v18625_v40 = vld [vmem:[#allocation176_spill] sm:$0xff]  ;;  %v18626_v39 = vld [vmem:[#allocation175_spill] sm:$0xff]  ;;  %v18627_v38 = vld [vmem:[#allocation178_spill] sm:$0xff]  ;;  %s13294_s12 = sshll.u32 (%p18004_p9), %s13534_s10, 4  ;;  %s13295_s12 = int_to_ptr.vmem [resolvable:$false] %s13294_s12 }
 0x4e4   : > { %s13296_s15 = scalar_lea.vmem (%p18004_p9), %s13295_s12, 4096  ;;  %p13297_p2 = scmp.lt.s32.totalorder (%p18004_p9), %s18069_s13, %s13295_s12 }
 0x4e5   : > { %s10540_s29 = sshll.u32 (%p18004_p9), %s18952_s17, 11  ;;  %p18956_p7 = scmp.ne.s32.totalorder (%p18004_p9), %s18953_s19, 0 }
 0x4e6   : >> { %4157 = vmatpush1.bf16.msra.mxu0 %v11981_v5  ;;  %11023 = vmatpush3.bf16.msra.mxu1 %v11998_v34  ;;  %v12006_v5 = vld [vmem:[%s15991_s3 + $0x158] ss:$24 sps:$4 sm:$0xff]   ;;  %s18955_s18 = smov (%p18004_p9), %s18954_s14  ;;  %s18066_s27 = scalar_lea.hbm (%p18004_p9), %s18954_s14, %s10540_s29 }
 0x4e7   : >> { %4158 = vmatprep.subr.bf16.mxu0 %v11982_v16  ;;  %11024 = vmatprep.subr.bf16.mxu1 %v12000_v31  ;;  %p13292_p11 = pnand (%p18004_p9), %p13291_p12, %p18956_p7  ;;  %p13298_p5 = scmp.lt.s32.totalorder (%p18004_p9), %s13296_s15, %s13290_s5 }
 0x4e9   : > { %p13293_p10 = pneg (%p18004_p9), %p13292_p11  ;;  %p13299_p13 = por (%p18004_p9), %p13298_p5, %p13297_p2 }
 0x4ea   : >> { %4159 = vmatpush1.bf16.msra.mxu0 %v11984_v7  ;;  %11025 = vmatpush3.bf16.msra.mxu1 %v12000_v31 }
 0x4eb   : >> { %4160 = vmatprep.subr.bf16.mxu0 %v11985_v29  ;;  %11026 = vmatprep.subr.bf16.mxu1 %v12002_v30  ;;  %p13300_p6 = pnand (%p18004_p9), %p13299_p13, %p13293_p10 }
 0x4ee   : >> { %4161 = vmatpush1.bf16.msra.mxu0 %v11987_v37  ;;  %11027 = vmatpush3.bf16.msra.mxu1 %v12002_v30 }
 0x4ef   : >> { %4162 = vmatprep.subr.bf16.mxu0 %v11988_v20  ;;  %11028 = vmatprep.subr.bf16.mxu1 %v12004_v33 }
 0x4f2   : >> { %4163 = vmatpush1.bf16.msra.mxu0 %v11990_v8  ;;  %11029 = vmatpush3.bf16.msra.mxu1 %v12004_v33 }
 0x4f3   : >> { %11304 = vmatprep.subr.bf16.mxu0 %v11993_v35  ;;  %11030 = vmatprep.subr.bf16.mxu1 %v12006_v5 }
 0x4f5   : >> { %4181 = vmatmul.mubr.bf16.vlgmr.msra.gmra.mrb[0].mxu0 %v3958_v3  ;;  %v3961_v3 = vpack.c.bf16 %v13480_v12, %v13484_v24 }
 0x4f6   : >> { %4190 = vmatprep.mubr.bf16.mxu0 %v13533_v6  ;;  %11305 = vmatpush3.bf16.msra.mxu0 %v11993_v35 }
 0x4f7   : >> { %11031 = vmatpush3.bf16.msra.mxu1 %v12006_v5 }
 0x4fa   : >> { %11033 = vmatmul.mubr.bf16.vlgmr.msra.gmra.mrb[0].mxu1 %v3959_v32 }
 0x4fb   : >> { %11036 = vmatprep.mubr.bf16.mxu1 %v3960_v2 }
 0x4fd   : >> { %4191 = vmatmul.mubr.bf16.gmra.mrb[4].mxu0 %v3959_v32 }
 0x4fe   : >> { %4200 = vmatprep.mubr.bf16.mxu0 %v13533_v6 }
 0x502   : >> { %11037 = vmatmul.mubr.bf16.gmra.mrb[4].mxu1 %v3961_v3 }
 0x503   : >> { %11040 = vmatprep.mubr.bf16.mxu1 %v3962_v36 }
 0x505   : >> { %4201 = vmatmul.mubr.bf16.gmra.mrb[8].mxu0 %v3960_v2 }
 0x506   : >> { %4210 = vmatprep.mubr.bf16.mxu0 %v13533_v6 }
 0x50a   : >> { %11041 = vmatmul.mubr.bf16.gmra.mrb[8].mxu1 %v3963_v25 }
 0x50b   : >> { %11044 = vmatprep.mubr.bf16.mxu1 %v3964_v10 }
 0x50d   : >> { %4211 = vmatmul.mubr.bf16.gmra.mrb[12].mxu0 %v3961_v3 }
 0x50e   : >> { %4220 = vmatprep.mubr.bf16.mxu0 %v13533_v6 }
 0x512   : >> { %11045 = vmatmul.mubr.bf16.gmra.mrb[12].mxu1 %v3965_v23 }
 0x513   : >> { %11064 = vmatprep.mubr.bf16.mxu1 %v10100_v22 }
 0x515   : >> { %4221 = vmatmul.mubr.bf16.gmra.mrb[16].mxu0 %v3962_v36 }
 0x516   : >> { %4230 = vmatprep.mubr.bf16.mxu0 %v13533_v6 }
 0x51d   : >> { %4231 = vmatmul.mubr.bf16.gmra.mrb[20].mxu0 %v3963_v25 }
 0x51e   : >> { %4240 = vmatprep.mubr.bf16.mxu0 %v13533_v6 }
 0x525   : >> { %4241 = vmatmul.mubr.bf16.gmra.mrb[24].mxu0 %v3964_v10 }
 0x526   : >> { %4250 = vmatprep.mubr.bf16.mxu0 %v13533_v6 }
 0x52d   : >> { %4251 = vmatmul.mubr.bf16.gmra.mrb[28].mxu0 %v3965_v23 }
 0x5c8   : >> { %v4182_v16 = vpop.f32.mrb[0].mxu0 }
 0x5c9   : >> { %v4184_v6 = vpop.f32.mrb[1].mxu0 }
 0x5ca   : >> { %v4186_v7 = vpop.f32.mrb[2].mxu0 }
 0x5cb   : >> { %v16041_v34 = vpack.c.bf16 %v4186_v7, %v4182_v16  ;;  %v4188_v29 = vpop.f32.mrb[3].mxu0 }
 0x5cc   : >> { %v4366_v37 = vpack.c.bf16 %v4188_v29, %v4184_v6 }
 0x5ce   : >> { %11048 = vmatprep.subr.bf16.mxu1 %v4366_v37 }
 0x5cf   : >> { %11049 = vmatpush3.bf16.msra.mxu1 %v4366_v37 }
 0x5d0   : >> { %v4192_v31 = vpop.f32.mrb[4].mxu0 }
 0x5d1   : >> { %v4194_v20 = vpop.f32.mrb[5].mxu0 }
 0x5d2   : >> { %v4196_v8 = vpop.f32.mrb[6].mxu0 }
 0x5d3   : >> { %v4359_v30 = vpack.c.bf16 %v4196_v8, %v4192_v31  ;;  %v4198_v35 = vpop.f32.mrb[7].mxu0 }
 0x5d4   : >> { %v4367_v33 = vpack.c.bf16 %v4198_v35, %v4194_v20 }
 0x5d6   : >> { %11050 = vmatprep.subr.bf16.mxu1 %v4367_v33 }
 0x5d7   : >> { %11051 = vmatpush3.bf16.msra.mxu1 %v4367_v33 }
 0x5d8   : >> { %v4202_v32 = vpop.f32.mrb[8].mxu0 }
 0x5d9   : >> { %v4204_v2 = vpop.f32.mrb[9].mxu0 }
 0x5da   : >> { %v4206_v3 = vpop.f32.mrb[10].mxu0 }
 0x5db   : >> { %v4360_v36 = vpack.c.bf16 %v4206_v3, %v4202_v32  ;;  %v4208_v25 = vpop.f32.mrb[11].mxu0 }
 0x5dc   : >> { %v4368_v10 = vpack.c.bf16 %v4208_v25, %v4204_v2 }
 0x5de   : >> { %11052 = vmatprep.subr.bf16.mxu1 %v4368_v10 }
 0x5df   : >> { %11053 = vmatpush3.bf16.msra.mxu1 %v4368_v10 }
 0x5e0   : >> { %v4212_v23 = vpop.f32.mrb[12].mxu0 }
 0x5e1   : >> { %v4214_v5 = vpop.f32.mrb[13].mxu0 }
 0x5e2   : >> { %v4216_v22 = vpop.f32.mrb[14].mxu0 }
 0x5e3   : >> { %v4361_v16 = vpack.c.bf16 %v4216_v22, %v4212_v23  ;;  %v4218_v6 = vpop.f32.mrb[15].mxu0 }
 0x5e4   : >> { %v4369_v7 = vpack.c.bf16 %v4218_v6, %v4214_v5 }
 0x5e6   : >> { %11054 = vmatprep.subr.bf16.mxu1 %v4369_v7 }
 0x5e7   : >> { %11055 = vmatpush3.bf16.msra.mxu1 %v4369_v7 }
 0x5e8   : >> { %v4222_v29 = vpop.f32.mrb[16].mxu0 }
 0x5e9   : >> { %v4224_v37 = vpop.f32.mrb[17].mxu0 }
 0x5ea   : >> { %v4226_v31 = vpop.f32.mrb[18].mxu0 }
 0x5eb   : >> { %v4362_v20 = vpack.c.bf16 %v4226_v31, %v4222_v29  ;;  %v4228_v8 = vpop.f32.mrb[19].mxu0 }
 0x5ec   : >> { %v4370_v35 = vpack.c.bf16 %v4228_v8, %v4224_v37 }
 0x5ee   : >> { %11056 = vmatprep.subr.bf16.mxu1 %v4370_v35 }
 0x5ef   : >> { %11057 = vmatpush3.bf16.msra.mxu1 %v4370_v35 }
 0x5f0   : >> { %v4232_v33 = vpop.f32.mrb[20].mxu0 }
 0x5f1   : >> { %v4234_v32 = vpop.f32.mrb[21].mxu0 }
 0x5f2   : >> { %v4236_v2 = vpop.f32.mrb[22].mxu0 }
 0x5f3   : >> { %v4363_v3 = vpack.c.bf16 %v4236_v2, %v4232_v33  ;;  %v4238_v25 = vpop.f32.mrb[23].mxu0  ;;  %v10101_v33 = vcombine.low %v18604_v59, %v18603_v60  ;;  %v10104_v2 = vcombine.low %v18610_v55, %v18609_v56 }
 0x5f4   : >> { %v4371_v10 = vpack.c.bf16 %v4238_v25, %v4234_v32  ;;  %v10102_v32 = vcombine.low %v18606_v61, %v18605_v62  ;;  %v10112_v25 = vcombine.low %v18626_v39, %v18625_v40 }
 0x5f6   : >> { %11058 = vmatprep.subr.bf16.mxu1 %v4371_v10 }
 0x5f7   : >> { %11059 = vmatpush3.bf16.msra.mxu1 %v4371_v10  ;;  %v18628_v10 = vld [vmem:[#allocation177_spill] sm:$0xff] }
 0x5f8   : >> { %v4242_v23 = vpop.f32.mrb[24].mxu0 }
 0x5f9   : >> { %v4244_v5 = vpop.f32.mrb[25].mxu0 }
 0x5fa   : >> { %v4246_v22 = vpop.f32.mrb[26].mxu0 }
 0x5fb   : >> { %v4364_v6 = vpack.c.bf16 %v4246_v22, %v4242_v23  ;;  %v4248_v7 = vpop.f32.mrb[27].mxu0  ;;  %v10113_v23 = vcombine.low %v18628_v10, %v18627_v38  ;;  %v18630_v22 = vld [vmem:[#allocation179_spill] sm:$0xff]  ;;  %v18643_v10 = vld [vmem:[#allocation194_spill] sm:$0xff] }
 0x5fc   : >> { %v4372_v0 = vpack.c.bf16 %v4248_v7, %v4244_v5  ;;  %v18629_v5 = vld [vmem:[#allocation180_spill] sm:$0xff]  ;;  %v18631_v7 = vld [vmem:[#allocation182_spill] sm:$0xff] }
 0x5fe   : >> { %11060 = vmatprep.subr.bf16.mxu1 %v4372_v0 }
 0x5ff   : >> { %11061 = vmatpush3.bf16.msra.mxu1 %v4372_v0  ;;  %v10103_v0 = vcombine.low %v18608_v63, %v18607_v58 }
 0x600   : >> { %v4252_v29 = vpop.f32.mrb[28].mxu0 }
 0x601   : >> { %v4254_v37 = vpop.f32.mrb[29].mxu0 }
 0x602   : >> { %v4256_v31 = vpop.f32.mrb[30].mxu0 }
 0x603   : >> { %v4365_v8 = vpack.c.bf16 %v4256_v31, %v4252_v29  ;;  %v4258_v35 = vpop.f32.mrb[31].mxu0  ;;  %v18632_v29 = vld [vmem:[#allocation181_spill] sm:$0xff]  ;;  %v18633_v31 = vld [vmem:[#allocation184_spill] sm:$0xff] }
 0x604   : >> { %v4373_v57 = vpack.c.bf16 %v4258_v35, %v4254_v37  ;;  %v10115_v37 = vcombine.low %v18632_v29, %v18631_v7  ;;  %v18647_v29 = vld [vmem:[#allocation198_spill] sm:$0xff] }
 0x606   : >> { %11062 = vmatprep.subr.bf16.mxu1 %v4373_v57 }
 0x607   : >> { %11063 = vmatpush3.bf16.msra.mxu1 %v4373_v57  ;;  %v10105_v57 = vcombine.low %v18612_v53, %v18611_v54 }
 0x608   : >> { %11176 = vmatprep.subr.bf16.mxu1 %v16041_v34 }
 0x60a   : >> { %11065 = vmatmul.mubr.bf16.vlgmr.msra.gmra.mrb[16].mxu1 %v10101_v33  ;;  %v18635_v33 = vld [vmem:[#allocation186_spill] sm:$0xff] }
 0x60b   : >> { %11177 = vmatpush3.bf16.msra.mxu1 %v16041_v34  ;;  %11068 = vmatprep.mubr.bf16.mxu1 %v10102_v32  ;;  %v10106_v34 = vcombine.low %v18614_v51, %v18613_v52  ;;  %v18636_v32 = vld [vmem:[#allocation185_spill] sm:$0xff] }
 0x60c   : >> { %11178 = vmatprep.subr.bf16.mxu1 %v4359_v30 }
 0x60f   : >> { %11179 = vmatpush3.bf16.msra.mxu1 %v4359_v30  ;;  %v10107_v30 = vcombine.low %v18616_v49, %v18615_v50 }
 0x610   : >> { %11180 = vmatprep.subr.bf16.mxu1 %v4360_v36 }
 0x612   : >> { %11069 = vmatmul.mubr.bf16.gmra.mrb[20].mxu1 %v10103_v0  ;;  %v10117_v0 = vcombine.low %v18636_v32, %v18635_v33  ;;  %v18651_v32 = vld [vmem:[#allocation202_spill] sm:$0xff] }
 0x613   : >> { %11181 = vmatpush3.bf16.msra.mxu1 %v4360_v36  ;;  %11072 = vmatprep.mubr.bf16.mxu1 %v10104_v2  ;;  %v10108_v36 = vcombine.low %v18618_v47, %v18617_v48  ;;  %v18637_v2 = vld [vmem:[#allocation188_spill] sm:$0xff]  ;;  %v6029_v47 = vld [vmem:[%s16273_s30 + $0x98] sm:$0xff] }
 0x614   : >> { %11182 = vmatprep.subr.bf16.mxu1 %v4361_v16 }
 0x617   : >> { %11183 = vmatpush3.bf16.msra.mxu1 %v4361_v16  ;;  %v10109_v16 = vcombine.low %v18620_v45, %v18619_v46 }
 0x618   : >> { %11184 = vmatprep.subr.bf16.mxu1 %v4362_v20 }
 0x61a   : >> { %11073 = vmatmul.mubr.bf16.gmra.mrb[24].mxu1 %v10105_v57  ;;  %v18638_v57 = vld [vmem:[#allocation187_spill] sm:$0xff] }
 0x61b   : >> { %11185 = vmatpush3.bf16.msra.mxu1 %v4362_v20  ;;  %11076 = vmatprep.mubr.bf16.mxu1 %v10106_v34  ;;  %v10110_v20 = vcombine.low %v18622_v43, %v18621_v44  ;;  %v10118_v34 = vcombine.low %v18638_v57, %v18637_v2  ;;  %v18653_v57 = vld [vmem:[#allocation204_spill] sm:$0xff] }
 0x61c   : >> { %11186 = vmatprep.subr.bf16.mxu1 %v4363_v3 }
 0x61f   : >> { %11187 = vmatpush3.bf16.msra.mxu1 %v4363_v3  ;;  %v10111_v3 = vcombine.low %v18624_v41, %v18623_v42 }
 0x620   : >> { %11188 = vmatprep.subr.bf16.mxu1 %v4364_v6 }
 0x622   : >> { %11077 = vmatmul.mubr.bf16.gmra.mrb[28].mxu1 %v10107_v30  ;;  %v18639_v30 = vld [vmem:[#allocation190_spill] sm:$0xff] }
 0x623   : >> { %11189 = vmatpush3.bf16.msra.mxu1 %v4364_v6  ;;  %11080 = vmatprep.mubr.bf16.mxu1 %v10108_v36  ;;  %v10114_v6 = vcombine.low %v18630_v22, %v18629_v5  ;;  %v18640_v36 = vld [vmem:[#allocation189_spill] sm:$0xff]  ;;  %v18645_v22 = vld [vmem:[#allocation196_spill] sm:$0xff] }
 0x624   : >> { %11190 = vmatprep.subr.bf16.mxu1 %v4365_v8 }
 0x627   : >> { %11191 = vmatpush3.bf16.msra.mxu1 %v4365_v8  ;;  %v18634_v8 = vld [vmem:[#allocation183_spill] sm:$0xff] }
 0x628   : >> { %v10116_v35 = vcombine.low %v18634_v8, %v18633_v31  ;;  %v18649_v8 = vld [vmem:[#allocation200_spill] sm:$0xff] }
 0x62a   : >> { %11081 = vmatmul.mubr.bf16.gmra.mrb[32].mxu1 %v10109_v16  ;;  %v10119_v16 = vcombine.low %v18640_v36, %v18639_v30  ;;  %v18655_v36 = vld [vmem:[#allocation206_spill] sm:$0xff] }
 0x62b   : >> { %11084 = vmatprep.mubr.bf16.mxu1 %v10110_v20  ;;  %v18641_v20 = vld [vmem:[#allocation192_spill] sm:$0xff] }
 0x632   : >> { %11085 = vmatmul.mubr.bf16.gmra.mrb[36].mxu1 %v10111_v3  ;;  %v18642_v3 = vld [vmem:[#allocation191_spill] sm:$0xff] }
 0x633   : >> { %11088 = vmatprep.mubr.bf16.mxu1 %v10112_v25  ;;  %v10120_v25 = vcombine.low %v18642_v3, %v18641_v20  ;;  %v18657_v3 = vld [vmem:[#allocation208_spill] sm:$0xff] }
 0x63a   : >> { %11089 = vmatmul.mubr.bf16.gmra.mrb[40].mxu1 %v10113_v23  ;;  %v18644_v23 = vld [vmem:[#allocation193_spill] sm:$0xff] }
 0x63b   : >> { %11092 = vmatprep.mubr.bf16.mxu1 %v10114_v6  ;;  %v10121_v5 = vcombine.low %v18644_v23, %v18643_v10  ;;  %v18646_v6 = vld [vmem:[#allocation195_spill] sm:$0xff]  ;;  %v18659_v23 = vld [vmem:[#allocation210_spill] sm:$0xff] }
 0x63c   : >> { %v10122_v7 = vcombine.low %v18646_v6, %v18645_v22  ;;  %v18661_v6 = vld [vmem:[#allocation212_spill] sm:$0xff] }
 0x642   : >> { %11093 = vmatmul.mubr.bf16.gmra.mrb[44].mxu1 %v10115_v37  ;;  %v18648_v37 = vld [vmem:[#allocation197_spill] sm:$0xff] }
 0x643   : >> { %11096 = vmatprep.mubr.bf16.mxu1 %v10116_v35  ;;  %v10123_v31 = vcombine.low %v18648_v37, %v18647_v29  ;;  %v18650_v35 = vld [vmem:[#allocation199_spill] sm:$0xff]  ;;  %v18663_v37 = vld [vmem:[#allocation214_spill] sm:$0xff] }
 0x644   : >> { %v10124_v33 = vcombine.low %v18650_v35, %v18649_v8  ;;  %v18665_v35 = vld [vmem:[#allocation216_spill] sm:$0xff] }
 0x64a   : >> { %11097 = vmatmul.mubr.bf16.gmra.mrb[48].mxu1 %v10117_v0  ;;  %v18652_v0 = vld [vmem:[#allocation201_spill] sm:$0xff] }
 0x64b   : >> { %11100 = vmatprep.mubr.bf16.mxu1 %v10118_v34  ;;  %v10125_v2 = vcombine.low %v18652_v0, %v18651_v32  ;;  %v18654_v34 = vld [vmem:[#allocation203_spill] sm:$0xff]  ;;  %v18667_v0 = vld [vmem:[#allocation218_spill] sm:$0xff] }
 0x64c   : >> { %v10126_v30 = vcombine.low %v18654_v34, %v18653_v57  ;;  %v18669_v34 = vld [vmem:[#allocation220_spill] sm:$0xff] }
 0x652   : >> { %11101 = vmatmul.mubr.bf16.gmra.mrb[52].mxu1 %v10119_v16  ;;  %v18656_v16 = vld [vmem:[#allocation205_spill] sm:$0xff] }
 0x653   : >> { %11104 = vmatprep.mubr.bf16.mxu1 %v10120_v25  ;;  %v10127_v20 = vcombine.low %v18656_v16, %v18655_v36  ;;  %v18658_v25 = vld [vmem:[#allocation207_spill] sm:$0xff]  ;;  %v18671_v16 = vld [vmem:[#allocation222_spill] sm:$0xff] }
 0x654   : >> { %v10128_v10 = vcombine.low %v18658_v25, %v18657_v3  ;;  %v18673_v25 = vld [vmem:[#allocation224_spill] sm:$0xff] }
 0x65a   : >> { %11105 = vmatmul.mubr.bf16.gmra.mrb[56].mxu1 %v10121_v5  ;;  %v18660_v5 = vld [vmem:[#allocation209_spill] sm:$0xff] }
 0x65b   : >> { %11108 = vmatprep.mubr.bf16.mxu1 %v10122_v7  ;;  %v10129_v22 = vcombine.low %v18660_v5, %v18659_v23  ;;  %v18662_v7 = vld [vmem:[#allocation211_spill] sm:$0xff]  ;;  %v18675_v5 = vld [vmem:[#allocation226_spill] sm:$0xff] }
 0x65c   : >> { %v10130_v29 = vcombine.low %v18662_v7, %v18661_v6  ;;  %v18677_v7 = vld [vmem:[#allocation228_spill] sm:$0xff] }
 0x662   : >> { %11109 = vmatmul.mubr.bf16.gmra.mrb[60].mxu1 %v10123_v31  ;;  %v18664_v31 = vld [vmem:[#allocation213_spill] sm:$0xff] }
 0x663   : >> { %11112 = vmatprep.mubr.bf16.mxu1 %v10124_v33  ;;  %v10131_v8 = vcombine.low %v18664_v31, %v18663_v37  ;;  %v18666_v33 = vld [vmem:[#allocation215_spill] sm:$0xff]  ;;  %v18679_v31 = vld [vmem:[#allocation230_spill] sm:$0xff] }
 0x664   : >> { %v10132_v32 = vcombine.low %v18666_v33, %v18665_v35  ;;  %v18681_v33 = vld [vmem:[#allocation232_spill] sm:$0xff] }
 0x66a   : >> { %11113 = vmatmul.mubr.bf16.gmra.mrb[64].mxu1 %v10125_v2  ;;  %v18668_v2 = vld [vmem:[#allocation217_spill] sm:$0xff] }
 0x66b   : >> { %11116 = vmatprep.mubr.bf16.mxu1 %v10126_v30  ;;  %v10133_v57 = vcombine.low %v18668_v2, %v18667_v0  ;;  %v18670_v30 = vld [vmem:[#allocation219_spill] sm:$0xff]  ;;  %v18683_v2 = vld [vmem:[#allocation234_spill] sm:$0xff] }
 0x66c   : >> { %v10134_v36 = vcombine.low %v18670_v30, %v18669_v34  ;;  %v18685_v30 = vld [vmem:[#allocation236_spill] sm:$0xff] }
 0x672   : >> { %11117 = vmatmul.mubr.bf16.gmra.mrb[68].mxu1 %v10127_v20  ;;  %v18672_v20 = vld [vmem:[#allocation221_spill] sm:$0xff] }
 0x673   : >> { %11120 = vmatprep.mubr.bf16.mxu1 %v10128_v10  ;;  %v10135_v3 = vcombine.low %v18672_v20, %v18671_v16  ;;  %v18674_v10 = vld [vmem:[#allocation223_spill] sm:$0xff]  ;;  %v18687_v20 = vld [vmem:[#allocation238_spill] sm:$0xff] }
 0x674   : >> { %v10136_v23 = vcombine.low %v18674_v10, %v18673_v25  ;;  %v18689_v10 = vld [vmem:[#allocation240_spill] sm:$0xff] }
 0x67a   : >> { %11121 = vmatmul.mubr.bf16.gmra.mrb[72].mxu1 %v10129_v22  ;;  %v18676_v22 = vld [vmem:[#allocation225_spill] sm:$0xff] }
 0x67b   : >> { %11124 = vmatprep.mubr.bf16.mxu1 %v10130_v29  ;;  %v10137_v6 = vcombine.low %v18676_v22, %v18675_v5  ;;  %v18678_v29 = vld [vmem:[#allocation227_spill] sm:$0xff]  ;;  %v18691_v22 = vld [vmem:[#allocation242_spill] sm:$0xff] }
 0x67c   : >> { %v10138_v37 = vcombine.low %v18678_v29, %v18677_v7  ;;  %v18693_v29 = vld [vmem:[#allocation244_spill] sm:$0xff] }
 0x682   : >> { %11125 = vmatmul.mubr.bf16.gmra.mrb[76].mxu1 %v10131_v8  ;;  %v18680_v8 = vld [vmem:[#allocation229_spill] sm:$0xff] }
 0x683   : >> { %11128 = vmatprep.mubr.bf16.mxu1 %v10132_v32  ;;  %v10139_v35 = vcombine.low %v18680_v8, %v18679_v31  ;;  %v18682_v32 = vld [vmem:[#allocation231_spill] sm:$0xff]  ;;  %v18695_v8 = vld [vmem:[#allocation246_spill] sm:$0xff] }
 0x684   : >> { %v10140_v0 = vcombine.low %v18682_v32, %v18681_v33  ;;  %v18697_v32 = vld [vmem:[#allocation248_spill] sm:$0xff] }
 0x68a   : >> { %11129 = vmatmul.mubr.bf16.gmra.mrb[80].mxu1 %v10133_v57  ;;  %v18684_v57 = vld [vmem:[#allocation233_spill] sm:$0xff] }
 0x68b   : >> { %11132 = vmatprep.mubr.bf16.mxu1 %v10134_v36  ;;  %v10141_v34 = vcombine.low %v18684_v57, %v18683_v2  ;;  %v18686_v36 = vld [vmem:[#allocation235_spill] sm:$0xff]  ;;  %v18699_v57 = vld [vmem:[#allocation250_spill] sm:$0xff] }
 0x68c   : >> { %v10142_v16 = vcombine.low %v18686_v36, %v18685_v30  ;;  %v18701_v36 = vld [vmem:[#allocation252_spill] sm:$0xff] }
 0x692   : >> { %11133 = vmatmul.mubr.bf16.gmra.mrb[84].mxu1 %v10135_v3  ;;  %v18688_v3 = vld [vmem:[#allocation237_spill] sm:$0xff] }
 0x693   : >> { %11136 = vmatprep.mubr.bf16.mxu1 %v10136_v23  ;;  %v10143_v25 = vcombine.low %v18688_v3, %v18687_v20  ;;  %v18690_v23 = vld [vmem:[#allocation239_spill] sm:$0xff]  ;;  %v18703_v3 = vld [vmem:[#allocation254_spill] sm:$0xff] }
 0x694   : >> { %v10144_v5 = vcombine.low %v18690_v23, %v18689_v10  ;;  %v18705_v23 = vld [vmem:[#allocation256_spill] sm:$0xff] }
 0x69a   : >> { %11137 = vmatmul.mubr.bf16.gmra.mrb[88].mxu1 %v10137_v6  ;;  %v18692_v6 = vld [vmem:[#allocation241_spill] sm:$0xff] }
 0x69b   : >> { %11140 = vmatprep.mubr.bf16.mxu1 %v10138_v37  ;;  %v10145_v7 = vcombine.low %v18692_v6, %v18691_v22  ;;  %v18694_v37 = vld [vmem:[#allocation243_spill] sm:$0xff]  ;;  %v18707_v6 = vld [vmem:[#allocation258_spill] sm:$0xff] }
 0x69c   : >> { %v10146_v31 = vcombine.low %v18694_v37, %v18693_v29  ;;  %v18709_v37 = vld [vmem:[#allocation260_spill] sm:$0xff] }
 0x6a2   : >> { %11141 = vmatmul.mubr.bf16.gmra.mrb[92].mxu1 %v10139_v35  ;;  %v18696_v35 = vld [vmem:[#allocation245_spill] sm:$0xff] }
 0x6a3   : >> { %11144 = vmatprep.mubr.bf16.mxu1 %v10140_v0  ;;  %v10147_v33 = vcombine.low %v18696_v35, %v18695_v8  ;;  %v18698_v0 = vld [vmem:[#allocation247_spill] sm:$0xff]  ;;  %v18711_v35 = vld [vmem:[#allocation262_spill] sm:$0xff] }
 0x6a4   : >> { %v10148_v2 = vcombine.low %v18698_v0, %v18697_v32  ;;  %v18713_v0 = vld [vmem:[#allocation40_spill] sm:$0xff] }
 0x6aa   : >> { %11145 = vmatmul.mubr.bf16.gmra.mrb[96].mxu1 %v10141_v34  ;;  %v18700_v34 = vld [vmem:[#allocation249_spill] sm:$0xff] }
 0x6ab   : >> { %11148 = vmatprep.mubr.bf16.mxu1 %v10142_v16  ;;  %v10149_v30 = vcombine.low %v18700_v34, %v18699_v57  ;;  %v18702_v16 = vld [vmem:[#allocation251_spill] sm:$0xff]  ;;  %v18715_v34 = vld [vmem:[#allocation42_spill] sm:$0xff] }
 0x6ac   : >> { %v10150_v20 = vcombine.low %v18702_v16, %v18701_v36  ;;  %v18717_v16 = vld [vmem:[#allocation44_spill] sm:$0xff] }
 0x6b2   : >> { %11149 = vmatmul.mubr.bf16.gmra.mrb[100].mxu1 %v10143_v25  ;;  %v18704_v25 = vld [vmem:[#allocation253_spill] sm:$0xff] }
 0x6b3   : >> { %11152 = vmatprep.mubr.bf16.mxu1 %v10144_v5  ;;  %v10151_v10 = vcombine.low %v18704_v25, %v18703_v3  ;;  %v18706_v5 = vld [vmem:[#allocation255_spill] sm:$0xff]  ;;  %v18719_v25 = vld [vmem:[#allocation46_spill] sm:$0xff] }
 0x6b4   : >> { %v10152_v22 = vcombine.low %v18706_v5, %v18705_v23  ;;  %v18721_v5 = vld [vmem:[#allocation48_spill] sm:$0xff] }
 0x6ba   : >> { %11153 = vmatmul.mubr.bf16.gmra.mrb[104].mxu1 %v10145_v7  ;;  %v18708_v7 = vld [vmem:[#allocation257_spill] sm:$0xff] }
 0x6bb   : >> { %11156 = vmatprep.mubr.bf16.mxu1 %v10146_v31  ;;  %v10153_v29 = vcombine.low %v18708_v7, %v18707_v6  ;;  %v18710_v31 = vld [vmem:[#allocation259_spill] sm:$0xff]  ;;  %v18723_v7 = vld [vmem:[#allocation50_spill] sm:$0xff] }
 0x6bc   : >> { %v10154_v8 = vcombine.low %v18710_v31, %v18709_v37  ;;  %v18725_v31 = vld [vmem:[#allocation52_spill] sm:$0xff] }
 0x6c2   : >> { %11157 = vmatmul.mubr.bf16.gmra.mrb[108].mxu1 %v10147_v33  ;;  %v18712_v33 = vld [vmem:[#allocation261_spill] sm:$0xff] }
 0x6c3   : >> { %11160 = vmatprep.mubr.bf16.mxu1 %v10148_v2  ;;  %v10155_v32 = vcombine.low %v18712_v33, %v18711_v35  ;;  %v18714_v2 = vld [vmem:[#allocation39_spill] sm:$0xff]  ;;  %v18727_v33 = vld [vmem:[#allocation54_spill] sm:$0xff] }
 0x6c4   : >> { %v10156_v57 = vcombine.low %v18714_v2, %v18713_v0  ;;  %v18729_v2 = vld [vmem:[#allocation56_spill] sm:$0xff] }
 0x6ca   : >> { %11161 = vmatmul.mubr.bf16.gmra.mrb[112].mxu1 %v10149_v30  ;;  %v18716_v30 = vld [vmem:[#allocation41_spill] sm:$0xff] }
 0x6cb   : >> { %11164 = vmatprep.mubr.bf16.mxu1 %v10150_v20  ;;  %v10157_v36 = vcombine.low %v18716_v30, %v18715_v34  ;;  %v18718_v20 = vld [vmem:[#allocation43_spill] sm:$0xff]  ;;  %v18731_v30 = vld [vmem:[#allocation58_spill] sm:$0xff] }
 0x6cc   : >> { %v10158_v3 = vcombine.low %v18718_v20, %v18717_v16  ;;  %v18733_v20 = vld [vmem:[#allocation60_spill] sm:$0xff] }
 0x6d2   : >> { %11165 = vmatmul.mubr.bf16.gmra.mrb[116].mxu1 %v10151_v10  ;;  %v18720_v10 = vld [vmem:[#allocation45_spill] sm:$0xff] }
 0x6d3   : >> { %11168 = vmatprep.mubr.bf16.mxu1 %v10152_v22  ;;  %v10159_v23 = vcombine.low %v18720_v10, %v18719_v25  ;;  %v18722_v22 = vld [vmem:[#allocation47_spill] sm:$0xff]  ;;  %v18735_v10 = vld [vmem:[#allocation62_spill] sm:$0xff] }
 0x6d4   : >> { %v10160_v6 = vcombine.low %v18722_v22, %v18721_v5  ;;  %v18737_v22 = vld [vmem:[#allocation64_spill] sm:$0xff] }
 0x6da   : >> { %11169 = vmatmul.mubr.bf16.gmra.mrb[120].mxu1 %v10153_v29  ;;  %v18724_v29 = vld [vmem:[#allocation49_spill] sm:$0xff] }
 0x6db   : >> { %11172 = vmatprep.mubr.bf16.mxu1 %v10154_v8  ;;  %v10161_v37 = vcombine.low %v18724_v29, %v18723_v7  ;;  %v18726_v8 = vld [vmem:[#allocation51_spill] sm:$0xff]  ;;  %v18739_v29 = vld [vmem:[#allocation66_spill] sm:$0xff] }
 0x6dc   : >> { %v10162_v35 = vcombine.low %v18726_v8, %v18725_v31  ;;  %v18741_v8 = vld [vmem:[#allocation68_spill] sm:$0xff] }
 0x6e2   : >> { %11173 = vmatmul.mubr.bf16.gmra.mrb[124].mxu1 %v10155_v32  ;;  %v18728_v32 = vld [vmem:[#allocation53_spill] sm:$0xff] }
 0x6e3   : >> { %11192 = vmatprep.mubr.bf16.mxu1 %v10156_v57  ;;  %v10163_v0 = vcombine.low %v18728_v32, %v18727_v33  ;;  %v18730_v57 = vld [vmem:[#allocation55_spill] sm:$0xff]  ;;  %v18743_v32 = vld [vmem:[#allocation70_spill] sm:$0xff] }
 0x6e4   : >> { %v10164_v34 = vcombine.low %v18730_v57, %v18729_v2  ;;  %v18745_v57 = vld [vmem:[#allocation72_spill] sm:$0xff] }
 0x6ea   : >> { %11193 = vmatmul.mubr.bf16.vlgmr.msra.gmra.mrb[16].mxu1 %v10157_v36  ;;  %v18732_v36 = vld [vmem:[#allocation57_spill] sm:$0xff] }
 0x6eb   : >> { %11196 = vmatprep.mubr.bf16.mxu1 %v10158_v3  ;;  %v10165_v16 = vcombine.low %v18732_v36, %v18731_v30  ;;  %v18734_v3 = vld [vmem:[#allocation59_spill] sm:$0xff]  ;;  %v18747_v36 = vld [vmem:[#allocation74_spill] sm:$0xff] }
 0x6ec   : >> { %v10166_v25 = vcombine.low %v18734_v3, %v18733_v20  ;;  %v18749_v3 = vld [vmem:[#allocation76_spill] sm:$0xff] }
 0x6f2   : >> { %11197 = vmatmul.mubr.bf16.gmra.mrb[20].mxu1 %v10159_v23  ;;  %v18736_v23 = vld [vmem:[#allocation61_spill] sm:$0xff] }
 0x6f3   : >> { %11200 = vmatprep.mubr.bf16.mxu1 %v10160_v6  ;;  %v10167_v5 = vcombine.low %v18736_v23, %v18735_v10  ;;  %v18738_v6 = vld [vmem:[#allocation63_spill] sm:$0xff]  ;;  %v18751_v23 = vld [vmem:[#allocation78_spill] sm:$0xff] }
 0x6f4   : >> { %v10168_v7 = vcombine.low %v18738_v6, %v18737_v22  ;;  %v18753_v6 = vld [vmem:[#allocation80_spill] sm:$0xff] }
 0x6fa   : >> { %11201 = vmatmul.mubr.bf16.gmra.mrb[24].mxu1 %v10161_v37  ;;  %v18740_v37 = vld [vmem:[#allocation65_spill] sm:$0xff] }
 0x6fb   : >> { %11204 = vmatprep.mubr.bf16.mxu1 %v10162_v35  ;;  %v10169_v31 = vcombine.low %v18740_v37, %v18739_v29  ;;  %v18742_v35 = vld [vmem:[#allocation67_spill] sm:$0xff]  ;;  %v18755_v37 = vld [vmem:[#allocation82_spill] sm:$0xff] }
 0x6fc   : >> { %v10170_v33 = vcombine.low %v18742_v35, %v18741_v8  ;;  %v18757_v35 = vld [vmem:[#allocation84_spill] sm:$0xff] }
 0x702   : >> { %11205 = vmatmul.mubr.bf16.gmra.mrb[28].mxu1 %v10163_v0  ;;  %v18744_v0 = vld [vmem:[#allocation69_spill] sm:$0xff] }
 0x703   : >> { %11208 = vmatprep.mubr.bf16.mxu1 %v10164_v34  ;;  %v10171_v2 = vcombine.low %v18744_v0, %v18743_v32  ;;  %v18746_v34 = vld [vmem:[#allocation71_spill] sm:$0xff]  ;;  %v18759_v0 = vld [vmem:[#allocation86_spill] sm:$0xff] }
 0x704   : >> { %v10172_v30 = vcombine.low %v18746_v34, %v18745_v57  ;;  %v18761_v34 = vld [vmem:[#allocation88_spill] sm:$0xff] }
 0x70a   : >> { %11209 = vmatmul.mubr.bf16.gmra.mrb[32].mxu1 %v10165_v16  ;;  %v18748_v16 = vld [vmem:[#allocation73_spill] sm:$0xff] }
 0x70b   : >> { %11212 = vmatprep.mubr.bf16.mxu1 %v10166_v25  ;;  %v10173_v20 = vcombine.low %v18748_v16, %v18747_v36  ;;  %v18750_v25 = vld [vmem:[#allocation75_spill] sm:$0xff]  ;;  %v12008_v16 = vld [vmem:[%s15991_s3 + $0x3c] ss:$24 sps:$4 sm:$0xff]  }
 0x70c   : >> { %v10174_v10 = vcombine.low %v18750_v25, %v18749_v3  ;;  %v18764_v3 = vld [vmem:[#allocation89_spill] sm:$0xff]  ;;  %11306 = vmatprep.subr.bf16.mxu0 %v12008_v16 }
 0x70d   : >> { %11307 = vmatpush3.bf16.msra.mxu0 %v12008_v16  ;;  %v12013_v16 = vld [vmem:[%s15991_s3 + $0x12c] ss:$24 sps:$4 sm:$0xff]  }
 0x712   : >> { %11213 = vmatmul.mubr.bf16.gmra.mrb[36].mxu1 %v10167_v5  ;;  %v18752_v5 = vld [vmem:[#allocation77_spill] sm:$0xff] }
 0x713   : >> { %11216 = vmatprep.mubr.bf16.mxu1 %v10168_v7  ;;  %v10175_v22 = vcombine.low %v18752_v5, %v18751_v23  ;;  %v18754_v7 = vld [vmem:[#allocation79_spill] sm:$0xff] }
 0x714   : >> { %v10176_v29 = vcombine.low %v18754_v7, %v18753_v6  ;;  %v18766_v23 = vld [vmem:[#allocation91_spill] sm:$0xff]  ;;  %v12010_v6 = vld [vmem:[%s15991_s3 + $0x9c] ss:$24 sps:$4 sm:$0xff]  }
 0x715   : >> { %v18767_v7 = vld [vmem:[#allocation94_spill] sm:$0xff] }
 0x71a   : >> { %11217 = vmatmul.mubr.bf16.gmra.mrb[40].mxu1 %v10169_v31  ;;  %v18756_v31 = vld [vmem:[#allocation81_spill] sm:$0xff] }
 0x71b   : >> { %11220 = vmatprep.mubr.bf16.mxu1 %v10170_v33  ;;  %v10177_v8 = vcombine.low %v18756_v31, %v18755_v37  ;;  %v18758_v33 = vld [vmem:[#allocation83_spill] sm:$0xff]  ;;  %v18769_v31 = vld [vmem:[#allocation96_spill] sm:$0xff] }
 0x71c   : >> { %v10178_v32 = vcombine.low %v18758_v33, %v18757_v35  ;;  %v12011_v33 = vld [vmem:[%s15991_s3 + $0xcc] ss:$24 sps:$4 sm:$0xff]  }
 0x722   : >> { %11221 = vmatmul.mubr.bf16.gmra.mrb[44].mxu1 %v10171_v2  ;;  %v18760_v2 = vld [vmem:[#allocation85_spill] sm:$0xff] }
 0x723   : >> { %11224 = vmatprep.mubr.bf16.mxu1 %v10172_v30  ;;  %v10179_v57 = vcombine.low %v18760_v2, %v18759_v0  ;;  %v18762_v30 = vld [vmem:[#allocation87_spill] sm:$0xff]  ;;  %v18771_v0 = vld [vmem:[#allocation98_spill] sm:$0xff]  ;;  %v18772_v2 = vld [vmem:[#allocation97_spill] sm:$0xff] }
 0x724   : >> { %v10180_v36 = vcombine.low %v18762_v30, %v18761_v34  ;;  %v18773_v34 = vld [vmem:[#allocation100_spill] sm:$0xff]  ;;  %v18774_v30 = vld [vmem:[#allocation99_spill] sm:$0xff] }
 0x72a   : >> { %11225 = vmatmul.mubr.bf16.gmra.mrb[48].mxu1 %v10173_v20  ;;  %v18763_v20 = vld [vmem:[#allocation90_spill] sm:$0xff] }
 0x72b   : >> { %11228 = vmatprep.mubr.bf16.mxu1 %v10174_v10  ;;  %v10181_v25 = vcombine.low %v18764_v3, %v18763_v20  ;;  %v18765_v10 = vld [vmem:[#allocation92_spill] sm:$0xff]  ;;  %v18775_v20 = vld [vmem:[#allocation102_spill] sm:$0xff]  ;;  %v18776_v3 = vld [vmem:[#allocation101_spill] sm:$0xff] }
 0x72c   : >> { %v10182_v5 = vcombine.low %v18766_v23, %v18765_v10  ;;  %v12014_v10 = vld [vmem:[%s15991_s3 + $0x15c] ss:$24 sps:$4 sm:$0xff]  }
 0x72d   : >> { %v18777_v23 = vld [vmem:[#allocation104_spill] sm:$0xff] }
 0x732   : >> { %11229 = vmatmul.mubr.bf16.gmra.mrb[52].mxu1 %v10175_v22  ;;  %v12009_v22 = vld [vmem:[%s15991_s3 + $0x6c] ss:$24 sps:$4 sm:$0xff]  }
 0x733   : >> { %11232 = vmatprep.mubr.bf16.mxu1 %v10176_v29  ;;  %11308 = vmatprep.subr.bf16.mxu0 %v12009_v22  ;;  %v18768_v29 = vld [vmem:[#allocation93_spill] sm:$0xff] }
 0x734   : >> { %11309 = vmatpush3.bf16.msra.mxu0 %v12009_v22  ;;  %v10183_v37 = vcombine.low %v18768_v29, %v18767_v7  ;;  %v18780_v7 = vld [vmem:[#allocation105_spill] sm:$0xff] }
 0x735   : >> { %11310 = vmatprep.subr.bf16.mxu0 %v12010_v6 }
 0x738   : >> { %11311 = vmatpush3.bf16.msra.mxu0 %v12010_v6  ;;  %v18779_v6 = vld [vmem:[#allocation106_spill] sm:$0xff] }
 0x739   : >> { %11312 = vmatprep.subr.bf16.mxu0 %v12011_v33  ;;  %v10189_v29 = vcombine.low %v18780_v7, %v18779_v6  ;;  %v18795_v7 = vld [vmem:[#allocation122_spill] sm:$0xff] }
 0x73a   : >> { %11233 = vmatmul.mubr.bf16.gmra.mrb[56].mxu1 %v10177_v8  ;;  %v18770_v8 = vld [vmem:[#allocation95_spill] sm:$0xff] }
 0x73b   : >> { %11236 = vmatprep.mubr.bf16.mxu1 %v10178_v32  ;;  %v10184_v35 = vcombine.low %v18770_v8, %v18769_v31  ;;  %v12012_v32 = vld [vmem:[%s15991_s3 + $0xfc] ss:$24 sps:$4 sm:$0xff]   ;;  %v18782_v31 = vld [vmem:[#allocation107_spill] sm:$0xff] }
 0x73c   : >> { %11313 = vmatpush3.bf16.msra.mxu0 %v12011_v33  ;;  %v18784_v33 = vld [vmem:[#allocation109_spill] sm:$0xff] }
 0x73d   : >> { %11314 = vmatprep.subr.bf16.mxu0 %v12012_v32 }
 0x740   : >> { %11315 = vmatpush3.bf16.msra.mxu0 %v12012_v32 }
 0x741   : >> { %11316 = vmatprep.subr.bf16.mxu0 %v12013_v16 }
 0x742   : >> { %11237 = vmatmul.mubr.bf16.gmra.mrb[60].mxu1 %v10179_v57  ;;  %v10185_v57 = vcombine.low %v18772_v2, %v18771_v0  ;;  %v18785_v0 = vld [vmem:[#allocation112_spill] sm:$0xff]  ;;  %v18786_v2 = vld [vmem:[#allocation111_spill] sm:$0xff] }
 0x743   : >> { %11240 = vmatprep.mubr.bf16.mxu1 %v10180_v36  ;;  %v10186_v36 = vcombine.low %v18774_v30, %v18773_v34  ;;  %v18787_v34 = vld [vmem:[#allocation114_spill] sm:$0xff]  ;;  %v18788_v30 = vld [vmem:[#allocation113_spill] sm:$0xff] }
 0x744   : >> { %11317 = vmatpush3.bf16.msra.mxu0 %v12013_v16  ;;  %v18789_v16 = vld [vmem:[#allocation116_spill] sm:$0xff] }
 0x745   : >> { %11318 = vmatprep.subr.bf16.mxu0 %v12014_v10 }
 0x748   : >> { %11319 = vmatpush3.bf16.msra.mxu0 %v12014_v10  ;;  %v18792_v10 = vld [vmem:[#allocation117_spill] sm:$0xff] }
 0x74a   : >> { %11241 = vmatmul.mubr.bf16.gmra.mrb[64].mxu1 %v10181_v25  ;;  %v10187_v25 = vcombine.low %v18776_v3, %v18775_v20  ;;  %v18790_v20 = vld [vmem:[#allocation115_spill] sm:$0xff] }
 0x74b   : >> { %11244 = vmatprep.mubr.bf16.mxu1 %v10182_v5  ;;  %v18778_v5 = vld [vmem:[#allocation103_spill] sm:$0xff]  ;;  %v10194_v3 = vcombine.low %v18790_v20, %v18789_v16  ;;  %v18805_v20 = vld [vmem:[#allocation132_spill] sm:$0xff] }
 0x74c   : >> { %v10188_v22 = vcombine.low %v18778_v5, %v18777_v23  ;;  %v18793_v5 = vld [vmem:[#allocation120_spill] sm:$0xff] }
 0x752   : >> { %11245 = vmatmul.mubr.bf16.gmra.mrb[68].mxu1 %v10183_v37  ;;  %v18781_v37 = vld [vmem:[#allocation108_spill] sm:$0xff] }
 0x753   : >> { %11248 = vmatprep.mubr.bf16.mxu1 %v10184_v35  ;;  %v10190_v8 = vcombine.low %v18782_v31, %v18781_v37  ;;  %v18783_v35 = vld [vmem:[#allocation110_spill] sm:$0xff]  ;;  %v18797_v31 = vld [vmem:[#allocation124_spill] sm:$0xff] }
 0x754   : >> { %v10191_v32 = vcombine.low %v18784_v33, %v18783_v35  ;;  %v18799_v33 = vld [vmem:[#allocation126_spill] sm:$0xff] }
 0x75a   : >> { %11249 = vmatmul.mubr.bf16.gmra.mrb[72].mxu1 %v10185_v57  ;;  %v10192_v57 = vcombine.low %v18786_v2, %v18785_v0  ;;  %v18801_v2 = vld [vmem:[#allocation128_spill] sm:$0xff] }
 0x75b   : >> { %11252 = vmatprep.mubr.bf16.mxu1 %v10186_v36  ;;  %v10193_v36 = vcombine.low %v18788_v30, %v18787_v34  ;;  %v18803_v30 = vld [vmem:[#allocation130_spill] sm:$0xff] }
 0x762   : >> { %11253 = vmatmul.mubr.bf16.gmra.mrb[76].mxu1 %v10187_v25  ;;  %v18791_v25 = vld [vmem:[#allocation118_spill] sm:$0xff] }
 0x763   : >> { %11256 = vmatprep.mubr.bf16.mxu1 %v10188_v22  ;;  %v10195_v23 = vcombine.low %v18792_v10, %v18791_v25  ;;  %v18794_v22 = vld [vmem:[#allocation119_spill] sm:$0xff]  ;;  %v18807_v10 = vld [vmem:[#allocation134_spill] sm:$0xff] }
 0x764   : >> { %v10196_v6 = vcombine.low %v18794_v22, %v18793_v5  ;;  %v18809_v22 = vld [vmem:[#allocation136_spill] sm:$0xff] }
 0x76a   : >> { %11257 = vmatmul.mubr.bf16.gmra.mrb[80].mxu1 %v10189_v29  ;;  %v18796_v29 = vld [vmem:[#allocation121_spill] sm:$0xff] }
 0x76b   : >> { %11260 = vmatprep.mubr.bf16.mxu1 %v10190_v8  ;;  %v10197_v37 = vcombine.low %v18796_v29, %v18795_v7  ;;  %v18798_v8 = vld [vmem:[#allocation123_spill] sm:$0xff]  ;;  %v18811_v29 = vld [vmem:[#allocation138_spill] sm:$0xff] }
 0x76c   : >> { %v10198_v35 = vcombine.low %v18798_v8, %v18797_v31  ;;  %v18813_v8 = vld [vmem:[#allocation140_spill] sm:$0xff] }
 0x772   : >> { %11261 = vmatmul.mubr.bf16.gmra.mrb[84].mxu1 %v10191_v32  ;;  %v18800_v32 = vld [vmem:[#allocation125_spill] sm:$0xff] }
 0x773   : >> { %11264 = vmatprep.mubr.bf16.mxu1 %v10192_v57  ;;  %v10199_v0 = vcombine.low %v18800_v32, %v18799_v33  ;;  %v18802_v57 = vld [vmem:[#allocation127_spill] sm:$0xff]  ;;  %v18815_v32 = vld [vmem:[#allocation142_spill] sm:$0xff] }
 0x774   : >> { %v10200_v34 = vcombine.low %v18802_v57, %v18801_v2  ;;  %v18817_v57 = vld [vmem:[#allocation144_spill] sm:$0xff] }
 0x77a   : >> { %11265 = vmatmul.mubr.bf16.gmra.mrb[88].mxu1 %v10193_v36  ;;  %v18804_v36 = vld [vmem:[#allocation129_spill] sm:$0xff] }
 0x77b   : >> { %11268 = vmatprep.mubr.bf16.mxu1 %v10194_v3  ;;  %v10201_v16 = vcombine.low %v18804_v36, %v18803_v30  ;;  %v18806_v3 = vld [vmem:[#allocation131_spill] sm:$0xff]  ;;  %v18819_v36 = vld [vmem:[#allocation146_spill] sm:$0xff] }
 0x77c   : >> { %v10202_v25 = vcombine.low %v18806_v3, %v18805_v20  ;;  %v18821_v3 = vld [vmem:[#allocation148_spill] sm:$0xff] }
 0x782   : >> { %11269 = vmatmul.mubr.bf16.gmra.mrb[92].mxu1 %v10195_v23  ;;  %v18808_v23 = vld [vmem:[#allocation133_spill] sm:$0xff] }
 0x783   : >> { %11272 = vmatprep.mubr.bf16.mxu1 %v10196_v6  ;;  %v10203_v5 = vcombine.low %v18808_v23, %v18807_v10  ;;  %v18810_v6 = vld [vmem:[#allocation135_spill] sm:$0xff]  ;;  %v6012_v23 = vld [vmem:[%s16273_s30 + $0x10] sm:$0xff] }
 0x784   : >> { %v10204_v7 = vcombine.low %v18810_v6, %v18809_v22  ;;  %v6013_v6 = vld [vmem:[%s16273_s30 + $0x18] sm:$0xff] }
 0x78a   : >> { %11273 = vmatmul.mubr.bf16.gmra.mrb[96].mxu1 %v10197_v37  ;;  %v18812_v37 = vld [vmem:[#allocation137_spill] sm:$0xff] }
 0x78b   : >> { %11276 = vmatprep.mubr.bf16.mxu1 %v10198_v35  ;;  %v10205_v31 = vcombine.low %v18812_v37, %v18811_v29  ;;  %v18814_v35 = vld [vmem:[#allocation139_spill] sm:$0xff] }
 0x78c   : >> { %v10206_v33 = vcombine.low %v18814_v35, %v18813_v8  ;;  %v6011_v37 = vld [vmem:[%s16273_s30 + $0x8] sm:$0xff]  ;;  %v18824_v8 = vld [vmem:[#allocation149_spill] sm:$0xff] }
 0x792   : >> { %11277 = vmatmul.mubr.bf16.gmra.mrb[100].mxu1 %v10199_v0  ;;  %v18816_v0 = vld [vmem:[#allocation141_spill] sm:$0xff] }
 0x793   : >> { %11280 = vmatprep.mubr.bf16.mxu1 %v10200_v34  ;;  %v10207_v2 = vcombine.low %v18816_v0, %v18815_v32  ;;  %v18818_v34 = vld [vmem:[#allocation143_spill] sm:$0xff] }
 0x794   : >> { %v10208_v30 = vcombine.low %v18818_v34, %v18817_v57 }
 0x79a   : >> { %11281 = vmatmul.mubr.bf16.gmra.mrb[104].mxu1 %v10201_v16  ;;  %v18820_v16 = vld [vmem:[#allocation145_spill] sm:$0xff] }
 0x79b   : >> { %11284 = vmatprep.mubr.bf16.mxu1 %v10202_v25  ;;  %v10209_v20 = vcombine.low %v18820_v16, %v18819_v36  ;;  %v18822_v25 = vld [vmem:[#allocation147_spill] sm:$0xff] }
 0x79c   : >> { %v10210_v10 = vcombine.low %v18822_v25, %v18821_v3  ;;  %v6014_v3 = vld [vmem:[%s16273_s30 + $0x20] sm:$0xff] }
 0x7a2   : >> { %11285 = vmatmul.mubr.bf16.gmra.mrb[108].mxu1 %v10203_v5  ;;  %v6010_v5 = vld [vmem:[%s16273_s30] sm:$0xff] }
 0x7a3   : >> { %11288 = vmatprep.mubr.bf16.mxu1 %v10204_v7 }
 0x7aa   : >> { %11289 = vmatmul.mubr.bf16.gmra.mrb[112].mxu1 %v10205_v31  ;;  %v18823_v31 = vld [vmem:[#allocation150_spill] sm:$0xff] }
 0x7ab   : >> { %11292 = vmatprep.mubr.bf16.mxu1 %v10206_v33  ;;  %v10211_v35 = vcombine.low %v18824_v8, %v18823_v31 }
 0x7b2   : >> { %11293 = vmatmul.mubr.bf16.gmra.mrb[116].mxu1 %v10207_v2 }
 0x7b3   : >> { %11296 = vmatprep.mubr.bf16.mxu1 %v10208_v30 }
 0x7ba   : >> { %11297 = vmatmul.mubr.bf16.gmra.mrb[120].mxu1 %v10209_v20  ;;  %v6016_v20 = vld [vmem:[%s16273_s30 + $0x30] sm:$0xff] }
 0x7bb   : >> { %11300 = vmatprep.mubr.bf16.mxu1 %v10210_v10  ;;  %v6017_v10 = vld [vmem:[%s16273_s30 + $0x38] sm:$0xff] }
 0x7bd   : >> { %v11194_v22 = vpop.f32.mrb[16].mxu1 }
 0x7be   : >> { %v16278_v7 = vadd.f32 %v11194_v22, %v6012_v23  ;;  %v5561_v29 = vpop.f32.mrb[17].mxu1  ;;  %v6015_v22 = vld [vmem:[%s16273_s30 + $0x28] sm:$0xff] }
 0x7bf   : >> { %v16283_v33 = vadd.f32 %v6010_v5, %v5561_v29  ;;  %v11195_v32 = vpop.f32.mrb[18].mxu1 }
 0x7c0   : >> { %v10214_v0 = vmul.f32 -1.442695, %v16278_v7  ;;  %v16286_v2 = vadd.f32 %v11195_v32, %v6013_v6  ;;  %v5564_v57 = vpop.f32.mrb[19].mxu1 }
 0x7c1   : >> { %v10212_v34 = vmul.f32 -1.442695, %v16283_v33  ;;  %v16289_v30 = vadd.f32 %v6011_v37, %v5564_v57 }
 0x7c2   : >> { %12039 = vpow2.f32 %v10214_v0  ;;  %v10215_v36 = vmul.f32 -1.442695, %v16286_v2  ;;  %11301 = vmatmul.mubr.bf16.gmra.mrb[124].mxu1 %v10211_v35 }
 0x7c3   : >> { %12041 = vpow2.f32 %v10212_v34  ;;  %v10213_v16 = vmul.f32 -1.442695, %v16289_v30  ;;  %v6020_v34 = vld [vmem:[%s16273_s30 + $0x50] sm:$0xff] }
 0x7c4   : >> { %12043 = vpow2.f32 %v10215_v36 }
 0x7c5   : >> { %12045 = vpow2.f32 %v10213_v16  ;;  %v11198_v25 = vpop.f32.mrb[20].mxu1  ;;  %v6018_v16 = vld [vmem:[%s16273_s30 + $0x40] sm:$0xff] }
 0x7c6   : >> { %v16296_v23 = vadd.f32 %v11198_v25, %v6016_v20  ;;  %v5577_v5 = vpop.f32.mrb[21].mxu1 }
 0x7c7   : >> { %v16299_v6 = vadd.f32 %v6014_v3, %v5577_v5  ;;  %v11199_v29 = vpop.f32.mrb[22].mxu1 }
 0x7c8   : >> { %v10218_v37 = vmul.f32 -1.442695, %v16296_v23  ;;  %v16302_v31 = vadd.f32 %v11199_v29, %v6017_v10  ;;  %v5580_v8 = vpop.f32.mrb[23].mxu1  ;;  %v6021_v10 = vld [vmem:[%s16273_s30 + $0x58] sm:$0xff] }
 0x7c9   : >> { %v10216_v35 = vmul.f32 -1.442695, %v16299_v6  ;;  %v16305_v32 = vadd.f32 %v6015_v22, %v5580_v8  ;;  %v6019_v8 = vld [vmem:[%s16273_s30 + $0x48] sm:$0xff] }
 0x7ca   : >> { %12047 = vpow2.f32 %v10218_v37  ;;  %v10219_v0 = vmul.f32 -1.442695, %v16302_v31 }
 0x7cb   : >> { %12049 = vpow2.f32 %v10216_v35  ;;  %v10217_v57 = vmul.f32 -1.442695, %v16305_v32 }
 0x7cc   : >> { %v12040_v36 = vpop.eup %12039  ;;  %12051 = vpow2.f32 %v10219_v0 }
 0x7cd   : >> { %v12042_v20 = vpop.eup %12041  ;;  %v6572_v3 = vadd.f32 1.0, %v12040_v36  ;;  %12053 = vpow2.f32 %v10217_v57  ;;  %v11202_v25 = vpop.f32.mrb[24].mxu1 }
 0x7ce   : >> { %v12044_v5 = vpop.eup %12043  ;;  %v6570_v29 = vadd.f32 1.0, %v12042_v20  ;;  %v16312_v22 = vadd.f32 %v11202_v25, %v6020_v34  ;;  %v5593_v37 = vpop.f32.mrb[25].mxu1  ;;  %v6024_v25 = vld [vmem:[%s16273_s30 + $0x70] sm:$0xff] }
 0x7cf   : >> { %v12046_v38 = vpop.eup %12045  ;;  %12055 = vrcp.f32 %v6572_v3  ;;  %v6573_v35 = vadd.f32 1.0, %v12044_v5  ;;  %v16315_v39 = vadd.f32 %v6018_v16, %v5593_v37  ;;  %v11203_v40 = vpop.f32.mrb[26].mxu1  ;;  %v6022_v5 = vld [vmem:[%s16273_s30 + $0x60] sm:$0xff]  ;;  %v6025_v37 = vld [vmem:[%s16273_s30 + $0x78] sm:$0xff] }
 0x7d0   : >> { %12057 = vrcp.f32 %v6570_v29  ;;  %v6571_v0 = vadd.f32 1.0, %v12046_v38  ;;  %v10222_v57 = vmul.f32 -1.442695, %v16312_v22  ;;  %v16318_v36 = vadd.f32 %v11203_v40, %v6021_v10  ;;  %v5596_v41 = vpop.f32.mrb[27].mxu1 }
 0x7d1   : >> { %12059 = vrcp.f32 %v6573_v35  ;;  %v10220_v34 = vmul.f32 -1.442695, %v16315_v39  ;;  %v16321_v20 = vadd.f32 %v6019_v8, %v5596_v41 }
 0x7d2   : >> { %12061 = vrcp.f32 %v6571_v0  ;;  %v10223_v3 = vmul.f32 -1.442695, %v16318_v36  ;;  %v6023_v0 = vld [vmem:[%s16273_s30 + $0x68] sm:$0xff] }
 0x7d3   : >> { %12063 = vpow2.f32 %v10222_v57  ;;  %v10221_v16 = vmul.f32 -1.442695, %v16321_v20 }
 0x7d4   : >> { %v12048_v38 = vpop.eup %12047  ;;  %12065 = vpow2.f32 %v10220_v34 }
 0x7d5   : >> { %v12050_v40 = vpop.eup %12049  ;;  %v6576_v10 = vadd.f32 1.0, %v12048_v38  ;;  %12067 = vpow2.f32 %v10223_v3  ;;  %v11206_v29 = vpop.f32.mrb[28].mxu1 }
 0x7d6   : >> { %v12052_v35 = vpop.eup %12051  ;;  %v6574_v42 = vadd.f32 1.0, %v12050_v40  ;;  %12069 = vpow2.f32 %v10221_v16  ;;  %v16328_v41 = vadd.f32 %v11206_v29, %v6024_v25  ;;  %v5609_v8 = vpop.f32.mrb[29].mxu1 }
 0x7d7   : >> { %v12054_v57 = vpop.eup %12053  ;;  %12071 = vrcp.f32 %v6576_v10  ;;  %v6577_v43 = vadd.f32 1.0, %v12052_v35  ;;  %v16331_v44 = vadd.f32 %v6022_v5, %v5609_v8  ;;  %v11207_v45 = vpop.f32.mrb[30].mxu1  ;;  %v6028_v35 = vld [vmem:[%s16273_s30 + $0x90] sm:$0xff]  ;;  %v6026_v8 = vld [vmem:[%s16273_s30 + $0x80] sm:$0xff] }
 0x7d8   : >> { %12073 = vrcp.f32 %v6574_v42  ;;  %v6575_v34 = vadd.f32 1.0, %v12054_v57  ;;  %v10226_v3 = vmul.f32 -1.442695, %v16328_v41  ;;  %v16334_v38 = vadd.f32 %v11207_v45, %v6025_v37  ;;  %v5612_v46 = vpop.f32.mrb[31].mxu1 }
 0x7d9   : >> { %v12056_v16 = vpop.eup %12055  ;;  %12075 = vrcp.f32 %v6577_v43  ;;  %v10224_v25 = vmul.f32 -1.442695, %v16331_v44  ;;  %v16337_v40 = vadd.f32 %v6023_v0, %v5612_v46 }
 0x7da   : >> { %v12058_v10 = vpop.eup %12057  ;;  %12077 = vrcp.f32 %v6575_v34  ;;  %v10227_v5 = vmul.f32 -1.442695, %v16334_v38  ;;  %v6908_v37 = vmul.f32 %v12056_v16, %v16278_v7  ;;  %v6027_v16 = vld [vmem:[%s16273_s30 + $0x88] sm:$0xff] }
 0x7db   : >> { %v12060_v29 = vpop.eup %12059  ;;  %12079 = vpow2.f32 %v10226_v3  ;;  %v10225_v42 = vmul.f32 -1.442695, %v16337_v40  ;;  %v6906_v0 = vmul.f32 %v12058_v10, %v16283_v33 }
 0x7dc   : >> { %v12062_v45 = vpop.eup %12061  ;;  %v6909_v43 = vmul.f32 %v12060_v29, %v16286_v2  ;;  %12081 = vpow2.f32 %v10224_v25 }
 0x7dd   : >> { %v12064_v46 = vpop.eup %12063  ;;  %v6907_v57 = vmul.f32 %v12062_v45, %v16289_v30  ;;  %12083 = vpow2.f32 %v10227_v5  ;;  %v11210_v34 = vpop.f32.mrb[32].mxu1 }
 0x7de   : >> { %v12066_v3 = vpop.eup %12065  ;;  %v7019_v48 = vpack.c.bf16 %v6909_v43, %v6908_v37  ;;  %v6580_v49 = vadd.f32 1.0, %v12064_v46  ;;  %12085 = vpow2.f32 %v10225_v42  ;;  %v16348_v50 = vadd.f32 %v11210_v34, %v6028_v35  ;;  %v5625_v7 = vpop.f32.mrb[33].mxu1  ;;  %v6032_v46 = vld [vmem:[%s16273_s30 + $0xb0] sm:$0xff] }
 0x7df   : >> { %v12068_v51 = vpop.eup %12067  ;;  %v6578_v2 = vadd.f32 1.0, %v12066_v3  ;;  %v16351_v25 = vadd.f32 %v6026_v8, %v5625_v7  ;;  %v11211_v29 = vpop.f32.mrb[34].mxu1  ;;  %v7018_v52 = vpack.c.bf16 %v6907_v57, %v6906_v0  ;;  %v6030_v3 = vld [vmem:[%s16273_s30 + $0xa0] sm:$0xff] }
 0x7e0   : >> { %v12070_v33 = vpop.eup %12069  ;;  %12087 = vrcp.f32 %v6580_v49  ;;  %v6581_v30 = vadd.f32 1.0, %v12068_v51  ;;  %v10230_v10 = vmul.f32 -1.442695, %v16348_v50  ;;  %v16354_v5 = vadd.f32 %v11211_v29, %v6029_v47  ;;  %v5628_v45 = vpop.f32.mrb[35].mxu1 }
 0x7e1   : >> { %v12072_v42 = vpop.eup %12071  ;;  %12089 = vrcp.f32 %v6578_v2  ;;  %v6579_v35 = vadd.f32 1.0, %v12070_v33  ;;  %v10228_v37 = vmul.f32 -1.442695, %v16351_v25  ;;  %v16357_v43 = vadd.f32 %v6027_v16, %v5628_v45  ;;  %11320 = vmatprep.mubr.bf16.mxu0 %v7018_v52  ;;  %v6033_v2 = vld [vmem:[%s16273_s30 + $0xb8] sm:$0xff] }
 0x7e2   : >> { %v12074_v8 = vpop.eup %12073  ;;  %12091 = vrcp.f32 %v6581_v30  ;;  %v10231_v49 = vmul.f32 -1.442695, %v16354_v5  ;;  %11321 = vmatmul.mubr.bf16.vlgmr.msra.gmra.mrb[32].mxu0 %v7019_v48  ;;  %v6912_v57 = vmul.f32 %v12072_v42, %v16296_v23 }
 0x7e3   : >> { %v12076_v51 = vpop.eup %12075  ;;  %12093 = vrcp.f32 %v6579_v35  ;;  %v10229_v47 = vmul.f32 -1.442695, %v16357_v43  ;;  %v6910_v7 = vmul.f32 %v12074_v8, %v16299_v6  ;;  %v6031_v35 = vld [vmem:[%s16273_s30 + $0xa8] sm:$0xff] }
 0x7e4   : >> { %v12078_v0 = vpop.eup %12077  ;;  %v6913_v34 = vmul.f32 %v12076_v51, %v16302_v31  ;;  %12095 = vpow2.f32 %v10230_v10 }
 0x7e5   : >> { %v12080_v52 = vpop.eup %12079  ;;  %v6911_v16 = vmul.f32 %v12078_v0, %v16305_v32  ;;  %12097 = vpow2.f32 %v10228_v37  ;;  %v11214_v48 = vpop.f32.mrb[36].mxu1 }
 0x7e6   : >> { %v12082_v29 = vpop.eup %12081  ;;  %v6584_v33 = vadd.f32 1.0, %v12080_v52  ;;  %12099 = vpow2.f32 %v10231_v49  ;;  %v16368_v30 = vadd.f32 %v11214_v48, %v6032_v46  ;;  %v5641_v45 = vpop.f32.mrb[37].mxu1  ;;  %v7021_v23 = vpack.c.bf16 %v6913_v34, %v6912_v57 }
 0x7e7   : >> { %v12084_v42 = vpop.eup %12083  ;;  %v6582_v31 = vadd.f32 1.0, %v12082_v29  ;;  %12101 = vpow2.f32 %v10229_v47  ;;  %v16371_v10 = vadd.f32 %v6030_v3, %v5641_v45  ;;  %v11215_v51 = vpop.f32.mrb[38].mxu1  ;;  %v7020_v6 = vpack.c.bf16 %v6911_v16, %v6910_v7  ;;  %v6036_v16 = vld [vmem:[%s16273_s30 + $0xd0] sm:$0xff] }
 0x7e8   : >> { %v12086_v8 = vpop.eup %12085  ;;  %12103 = vrcp.f32 %v6584_v33  ;;  %v6585_v32 = vadd.f32 1.0, %v12084_v42  ;;  %v10234_v37 = vmul.f32 -1.442695, %v16368_v30  ;;  %v16374_v0 = vadd.f32 %v11215_v51, %v6033_v2  ;;  %v5644_v49 = vpop.f32.mrb[39].mxu1  ;;  %v6034_v2 = vld [vmem:[%s16273_s30 + $0xc0] sm:$0xff]  ;;  %v6037_v42 = vld [vmem:[%s16273_s30 + $0xd8] sm:$0xff] }
 0x7e9   : >> { %12105 = vrcp.f32 %v6582_v31  ;;  %v6583_v46 = vadd.f32 1.0, %v12086_v8  ;;  %v10232_v57 = vmul.f32 -1.442695, %v16371_v10  ;;  %v16377_v34 = vadd.f32 %v6031_v35, %v5644_v49  ;;  %11324 = vmatprep.mubr.bf16.mxu0 %v7020_v6 }
 0x7ea   : >> { %v12088_v47 = vpop.eup %12087  ;;  %12107 = vrcp.f32 %v6585_v32  ;;  %v10235_v3 = vmul.f32 -1.442695, %v16374_v0  ;;  %11325 = vmatmul.mubr.bf16.gmra.mrb[36].mxu0 %v7021_v23  ;;  %v6035_v32 = vld [vmem:[%s16273_s30 + $0xc8] sm:$0xff] }
 0x7eb   : >> { %v12090_v52 = vpop.eup %12089  ;;  %12109 = vrcp.f32 %v6583_v46  ;;  %v10233_v7 = vmul.f32 -1.442695, %v16377_v34  ;;  %v6916_v33 = vmul.f32 %v12088_v47, %v16312_v22 }
 0x7ec   : >> { %v12092_v48 = vpop.eup %12091  ;;  %12111 = vpow2.f32 %v10234_v37  ;;  %v6914_v23 = vmul.f32 %v12090_v52, %v16315_v39 }
 0x7ed   : >> { %v12094_v29 = vpop.eup %12093  ;;  %v6917_v45 = vmul.f32 %v12092_v48, %v16318_v36  ;;  %12113 = vpow2.f32 %v10232_v57  ;;  %v11218_v35 = vpop.f32.mrb[40].mxu1 }
 0x7ee   : >> { %v12096_v31 = vpop.eup %12095  ;;  %v6915_v51 = vmul.f32 %v12094_v29, %v16321_v20  ;;  %12115 = vpow2.f32 %v10235_v3  ;;  %v16388_v6 = vadd.f32 %v11218_v35, %v6036_v16  ;;  %v5657_v8 = vpop.f32.mrb[41].mxu1  ;;  %v6040_v35 = vld [vmem:[%s16273_s30 + $0xf0] sm:$0xff] }
 0x7ef   : >> { %v12098_v37 = vpop.eup %12097  ;;  %v6588_v49 = vadd.f32 1.0, %v12096_v31  ;;  %12117 = vpow2.f32 %v10233_v7  ;;  %v16391_v46 = vadd.f32 %v6034_v2, %v5657_v8  ;;  %v11219_v22 = vpop.f32.mrb[42].mxu1  ;;  %v7023_v36 = vpack.c.bf16 %v6917_v45, %v6916_v33 }
 0x7f0   : >> { %v12100_v57 = vpop.eup %12099  ;;  %v6586_v47 = vadd.f32 1.0, %v12098_v37  ;;  %v16393_v48 = vadd.f32 %v11219_v22, %v6037_v42  ;;  %v5660_v53 = vpop.f32.mrb[43].mxu1  ;;  %v7022_v39 = vpack.c.bf16 %v6915_v51, %v6914_v23  ;;  %v10238_v52 = vmul.f32 -1.442695, %v16388_v6  ;;  %v6041_v37 = vld [vmem:[%s16273_s30 + $0xf8] sm:$0xff] }
 0x7f1   : >> { %v12102_v20 = vpop.eup %12101  ;;  %12119 = vrcp.f32 %v6588_v49  ;;  %v6589_v3 = vadd.f32 1.0, %v12100_v57  ;;  %v16396_v16 = vadd.f32 %v6035_v32, %v5660_v53  ;;  %v10236_v29 = vmul.f32 -1.442695, %v16391_v46  ;;  %v6038_v53 = vld [vmem:[%s16273_s30 + $0xe0] sm:$0xff] }
 0x7f2   : >> { %v12104_v7 = vpop.eup %12103  ;;  %12121 = vrcp.f32 %v6586_v47  ;;  %v6587_v2 = vadd.f32 1.0, %v12102_v20  ;;  %11328 = vmatprep.mubr.bf16.mxu0 %v7022_v39  ;;  %v10239_v45 = vmul.f32 -1.442695, %v16393_v48  ;;  %v6039_v47 = vld [vmem:[%s16273_s30 + $0xe8] sm:$0xff] }
 0x7f3   : >> { %v12106_v33 = vpop.eup %12105  ;;  %12123 = vrcp.f32 %v6589_v3  ;;  %11329 = vmatmul.mubr.bf16.gmra.mrb[40].mxu0 %v7023_v36  ;;  %v10237_v31 = vmul.f32 -1.442695, %v16396_v16  ;;  %v6920_v51 = vmul.f32 %v12104_v7, %v16328_v41 }
 0x7f4   : >> { %v12108_v42 = vpop.eup %12107  ;;  %12125 = vrcp.f32 %v6587_v2 }
 0x7f5   : >> { %v12110_v23 = vpop.eup %12109  ;;  %v6921_v8 = vmul.f32 %v12108_v42, %v16334_v38  ;;  %12127 = vpow2.f32 %v10238_v52  ;;  %v11222_v32 = vpop.f32.mrb[44].mxu1  ;;  %v6918_v38 = vmul.f32 %v12106_v33, %v16331_v44 }
 0x7f6   : >> { %v12112_v49 = vpop.eup %12111  ;;  %v6919_v22 = vmul.f32 %v12110_v23, %v16337_v40  ;;  %12129 = vpow2.f32 %v10236_v29  ;;  %v16407_v36 = vadd.f32 %v11222_v32, %v6040_v35  ;;  %v5673_v57 = vpop.f32.mrb[45].mxu1 }
 0x7f7   : >> { %v12114_v39 = vpop.eup %12113  ;;  %v6592_v20 = vadd.f32 1.0, %v12112_v49  ;;  %12131 = vpow2.f32 %v10239_v45  ;;  %v16410_v3 = vadd.f32 %v6038_v53, %v5673_v57  ;;  %v11223_v2 = vpop.f32.mrb[46].mxu1  ;;  %v7025_v41 = vpack.c.bf16 %v6921_v8, %v6920_v51  ;;  %v6044_v8 = vld [vmem:[%s16273_s30 + $0x110] sm:$0xff]  ;;  %v6042_v49 = vld [vmem:[%s16273_s30 + $0x100] sm:$0xff] }
 0x7f8   : >> { %v12116_v7 = vpop.eup %12115  ;;  %v6590_v52 = vadd.f32 1.0, %v12114_v39  ;;  %12133 = vpow2.f32 %v10237_v31  ;;  %v16413_v42 = vadd.f32 %v11223_v2, %v6041_v37  ;;  %v5676_v40 = vpop.f32.mrb[47].mxu1  ;;  %v10242_v23 = vmul.f32 -1.442695, %v16407_v36  ;;  %v6045_v39 = vld [vmem:[%s16273_s30 + $0x118] sm:$0xff] }
 0x7f9   : >> { %v12118_v29 = vpop.eup %12117  ;;  %12135 = vrcp.f32 %v6592_v20  ;;  %v6593_v35 = vadd.f32 1.0, %v12116_v7  ;;  %v16416_v45 = vadd.f32 %v6039_v47, %v5676_v40  ;;  %v10240_v51 = vmul.f32 -1.442695, %v16410_v3 }
 0x7fa   : >> { %12137 = vrcp.f32 %v6590_v52  ;;  %v6591_v53 = vadd.f32 1.0, %v12118_v29  ;;  %v7024_v44 = vpack.c.bf16 %v6919_v22, %v6918_v38  ;;  %v10243_v31 = vmul.f32 -1.442695, %v16413_v42  ;;  %v6043_v38 = vld [vmem:[%s16273_s30 + $0x108] sm:$0xff] }
 0x7fb   : >> { %v12120_v33 = vpop.eup %12119  ;;  %12139 = vrcp.f32 %v6593_v35  ;;  %v10241_v37 = vmul.f32 -1.442695, %v16416_v45 }
 0x7fc   : >> { %v12122_v32 = vpop.eup %12121  ;;  %12141 = vrcp.f32 %v6591_v53  ;;  %11332 = vmatprep.mubr.bf16.mxu0 %v7024_v44  ;;  %v6924_v53 = vmul.f32 %v12120_v33, %v16348_v50 }
 0x7fd   : >> { %v12124_v57 = vpop.eup %12123  ;;  %12143 = vpow2.f32 %v10242_v23  ;;  %11333 = vmatmul.mubr.bf16.gmra.mrb[44].mxu0 %v7025_v41  ;;  %v11226_v47 = vpop.f32.mrb[48].mxu1  ;;  %v6922_v40 = vmul.f32 %v12122_v32, %v16351_v25 }
 0x7fe   : >> { %v12126_v20 = vpop.eup %12125  ;;  %v6925_v22 = vmul.f32 %v12124_v57, %v16354_v5  ;;  %12145 = vpow2.f32 %v10240_v51  ;;  %v16425_v2 = vadd.f32 %v11226_v47, %v6044_v8  ;;  %v5689_v7 = vpop.f32.mrb[49].mxu1 }
 0x7ff   : >> { %v12128_v52 = vpop.eup %12127  ;;  %v6923_v29 = vmul.f32 %v12126_v20, %v16357_v43  ;;  %12147 = vpow2.f32 %v10243_v31  ;;  %v16430_v35 = vadd.f32 %v6042_v49, %v5689_v7  ;;  %v11227_v23 = vpop.f32.mrb[50].mxu1 }
 0x800   : >> { %v12130_v41 = vpop.eup %12129  ;;  %v6596_v44 = vadd.f32 1.0, %v12128_v52  ;;  %12149 = vpow2.f32 %v10241_v37  ;;  %v16433_v5 = vadd.f32 %v11227_v23, %v6045_v39  ;;  %v5692_v51 = vpop.f32.mrb[51].mxu1  ;;  %v10246_v32 = vmul.f32 -1.442695, %v16425_v2  ;;  %v6048_v39 = vld [vmem:[%s16273_s30 + $0x130] sm:$0xff] }
 0x801   : >> { %v12132_v8 = vpop.eup %12131  ;;  %v6594_v57 = vadd.f32 1.0, %v12130_v41  ;;  %v16435_v47 = vadd.f32 %v6043_v38, %v5692_v51  ;;  %v7026_v25 = vpack.c.bf16 %v6923_v29, %v6922_v40  ;;  %v7027_v49 = vpack.c.bf16 %v6925_v22, %v6924_v53  ;;  %v6046_v38 = vld [vmem:[%s16273_s30 + $0x120] sm:$0xff]  ;;  %v6049_v29 = vld [vmem:[%s16273_s30 + $0x138] sm:$0xff] }
 0x802   : >> { %v12134_v43 = vpop.eup %12133  ;;  %12151 = vrcp.f32 %v6596_v44  ;;  %v6597_v31 = vadd.f32 1.0, %v12132_v8  ;;  %v10244_v37 = vmul.f32 -1.442695, %v16430_v35  ;;  %v10247_v7 = vmul.f32 -1.442695, %v16433_v5  ;;  %v6047_v44 = vld [vmem:[%s16273_s30 + $0x128] sm:$0xff] }
 0x803   : >> { %v12136_v50 = vpop.eup %12135  ;;  %12153 = vrcp.f32 %v6594_v57  ;;  %v6595_v33 = vadd.f32 1.0, %v12134_v43  ;;  %11336 = vmatprep.mubr.bf16.mxu0 %v7026_v25  ;;  %v10245_v40 = vmul.f32 -1.442695, %v16435_v47 }
 0x804   : >> { %v12138_v20 = vpop.eup %12137  ;;  %12155 = vrcp.f32 %v6597_v31 }
 0x805   : >> { %v12140_v52 = vpop.eup %12139  ;;  %12157 = vrcp.f32 %v6595_v33  ;;  %11337 = vmatmul.mubr.bf16.gmra.mrb[48].mxu0 %v7027_v49  ;;  %v11230_v22 = vpop.f32.mrb[52].mxu1  ;;  %v6926_v49 = vmul.f32 %v12138_v20, %v16371_v10 }
 0x806   : >> { %v12142_v23 = vpop.eup %12141  ;;  %12159 = vpow2.f32 %v10246_v32  ;;  %v16444_v41 = vadd.f32 %v11230_v22, %v6048_v39  ;;  %v5705_v53 = vpop.f32.mrb[53].mxu1  ;;  %v6929_v8 = vmul.f32 %v12140_v52, %v16374_v0  ;;  %v6928_v22 = vmul.f32 %v12136_v50, %v16368_v30 }
 0x807   : >> { %v12144_v51 = vpop.eup %12143  ;;  %v6927_v57 = vmul.f32 %v12142_v23, %v16377_v34  ;;  %12161 = vpow2.f32 %v10244_v37  ;;  %v16449_v25 = vadd.f32 %v6046_v38, %v5705_v53  ;;  %v11231_v43 = vpop.f32.mrb[54].mxu1 }
 0x808   : >> { %v12146_v31 = vpop.eup %12145  ;;  %v6600_v33 = vadd.f32 1.0, %v12144_v51  ;;  %12163 = vpow2.f32 %v10247_v7  ;;  %v16452_v54 = vadd.f32 %v11231_v43, %v6049_v29  ;;  %v5708_v32 = vpop.f32.mrb[55].mxu1  ;;  %v10250_v38 = vmul.f32 -1.442695, %v16444_v41  ;;  %v6052_v29 = vld [vmem:[%s16273_s30 + $0x150] sm:$0xff]  ;;  %v6053_v51 = vld [vmem:[%s16273_s30 + $0x158] sm:$0xff] }
 0x809   : >> { %v12148_v39 = vpop.eup %12147  ;;  %v6598_v55 = vadd.f32 1.0, %v12146_v31  ;;  %12165 = vpow2.f32 %v10245_v40  ;;  %v16455_v0 = vadd.f32 %v6047_v44, %v5708_v32  ;;  %v7028_v10 = vpack.c.bf16 %v6927_v57, %v6926_v49  ;;  %v6050_v40 = vld [vmem:[%s16273_s30 + $0x140] sm:$0xff]  ;;  %v6051_v43 = vld [vmem:[%s16273_s30 + $0x148] sm:$0xff] }
 0x80a   : >> { %v12150_v34 = vpop.eup %12149  ;;  %12167 = vrcp.f32 %v6600_v33  ;;  %v6601_v37 = vadd.f32 1.0, %v12148_v39  ;;  %v10248_v7 = vmul.f32 -1.442695, %v16449_v25  ;;  %v7029_v52 = vpack.c.bf16 %v6929_v8, %v6928_v22 }
 0x80b   : >> { %12169 = vrcp.f32 %v6598_v55  ;;  %v6599_v20 = vadd.f32 1.0, %v12150_v34  ;;  %v10251_v50 = vmul.f32 -1.442695, %v16452_v54  ;;  %11340 = vmatprep.mubr.bf16.mxu0 %v7028_v10  ;;  %v10249_v53 = vmul.f32 -1.442695, %v16455_v0 }
 0x80c   : >> { %v12152_v30 = vpop.eup %12151  ;;  %12171 = vrcp.f32 %v6601_v37 }
 0x80d   : >> { %v12154_v23 = vpop.eup %12153  ;;  %12173 = vrcp.f32 %v6599_v20  ;;  %11341 = vmatmul.mubr.bf16.gmra.mrb[52].mxu0 %v7029_v52  ;;  %v11234_v44 = vpop.f32.mrb[56].mxu1  ;;  %v6932_v52 = vmul.f32 %v12152_v30, %v16388_v6 }
 0x80e   : >> { %v12156_v55 = vpop.eup %12155  ;;  %12175 = vpow2.f32 %v10250_v38  ;;  %v16464_v57 = vadd.f32 %v11234_v44, %v6052_v29  ;;  %v5721_v8 = vpop.f32.mrb[57].mxu1  ;;  %v6930_v49 = vmul.f32 %v12154_v23, %v16391_v46 }
 0x80f   : >> { %v12158_v31 = vpop.eup %12157  ;;  %v6933_v33 = vmul.f32 %v12156_v55, %v16393_v48  ;;  %12177 = vpow2.f32 %v10248_v7  ;;  %v16469_v32 = vadd.f32 %v6050_v40, %v5721_v8  ;;  %v11235_v39 = vpop.f32.mrb[58].mxu1 }
 0x810   : >> { %v12160_v22 = vpop.eup %12159  ;;  %v6931_v34 = vmul.f32 %v12158_v31, %v16396_v16  ;;  %12179 = vpow2.f32 %v10251_v50  ;;  %v10254_v37 = vmul.f32 -1.442695, %v16464_v57  ;;  %v16473_v38 = vadd.f32 %v11235_v39, %v6053_v51  ;;  %v5724_v10 = vpop.f32.mrb[59].mxu1  ;;  %v6056_v51 = vld [vmem:[%s16273_s30 + $0x170] sm:$0xff]  ;;  %v6054_v31 = vld [vmem:[%s16273_s30 + $0x160] sm:$0xff] }
 0x811   : >> { %v12162_v20 = vpop.eup %12161  ;;  %v6604_v46 = vadd.f32 1.0, %v12160_v22  ;;  %12181 = vpow2.f32 %v10249_v53  ;;  %v16476_v48 = vadd.f32 %v6051_v43, %v5724_v10  ;;  %v10252_v50 = vmul.f32 -1.442695, %v16469_v32  ;;  %v6057_v22 = vld [vmem:[%s16273_s30 + $0x178] sm:$0xff] }
 0x812   : >> { %v12164_v7 = vpop.eup %12163  ;;  %v6602_v29 = vadd.f32 1.0, %v12162_v20  ;;  %12183 = vpow2.f32 %v10254_v37  ;;  %v7030_v40 = vpack.c.bf16 %v6931_v34, %v6930_v49  ;;  %v7031_v44 = vpack.c.bf16 %v6933_v33, %v6932_v52  ;;  %v6055_v52 = vld [vmem:[%s16273_s30 + $0x168] sm:$0xff] }
 0x813   : >> { %v12166_v23 = vpop.eup %12165  ;;  %12185 = vrcp.f32 %v6604_v46  ;;  %v6605_v16 = vadd.f32 1.0, %v12164_v7  ;;  %v10255_v30 = vmul.f32 -1.442695, %v16473_v38  ;;  %v10253_v8 = vmul.f32 -1.442695, %v16476_v48 }
 0x814   : >> { %v12168_v55 = vpop.eup %12167  ;;  %12187 = vrcp.f32 %v6602_v29  ;;  %v6603_v6 = vadd.f32 1.0, %v12166_v23  ;;  %11344 = vmatprep.mubr.bf16.mxu0 %v7030_v40 }
 0x815   : >> { %v12170_v53 = vpop.eup %12169  ;;  %12189 = vrcp.f32 %v6605_v16  ;;  %11345 = vmatmul.mubr.bf16.gmra.mrb[56].mxu0 %v7031_v44  ;;  %v11238_v43 = vpop.f32.mrb[60].mxu1  ;;  %v6936_v44 = vmul.f32 %v12168_v55, %v16407_v36 }
 0x816   : >> { %v12172_v49 = vpop.eup %12171  ;;  %12191 = vrcp.f32 %v6603_v6  ;;  %v16483_v39 = vadd.f32 %v11238_v43, %v6056_v51  ;;  %v5737_v33 = vpop.f32.mrb[61].mxu1  ;;  %v6934_v37 = vmul.f32 %v12170_v53, %v16410_v3 }
 0x817   : >> { %v12174_v34 = vpop.eup %12173  ;;  %v6937_v10 = vmul.f32 %v12172_v49, %v16413_v42  ;;  %12193 = vpow2.f32 %v10252_v50  ;;  %v11239_v20 = vpop.f32.mrb[62].mxu1  ;;  %v16491_v40 = vadd.f32 %v6054_v31, %v5737_v33  ;;  %v6060_v31 = vld [vmem:[%s16273_s30 + $0x190] sm:$0xff] }
 0x818   : >> { %v12176_v46 = vpop.eup %12175  ;;  %v6935_v7 = vmul.f32 %v12174_v34, %v16416_v45  ;;  %12195 = vpow2.f32 %v10255_v30  ;;  %v10258_v29 = vmul.f32 -1.442695, %v16483_v39  ;;  %v5740_v23 = vpop.f32.mrb[63].mxu1  ;;  %v16494_v3 = vadd.f32 %v11239_v20, %v6057_v22 }
 0x819   : >> { %v12178_v16 = vpop.eup %12177  ;;  %v6608_v51 = vadd.f32 1.0, %v12176_v46  ;;  %12197 = vpow2.f32 %v10253_v8  ;;  %v16496_v6 = vadd.f32 %v6055_v52, %v5740_v23  ;;  %v7033_v43 = vpack.c.bf16 %v6937_v10, %v6936_v44  ;;  %v6059_v44 = vld [vmem:[%s16273_s30 + $0x188] sm:$0xff] }
 0x81a   : >> { %v12180_v42 = vpop.eup %12179  ;;  %v6606_v50 = vadd.f32 1.0, %v12178_v16  ;;  %12199 = vpow2.f32 %v10258_v29  ;;  %v7032_v45 = vpack.c.bf16 %v6935_v7, %v6934_v37  ;;  %v10256_v55 = vmul.f32 -1.442695, %v16491_v40  ;;  %v6058_v37 = vld [vmem:[%s16273_s30 + $0x180] sm:$0xff]  ;;  %v6061_v7 = vld [vmem:[%s16273_s30 + $0x198] sm:$0xff] }
 0x81b   : >> { %v12182_v30 = vpop.eup %12181  ;;  %12201 = vrcp.f32 %v6608_v51  ;;  %v6609_v53 = vadd.f32 1.0, %v12180_v42  ;;  %v10259_v22 = vmul.f32 -1.442695, %v16494_v3  ;;  %v10257_v10 = vmul.f32 -1.442695, %v16496_v6 }
 0x81c   : >> { %v12184_v49 = vpop.eup %12183  ;;  %12203 = vrcp.f32 %v6606_v50  ;;  %v6607_v36 = vadd.f32 1.0, %v12182_v30  ;;  %11348 = vmatprep.mubr.bf16.mxu0 %v7032_v45 }
 0x81d   : >> { %v12186_v8 = vpop.eup %12185  ;;  %12205 = vrcp.f32 %v6609_v53  ;;  %v6612_v33 = vadd.f32 1.0, %v12184_v49  ;;  %11349 = vmatmul.mubr.bf16.gmra.mrb[60].mxu0 %v7033_v43  ;;  %v11242_v34 = vpop.f32.mrb[64].mxu1 }
 0x81e   : >> { %v12188_v20 = vpop.eup %12187  ;;  %12207 = vrcp.f32 %v6607_v36  ;;  %v16503_v52 = vadd.f32 %v11242_v34, %v6060_v31  ;;  %v5753_v46 = vpop.f32.mrb[65].mxu1  ;;  %v6940_v23 = vmul.f32 %v12186_v8, %v16425_v2 }
 0x81f   : >> { %v12190_v29 = vpop.eup %12189  ;;  %12209 = vrcp.f32 %v6612_v33  ;;  %v11243_v16 = vpop.f32.mrb[66].mxu1  ;;  %v16510_v45 = vadd.f32 %v6058_v37, %v5753_v46  ;;  %v6938_v43 = vmul.f32 %v12188_v20, %v16430_v35  ;;  %v6064_v37 = vld [vmem:[%s16273_s30 + $0x1b0] sm:$0xff] }
 0x820   : >> { %v12192_v51 = vpop.eup %12191  ;;  %v6941_v42 = vmul.f32 %v12190_v29, %v16433_v5  ;;  %12211 = vpow2.f32 %v10256_v55  ;;  %v10262_v50 = vmul.f32 -1.442695, %v16503_v52  ;;  %v5756_v30 = vpop.f32.mrb[67].mxu1  ;;  %v16514_v2 = vadd.f32 %v11243_v16, %v6061_v7 }
 0x821   : >> { %v12194_v53 = vpop.eup %12193  ;;  %v6939_v31 = vmul.f32 %v12192_v51, %v16435_v47  ;;  %12213 = vpow2.f32 %v10259_v22  ;;  %v16516_v5 = vadd.f32 %v6059_v44, %v5756_v30  ;;  %v10260_v47 = vmul.f32 -1.442695, %v16510_v45  ;;  %v6062_v22 = vld [vmem:[%s16273_s30 + $0x1a0] sm:$0xff] }
 0x822   : >> { %v12196_v49 = vpop.eup %12195  ;;  %v6610_v36 = vadd.f32 1.0, %v12194_v53  ;;  %12215 = vpow2.f32 %v10257_v10  ;;  %v7035_v55 = vpack.c.bf16 %v6941_v42, %v6940_v23  ;;  %v10263_v10 = vmul.f32 -1.442695, %v16514_v2  ;;  %v6065_v42 = vld [vmem:[%s16273_s30 + $0x1b8] sm:$0xff] }
 0x823   : >> { %v12198_v8 = vpop.eup %12197  ;;  %v6613_v33 = vadd.f32 1.0, %v12196_v49  ;;  %12217 = vpow2.f32 %v10262_v50  ;;  %v7034_v34 = vpack.c.bf16 %v6939_v31, %v6938_v43  ;;  %v10261_v16 = vmul.f32 -1.442695, %v16516_v5  ;;  %v6063_v31 = vld [vmem:[%s16273_s30 + $0x1a8] sm:$0xff] }
 0x824   : >> { %v12200_v46 = vpop.eup %12199  ;;  %12219 = vrcp.f32 %v6610_v36  ;;  %v6611_v35 = vadd.f32 1.0, %v12198_v8 }
 0x825   : >> { %v12202_v20 = vpop.eup %12201  ;;  %12221 = vrcp.f32 %v6613_v33  ;;  %v6616_v7 = vadd.f32 1.0, %v12200_v46  ;;  %11352 = vmatprep.mubr.bf16.mxu0 %v7034_v34  ;;  %v11246_v29 = vpop.f32.mrb[68].mxu1 }
 0x826   : >> { %v12204_v23 = vpop.eup %12203  ;;  %12223 = vrcp.f32 %v6611_v35  ;;  %11353 = vmatmul.mubr.bf16.gmra.mrb[64].mxu0 %v7035_v55  ;;  %v16523_v44 = vadd.f32 %v11246_v29, %v6064_v37  ;;  %v5769_v51 = vpop.f32.mrb[69].mxu1  ;;  %v6944_v30 = vmul.f32 %v12202_v20, %v16444_v41 }
 0x827   : >> { %v12206_v50 = vpop.eup %12205  ;;  %12225 = vrcp.f32 %v6616_v7  ;;  %v16527_v53 = vadd.f32 %v6062_v22, %v5769_v51  ;;  %v11247_v43 = vpop.f32.mrb[70].mxu1  ;;  %v6942_v36 = vmul.f32 %v12204_v23, %v16449_v25  ;;  %v6068_v7 = vld [vmem:[%s16273_s30 + $0x1d0] sm:$0xff] }
 0x828   : >> { %v12208_v49 = vpop.eup %12207  ;;  %v6945_v8 = vmul.f32 %v12206_v50, %v16452_v54  ;;  %12227 = vpow2.f32 %v10260_v47  ;;  %v10266_v55 = vmul.f32 -1.442695, %v16523_v44  ;;  %v5772_v33 = vpop.f32.mrb[71].mxu1  ;;  %v16535_v46 = vadd.f32 %v11247_v43, %v6065_v42 }
 0x829   : >> { %v12210_v34 = vpop.eup %12209  ;;  %v6943_v37 = vmul.f32 %v12208_v49, %v16455_v0  ;;  %12229 = vpow2.f32 %v10263_v10  ;;  %v10264_v41 = vmul.f32 -1.442695, %v16527_v53  ;;  %v16537_v22 = vadd.f32 %v6063_v31, %v5772_v33  ;;  %v6066_v0 = vld [vmem:[%s16273_s30 + $0x1c0] sm:$0xff]  ;;  %v6069_v33 = vld [vmem:[%s16273_s30 + $0x1d8] sm:$0xff] }
 0x82a   : >> { %v12212_v35 = vpop.eup %12211  ;;  %12231 = vpow2.f32 %v10261_v16  ;;  %v7037_v25 = vpack.c.bf16 %v6945_v8, %v6944_v30  ;;  %v10267_v42 = vmul.f32 -1.442695, %v16535_v46 }
 0x82b   : >> { %v12214_v54 = vpop.eup %12213  ;;  %v6614_v47 = vadd.f32 1.0, %v12212_v35  ;;  %12233 = vpow2.f32 %v10266_v55  ;;  %v7036_v20 = vpack.c.bf16 %v6943_v37, %v6942_v36  ;;  %v10265_v43 = vmul.f32 -1.442695, %v16537_v22 }
 0x82c   : >> { %v12216_v29 = vpop.eup %12215  ;;  %v6617_v23 = vadd.f32 1.0, %v12214_v54  ;;  %12235 = vpow2.f32 %v10264_v41  ;;  %v6948_v41 = vmul.f32 %v12210_v34, %v16464_v57 }
 0x82d   : >> { %v12218_v51 = vpop.eup %12217  ;;  %12237 = vrcp.f32 %v6614_v47  ;;  %v6615_v10 = vadd.f32 1.0, %v12216_v29  ;;  %11356 = vmatprep.mubr.bf16.mxu0 %v7036_v20  ;;  %v11250_v16 = vpop.f32.mrb[72].mxu1 }
 0x82e   : >> { %v12220_v50 = vpop.eup %12219  ;;  %12239 = vrcp.f32 %v6617_v23  ;;  %v6620_v30 = vadd.f32 1.0, %v12218_v51  ;;  %11357 = vmatmul.mubr.bf16.gmra.mrb[68].mxu0 %v7037_v25  ;;  %v16543_v31 = vadd.f32 %v11250_v16, %v6068_v7  ;;  %v5785_v49 = vpop.f32.mrb[73].mxu1  ;;  %v6067_v25 = vld [vmem:[%s16273_s30 + $0x1c8] sm:$0xff] }
 0x82f   : >> { %v12222_v36 = vpop.eup %12221  ;;  %12241 = vrcp.f32 %v6615_v10  ;;  %v16545_v8 = vadd.f32 %v6066_v0, %v5785_v49  ;;  %v11251_v55 = vpop.f32.mrb[74].mxu1  ;;  %v6946_v7 = vmul.f32 %v12220_v50, %v16469_v32 }
 0x830   : >> { %v12224_v37 = vpop.eup %12223  ;;  %v6949_v35 = vmul.f32 %v12222_v36, %v16473_v38  ;;  %12243 = vrcp.f32 %v6620_v30  ;;  %v10270_v54 = vmul.f32 -1.442695, %v16543_v31  ;;  %v5788_v47 = vpop.f32.mrb[75].mxu1  ;;  %v16555_v57 = vadd.f32 %v11251_v55, %v6069_v33  ;;  %v6072_v30 = vld [vmem:[%s16273_s30 + $0x1f0] sm:$0xff] }
 0x831   : >> { %v12226_v20 = vpop.eup %12225  ;;  %v6947_v29 = vmul.f32 %v12224_v37, %v16476_v48  ;;  %12245 = vpow2.f32 %v10267_v42  ;;  %v10268_v23 = vmul.f32 -1.442695, %v16545_v8  ;;  %v16557_v10 = vadd.f32 %v6067_v25, %v5788_v47  ;;  %v6070_v48 = vld [vmem:[%s16273_s30 + $0x1e0] sm:$0xff] }
 0x832   : >> { %v12228_v0 = vpop.eup %12227  ;;  %12247 = vpow2.f32 %v10265_v43  ;;  %v7039_v38 = vpack.c.bf16 %v6949_v35, %v6948_v41  ;;  %v10271_v33 = vmul.f32 -1.442695, %v16555_v57 }
 0x833   : >> { %v12230_v34 = vpop.eup %12229  ;;  %v6618_v51 = vadd.f32 1.0, %v12228_v0  ;;  %12249 = vpow2.f32 %v10270_v54  ;;  %v7038_v16 = vpack.c.bf16 %v6947_v29, %v6946_v7  ;;  %v10269_v47 = vmul.f32 -1.442695, %v16557_v10  ;;  %v6073_v29 = vld [vmem:[%s16273_s30 + $0x1f8] sm:$0xff] }
 0x834   : >> { %v12232_v49 = vpop.eup %12231  ;;  %v6621_v32 = vadd.f32 1.0, %v12230_v34  ;;  %12251 = vpow2.f32 %v10268_v23 }
 0x835   : >> { %v12234_v50 = vpop.eup %12233  ;;  %12253 = vrcp.f32 %v6618_v51  ;;  %v6619_v42 = vadd.f32 1.0, %v12232_v49  ;;  %11360 = vmatprep.mubr.bf16.mxu0 %v7038_v16  ;;  %v11254_v43 = vpop.f32.mrb[76].mxu1  ;;  %v6071_v51 = vld [vmem:[%s16273_s30 + $0x1e8] sm:$0xff]  ;;  %v6952_v16 = vmul.f32 %v12226_v20, %v16483_v39  ;;  %v6076_v20 = vld [vmem:[%s16273_s30 + $0x210] sm:$0xff] }
 0x836   : >> { %v12236_v36 = vpop.eup %12235  ;;  %12255 = vrcp.f32 %v6621_v32  ;;  %v6624_v55 = vadd.f32 1.0, %v12234_v50  ;;  %11361 = vmatmul.mubr.bf16.gmra.mrb[72].mxu0 %v7039_v38  ;;  %v16562_v37 = vadd.f32 %v11254_v43, %v6072_v30  ;;  %v5801_v41 = vpop.f32.mrb[77].mxu1 }
 0x837   : >> { %v12238_v35 = vpop.eup %12237  ;;  %12257 = vrcp.f32 %v6619_v42  ;;  %v6622_v54 = vadd.f32 1.0, %v12236_v36  ;;  %v16565_v25 = vadd.f32 %v6070_v48, %v5801_v41  ;;  %v11255_v7 = vpop.f32.mrb[78].mxu1 }
 0x838   : >> { %v12240_v23 = vpop.eup %12239  ;;  %12259 = vrcp.f32 %v6624_v55  ;;  %v10274_v0 = vmul.f32 -1.442695, %v16562_v37  ;;  %v5804_v34 = vpop.f32.mrb[79].mxu1  ;;  %v6950_v48 = vmul.f32 %v12238_v35, %v16491_v40  ;;  %v16575_v42 = vadd.f32 %v11255_v7, %v6073_v29 }
 0x839   : >> { %v12242_v38 = vpop.eup %12241  ;;  %v6953_v30 = vmul.f32 %v12240_v23, %v16494_v3  ;;  %12261 = vrcp.f32 %v6622_v54  ;;  %v10272_v49 = vmul.f32 -1.442695, %v16565_v25  ;;  %v16577_v36 = vadd.f32 %v6071_v51, %v5804_v34  ;;  %v6074_v54 = vld [vmem:[%s16273_s30 + $0x200] sm:$0xff] }
 0x83a   : >> { %v12244_v32 = vpop.eup %12243  ;;  %v6951_v50 = vmul.f32 %v12242_v38, %v16496_v6  ;;  %12263 = vpow2.f32 %v10271_v33  ;;  %v6077_v6 = vld [vmem:[%s16273_s30 + $0x218] sm:$0xff]  ;;  %v10275_v7 = vmul.f32 -1.442695, %v16575_v42 }
 0x83b   : >> { %v12246_v43 = vpop.eup %12245  ;;  %12265 = vpow2.f32 %v10269_v47  ;;  %v7041_v39 = vpack.c.bf16 %v6953_v30, %v6952_v16  ;;  %v10273_v51 = vmul.f32 -1.442695, %v16577_v36 }
 0x83c   : >> { %v12248_v3 = vpop.eup %12247  ;;  %v6625_v55 = vadd.f32 1.0, %v12246_v43  ;;  %12267 = vpow2.f32 %v10274_v0  ;;  %v7040_v41 = vpack.c.bf16 %v6951_v50, %v6950_v48  ;;  %v6075_v43 = vld [vmem:[%s16273_s30 + $0x208] sm:$0xff] }
 0x83d   : >> { %v12250_v23 = vpop.eup %12249  ;;  %v6623_v56 = vadd.f32 1.0, %v12248_v3  ;;  %12269 = vpow2.f32 %v10272_v49  ;;  %v11258_v40 = vpop.f32.mrb[80].mxu1  ;;  %v6956_v3 = vmul.f32 %v12244_v32, %v16503_v52  ;;  %v6080_v32 = vld [vmem:[%s16273_s30 + $0x230] sm:$0xff] }
 0x83e   : >> { %v12252_v33 = vpop.eup %12251  ;;  %12271 = vrcp.f32 %v6625_v55  ;;  %v6628_v35 = vadd.f32 1.0, %v12250_v23  ;;  %11364 = vmatprep.mubr.bf16.mxu0 %v7040_v41  ;;  %v16583_v47 = vadd.f32 %v11258_v40, %v6076_v20  ;;  %v5817_v29 = vpop.f32.mrb[81].mxu1 }
 0x83f   : >> { %v12254_v34 = vpop.eup %12253  ;;  %12273 = vrcp.f32 %v6623_v56  ;;  %v6626_v0 = vadd.f32 1.0, %v12252_v33  ;;  %11365 = vmatmul.mubr.bf16.gmra.mrb[76].mxu0 %v7041_v39  ;;  %v16586_v38 = vadd.f32 %v6074_v54, %v5817_v29  ;;  %v11259_v16 = vpop.f32.mrb[82].mxu1 }
 0x840   : >> { %v12256_v30 = vpop.eup %12255  ;;  %12275 = vrcp.f32 %v6628_v35  ;;  %v10278_v49 = vmul.f32 -1.442695, %v16583_v47  ;;  %v16589_v48 = vadd.f32 %v11259_v16, %v6077_v6  ;;  %v5820_v50 = vpop.f32.mrb[83].mxu1  ;;  %v6954_v41 = vmul.f32 %v12254_v34, %v16510_v45  ;;  %v6078_v35 = vld [vmem:[%s16273_s30 + $0x220] sm:$0xff]  ;;  %v6081_v34 = vld [vmem:[%s16273_s30 + $0x238] sm:$0xff] }
 0x841   : >> { %v12258_v20 = vpop.eup %12257  ;;  %v6957_v56 = vmul.f32 %v12256_v30, %v16514_v2  ;;  %12277 = vrcp.f32 %v6626_v0  ;;  %v10276_v39 = vmul.f32 -1.442695, %v16586_v38  ;;  %v16598_v6 = vadd.f32 %v6075_v43, %v5820_v50 }
 0x842   : >> { %v12260_v55 = vpop.eup %12259  ;;  %v6955_v54 = vmul.f32 %v12258_v20, %v16516_v5  ;;  %12279 = vpow2.f32 %v10275_v7  ;;  %v10279_v23 = vmul.f32 -1.442695, %v16589_v48 }
 0x843   : >> { %v12262_v40 = vpop.eup %12261  ;;  %12281 = vpow2.f32 %v10273_v51  ;;  %v7043_v52 = vpack.c.bf16 %v6957_v56, %v6956_v3 }
 0x844   : >> { %v12264_v2 = vpop.eup %12263  ;;  %12283 = vpow2.f32 %v10278_v49  ;;  %v7042_v33 = vpack.c.bf16 %v6955_v54, %v6954_v41  ;;  %v10277_v49 = vmul.f32 -1.442695, %v16598_v6 }
 0x845   : >> { %v12266_v29 = vpop.eup %12265  ;;  %v6629_v0 = vadd.f32 1.0, %v12264_v2  ;;  %12285 = vpow2.f32 %v10276_v39  ;;  %v11262_v45 = vpop.f32.mrb[84].mxu1 }
 0x846   : >> { %v12268_v5 = vpop.eup %12267  ;;  %v6627_v16 = vadd.f32 1.0, %v12266_v29  ;;  %12287 = vpow2.f32 %v10279_v23  ;;  %11368 = vmatprep.mubr.bf16.mxu0 %v7042_v33  ;;  %v16603_v7 = vadd.f32 %v11262_v45, %v6080_v32  ;;  %v5833_v51 = vpop.f32.mrb[85].mxu1  ;;  %v6960_v32 = vmul.f32 %v12260_v55, %v16523_v44  ;;  %v6079_v33 = vld [vmem:[%s16273_s30 + $0x228] sm:$0xff]  ;;  %v6084_v44 = vld [vmem:[%s16273_s30 + $0x250] sm:$0xff] }
 0x847   : >> { %v12270_v30 = vpop.eup %12269  ;;  %12289 = vrcp.f32 %v6629_v0  ;;  %v6632_v50 = vadd.f32 1.0, %v12268_v5  ;;  %11369 = vmatmul.mubr.bf16.gmra.mrb[80].mxu0 %v7043_v52  ;;  %v16606_v43 = vadd.f32 %v6078_v35, %v5833_v51  ;;  %v11263_v20 = vpop.f32.mrb[86].mxu1  ;;  %v6958_v29 = vmul.f32 %v12262_v40, %v16527_v53  ;;  %v6082_v51 = vld [vmem:[%s16273_s30 + $0x240] sm:$0xff]  ;;  %v6085_v40 = vld [vmem:[%s16273_s30 + $0x258] sm:$0xff] }
 0x848   : >> { %v12272_v3 = vpop.eup %12271  ;;  %12291 = vrcp.f32 %v6627_v16  ;;  %v6630_v56 = vadd.f32 1.0, %v12270_v30  ;;  %v10282_v39 = vmul.f32 -1.442695, %v16603_v7  ;;  %v16609_v41 = vadd.f32 %v11263_v20, %v6081_v34  ;;  %v5836_v54 = vpop.f32.mrb[87].mxu1 }
 0x849   : >> { %v12274_v23 = vpop.eup %12273  ;;  %v6961_v2 = vmul.f32 %v12272_v3, %v16535_v46  ;;  %12293 = vrcp.f32 %v6632_v50  ;;  %v10280_v52 = vmul.f32 -1.442695, %v16606_v43  ;;  %v16619_v46 = vadd.f32 %v6079_v33, %v5836_v54 }
 0x84a   : >> { %v12276_v35 = vpop.eup %12275  ;;  %v6959_v0 = vmul.f32 %v12274_v23, %v16537_v22  ;;  %12295 = vrcp.f32 %v6630_v56  ;;  %v10283_v45 = vmul.f32 -1.442695, %v16609_v41 }
 0x84b   : >> { %v12278_v34 = vpop.eup %12277  ;;  %12297 = vpow2.f32 %v10277_v49  ;;  %v7045_v5 = vpack.c.bf16 %v6961_v2, %v6960_v32 }
 0x84c   : >> { %v12280_v55 = vpop.eup %12279  ;;  %12299 = vpow2.f32 %v10282_v39  ;;  %v7044_v16 = vpack.c.bf16 %v6959_v0, %v6958_v29 }
 0x84d   : >> { %v12282_v30 = vpop.eup %12281  ;;  %v6633_v50 = vadd.f32 1.0, %v12280_v55  ;;  %12301 = vpow2.f32 %v10280_v52  ;;  %v11266_v53 = vpop.f32.mrb[88].mxu1  ;;  %v10281_v52 = vmul.f32 -1.442695, %v16619_v46  ;;  %v6083_v55 = vld [vmem:[%s16273_s30 + $0x248] sm:$0xff] }
 0x84e   : >> { %v12284_v22 = vpop.eup %12283  ;;  %v6631_v20 = vadd.f32 1.0, %v12282_v30  ;;  %12303 = vpow2.f32 %v10283_v45  ;;  %11372 = vmatprep.mubr.bf16.mxu0 %v7044_v16  ;;  %v16623_v3 = vadd.f32 %v11266_v53, %v6084_v44  ;;  %v5849_v49 = vpop.f32.mrb[89].mxu1  ;;  %v6964_v16 = vmul.f32 %v12276_v35, %v16543_v31 }
 0x84f   : >> { %v12286_v56 = vpop.eup %12285  ;;  %12305 = vrcp.f32 %v6633_v50  ;;  %v6636_v39 = vadd.f32 1.0, %v12284_v22  ;;  %11373 = vmatmul.mubr.bf16.gmra.mrb[84].mxu0 %v7045_v5  ;;  %v16625_v54 = vadd.f32 %v6082_v51, %v5849_v49  ;;  %v11267_v23 = vpop.f32.mrb[90].mxu1  ;;  %v6962_v53 = vmul.f32 %v12278_v34, %v16545_v8 }
 0x850   : >> { %v12288_v32 = vpop.eup %12287  ;;  %12307 = vrcp.f32 %v6631_v20  ;;  %v6634_v2 = vadd.f32 1.0, %v12286_v56  ;;  %v16628_v33 = vadd.f32 %v11267_v23, %v6085_v40  ;;  %v5852_v29 = vpop.f32.mrb[91].mxu1  ;;  %v10286_v44 = vmul.f32 -1.442695, %v16623_v3  ;;  %v6088_v20 = vld [vmem:[%s16273_s30 + $0x270] sm:$0xff] }
 0x851   : >> { %v12290_v0 = vpop.eup %12289  ;;  %12309 = vrcp.f32 %v6636_v39  ;;  %v6637_v45 = vadd.f32 1.0, %v12288_v32  ;;  %v10284_v30 = vmul.f32 -1.442695, %v16625_v54  ;;  %v16639_v56 = vadd.f32 %v6083_v55, %v5852_v29  ;;  %v6089_v32 = vld [vmem:[%s16273_s30 + $0x278] sm:$0xff] }
 0x852   : >> { %v12292_v5 = vpop.eup %12291  ;;  %v6965_v51 = vmul.f32 %v12290_v0, %v16555_v57  ;;  %12311 = vrcp.f32 %v6634_v2  ;;  %v10287_v22 = vmul.f32 -1.442695, %v16628_v33  ;;  %v6086_v57 = vld [vmem:[%s16273_s30 + $0x260] sm:$0xff]  ;;  %v6087_v0 = vld [vmem:[%s16273_s30 + $0x268] sm:$0xff] }
 0x853   : >> { %v12294_v50 = vpop.eup %12293  ;;  %v6963_v40 = vmul.f32 %v12292_v5, %v16557_v10  ;;  %12313 = vrcp.f32 %v6637_v45 }
 0x854   : >> { %v12296_v49 = vpop.eup %12295  ;;  %12315 = vpow2.f32 %v10281_v52  ;;  %v7047_v31 = vpack.c.bf16 %v6965_v51, %v6964_v16  ;;  %v10285_v16 = vmul.f32 -1.442695, %v16639_v56 }
 0x855   : >> { %v12298_v35 = vpop.eup %12297  ;;  %12317 = vpow2.f32 %v10286_v44  ;;  %v7046_v39 = vpack.c.bf16 %v6963_v40, %v6962_v53  ;;  %v11270_v23 = vpop.f32.mrb[92].mxu1 }
 0x856   : >> { %v12300_v2 = vpop.eup %12299  ;;  %v6635_v8 = vadd.f32 1.0, %v12298_v35  ;;  %12319 = vpow2.f32 %v10284_v30  ;;  %v16643_v10 = vadd.f32 %v11270_v23, %v6088_v20  ;;  %v5865_v34 = vpop.f32.mrb[93].mxu1  ;;  %v6968_v35 = vmul.f32 %v12294_v50, %v16562_v37 }
 0x857   : >> { %v12302_v45 = vpop.eup %12301  ;;  %v6640_v5 = vadd.f32 1.0, %v12300_v2  ;;  %12321 = vpow2.f32 %v10287_v22  ;;  %11376 = vmatprep.mubr.bf16.mxu0 %v7046_v39  ;;  %v16646_v52 = vadd.f32 %v6086_v57, %v5865_v34  ;;  %v11271_v29 = vpop.f32.mrb[94].mxu1  ;;  %v6092_v34 = vld [vmem:[%s16273_s30 + $0x290] sm:$0xff] }
 0x858   : >> { %v12304_v55 = vpop.eup %12303  ;;  %12323 = vrcp.f32 %v6635_v8  ;;  %v6638_v44 = vadd.f32 1.0, %v12302_v45  ;;  %11377 = vmatmul.mubr.bf16.gmra.mrb[88].mxu0 %v7047_v31  ;;  %v16649_v51 = vadd.f32 %v11271_v29, %v6089_v32  ;;  %v5868_v30 = vpop.f32.mrb[95].mxu1  ;;  %v10290_v20 = vmul.f32 -1.442695, %v16643_v10 }
 0x859   : >> { %v12306_v53 = vpop.eup %12305  ;;  %12325 = vrcp.f32 %v6640_v5  ;;  %v6641_v40 = vadd.f32 1.0, %v12304_v55  ;;  %v16652_v22 = vadd.f32 %v6087_v0, %v5868_v30  ;;  %v10288_v31 = vmul.f32 -1.442695, %v16646_v52  ;;  %v6093_v55 = vld [vmem:[%s16273_s30 + $0x298] sm:$0xff]  ;;  %v6091_v30 = vld [vmem:[%s16273_s30 + $0x288] sm:$0xff] }
 0x85a   : >> { %v12308_v57 = vpop.eup %12307  ;;  %v6969_v39 = vmul.f32 %v12306_v53, %v16575_v42  ;;  %12327 = vrcp.f32 %v6638_v44  ;;  %v6966_v32 = vmul.f32 %v12296_v49, %v16565_v25  ;;  %v10291_v8 = vmul.f32 -1.442695, %v16649_v51  ;;  %v6090_v42 = vld [vmem:[%s16273_s30 + $0x280] sm:$0xff] }
 0x85b   : >> { %v12310_v23 = vpop.eup %12309  ;;  %v6967_v2 = vmul.f32 %v12308_v57, %v16577_v36  ;;  %12329 = vrcp.f32 %v6641_v40  ;;  %v10289_v37 = vmul.f32 -1.442695, %v16652_v22 }
 0x85c   : >> { %v12312_v0 = vpop.eup %12311  ;;  %12331 = vpow2.f32 %v10285_v16  ;;  %v7049_v50 = vpack.c.bf16 %v6969_v39, %v6968_v35 }
 0x85d   : >> { %v12314_v45 = vpop.eup %12313  ;;  %12333 = vpow2.f32 %v10290_v20  ;;  %v7048_v5 = vpack.c.bf16 %v6967_v2, %v6966_v32  ;;  %v11274_v29 = vpop.f32.mrb[96].mxu1  ;;  %v6972_v20 = vmul.f32 %v12310_v23, %v16583_v47 }
 0x85e   : >> { %v12316_v44 = vpop.eup %12315  ;;  %v6973_v25 = vmul.f32 %v12314_v45, %v16589_v48  ;;  %12335 = vpow2.f32 %v10288_v31  ;;  %v16665_v36 = vadd.f32 %v11274_v29, %v6092_v34  ;;  %v5881_v49 = vpop.f32.mrb[97].mxu1 }
 0x85f   : >> { %v12318_v53 = vpop.eup %12317  ;;  %v6639_v40 = vadd.f32 1.0, %v12316_v44  ;;  %12337 = vpow2.f32 %v10291_v8  ;;  %11380 = vmatprep.mubr.bf16.mxu0 %v7048_v5  ;;  %v16668_v16 = vadd.f32 %v6090_v42, %v5881_v49  ;;  %v11275_v57 = vpop.f32.mrb[98].mxu1 }
 0x860   : >> { %v12320_v35 = vpop.eup %12319  ;;  %v6644_v39 = vadd.f32 1.0, %v12318_v53  ;;  %12339 = vpow2.f32 %v10289_v37  ;;  %11381 = vmatmul.mubr.bf16.gmra.mrb[92].mxu0 %v7049_v50  ;;  %v16671_v32 = vadd.f32 %v11275_v57, %v6093_v55  ;;  %v5884_v48 = vpop.f32.mrb[99].mxu1  ;;  %v10294_v34 = vmul.f32 -1.442695, %v16665_v36  ;;  %v6096_v55 = vld [vmem:[%s16273_s30 + $0x2b0] sm:$0xff] }
 0x861   : >> { %v12322_v31 = vpop.eup %12321  ;;  %12341 = vrcp.f32 %v6639_v40  ;;  %v6642_v2 = vadd.f32 1.0, %v12320_v35  ;;  %v16674_v8 = vadd.f32 %v6091_v30, %v5884_v48  ;;  %v10292_v47 = vmul.f32 -1.442695, %v16668_v16  ;;  %v6094_v30 = vld [vmem:[%s16273_s30 + $0x2a0] sm:$0xff] }
 0x862   : >> { %v12324_v42 = vpop.eup %12323  ;;  %12343 = vrcp.f32 %v6644_v39  ;;  %v6645_v45 = vadd.f32 1.0, %v12322_v31  ;;  %v7051_v23 = vpack.c.bf16 %v6973_v25, %v6972_v20  ;;  %v6970_v50 = vmul.f32 %v12312_v0, %v16586_v38  ;;  %v6097_v25 = vld [vmem:[%s16273_s30 + $0x2b8] sm:$0xff]  ;;  %v6095_v20 = vld [vmem:[%s16273_s30 + $0x2a8] sm:$0xff] }
 0x863   : >> { %v12326_v37 = vpop.eup %12325  ;;  %v6971_v5 = vmul.f32 %v12324_v42, %v16598_v6  ;;  %12345 = vrcp.f32 %v6642_v2  ;;  %v10295_v29 = vmul.f32 -1.442695, %v16671_v32  ;;  %v10293_v49 = vmul.f32 -1.442695, %v16674_v8 }
 0x864   : >> { %v12328_v44 = vpop.eup %12327  ;;  %12347 = vrcp.f32 %v6645_v45  ;;  %v6976_v42 = vmul.f32 %v12326_v37, %v16603_v7 }
 0x865   : >> { %v12330_v53 = vpop.eup %12329  ;;  %12349 = vpow2.f32 %v10294_v34  ;;  %v7050_v40 = vpack.c.bf16 %v6971_v5, %v6970_v50  ;;  %v11278_v57 = vpop.f32.mrb[100].mxu1 }
 0x866   : >> { %v12332_v35 = vpop.eup %12331  ;;  %v16685_v38 = vmul.f32 %v12330_v53, %v16609_v41  ;;  %12351 = vpow2.f32 %v10292_v47  ;;  %v16687_v6 = vadd.f32 %v11278_v57, %v6096_v55  ;;  %v5897_v0 = vpop.f32.mrb[101].mxu1 }
 0x867   : >> { %v12334_v39 = vpop.eup %12333  ;;  %v6643_v48 = vadd.f32 1.0, %v12332_v35  ;;  %12353 = vpow2.f32 %v10295_v29  ;;  %11384 = vmatprep.mubr.bf16.mxu0 %v7050_v40  ;;  %v16690_v31 = vadd.f32 %v6094_v30, %v5897_v0  ;;  %v11279_v2 = vpop.f32.mrb[102].mxu1  ;;  %v6100_v40 = vld [vmem:[%s16273_s30 + $0x2d0] sm:$0xff] }
 0x868   : >> { %v12336_v34 = vpop.eup %12335  ;;  %v6648_v45 = vadd.f32 1.0, %v12334_v39  ;;  %12355 = vpow2.f32 %v10293_v49  ;;  %11385 = vmatmul.mubr.bf16.gmra.mrb[96].mxu0 %v7051_v23  ;;  %v16693_v41 = vadd.f32 %v11279_v2, %v6097_v25  ;;  %v5900_v47 = vpop.f32.mrb[103].mxu1  ;;  %v10298_v53 = vmul.f32 -1.442695, %v16687_v6  ;;  %v6101_v2 = vld [vmem:[%s16273_s30 + $0x2d8] sm:$0xff] }
 0x869   : >> { %v12338_v50 = vpop.eup %12337  ;;  %12357 = vrcp.f32 %v6643_v48  ;;  %v6646_v5 = vadd.f32 1.0, %v12336_v34  ;;  %v16695_v55 = vadd.f32 %v6095_v20, %v5900_v47  ;;  %v7053_v7 = vpack.c.bf16 %v16685_v38, %v6976_v42  ;;  %v6098_v20 = vld [vmem:[%s16273_s30 + $0x2c0] sm:$0xff] }
 0x86a   : >> { %v12340_v29 = vpop.eup %12339  ;;  %12359 = vrcp.f32 %v6648_v45  ;;  %v6649_v30 = vadd.f32 1.0, %v12338_v50  ;;  %v10296_v49 = vmul.f32 -1.442695, %v16690_v31  ;;  %v6974_v25 = vmul.f32 %v12328_v44, %v16606_v43  ;;  %v6099_v50 = vld [vmem:[%s16273_s30 + $0x2c8] sm:$0xff] }
 0x86b   : >> { %v12342_v37 = vpop.eup %12341  ;;  %12361 = vrcp.f32 %v6646_v5  ;;  %v6647_v23 = vadd.f32 1.0, %v12340_v29  ;;  %v10299_v0 = vmul.f32 -1.442695, %v16693_v41  ;;  %v10297_v38 = vmul.f32 -1.442695, %v16695_v55 }
 0x86c   : >> { %v12344_v57 = vpop.eup %12343  ;;  %v6975_v35 = vmul.f32 %v12342_v37, %v16619_v46  ;;  %12363 = vrcp.f32 %v6649_v30 }
 0x86d   : >> { %v12346_v39 = vpop.eup %12345  ;;  %12365 = vrcp.f32 %v6647_v23  ;;  %v11282_v48 = vpop.f32.mrb[104].mxu1  ;;  %v6980_v30 = vmul.f32 %v12344_v57, %v16623_v3 }
 0x86e   : >> { %v12348_v34 = vpop.eup %12347  ;;  %12367 = vpow2.f32 %v10298_v53  ;;  %v7052_v42 = vpack.c.bf16 %v6975_v35, %v6974_v25  ;;  %v16707_v45 = vadd.f32 %v11282_v48, %v6100_v40  ;;  %v5913_v47 = vpop.f32.mrb[105].mxu1 }
 0x86f   : >> { %v12350_v43 = vpop.eup %12349  ;;  %v6981_v46 = vmul.f32 %v12348_v34, %v16628_v33  ;;  %12369 = vpow2.f32 %v10296_v49  ;;  %v16711_v44 = vadd.f32 %v6098_v20, %v5913_v47  ;;  %v11283_v5 = vpop.f32.mrb[106].mxu1  ;;  %v6102_v47 = vld [vmem:[%s16273_s30 + $0x2e0] sm:$0xff] }
 0x870   : >> { %v12352_v29 = vpop.eup %12351  ;;  %v6652_v37 = vadd.f32 1.0, %v12350_v43  ;;  %12371 = vpow2.f32 %v10299_v0  ;;  %11388 = vmatprep.mubr.bf16.mxu0 %v7052_v42  ;;  %v16714_v23 = vadd.f32 %v11283_v5, %v6101_v2  ;;  %v5916_v53 = vpop.f32.mrb[107].mxu1  ;;  %v10302_v20 = vmul.f32 -1.442695, %v16707_v45  ;;  %v6104_v2 = vld [vmem:[%s16273_s30 + $0x2f0] sm:$0xff]  ;;  %v6105_v5 = vld [vmem:[%s16273_s30 + $0x2f8] sm:$0xff] }
 0x871   : >> { %v12354_v40 = vpop.eup %12353  ;;  %v6650_v25 = vadd.f32 1.0, %v12352_v29  ;;  %12373 = vpow2.f32 %v10297_v38  ;;  %11389 = vmatmul.mubr.bf16.gmra.mrb[100].mxu0 %v7053_v7  ;;  %v16716_v35 = vadd.f32 %v6099_v50, %v5916_v53  ;;  %v7055_v3 = vpack.c.bf16 %v6981_v46, %v6980_v30 }
 0x872   : >> { %v12356_v33 = vpop.eup %12355  ;;  %12375 = vrcp.f32 %v6652_v37  ;;  %v6653_v49 = vadd.f32 1.0, %v12354_v40  ;;  %v10300_v48 = vmul.f32 -1.442695, %v16711_v44  ;;  %v6978_v7 = vmul.f32 %v12346_v39, %v16625_v54  ;;  %v6103_v40 = vld [vmem:[%s16273_s30 + $0x2e8] sm:$0xff] }
 0x873   : >> { %v12358_v57 = vpop.eup %12357  ;;  %12377 = vrcp.f32 %v6650_v25  ;;  %v6651_v0 = vadd.f32 1.0, %v12356_v33  ;;  %v10303_v42 = vmul.f32 -1.442695, %v16714_v23  ;;  %v10301_v43 = vmul.f32 -1.442695, %v16716_v35 }
 0x874   : >> { %v12360_v34 = vpop.eup %12359  ;;  %v6979_v38 = vmul.f32 %v12358_v57, %v16639_v56  ;;  %12379 = vrcp.f32 %v6653_v49 }
 0x875   : >> { %v12362_v50 = vpop.eup %12361  ;;  %12381 = vrcp.f32 %v6651_v0  ;;  %v11286_v46 = vpop.f32.mrb[108].mxu1 }
 0x876   : >> { %v12364_v29 = vpop.eup %12363  ;;  %12383 = vpow2.f32 %v10302_v20  ;;  %v7054_v30 = vpack.c.bf16 %v6979_v38, %v6978_v7  ;;  %v16727_v37 = vadd.f32 %v11286_v46, %v6104_v2  ;;  %v5929_v53 = vpop.f32.mrb[109].mxu1  ;;  %v6982_v56 = vmul.f32 %v12362_v50, %v16646_v52 }
 0x877   : >> { %v12366_v54 = vpop.eup %12365  ;;  %v6985_v39 = vmul.f32 %v12364_v29, %v16649_v51  ;;  %12385 = vpow2.f32 %v10300_v48  ;;  %v16732_v25 = vadd.f32 %v6102_v47, %v5929_v53  ;;  %v11287_v33 = vpop.f32.mrb[110].mxu1  ;;  %v6984_v52 = vmul.f32 %v12360_v34, %v16643_v10  ;;  %v6108_v29 = vld [vmem:[%s16273_s30 + $0x310] sm:$0xff] }
 0x878   : >> { %v12368_v49 = vpop.eup %12367  ;;  %v6983_v57 = vmul.f32 %v12366_v54, %v16652_v22  ;;  %12387 = vpow2.f32 %v10303_v42  ;;  %11392 = vmatprep.mubr.bf16.mxu0 %v7054_v30  ;;  %v10306_v20 = vmul.f32 -1.442695, %v16727_v37  ;;  %v16736_v0 = vadd.f32 %v11287_v33, %v6105_v5  ;;  %v5932_v2 = vpop.f32.mrb[111].mxu1  ;;  %v6109_v33 = vld [vmem:[%s16273_s30 + $0x318] sm:$0xff] }
 0x879   : >> { %v12370_v7 = vpop.eup %12369  ;;  %v6656_v38 = vadd.f32 1.0, %v12368_v49  ;;  %12389 = vpow2.f32 %v10301_v43  ;;  %11393 = vmatmul.mubr.bf16.gmra.mrb[104].mxu0 %v7055_v3  ;;  %v16739_v51 = vadd.f32 %v6103_v40, %v5932_v2  ;;  %v10304_v46 = vmul.f32 -1.442695, %v16732_v25  ;;  %v6106_v40 = vld [vmem:[%s16273_s30 + $0x300] sm:$0xff] }
 0x87a   : >> { %v12372_v48 = vpop.eup %12371  ;;  %v6654_v47 = vadd.f32 1.0, %v12370_v7  ;;  %12391 = vpow2.f32 %v10306_v20  ;;  %v7056_v22 = vpack.c.bf16 %v6983_v57, %v6982_v56  ;;  %v7057_v5 = vpack.c.bf16 %v6985_v39, %v6984_v52  ;;  %v6107_v7 = vld [vmem:[%s16273_s30 + $0x308] sm:$0xff] }
 0x87b   : >> { %v12374_v42 = vpop.eup %12373  ;;  %12393 = vrcp.f32 %v6656_v38  ;;  %v6657_v50 = vadd.f32 1.0, %v12372_v48  ;;  %v10307_v3 = vmul.f32 -1.442695, %v16736_v0  ;;  %v10305_v43 = vmul.f32 -1.442695, %v16739_v51 }
 0x87c   : >> { %v12376_v30 = vpop.eup %12375  ;;  %12395 = vrcp.f32 %v6654_v47  ;;  %v6655_v10 = vadd.f32 1.0, %v12374_v42  ;;  %11396 = vmatprep.mubr.bf16.mxu0 %v7056_v22 }
 0x87d   : >> { %v12378_v34 = vpop.eup %12377  ;;  %12397 = vrcp.f32 %v6657_v50  ;;  %v11290_v53 = vpop.f32.mrb[112].mxu1  ;;  %v6988_v50 = vmul.f32 %v12376_v30, %v16665_v36 }
 0x87e   : >> { %v12380_v54 = vpop.eup %12379  ;;  %12399 = vrcp.f32 %v6655_v10  ;;  %v16746_v56 = vadd.f32 %v11290_v53, %v6108_v29  ;;  %v5945_v39 = vpop.f32.mrb[113].mxu1  ;;  %v6986_v57 = vmul.f32 %v12378_v34, %v16668_v16 }
 0x87f   : >> { %v12382_v49 = vpop.eup %12381  ;;  %v6989_v20 = vmul.f32 %v12380_v54, %v16671_v32  ;;  %12401 = vpow2.f32 %v10304_v46  ;;  %v11291_v2 = vpop.f32.mrb[114].mxu1  ;;  %v16754_v47 = vadd.f32 %v6106_v40, %v5945_v39  ;;  %v6112_v40 = vld [vmem:[%s16273_s30 + $0x330] sm:$0xff] }
 0x880   : >> { %v12384_v52 = vpop.eup %12383  ;;  %v6987_v38 = vmul.f32 %v12382_v49, %v16674_v8  ;;  %12403 = vpow2.f32 %v10307_v3  ;;  %v10310_v48 = vmul.f32 -1.442695, %v16746_v56  ;;  %v5948_v22 = vpop.f32.mrb[115].mxu1  ;;  %v16757_v16 = vadd.f32 %v11291_v2, %v6109_v33  ;;  %v6110_v49 = vld [vmem:[%s16273_s30 + $0x320] sm:$0xff] }
 0x881   : >> { %v12386_v42 = vpop.eup %12385  ;;  %v6660_v29 = vadd.f32 1.0, %v12384_v52  ;;  %12405 = vpow2.f32 %v10305_v43  ;;  %11397 = vmatmul.mubr.bf16.gmra.mrb[108].mxu0 %v7057_v5  ;;  %v16759_v10 = vadd.f32 %v6107_v7, %v5948_v22  ;;  %v7059_v53 = vpack.c.bf16 %v6989_v20, %v6988_v50  ;;  %v6113_v52 = vld [vmem:[%s16273_s30 + $0x338] sm:$0xff] }
 0x882   : >> { %v12388_v32 = vpop.eup %12387  ;;  %v6658_v46 = vadd.f32 1.0, %v12386_v42  ;;  %12407 = vpow2.f32 %v10310_v48  ;;  %v7058_v8 = vpack.c.bf16 %v6987_v38, %v6986_v57  ;;  %v10308_v5 = vmul.f32 -1.442695, %v16754_v47  ;;  %v6111_v42 = vld [vmem:[%s16273_s30 + $0x328] sm:$0xff] }
 0x883   : >> { %v12390_v3 = vpop.eup %12389  ;;  %12409 = vrcp.f32 %v6660_v29  ;;  %v6661_v34 = vadd.f32 1.0, %v12388_v32  ;;  %v10311_v39 = vmul.f32 -1.442695, %v16757_v16  ;;  %v10309_v20 = vmul.f32 -1.442695, %v16759_v10 }
 0x884   : >> { %v12392_v54 = vpop.eup %12391  ;;  %12411 = vrcp.f32 %v6658_v46  ;;  %v6659_v36 = vadd.f32 1.0, %v12390_v3  ;;  %11400 = vmatprep.mubr.bf16.mxu0 %v7058_v8 }
 0x885   : >> { %v12394_v30 = vpop.eup %12393  ;;  %12413 = vrcp.f32 %v6661_v34  ;;  %v6664_v43 = vadd.f32 1.0, %v12392_v54  ;;  %v11294_v33 = vpop.f32.mrb[116].mxu1 }
 0x886   : >> { %v12396_v57 = vpop.eup %12395  ;;  %12415 = vrcp.f32 %v6659_v36  ;;  %v16766_v2 = vadd.f32 %v11294_v33, %v6112_v40  ;;  %v5961_v7 = vpop.f32.mrb[117].mxu1  ;;  %v6992_v48 = vmul.f32 %v12394_v30, %v16687_v6 }
 0x887   : >> { %v12398_v38 = vpop.eup %12397  ;;  %12417 = vrcp.f32 %v6664_v43  ;;  %v11295_v22 = vpop.f32.mrb[118].mxu1  ;;  %v16773_v46 = vadd.f32 %v6110_v49, %v5961_v7  ;;  %v6990_v34 = vmul.f32 %v12396_v57, %v16690_v31  ;;  %v6116_v49 = vld [vmem:[%s16273_s30 + $0x350] sm:$0xff] }
 0x888   : >> { %v12400_v50 = vpop.eup %12399  ;;  %v6993_v29 = vmul.f32 %v12398_v38, %v16693_v41  ;;  %12419 = vpow2.f32 %v10308_v5  ;;  %v10314_v32 = vmul.f32 -1.442695, %v16766_v2  ;;  %v5964_v8 = vpop.f32.mrb[119].mxu1  ;;  %v16777_v6 = vadd.f32 %v11295_v22, %v6113_v52 }
 0x889   : >> { %v12402_v3 = vpop.eup %12401  ;;  %v6991_v40 = vmul.f32 %v12400_v50, %v16695_v55  ;;  %12421 = vpow2.f32 %v10311_v39  ;;  %11401 = vmatmul.mubr.bf16.gmra.mrb[112].mxu0 %v7059_v53  ;;  %v16779_v41 = vadd.f32 %v6111_v42, %v5964_v8  ;;  %v10312_v55 = vmul.f32 -1.442695, %v16773_v46  ;;  %v6114_v53 = vld [vmem:[%s16273_s30 + $0x340] sm:$0xff]  ;;  %v6117_v50 = vld [vmem:[%s16273_s30 + $0x358] sm:$0xff] }
 0x88a   : >> { %v12404_v54 = vpop.eup %12403  ;;  %v6662_v36 = vadd.f32 1.0, %v12402_v3  ;;  %12423 = vpow2.f32 %v10309_v20  ;;  %v7061_v5 = vpack.c.bf16 %v6993_v29, %v6992_v48  ;;  %v10315_v20 = vmul.f32 -1.442695, %v16777_v6 }
 0x88b   : >> { %v12406_v30 = vpop.eup %12405  ;;  %v6665_v43 = vadd.f32 1.0, %v12404_v54  ;;  %12425 = vpow2.f32 %v10314_v32  ;;  %v7060_v33 = vpack.c.bf16 %v6991_v40, %v6990_v34  ;;  %v10313_v48 = vmul.f32 -1.442695, %v16779_v41  ;;  %v6115_v34 = vld [vmem:[%s16273_s30 + $0x348] sm:$0xff] }
 0x88c   : >> { %v12408_v7 = vpop.eup %12407  ;;  %12427 = vrcp.f32 %v6662_v36  ;;  %v6663_v31 = vadd.f32 1.0, %v12406_v30 }
 0x88d   : >> { %v12410_v39 = vpop.eup %12409  ;;  %12429 = vrcp.f32 %v6665_v43  ;;  %v6668_v57 = vadd.f32 1.0, %v12408_v7  ;;  %11404 = vmatprep.mubr.bf16.mxu0 %v7060_v33  ;;  %v11298_v52 = vpop.f32.mrb[120].mxu1 }
 0x88e   : >> { %v12412_v38 = vpop.eup %12411  ;;  %12431 = vrcp.f32 %v6663_v31  ;;  %v16786_v22 = vadd.f32 %v11298_v52, %v6116_v49  ;;  %v5977_v42 = vpop.f32.mrb[121].mxu1  ;;  %v6996_v32 = vmul.f32 %v12410_v39, %v16707_v45 }
 0x88f   : >> { %v12414_v29 = vpop.eup %12413  ;;  %12433 = vrcp.f32 %v6668_v57  ;;  %v16790_v8 = vadd.f32 %v6114_v53, %v5977_v42  ;;  %v11299_v3 = vpop.f32.mrb[122].mxu1  ;;  %v6994_v54 = vmul.f32 %v12412_v38, %v16711_v44  ;;  %v6120_v57 = vld [vmem:[%s16273_s30 + $0x370] sm:$0xff] }
 0x890   : >> { %v12416_v40 = vpop.eup %12415  ;;  %v6997_v36 = vmul.f32 %v12414_v29, %v16714_v23  ;;  %12435 = vpow2.f32 %v10312_v55  ;;  %v10318_v30 = vmul.f32 -1.442695, %v16786_v22  ;;  %v5980_v43 = vpop.f32.mrb[123].mxu1  ;;  %v16798_v7 = vadd.f32 %v11299_v3, %v6117_v50 }
 0x891   : >> { %v12418_v33 = vpop.eup %12417  ;;  %v6995_v49 = vmul.f32 %v12416_v40, %v16716_v35  ;;  %12437 = vpow2.f32 %v10315_v20  ;;  %11405 = vmatmul.mubr.bf16.gmra.mrb[116].mxu0 %v7061_v5  ;;  %v10316_v45 = vmul.f32 -1.442695, %v16790_v8  ;;  %v16800_v44 = vadd.f32 %v6115_v34, %v5980_v43  ;;  %v6118_v35 = vld [vmem:[%s16273_s30 + $0x360] sm:$0xff] }
 0x892   : >> { %v12420_v31 = vpop.eup %12419  ;;  %12439 = vpow2.f32 %v10313_v48  ;;  %v7063_v23 = vpack.c.bf16 %v6997_v36, %v6996_v32  ;;  %v10319_v42 = vmul.f32 -1.442695, %v16798_v7 }
 0x893   : >> { %v12422_v55 = vpop.eup %12421  ;;  %v6666_v53 = vadd.f32 1.0, %v12420_v31  ;;  %12441 = vpow2.f32 %v10318_v30  ;;  %v7062_v39 = vpack.c.bf16 %v6995_v49, %v6994_v54  ;;  %v10317_v32 = vmul.f32 -1.442695, %v16800_v44  ;;  %v6121_v30 = vld [vmem:[%s16273_s30 + $0x378] sm:$0xff] }
 0x894   : >> { %v12424_v52 = vpop.eup %12423  ;;  %v6669_v38 = vadd.f32 1.0, %v12422_v55  ;;  %12443 = vpow2.f32 %v10316_v45  ;;  %v7000_v49 = vmul.f32 %v12418_v33, %v16727_v37 }
 0x895   : >> { %v12426_v20 = vpop.eup %12425  ;;  %12445 = vrcp.f32 %v6666_v53  ;;  %v6667_v5 = vadd.f32 1.0, %v12424_v52  ;;  %11408 = vmatprep.mubr.bf16.mxu0 %v7062_v39  ;;  %v11302_v48 = vpop.f32.mrb[124].mxu1  ;;  %v6119_v53 = vld [vmem:[%s16273_s30 + $0x368] sm:$0xff] }
 0x896   : >> { %v12428_v50 = vpop.eup %12427  ;;  %12447 = vrcp.f32 %v6669_v38  ;;  %v6672_v29 = vadd.f32 1.0, %v12426_v20  ;;  %v16806_v3 = vadd.f32 %v11302_v48, %v6120_v57  ;;  %v5993_v34 = vpop.f32.mrb[125].mxu1 }
 0x897   : >> { %v12430_v40 = vpop.eup %12429  ;;  %12449 = vrcp.f32 %v6667_v5  ;;  %v16808_v54 = vadd.f32 %v6118_v35, %v5993_v34  ;;  %v11303_v36 = vpop.f32.mrb[126].mxu1  ;;  %v6998_v57 = vmul.f32 %v12428_v50, %v16732_v25 }
 0x898   : >> { %v12432_v43 = vpop.eup %12431  ;;  %v7001_v45 = vmul.f32 %v12430_v40, %v16736_v0  ;;  %12451 = vrcp.f32 %v6672_v29  ;;  %v10322_v31 = vmul.f32 -1.442695, %v16806_v3  ;;  %v5996_v55 = vpop.f32.mrb[127].mxu1  ;;  %v16818_v20 = vadd.f32 %v11303_v36, %v6121_v30 }
 0x899   : >> { %v12434_v39 = vpop.eup %12433  ;;  %v6999_v52 = vmul.f32 %v12432_v43, %v16739_v51  ;;  %12453 = vpow2.f32 %v10319_v42  ;;  %11409 = vmatmul.mubr.bf16.gmra.mrb[120].mxu0 %v7063_v23  ;;  %v10320_v38 = vmul.f32 -1.442695, %v16808_v54  ;;  %v16820_v5 = vadd.f32 %v6119_v53, %v5996_v55 }
 0x89a   : >> { %v12436_v35 = vpop.eup %12435  ;;  %12455 = vpow2.f32 %v10317_v32  ;;  %v7065_v37 = vpack.c.bf16 %v7001_v45, %v7000_v49  ;;  %v10323_v42 = vmul.f32 -1.442695, %v16818_v20  ;;  %v7004_v43 = vmul.f32 %v12434_v39, %v16746_v56 }
 0x89b   : >> { %v12438_v0 = vpop.eup %12437  ;;  %v6670_v33 = vadd.f32 1.0, %v12436_v35  ;;  %12457 = vpow2.f32 %v10322_v31  ;;  %v7064_v48 = vpack.c.bf16 %v6999_v52, %v6998_v57  ;;  %v10321_v32 = vmul.f32 -1.442695, %v16820_v5 }
 0x89c   : >> { %v12440_v29 = vpop.eup %12439  ;;  %v6673_v34 = vadd.f32 1.0, %v12438_v0  ;;  %12459 = vpow2.f32 %v10320_v38  ;;  %v7074_v39 = vlaneseq }
 0x89d   : >> { %v12442_v25 = vpop.eup %12441  ;;  %12461 = vrcp.f32 %v6670_v33  ;;  %v6671_v51 = vadd.f32 1.0, %v12440_v29  ;;  %11412 = vmatprep.mubr.bf16.mxu0 %v7064_v48 }
 0x89e   : >> { %v12444_v23 = vpop.eup %12443  ;;  %12463 = vrcp.f32 %v6673_v34  ;;  %v6676_v36 = vadd.f32 1.0, %v12442_v25  ;;  %v16831_v25 = vshrl.u32 %v7074_v39, 7 }
 0x89f   : >> { %v12446_v50 = vpop.eup %12445  ;;  %12465 = vrcp.f32 %v6671_v51  ;;  %v6674_v45 = vadd.f32 1.0, %v12444_v23 }
 0x8a0   : >> { %v12448_v40 = vpop.eup %12447  ;;  %v7002_v55 = vmul.f32 %v12446_v50, %v16754_v47  ;;  %12467 = vpow2.f32 %v10323_v42 }
 0x8a1   : >> { %v12450_v30 = vpop.eup %12449  ;;  %v7005_v49 = vmul.f32 %v12448_v40, %v16757_v16  ;;  %11413 = vmatmul.mubr.bf16.gmra.mrb[124].mxu0 %v7065_v37  ;;  %12469 = vpow2.f32 %v10321_v32 }
 0x8a2   : >> { %v12452_v31 = vpop.eup %12451  ;;  %v7003_v53 = vmul.f32 %v12450_v30, %v16759_v10  ;;  %12471 = vrcp.f32 %v6676_v36 }
 0x8a3   : >> { %v12454_v57 = vpop.eup %12453  ;;  %v7067_v52 = vpack.c.bf16 %v7005_v49, %v7004_v43  ;;  %12473 = vrcp.f32 %v6674_v45  ;;  %v7008_v48 = vmul.f32 %v12452_v31, %v16766_v2  ;;  %v7076_v2 = vsub.s32 1, %v16831_v25 }
 0x8a4   : >> { %v12456_v38 = vpop.eup %12455  ;;  %v6677_v35 = vadd.f32 1.0, %v12454_v57  ;;  %v7066_v0 = vpack.c.bf16 %v7003_v53, %v7002_v55 }
 0x8a5   : >> { %v12458_v33 = vpop.eup %12457  ;;  %v6675_v56 = vadd.f32 1.0, %v12456_v38 }
 0x8a6   : >> { %v12460_v16 = vpop.eup %12459  ;;  %12475 = vrcp.f32 %v6677_v35  ;;  %11416 = vmatprep.mubr.bf16.mxu0 %v7066_v0  ;;  %v6680_v34 = vadd.f32 1.0, %v12458_v33 }
 0x8a7   : >> { %v12462_v37 = vpop.eup %12461  ;;  %12477 = vrcp.f32 %v6675_v56  ;;  %v6678_v42 = vadd.f32 1.0, %v12460_v16 }
 0x8a8   : >> { %v12464_v47 = vpop.eup %12463  ;;  %v7006_v51 = vmul.f32 %v12462_v37, %v16773_v46  ;;  %12479 = vrcp.f32 %v6680_v34  ;;  %v4019_v46 = vld [vmem:[%s16836_s25] sm:$0xff] }
 0x8a9   : >> { %v12466_v10 = vpop.eup %12465  ;;  %v7009_v29 = vmul.f32 %v12464_v47, %v16777_v6  ;;  %11417 = vmatmul.mubr.bf16.gmra.mrb[128].mxu0 %v7067_v52  ;;  %12481 = vrcp.f32 %v6678_v42  ;;  %v16841_v53 = vrot.slane %v4019_v46, %v7076_v2  ;;  %v18826_v2 = vld [vmem:[#allocation263_spill] sm:$0xff] }
 0x8aa   : >> { %v7007_v23 = vmul.f32 %v12466_v10, %v16779_v41  ;;  %v12468_v32 = vpop.eup %12467 }
 0x8ab   : >> { %v7069_v50 = vpack.c.bf16 %v7009_v29, %v7008_v48  ;;  %v12470_v36 = vpop.eup %12469  ;;  %v6681_v30 = vadd.f32 1.0, %v12468_v32 }
 0x8ac   : >> { %v7068_v40 = vpack.c.bf16 %v7007_v23, %v7006_v51  ;;  %v12472_v43 = vpop.eup %12471  ;;  %v6679_v6 = vadd.f32 1.0, %v12470_v36 }
 0x8ad   : >> { %v12474_v49 = vpop.eup %12473  ;;  %12483 = vrcp.f32 %v6681_v30  ;;  %v7012_v31 = vmul.f32 %v12472_v43, %v16786_v22 }
 0x8ae   : >> { %11420 = vmatprep.mubr.bf16.mxu0 %v7068_v40  ;;  %12485 = vrcp.f32 %v6679_v6  ;;  %v7010_v57 = vmul.f32 %v12474_v49, %v16790_v8 }
 0x8b0   : >> { %v12476_v41 = vpop.eup %12475 }
 0x8b1   : >> { %v12478_v45 = vpop.eup %12477  ;;  %v7013_v55 = vmul.f32 %v12476_v41, %v16798_v7  ;;  %11421 = vmatmul.mubr.bf16.gmra.mrb[132].mxu0 %v7069_v50 }
 0x8b2   : >> { %v7011_v52 = vmul.f32 %v12478_v45, %v16800_v44  ;;  %v12480_v16 = vpop.eup %12479 }
 0x8b3   : >> { %v7071_v38 = vpack.c.bf16 %v7013_v55, %v7012_v31  ;;  %v12482_v39 = vpop.eup %12481  ;;  %v7016_v34 = vmul.f32 %v12480_v16, %v16806_v3 }
 0x8b4   : >> { %v7070_v35 = vpack.c.bf16 %v7011_v52, %v7010_v57  ;;  %v7014_v42 = vmul.f32 %v12482_v39, %v16808_v54 }
 0x8b5   : >> { %v11322_v0 = vpop.f32.mrb[32].mxu0 }
 0x8b6   : >> { %11424 = vmatprep.mubr.bf16.mxu0 %v7070_v35  ;;  %v16846_v33 = vadd.f32 %v11322_v0, %v16841_v53  ;;  %v7144_v56 = vpop.f32.mrb[33].mxu0 }
 0x8b7   : >> { %v16849_v22 = vadd.f32 %v7144_v56, %v16841_v53  ;;  %v11323_v7 = vpop.f32.mrb[34].mxu0  ;;  %v12484_v47 = vpop.eup %12483 }
 0x8b8   : >> { %v10334_v37 = vmul.f32 -1.442695, %v16846_v33  ;;  %v16853_v8 = vadd.f32 %v11323_v7, %v16841_v53  ;;  %v7147_v44 = vpop.f32.mrb[35].mxu0  ;;  %v12486_v29 = vpop.eup %12485  ;;  %v7017_v51 = vmul.f32 %v12484_v47, %v16818_v20  ;;  %v18825_v20 = vld [vmem:[#allocation267_spill] sm:$0xff] }
 0x8b9   : >> { %11425 = vmatmul.mubr.bf16.gmra.mrb[136].mxu0 %v7071_v38  ;;  %v10332_v10 = vmul.f32 -1.442695, %v16849_v22  ;;  %v16857_v48 = vadd.f32 %v7147_v44, %v16841_v53  ;;  %v7015_v50 = vmul.f32 %v12486_v29, %v16820_v5  ;;  %v10445_v6 = vcombine.high %v18826_v2, %v18825_v20 }
 0x8ba   : >> { %12487 = vpow2.f32 %v10334_v37  ;;  %v10335_v23 = vmul.f32 -1.442695, %v16853_v8  ;;  %v7073_v40 = vpack.c.bf16 %v7017_v51, %v7016_v34 }
 0x8bb   : >> { %12489 = vpow2.f32 %v10332_v10  ;;  %v10333_v32 = vmul.f32 -1.442695, %v16857_v48  ;;  %v7072_v36 = vpack.c.bf16 %v7015_v50, %v7014_v42 }
 0x8bc   : >> { %12491 = vpow2.f32 %v10335_v23 }
 0x8bd   : >> { %12493 = vpow2.f32 %v10333_v32  ;;  %v11326_v30 = vpop.f32.mrb[36].mxu0  ;;  %11428 = vmatprep.mubr.bf16.mxu0 %v7072_v36 }
 0x8be   : >> { %v16866_v43 = vadd.f32 %v11326_v30, %v16841_v53  ;;  %v7160_v3 = vpop.f32.mrb[37].mxu0 }
 0x8bf   : >> { %v16871_v54 = vadd.f32 %v7160_v3, %v16841_v53  ;;  %v11327_v5 = vpop.f32.mrb[38].mxu0 }
 0x8c0   : >> { %v10338_v49 = vmul.f32 -1.442695, %v16866_v43  ;;  %v16875_v46 = vadd.f32 %v11327_v5, %v16841_v53  ;;  %v7163_v41 = vpop.f32.mrb[39].mxu0 }
 0x8c1   : >> { %11429 = vmatmul.mubr.bf16.gmra.mrb[140].mxu0 %v7073_v40  ;;  %v10336_v45 = vmul.f32 -1.442695, %v16871_v54  ;;  %v16879_v31 = vadd.f32 %v7163_v41, %v16841_v53 }
 0x8c2   : >> { %12495 = vpow2.f32 %v10338_v49  ;;  %v10339_v55 = vmul.f32 -1.442695, %v16875_v46  ;;  %8751 = vmatprep.mubr.bf16.mxu0 %v10445_v6 }
 0x8c3   : >> { %12497 = vpow2.f32 %v10336_v45  ;;  %v10337_v57 = vmul.f32 -1.442695, %v16879_v31 }
 0x8c4   : >> { %v12488_v52 = vpop.eup %12487  ;;  %12499 = vpow2.f32 %v10339_v55 }
 0x8c5   : >> { %v12490_v38 = vpop.eup %12489  ;;  %v7929_v35 = vadd.f32 1.0, %v12488_v52  ;;  %12501 = vpow2.f32 %v10337_v57 }
 0x8c6   : >> { %v12492_v0 = vpop.eup %12491  ;;  %v7927_v56 = vadd.f32 1.0, %v12490_v38  ;;  %v11330_v16 = vpop.f32.mrb[40].mxu0 }
 0x8c7   : >> { %v12494_v7 = vpop.eup %12493  ;;  %12503 = vrcp.f32 %v7929_v35  ;;  %v7930_v39 = vadd.f32 1.0, %v12492_v0  ;;  %v16884_v37 = vadd.f32 %v11330_v16, %v16841_v53  ;;  %v7176_v44 = vpop.f32.mrb[41].mxu0 }
 0x8c8   : >> { %12505 = vrcp.f32 %v7927_v56  ;;  %v7928_v47 = vadd.f32 1.0, %v12494_v7  ;;  %v16887_v10 = vadd.f32 %v7176_v44, %v16841_v53  ;;  %v11331_v29 = vpop.f32.mrb[42].mxu0 }
 0x8c9   : >> { %12507 = vrcp.f32 %v7930_v39  ;;  %v10342_v34 = vmul.f32 -1.442695, %v16884_v37  ;;  %v16891_v51 = vadd.f32 %v11331_v29, %v16841_v53  ;;  %v7179_v23 = vpop.f32.mrb[43].mxu0 }
 0x8ca   : >> { %12509 = vrcp.f32 %v7928_v47  ;;  %v10340_v42 = vmul.f32 -1.442695, %v16887_v10  ;;  %v16895_v50 = vadd.f32 %v7179_v23, %v16841_v53 }
 0x8cb   : >> { %12511 = vpow2.f32 %v10342_v34  ;;  %v10343_v32 = vmul.f32 -1.442695, %v16891_v51 }
 0x8cc   : >> { %v12496_v40 = vpop.eup %12495  ;;  %12513 = vpow2.f32 %v10340_v42  ;;  %v10341_v36 = vmul.f32 -1.442695, %v16895_v50 }
 0x8cd   : >> { %v12498_v30 = vpop.eup %12497  ;;  %v7933_v3 = vadd.f32 1.0, %v12496_v40  ;;  %12515 = vpow2.f32 %v10343_v32 }
 0x8ce   : >> { %v12500_v6 = vpop.eup %12499  ;;  %v7931_v5 = vadd.f32 1.0, %v12498_v30  ;;  %12517 = vpow2.f32 %v10341_v36 }
 0x8cf   : >> { %v12502_v49 = vpop.eup %12501  ;;  %12519 = vrcp.f32 %v7933_v3  ;;  %v7934_v41 = vadd.f32 1.0, %v12500_v6 }
 0x8d0   : >> { %12521 = vrcp.f32 %v7931_v5  ;;  %v7932_v45 = vadd.f32 1.0, %v12502_v49  ;;  %v11334_v55 = vpop.f32.mrb[44].mxu0 }
 0x8d1   : >> { %v12504_v57 = vpop.eup %12503  ;;  %12523 = vrcp.f32 %v7934_v41  ;;  %v16900_v52 = vadd.f32 %v11334_v55, %v16841_v53  ;;  %v7192_v38 = vpop.f32.mrb[45].mxu0 }
 0x8d2   : >> { %v12506_v35 = vpop.eup %12505  ;;  %12525 = vrcp.f32 %v7932_v45  ;;  %v16903_v0 = vadd.f32 %v7192_v38, %v16841_v53  ;;  %v11335_v56 = vpop.f32.mrb[46].mxu0  ;;  %v16910_v29 = vmul.f32 %v12504_v57, %v16846_v33 }
 0x8d3   : >> { %v12508_v16 = vpop.eup %12507  ;;  %v10346_v7 = vmul.f32 -1.442695, %v16900_v52  ;;  %v16907_v39 = vadd.f32 %v11335_v56, %v16841_v53  ;;  %v7195_v44 = vpop.f32.mrb[47].mxu0  ;;  %v16920_v40 = vmul.f32 %v12506_v35, %v16849_v22 }
 0x8d4   : >> { %v12510_v47 = vpop.eup %12509  ;;  %v16913_v34 = vmul.f32 %v12508_v16, %v16853_v8  ;;  %v10344_v23 = vmul.f32 -1.442695, %v16903_v0  ;;  %v16917_v42 = vadd.f32 %v7195_v44, %v16841_v53 }
 0x8d5   : >> { %v12512_v32 = vpop.eup %12511  ;;  %v16923_v36 = vmul.f32 %v12510_v47, %v16857_v48  ;;  %12527 = vpow2.f32 %v10346_v7  ;;  %v10347_v30 = vmul.f32 -1.442695, %v16907_v39 }
 0x8d6   : >> { %v12514_v33 = vpop.eup %12513  ;;  %v7937_v3 = vadd.f32 1.0, %v12512_v32  ;;  %12529 = vpow2.f32 %v10344_v23  ;;  %v10345_v48 = vmul.f32 -1.442695, %v16917_v42 }
 0x8d7   : >> { %v12516_v6 = vpop.eup %12515  ;;  %v7935_v49 = vadd.f32 1.0, %v12514_v33  ;;  %12531 = vpow2.f32 %v10347_v30 }
 0x8d8   : >> { %v12518_v22 = vpop.eup %12517  ;;  %12533 = vrcp.f32 %v7937_v3  ;;  %v7938_v41 = vadd.f32 1.0, %v12516_v6  ;;  %v11338_v45 = vpop.f32.mrb[48].mxu0 }
 0x8d9   : >> { %v12520_v55 = vpop.eup %12519  ;;  %12535 = vrcp.f32 %v7935_v49  ;;  %v7936_v57 = vadd.f32 1.0, %v12518_v22  ;;  %v16932_v38 = vadd.f32 %v11338_v45, %v16841_v53  ;;  %v7208_v35 = vpop.f32.mrb[49].mxu0 }
 0x8da   : >> { %v12522_v56 = vpop.eup %12521  ;;  %12537 = vrcp.f32 %v7938_v41  ;;  %v16935_v16 = vadd.f32 %v7208_v35, %v16841_v53  ;;  %v11339_v7 = vpop.f32.mrb[50].mxu0  ;;  %v16938_v47 = vmul.f32 %v12520_v55, %v16866_v43 }
 0x8db   : >> { %v12524_v44 = vpop.eup %12523  ;;  %12539 = vrcp.f32 %v7936_v57  ;;  %v10350_v23 = vmul.f32 -1.442695, %v16932_v38  ;;  %v16942_v32 = vadd.f32 %v11339_v7, %v16841_v53  ;;  %v7211_v30 = vpop.f32.mrb[51].mxu0  ;;  %v16952_v43 = vmul.f32 %v12522_v56, %v16871_v54 }
 0x8dc   : >> { %v12526_v33 = vpop.eup %12525  ;;  %v16945_v3 = vmul.f32 %v12524_v44, %v16875_v46  ;;  %12541 = vpow2.f32 %v10345_v48  ;;  %v10348_v6 = vmul.f32 -1.442695, %v16935_v16  ;;  %v16949_v49 = vadd.f32 %v7211_v30, %v16841_v53 }
 0x8dd   : >> { %v16955_v22 = vmul.f32 %v12526_v33, %v16879_v31  ;;  %12543 = vpow2.f32 %v10350_v23  ;;  %v10351_v41 = vmul.f32 -1.442695, %v16942_v32 }
 0x8de   : >> { %12545 = vpow2.f32 %v10348_v6  ;;  %v10349_v46 = vmul.f32 -1.442695, %v16949_v49 }
 0x8df   : >> { %v12528_v48 = vpop.eup %12527  ;;  %12547 = vpow2.f32 %v10351_v41 }
 0x8e0   : >> { %v12530_v57 = vpop.eup %12529  ;;  %v7941_v54 = vadd.f32 1.0, %v12528_v48  ;;  %12549 = vpow2.f32 %v10349_v46  ;;  %v11342_v35 = vpop.f32.mrb[52].mxu0 }
 0x8e1   : >> { %v12532_v31 = vpop.eup %12531  ;;  %v7939_v56 = vadd.f32 1.0, %v12530_v57  ;;  %v16964_v7 = vadd.f32 %v11342_v35, %v16841_v53  ;;  %v7224_v44 = vpop.f32.mrb[53].mxu0 }
 0x8e2   : >> { %v12534_v23 = vpop.eup %12533  ;;  %12551 = vrcp.f32 %v7941_v54  ;;  %v7942_v30 = vadd.f32 1.0, %v12532_v31  ;;  %v16967_v33 = vadd.f32 %v7224_v44, %v16841_v53  ;;  %v11343_v6 = vpop.f32.mrb[54].mxu0 }
 0x8e3   : >> { %v12536_v45 = vpop.eup %12535  ;;  %12553 = vrcp.f32 %v7939_v56  ;;  %v10354_v41 = vmul.f32 -1.442695, %v16964_v7  ;;  %v16971_v46 = vadd.f32 %v11343_v6, %v16841_v53  ;;  %v7227_v48 = vpop.f32.mrb[55].mxu0  ;;  %v16978_v31 = vmul.f32 %v12534_v23, %v16884_v37 }
 0x8e4   : >> { %v12538_v57 = vpop.eup %12537  ;;  %12555 = vrcp.f32 %v7942_v30  ;;  %v10352_v35 = vmul.f32 -1.442695, %v16967_v33  ;;  %v16975_v55 = vadd.f32 %v7227_v48, %v16841_v53  ;;  %v16985_v8 = vmul.f32 %v12536_v45, %v16887_v10 }
 0x8e5   : >> { %v12540_v54 = vpop.eup %12539  ;;  %v16981_v44 = vmul.f32 %v12538_v57, %v16891_v51  ;;  %12557 = vpow2.f32 %v10354_v41  ;;  %v10355_v56 = vmul.f32 -1.442695, %v16971_v46 }
 0x8e6   : >> { %v12542_v6 = vpop.eup %12541  ;;  %v16988_v30 = vmul.f32 %v12540_v54, %v16895_v50  ;;  %12559 = vpow2.f32 %v10352_v35  ;;  %v10353_v48 = vmul.f32 -1.442695, %v16975_v55 }
 0x8e7   : >> { %v12544_v5 = vpop.eup %12543  ;;  %v7940_v23 = vadd.f32 1.0, %v12542_v6  ;;  %12561 = vpow2.f32 %v10355_v56 }
 0x8e8   : >> { %v12546_v51 = vpop.eup %12545  ;;  %v7945_v57 = vadd.f32 1.0, %v12544_v5  ;;  %12563 = vpow2.f32 %v10353_v48  ;;  %v11346_v10 = vpop.f32.mrb[56].mxu0 }
 0x8e9   : >> { %v12548_v45 = vpop.eup %12547  ;;  %12565 = vrcp.f32 %v7940_v23  ;;  %v7943_v50 = vadd.f32 1.0, %v12546_v51  ;;  %v16996_v35 = vadd.f32 %v11346_v10, %v16841_v53  ;;  %v7240_v54 = vpop.f32.mrb[57].mxu0 }
 0x8ea   : >> { %v12550_v58 = vpop.eup %12549  ;;  %12567 = vrcp.f32 %v7945_v57  ;;  %v7946_v59 = vadd.f32 1.0, %v12548_v45  ;;  %v16999_v6 = vadd.f32 %v7240_v54, %v16841_v53  ;;  %v11347_v56 = vpop.f32.mrb[58].mxu0 }
 0x8eb   : >> { %12569 = vrcp.f32 %v7943_v50  ;;  %v7944_v37 = vadd.f32 1.0, %v12550_v58  ;;  %v10358_v5 = vmul.f32 -1.442695, %v16996_v35  ;;  %v17003_v48 = vadd.f32 %v11347_v56, %v16841_v53  ;;  %v7243_v23 = vpop.f32.mrb[59].mxu0 }
 0x8ec   : >> { %v12552_v51 = vpop.eup %12551  ;;  %12571 = vrcp.f32 %v7946_v59  ;;  %v10356_v10 = vmul.f32 -1.442695, %v16999_v6  ;;  %v17007_v41 = vadd.f32 %v7243_v23, %v16841_v53 }
 0x8ed   : >> { %v12554_v57 = vpop.eup %12553  ;;  %12573 = vrcp.f32 %v7944_v37  ;;  %v10359_v45 = vmul.f32 -1.442695, %v17003_v48  ;;  %v17012_v56 = vmul.f32 %v12552_v51, %v16900_v52 }
 0x8ee   : >> { %v12556_v54 = vpop.eup %12555  ;;  %12575 = vpow2.f32 %v10358_v5  ;;  %v10357_v58 = vmul.f32 -1.442695, %v17007_v41  ;;  %v17023_v51 = vmul.f32 %v12554_v57, %v16903_v0 }
 0x8ef   : >> { %v12558_v50 = vpop.eup %12557  ;;  %v17015_v60 = vmul.f32 %v12556_v54, %v16907_v39  ;;  %12577 = vpow2.f32 %v10356_v10 }
 0x8f0   : >> { %v12560_v59 = vpop.eup %12559  ;;  %v7949_v61 = vadd.f32 1.0, %v12558_v50  ;;  %12579 = vpow2.f32 %v10359_v45  ;;  %v11350_v23 = vpop.f32.mrb[60].mxu0 }
 0x8f1   : >> { %v12562_v62 = vpop.eup %12561  ;;  %v7947_v63 = vadd.f32 1.0, %v12560_v59  ;;  %12581 = vpow2.f32 %v10357_v58  ;;  %v17020_v5 = vadd.f32 %v11350_v23, %v16841_v53  ;;  %v7256_v14 = vpop.f32.mrb[61].mxu0 }
 0x8f2   : >> { %v12564_v52 = vpop.eup %12563  ;;  %12583 = vrcp.f32 %v7949_v61  ;;  %v7950_v39 = vadd.f32 1.0, %v12562_v62  ;;  %v17026_v10 = vadd.f32 %v7256_v14, %v16841_v53  ;;  %v11351_v45 = vpop.f32.mrb[62].mxu0 }
 0x8f3   : >> { %v12566_v54 = vpop.eup %12565  ;;  %12585 = vrcp.f32 %v7947_v63  ;;  %v7948_v50 = vadd.f32 1.0, %v12564_v52  ;;  %v10362_v59 = vmul.f32 -1.442695, %v17020_v5  ;;  %v17030_v58 = vadd.f32 %v11351_v45, %v16841_v53  ;;  %v7259_v23 = vpop.f32.mrb[63].mxu0 }
 0x8f4   : >> { %v12568_v37 = vpop.eup %12567  ;;  %v17033_v15 = vmul.f32 %v12566_v54, %v16917_v42  ;;  %12587 = vrcp.f32 %v7950_v39  ;;  %v10360_v61 = vmul.f32 -1.442695, %v17026_v10  ;;  %v17037_v62 = vadd.f32 %v7259_v23, %v16841_v53 }
 0x8f5   : >> { %v12570_v14 = vpop.eup %12569  ;;  %12589 = vrcp.f32 %v7948_v50  ;;  %v10363_v63 = vmul.f32 -1.442695, %v17030_v58  ;;  %v8281_v42 = vmul.f32 %v12568_v37, %v16932_v38 }
 0x8f6   : >> { %v12572_v0 = vpop.eup %12571  ;;  %12591 = vpow2.f32 %v10362_v59  ;;  %v10361_v52 = vmul.f32 -1.442695, %v17037_v62  ;;  %v8279_v23 = vmul.f32 %v12570_v14, %v16935_v16 }
 0x8f7   : >> { %v12574_v45 = vpop.eup %12573  ;;  %v8282_v39 = vmul.f32 %v12572_v0, %v16942_v32  ;;  %12593 = vpow2.f32 %v10360_v61 }
 0x8f8   : >> { %v12576_v54 = vpop.eup %12575  ;;  %v8280_v50 = vmul.f32 %v12574_v45, %v16949_v49  ;;  %12595 = vpow2.f32 %v10363_v63 }
 0x8f9   : >> { %v12578_v1 = vpop.eup %12577  ;;  %v7953_v18 = vadd.f32 1.0, %v12576_v54  ;;  %12597 = vpow2.f32 %v10361_v52  ;;  %v11354_v26 = vpop.f32.mrb[64].mxu0  ;;  %v8384_v57 = vpack.c.bf16 %v8282_v39, %v8281_v42  ;;  %v18827_v42 = vpack.c.bf16 %v16923_v36, %v16920_v40 }
 0x8fa   : >> { %v12580_v59 = vpop.eup %12579  ;;  %v7951_v28 = vadd.f32 1.0, %v12578_v1  ;;  %v17048_v4 = vadd.f32 %v11354_v26, %v16841_v53  ;;  %v7272_v38 = vpop.f32.mrb[65].mxu0  ;;  %v8383_v37 = vpack.c.bf16 %v8280_v50, %v8279_v23 }
 0x8fb   : >> { %v12582_v32 = vpop.eup %12581  ;;  %12599 = vrcp.f32 %v7953_v18  ;;  %v7954_v61 = vadd.f32 1.0, %v12580_v59  ;;  %v17051_v16 = vadd.f32 %v7272_v38, %v16841_v53  ;;  %v11355_v49 = vpop.f32.mrb[66].mxu0 }
 0x8fc   : >> { %v12584_v14 = vpop.eup %12583  ;;  %12601 = vrcp.f32 %v7951_v28  ;;  %v7952_v63 = vadd.f32 1.0, %v12582_v32  ;;  %v10366_v0 = vmul.f32 -1.442695, %v17048_v4  ;;  %v17055_v52 = vadd.f32 %v11355_v49, %v16841_v53  ;;  %v7275_v1 = vpop.f32.mrb[67].mxu0  ;;  %10758 = vmatprep.subr.bf16.mxu0 %v8383_v37 }
 0x8fd   : >> { %v12586_v26 = vpop.eup %12585  ;;  %12603 = vrcp.f32 %v7954_v61  ;;  %v10364_v45 = vmul.f32 -1.442695, %v17051_v16  ;;  %v17059_v18 = vadd.f32 %v7275_v1, %v16841_v53  ;;  %10759 = vmatpush3.bf16.msra.mxu0 %v18827_v42  ;;  %v8285_v23 = vmul.f32 %v12584_v14, %v16964_v7 }
 0x8fe   : >> { %v12588_v28 = vpop.eup %12587  ;;  %12605 = vrcp.f32 %v7952_v63  ;;  %v10367_v39 = vmul.f32 -1.442695, %v17055_v52  ;;  %10760 = vmatprep.subr.bf16.mxu0 %v8384_v57  ;;  %v8283_v37 = vmul.f32 %v12586_v26, %v16967_v33  ;;  %v18828_v57 = vpack.c.bf16 %v16913_v34, %v16910_v29 }
 0x8ff   : >> { %v12590_v54 = vpop.eup %12589  ;;  %v8286_v50 = vmul.f32 %v12588_v28, %v16971_v46  ;;  %12607 = vpow2.f32 %v10366_v0  ;;  %v10365_v59 = vmul.f32 -1.442695, %v17059_v18 }
 0x900   : >> { %v12592_v38 = vpop.eup %12591  ;;  %v8284_v32 = vmul.f32 %v12590_v54, %v16975_v55  ;;  %12609 = vpow2.f32 %v10364_v45 }
 0x901   : >> { %v12594_v40 = vpop.eup %12593  ;;  %v7957_v36 = vadd.f32 1.0, %v12592_v38  ;;  %12611 = vpow2.f32 %v10367_v39  ;;  %v11358_v61 = vpop.f32.mrb[68].mxu0  ;;  %10761 = vmatpush3.bf16.msra.mxu0 %v18828_v57  ;;  %v8386_v7 = vpack.c.bf16 %v8286_v50, %v8285_v23  ;;  %v18829_v23 = vpack.c.bf16 %v16955_v22, %v16952_v43 }
 0x902   : >> { %v12596_v49 = vpop.eup %12595  ;;  %v7955_v46 = vadd.f32 1.0, %v12594_v40  ;;  %12613 = vpow2.f32 %v10365_v59  ;;  %v17074_v14 = vadd.f32 %v11358_v61, %v16841_v53  ;;  %v7288_v63 = vpop.f32.mrb[69].mxu0  ;;  %v8385_v33 = vpack.c.bf16 %v8284_v32, %v8283_v37 }
 0x903   : >> { %v12598_v0 = vpop.eup %12597  ;;  %12615 = vrcp.f32 %v7957_v36  ;;  %v7958_v55 = vadd.f32 1.0, %v12596_v49  ;;  %v17077_v1 = vadd.f32 %v7288_v63, %v16841_v53  ;;  %v11359_v26 = vpop.f32.mrb[70].mxu0 }
 0x904   : >> { %12617 = vrcp.f32 %v7955_v46  ;;  %v7956_v45 = vadd.f32 1.0, %v12598_v0  ;;  %v10370_v29 = vmul.f32 -1.442695, %v17074_v14  ;;  %v17081_v34 = vadd.f32 %v11359_v26, %v16841_v53  ;;  %v7291_v42 = vpop.f32.mrb[71].mxu0  ;;  %10762 = vmatprep.subr.bf16.mxu0 %v8385_v33 }
 0x905   : >> { %v12600_v28 = vpop.eup %12599  ;;  %12619 = vrcp.f32 %v7958_v55  ;;  %v10368_v39 = vmul.f32 -1.442695, %v17077_v1  ;;  %v17085_v54 = vadd.f32 %v7291_v42, %v16841_v53  ;;  %10763 = vmatpush3.bf16.msra.mxu0 %v18829_v23 }
 0x906   : >> { %v12602_v50 = vpop.eup %12601  ;;  %12621 = vrcp.f32 %v7956_v45  ;;  %v10371_v59 = vmul.f32 -1.442695, %v17081_v34  ;;  %10764 = vmatprep.subr.bf16.mxu0 %v8386_v7  ;;  %v8289_v40 = vmul.f32 %v12600_v28, %v16996_v35  ;;  %v18830_v7 = vpack.c.bf16 %v16945_v3, %v16938_v47 }
 0x907   : >> { %v12604_v38 = vpop.eup %12603  ;;  %12623 = vpow2.f32 %v10370_v29  ;;  %v10369_v37 = vmul.f32 -1.442695, %v17085_v54  ;;  %v8287_v57 = vmul.f32 %v12602_v50, %v16999_v6 }
 0x908   : >> { %v12606_v32 = vpop.eup %12605  ;;  %v8290_v36 = vmul.f32 %v12604_v38, %v17003_v48  ;;  %12625 = vpow2.f32 %v10368_v39  ;;  %v18831_v38 = vpack.c.bf16 %v16988_v30, %v16985_v8 }
 0x909   : >> { %v12608_v61 = vpop.eup %12607  ;;  %v8288_v43 = vmul.f32 %v12606_v32, %v17007_v41  ;;  %12627 = vpow2.f32 %v10371_v59  ;;  %v11362_v22 = vpop.f32.mrb[72].mxu0  ;;  %10765 = vmatpush3.bf16.msra.mxu0 %v18830_v7 }
 0x90a   : >> { %v12610_v49 = vpop.eup %12609  ;;  %v7961_v46 = vadd.f32 1.0, %v12608_v61  ;;  %12629 = vpow2.f32 %v10369_v37  ;;  %v17100_v63 = vadd.f32 %v11362_v22, %v16841_v53  ;;  %v7304_v35 = vpop.f32.mrb[73].mxu0  ;;  %v8388_v48 = vpack.c.bf16 %v8290_v36, %v8289_v40 }
 0x90b   : >> { %v12612_v33 = vpop.eup %12611  ;;  %v7959_v0 = vadd.f32 1.0, %v12610_v49  ;;  %v17103_v6 = vadd.f32 %v7304_v35, %v16841_v53  ;;  %v11363_v41 = vpop.f32.mrb[74].mxu0  ;;  %v8387_v55 = vpack.c.bf16 %v8288_v43, %v8287_v57  ;;  %v18832_v49 = vpack.c.bf16 %v16981_v44, %v16978_v31 }
 0x90c   : >> { %v12614_v26 = vpop.eup %12613  ;;  %12631 = vrcp.f32 %v7961_v46  ;;  %v7962_v45 = vadd.f32 1.0, %v12612_v33  ;;  %v10374_v47 = vmul.f32 -1.442695, %v17100_v63  ;;  %v17107_v3 = vadd.f32 %v11363_v41, %v16841_v53  ;;  %v7307_v29 = vpop.f32.mrb[75].mxu0 }
 0x90d   : >> { %v12616_v42 = vpop.eup %12615  ;;  %12633 = vrcp.f32 %v7959_v0  ;;  %v7960_v28 = vadd.f32 1.0, %v12614_v26  ;;  %v10372_v39 = vmul.f32 -1.442695, %v17103_v6  ;;  %v17111_v23 = vadd.f32 %v7307_v29, %v16841_v53  ;;  %10766 = vmatprep.subr.bf16.mxu0 %v8387_v55 }
 0x90e   : >> { %v12618_v50 = vpop.eup %12617  ;;  %12635 = vrcp.f32 %v7962_v45  ;;  %v10375_v59 = vmul.f32 -1.442695, %v17107_v3  ;;  %10767 = vmatpush3.bf16.msra.mxu0 %v18831_v38  ;;  %v8293_v36 = vmul.f32 %v12616_v42, %v17020_v5  ;;  %v18833_v42 = vpack.c.bf16 %v17033_v15, %v17023_v51 }
 0x90f   : >> { %v12620_v37 = vpop.eup %12619  ;;  %12637 = vrcp.f32 %v7960_v28  ;;  %v10373_v32 = vmul.f32 -1.442695, %v17111_v23  ;;  %10768 = vmatprep.subr.bf16.mxu0 %v8388_v48  ;;  %v8291_v43 = vmul.f32 %v12618_v50, %v17026_v10  ;;  %v10444_v15 = vcombine.low %v18826_v2, %v18825_v20 }
 0x910   : >> { %v12622_v40 = vpop.eup %12621  ;;  %v8294_v61 = vmul.f32 %v12620_v37, %v17030_v58  ;;  %12639 = vpow2.f32 %v10374_v47 }
 0x911   : >> { %v12624_v57 = vpop.eup %12623  ;;  %v8292_v22 = vmul.f32 %v12622_v40, %v17037_v62  ;;  %12641 = vpow2.f32 %v10372_v39 }
 0x912   : >> { %v12626_v7 = vpop.eup %12625  ;;  %v7965_v8 = vadd.f32 1.0, %v12624_v57  ;;  %12643 = vpow2.f32 %v10375_v59  ;;  %v11366_v30 = vpop.f32.mrb[76].mxu0  ;;  %10769 = vmatpush3.bf16.msra.mxu0 %v18832_v49  ;;  %v8390_v46 = vpack.c.bf16 %v8294_v61, %v8293_v36  ;;  %v18835_v57 = vld [vmem:[#allocation275_spill] sm:$0xff] }
 0x913   : >> { %v12628_v35 = vpop.eup %12627  ;;  %v7963_v5 = vadd.f32 1.0, %v12626_v7  ;;  %12645 = vpow2.f32 %v10373_v32  ;;  %v17126_v58 = vadd.f32 %v11366_v30, %v16841_v53  ;;  %v7320_v48 = vpop.f32.mrb[77].mxu0  ;;  %v8389_v10 = vpack.c.bf16 %v8292_v22, %v8291_v43 }
 0x914   : >> { %v12630_v33 = vpop.eup %12629  ;;  %12647 = vrcp.f32 %v7965_v8  ;;  %v7966_v62 = vadd.f32 1.0, %v12628_v35  ;;  %v17129_v0 = vadd.f32 %v7320_v48, %v16841_v53  ;;  %v11367_v41 = vpop.f32.mrb[78].mxu0 }
 0x915   : >> { %12649 = vrcp.f32 %v7963_v5  ;;  %v7964_v55 = vadd.f32 1.0, %v12630_v33  ;;  %v10378_v31 = vmul.f32 -1.442695, %v17126_v58  ;;  %v17133_v44 = vadd.f32 %v11367_v41, %v16841_v53  ;;  %v7323_v26 = vpop.f32.mrb[79].mxu0  ;;  %10770 = vmatprep.subr.bf16.mxu0 %v8389_v10 }
 0x916   : >> { %v12632_v45 = vpop.eup %12631  ;;  %12651 = vrcp.f32 %v7966_v62  ;;  %v10376_v47 = vmul.f32 -1.442695, %v17129_v0  ;;  %v17137_v29 = vadd.f32 %v7323_v26, %v16841_v53  ;;  %10771 = vmatpush3.bf16.msra.mxu0 %v18833_v42 }
 0x917   : >> { %v12634_v28 = vpop.eup %12633  ;;  %12653 = vrcp.f32 %v7964_v55  ;;  %v10379_v39 = vmul.f32 -1.442695, %v17133_v44  ;;  %10772 = vmatprep.subr.bf16.mxu0 %v8390_v46  ;;  %v17145_v37 = vmul.f32 %v12632_v45, %v17048_v4  ;;  %v18834_v4 = vpack.c.bf16 %v17015_v60, %v17012_v56 }
 0x918   : >> { %v12636_v50 = vpop.eup %12635  ;;  %12655 = vpow2.f32 %v10378_v31  ;;  %v10377_v59 = vmul.f32 -1.442695, %v17137_v29  ;;  %v17153_v40 = vmul.f32 %v12634_v28, %v17051_v16 }
 0x919   : >> { %v12638_v38 = vpop.eup %12637  ;;  %v17148_v32 = vmul.f32 %v12636_v50, %v17055_v52  ;;  %12657 = vpow2.f32 %v10376_v47  ;;  %v18836_v52 = vld [vmem:[#allocation271_spill] sm:$0xff] }
 0x91a   : >> { %v12640_v51 = vpop.eup %12639  ;;  %v17156_v36 = vmul.f32 %v12638_v38, %v17059_v18  ;;  %12659 = vpow2.f32 %v10379_v39  ;;  %v11370_v61 = vpop.f32.mrb[80].mxu0  ;;  %10773 = vmatpush3.bf16.msra.mxu0 %v18834_v4  ;;  %v10452_v43 = vcombine.high %v18836_v52, %v18835_v57  ;;  %v18837_v4 = vld [vmem:[#allocation283_spill] sm:$0xff] }
 0x91b   : >> { %v12642_v22 = vpop.eup %12641  ;;  %v7969_v8 = vadd.f32 1.0, %v12640_v51  ;;  %12661 = vpow2.f32 %v10377_v59  ;;  %v17166_v16 = vadd.f32 %v11370_v61, %v16841_v53  ;;  %v7336_v18 = vpop.f32.mrb[81].mxu0  ;;  %v10451_v59 = vcombine.low %v18836_v52, %v18835_v57 }
 0x91c   : >> { %v12644_v30 = vpop.eup %12643  ;;  %v7967_v46 = vadd.f32 1.0, %v12642_v22  ;;  %v17171_v60 = vadd.f32 %v7336_v18, %v16841_v53  ;;  %v11371_v56 = vpop.f32.mrb[82].mxu0  ;;  %v18839_v22 = vld [vmem:[#allocation279_spill] sm:$0xff] }
 0x91d   : >> { %v12646_v35 = vpop.eup %12645  ;;  %12663 = vrcp.f32 %v7969_v8  ;;  %v7970_v5 = vadd.f32 1.0, %v12644_v30  ;;  %v10382_v48 = vmul.f32 -1.442695, %v17166_v16  ;;  %v17175_v10 = vadd.f32 %v11371_v56, %v16841_v53  ;;  %v7339_v33 = vpop.f32.mrb[83].mxu0  ;;  %8752 = vmatmul.mubr.bf16.vlgmr.msra.gmra.mrb[144].mxu0 %v10444_v15 }
 0x91e   : >> { %v12648_v62 = vpop.eup %12647  ;;  %12665 = vrcp.f32 %v7967_v46  ;;  %v7968_v41 = vadd.f32 1.0, %v12646_v35  ;;  %v10380_v55 = vmul.f32 -1.442695, %v17171_v60  ;;  %v17179_v31 = vadd.f32 %v7339_v33, %v16841_v53  ;;  %8759 = vmatprep.mubr.bf16.mxu0 %v10452_v43 }
 0x91f   : >> { %v12650_v26 = vpop.eup %12649  ;;  %12667 = vrcp.f32 %v7970_v5  ;;  %v10383_v45 = vmul.f32 -1.442695, %v17175_v10  ;;  %v17184_v39 = vmul.f32 %v12648_v62, %v17074_v14  ;;  %v18838_v43 = vmov %v18837_v4 }
 0x920   : >> { %v12652_v47 = vpop.eup %12651  ;;  %12669 = vrcp.f32 %v7968_v41  ;;  %v10381_v42 = vmul.f32 -1.442695, %v17179_v31  ;;  %v17192_v15 = vmul.f32 %v12650_v26, %v17077_v1  ;;  %v10459_v14 = vcombine.high %v18839_v22, %v18837_v4 }
 0x921   : >> { %v12654_v28 = vpop.eup %12653  ;;  %v17187_v50 = vmul.f32 %v12652_v47, %v17081_v34  ;;  %12671 = vpow2.f32 %v10382_v48 }
 0x922   : >> { %v12656_v38 = vpop.eup %12655  ;;  %v17195_v51 = vmul.f32 %v12654_v28, %v17085_v54  ;;  %12673 = vpow2.f32 %v10380_v55  ;;  %v11374_v61 = vpop.f32.mrb[84].mxu0  ;;  %v18845_v54 = vld [vmem:[#allocation295_spill] sm:$0xff] }
 0x923   : >> { %v12658_v8 = vpop.eup %12657  ;;  %v7973_v18 = vadd.f32 1.0, %v12656_v38  ;;  %12675 = vpow2.f32 %v10383_v45  ;;  %v17202_v30 = vadd.f32 %v11374_v61, %v16841_v53  ;;  %v7352_v46 = vpop.f32.mrb[85].mxu0 }
 0x924   : >> { %v12660_v1 = vpop.eup %12659  ;;  %v7971_v56 = vadd.f32 1.0, %v12658_v8  ;;  %12677 = vpow2.f32 %v10381_v42  ;;  %v17207_v35 = vadd.f32 %v7352_v46, %v16841_v53  ;;  %v11375_v5 = vpop.f32.mrb[86].mxu0 }
 0x925   : >> { %v12662_v48 = vpop.eup %12661  ;;  %12679 = vrcp.f32 %v7973_v18  ;;  %v7974_v33 = vadd.f32 1.0, %v12660_v1  ;;  %v10386_v62 = vmul.f32 -1.442695, %v17202_v30  ;;  %v17211_v41 = vadd.f32 %v11375_v5, %v16841_v53  ;;  %v7355_v55 = vpop.f32.mrb[87].mxu0  ;;  %8760 = vmatmul.mubr.bf16.gmra.mrb[148].mxu0 %v10451_v59  ;;  %v18842_v1 = vld [vmem:[#allocation287_spill] sm:$0xff] }
 0x926   : >> { %12681 = vrcp.f32 %v7971_v56  ;;  %v7972_v26 = vadd.f32 1.0, %v12662_v48  ;;  %v10384_v45 = vmul.f32 -1.442695, %v17207_v35  ;;  %v17215_v47 = vadd.f32 %v7355_v55, %v16841_v53  ;;  %8767 = vmatprep.mubr.bf16.mxu0 %v10459_v14  ;;  %v18840_v14 = vld [vmem:[#allocation291_spill] sm:$0xff] }
 0x927   : >> { %v12664_v42 = vpop.eup %12663  ;;  %12683 = vrcp.f32 %v7974_v33  ;;  %v10387_v28 = vmul.f32 -1.442695, %v17211_v41  ;;  %v10458_v59 = vcombine.low %v18839_v22, %v18838_v43  ;;  %v18841_v56 = vmov %v18840_v14 }
 0x928   : >> { %v12666_v38 = vpop.eup %12665  ;;  %12685 = vrcp.f32 %v7972_v26  ;;  %v10385_v61 = vmul.f32 -1.442695, %v17215_v47  ;;  %v17222_v18 = vmul.f32 %v12664_v42, %v17100_v63  ;;  %v18843_v5 = vmov %v18842_v1 }
 0x929   : >> { %v12668_v4 = vpop.eup %12667  ;;  %12687 = vpow2.f32 %v10386_v62  ;;  %v10466_v48 = vcombine.high %v18842_v1, %v18840_v14  ;;  %v17230_v55 = vmul.f32 %v12666_v38, %v17103_v6 }
 0x92a   : >> { %v12670_v8 = vpop.eup %12669  ;;  %v17225_v46 = vmul.f32 %v12668_v4, %v17107_v3  ;;  %12689 = vpow2.f32 %v10384_v45 }
 0x92b   : >> { %v12672_v33 = vpop.eup %12671  ;;  %v17233_v62 = vmul.f32 %v12670_v8, %v17111_v23  ;;  %12691 = vpow2.f32 %v10387_v28  ;;  %v11378_v26 = vpop.f32.mrb[88].mxu0 }
 0x92c   : >> { %v12674_v34 = vpop.eup %12673  ;;  %v7977_v42 = vadd.f32 1.0, %v12672_v33  ;;  %12693 = vpow2.f32 %v10385_v61  ;;  %v17238_v3 = vadd.f32 %v11378_v26, %v16841_v53  ;;  %v7368_v45 = vpop.f32.mrb[89].mxu0 }
 0x92d   : >> { %v12676_v4 = vpop.eup %12675  ;;  %v7975_v38 = vadd.f32 1.0, %v12674_v34  ;;  %v17243_v23 = vadd.f32 %v7368_v45, %v16841_v53  ;;  %v11379_v28 = vpop.f32.mrb[90].mxu0  ;;  %8768 = vmatmul.mubr.bf16.gmra.mrb[152].mxu0 %v10458_v59 }
 0x92e   : >> { %v12678_v8 = vpop.eup %12677  ;;  %12695 = vrcp.f32 %v7977_v42  ;;  %v7978_v14 = vadd.f32 1.0, %v12676_v4  ;;  %v10390_v1 = vmul.f32 -1.442695, %v17238_v3  ;;  %v17247_v61 = vadd.f32 %v11379_v28, %v16841_v53  ;;  %v7371_v33 = vpop.f32.mrb[91].mxu0  ;;  %8775 = vmatprep.mubr.bf16.mxu0 %v10466_v48 }
 0x92f   : >> { %v12680_v26 = vpop.eup %12679  ;;  %12697 = vrcp.f32 %v7975_v38  ;;  %v7976_v63 = vadd.f32 1.0, %v12678_v8  ;;  %v10388_v34 = vmul.f32 -1.442695, %v17243_v23  ;;  %v17251_v45 = vadd.f32 %v7371_v33, %v16841_v53  ;;  %v18844_v33 = vld [vmem:[#allocation299_spill] sm:$0xff] }
 0x930   : >> { %v12682_v6 = vpop.eup %12681  ;;  %12699 = vrcp.f32 %v7978_v14  ;;  %v10391_v59 = vmul.f32 -1.442695, %v17247_v61  ;;  %v10465_v28 = vcombine.low %v18843_v5, %v18841_v56  ;;  %v17258_v38 = vmul.f32 %v12680_v26, %v17126_v58 }
 0x931   : >> { %v12684_v42 = vpop.eup %12683  ;;  %12701 = vrcp.f32 %v7976_v63  ;;  %v10389_v4 = vmul.f32 -1.442695, %v17251_v45  ;;  %v10473_v14 = vcombine.high %v18845_v54, %v18844_v33  ;;  %v17266_v49 = vmul.f32 %v12682_v6, %v17129_v0 }
 0x932   : >> { %v12686_v48 = vpop.eup %12685  ;;  %v17261_v8 = vmul.f32 %v12684_v42, %v17133_v44  ;;  %12703 = vpow2.f32 %v10390_v1 }
 0x933   : >> { %v12688_v7 = vpop.eup %12687  ;;  %v17269_v63 = vmul.f32 %v12686_v48, %v17137_v29  ;;  %12705 = vpow2.f32 %v10388_v34  ;;  %v11382_v2 = vpop.f32.mrb[92].mxu0 }
 0x934   : >> { %v12690_v5 = vpop.eup %12689  ;;  %v7981_v26 = vadd.f32 1.0, %v12688_v7  ;;  %12707 = vpow2.f32 %v10391_v59  ;;  %v17274_v44 = vadd.f32 %v11382_v2, %v16841_v53  ;;  %v7384_v1 = vpop.f32.mrb[93].mxu0 }
 0x935   : >> { %v12692_v42 = vpop.eup %12691  ;;  %v7979_v6 = vadd.f32 1.0, %v12690_v5  ;;  %12709 = vpow2.f32 %v10389_v4  ;;  %v17279_v29 = vadd.f32 %v7384_v1, %v16841_v53  ;;  %v11383_v34 = vpop.f32.mrb[94].mxu0  ;;  %8776 = vmatmul.mubr.bf16.gmra.mrb[156].mxu0 %v10465_v28 }
 0x936   : >> { %v12694_v48 = vpop.eup %12693  ;;  %12711 = vrcp.f32 %v7981_v26  ;;  %v7982_v58 = vadd.f32 1.0, %v12692_v42  ;;  %v10394_v7 = vmul.f32 -1.442695, %v17274_v44  ;;  %v17283_v2 = vadd.f32 %v11383_v34, %v16841_v53  ;;  %v7387_v59 = vpop.f32.mrb[95].mxu0  ;;  %8783 = vmatprep.mubr.bf16.mxu0 %v10473_v14  ;;  %v18846_v14 = vld [vmem:[#allocation307_spill] sm:$0xff] }
 0x937   : >> { %12713 = vrcp.f32 %v7979_v6  ;;  %v7980_v20 = vadd.f32 1.0, %v12694_v48  ;;  %v10392_v5 = vmul.f32 -1.442695, %v17279_v29  ;;  %v17287_v4 = vadd.f32 %v7387_v59, %v16841_v53  ;;  %v18848_v48 = vld [vmem:[#allocation303_spill] sm:$0xff] }
 0x938   : >> { %v12696_v1 = vpop.eup %12695  ;;  %12715 = vrcp.f32 %v7982_v58  ;;  %v10395_v28 = vmul.f32 -1.442695, %v17283_v2  ;;  %v10472_v34 = vcombine.low %v18845_v54, %v18844_v33  ;;  %v18847_v6 = vmov %v18846_v14 }
 0x939   : >> { %v12698_v26 = vpop.eup %12697  ;;  %12717 = vrcp.f32 %v7980_v20  ;;  %v10393_v42 = vmul.f32 -1.442695, %v17287_v4  ;;  %v10480_v22 = vcombine.high %v18848_v48, %v18846_v14  ;;  %v8313_v59 = vmul.f32 %v12696_v1, %v17166_v16 }
 0x93a   : >> { %v12700_v0 = vpop.eup %12699  ;;  %12719 = vpow2.f32 %v10394_v7  ;;  %v8311_v20 = vmul.f32 %v12698_v26, %v17171_v60 }
 0x93b   : >> { %v12702_v43 = vpop.eup %12701  ;;  %v8314_v52 = vmul.f32 %v12700_v0, %v17175_v10  ;;  %12721 = vpow2.f32 %v10392_v5  ;;  %v11386_v58 = vpop.f32.mrb[96].mxu0 }
 0x93c   : >> { %v12704_v56 = vpop.eup %12703  ;;  %v8312_v57 = vmul.f32 %v12702_v43, %v17179_v31  ;;  %12723 = vpow2.f32 %v10395_v28  ;;  %v17300_v33 = vadd.f32 %v11386_v58, %v16841_v53  ;;  %v7400_v7 = vpop.f32.mrb[97].mxu0  ;;  %v10479_v58 = vcombine.low %v18848_v48, %v18847_v6 }
 0x93d   : >> { %v12706_v54 = vpop.eup %12705  ;;  %v7985_v19 = vadd.f32 1.0, %v12704_v56  ;;  %12725 = vpow2.f32 %v10393_v42  ;;  %v17303_v14 = vadd.f32 %v7400_v7, %v16841_v53  ;;  %v11387_v16 = vpop.f32.mrb[98].mxu0  ;;  %8784 = vmatmul.mubr.bf16.gmra.mrb[160].mxu0 %v10472_v34  ;;  %v8400_v10 = vpack.c.bf16 %v8314_v52, %v8313_v59 }
 0x93e   : >> { %v12708_v0 = vpop.eup %12707  ;;  %v7983_v5 = vadd.f32 1.0, %v12706_v54  ;;  %v17306_v60 = vadd.f32 %v11387_v16, %v16841_v53  ;;  %v7403_v31 = vpop.f32.mrb[99].mxu0  ;;  %v8399_v43 = vpack.c.bf16 %v8312_v57, %v8311_v20  ;;  %8791 = vmatprep.mubr.bf16.mxu0 %v10480_v22  ;;  %v10398_v56 = vmul.f32 -1.442695, %v17300_v33 }
 0x93f   : >> { %v12710_v1 = vpop.eup %12709  ;;  %12727 = vrcp.f32 %v7985_v19  ;;  %v7986_v28 = vadd.f32 1.0, %v12708_v0  ;;  %v17310_v26 = vadd.f32 %v7403_v31, %v16841_v53  ;;  %v10396_v52 = vmul.f32 -1.442695, %v17303_v14  ;;  %v18850_v0 = vld [vmem:[#allocation315_spill] sm:$0xff] }
 0x940   : >> { %v12712_v42 = vpop.eup %12711  ;;  %12729 = vrcp.f32 %v7983_v5  ;;  %v7984_v34 = vadd.f32 1.0, %v12710_v1  ;;  %10822 = vmatprep.subr.bf16.mxu0 %v8399_v43  ;;  %v10399_v59 = vmul.f32 -1.442695, %v17306_v60  ;;  %v18849_v57 = vpack.c.bf16 %v17156_v36, %v17153_v40  ;;  %v18851_v5 = vld [vmem:[#allocation311_spill] sm:$0xff] }
 0x941   : >> { %v12714_v54 = vpop.eup %12713  ;;  %12731 = vrcp.f32 %v7986_v28  ;;  %v10397_v22 = vmul.f32 -1.442695, %v17310_v26  ;;  %v8317_v7 = vmul.f32 %v12712_v42, %v17202_v30  ;;  %v10487_v31 = vcombine.high %v18851_v5, %v18850_v0 }
 0x942   : >> { %10823 = vmatpush3.bf16.msra.mxu0 %v18849_v57  ;;  %v12716_v19 = vpop.eup %12715  ;;  %12733 = vrcp.f32 %v7984_v34  ;;  %v8315_v40 = vmul.f32 %v12714_v54, %v17207_v35 }
 0x943   : >> { %10824 = vmatprep.subr.bf16.mxu0 %v8400_v10  ;;  %v12718_v20 = vpop.eup %12717  ;;  %v8318_v16 = vmul.f32 %v12716_v19, %v17211_v41  ;;  %12735 = vpow2.f32 %v10398_v56  ;;  %v18852_v41 = vpack.c.bf16 %v17148_v32, %v17145_v37 }
 0x944   : >> { %v12720_v43 = vpop.eup %12719  ;;  %v8316_v36 = vmul.f32 %v12718_v20, %v17215_v47  ;;  %12737 = vpow2.f32 %v10396_v52  ;;  %v11390_v1 = vpop.f32.mrb[100].mxu0 }
 0x945   : >> { %v12722_v10 = vpop.eup %12721  ;;  %v7989_v28 = vadd.f32 1.0, %v12720_v43  ;;  %12739 = vpow2.f32 %v10399_v59  ;;  %v17327_v34 = vadd.f32 %v11390_v1, %v16841_v53  ;;  %v7416_v30 = vpop.f32.mrb[101].mxu0  ;;  %v8402_v56 = vpack.c.bf16 %v8318_v16, %v8317_v7  ;;  %8792 = vmatmul.mubr.bf16.gmra.mrb[164].mxu0 %v10479_v58 }
 0x946   : >> { %10825 = vmatpush3.bf16.msra.mxu0 %v18852_v41  ;;  %v12724_v42 = vpop.eup %12723  ;;  %v7987_v57 = vadd.f32 1.0, %v12722_v10  ;;  %12741 = vpow2.f32 %v10397_v22  ;;  %v17333_v35 = vadd.f32 %v7416_v30, %v16841_v53  ;;  %v11391_v47 = vpop.f32.mrb[102].mxu0  ;;  %v8401_v52 = vpack.c.bf16 %v8316_v36, %v8315_v40  ;;  %8799 = vmatprep.mubr.bf16.mxu0 %v10487_v31  ;;  %v18854_v10 = vld [vmem:[#allocation323_spill] sm:$0xff] }
 0x947   : >> { %v12726_v54 = vpop.eup %12725  ;;  %12743 = vrcp.f32 %v7989_v28  ;;  %v7990_v59 = vadd.f32 1.0, %v12724_v42  ;;  %v10402_v19 = vmul.f32 -1.442695, %v17327_v34  ;;  %v17337_v20 = vadd.f32 %v11391_v47, %v16841_v53  ;;  %v7419_v37 = vpop.f32.mrb[103].mxu0  ;;  %v18855_v28 = vld [vmem:[#allocation319_spill] sm:$0xff] }
 0x948   : >> { %12745 = vrcp.f32 %v7987_v57  ;;  %v7988_v32 = vadd.f32 1.0, %v12726_v54  ;;  %v10400_v22 = vmul.f32 -1.442695, %v17333_v35  ;;  %v17341_v7 = vadd.f32 %v7419_v37, %v16841_v53  ;;  %10826 = vmatprep.subr.bf16.mxu0 %v8401_v52 }
 0x949   : >> { %v12728_v58 = vpop.eup %12727  ;;  %12747 = vrcp.f32 %v7990_v59  ;;  %v10403_v16 = vmul.f32 -1.442695, %v17337_v20  ;;  %v18853_v43 = vpack.c.bf16 %v17195_v51, %v17192_v15  ;;  %v10486_v36 = vcombine.low %v18851_v5, %v18850_v0 }
 0x94a   : >> { %v12730_v40 = vpop.eup %12729  ;;  %12749 = vrcp.f32 %v7988_v32  ;;  %v10401_v31 = vmul.f32 -1.442695, %v17341_v7  ;;  %v18856_v30 = vmov %v18855_v28  ;;  %v10494_v41 = vcombine.high %v18855_v28, %v18854_v10 }
 0x94b   : >> { %10827 = vmatpush3.bf16.msra.mxu0 %v18853_v43  ;;  %v12732_v1 = vpop.eup %12731  ;;  %12751 = vpow2.f32 %v10402_v19  ;;  %v8321_v57 = vmul.f32 %v12728_v58, %v17238_v3  ;;  %v8319_v52 = vmul.f32 %v12730_v40, %v17243_v23  ;;  %v18857_v19 = vpack.c.bf16 %v17187_v50, %v17184_v39 }
 0x94c   : >> { %10828 = vmatprep.subr.bf16.mxu0 %v8402_v56  ;;  %v12734_v42 = vpop.eup %12733  ;;  %v8322_v47 = vmul.f32 %v12732_v1, %v17247_v61  ;;  %12753 = vpow2.f32 %v10400_v22  ;;  %v11394_v15 = vpop.f32.mrb[104].mxu0 }
 0x94d   : >> { %v12736_v51 = vpop.eup %12735  ;;  %v8320_v56 = vmul.f32 %v12734_v42, %v17251_v45  ;;  %12755 = vpow2.f32 %v10403_v16  ;;  %v17357_v54 = vadd.f32 %v11394_v15, %v16841_v53  ;;  %v7432_v59 = vpop.f32.mrb[105].mxu0  ;;  %8800 = vmatmul.mubr.bf16.gmra.mrb[168].mxu0 %v10486_v36 }
 0x94e   : >> { %v12738_v37 = vpop.eup %12737  ;;  %v7993_v3 = vadd.f32 1.0, %v12736_v51  ;;  %12757 = vpow2.f32 %v10401_v31  ;;  %v17363_v61 = vadd.f32 %v7432_v59, %v16841_v53  ;;  %v11395_v32 = vpop.f32.mrb[106].mxu0  ;;  %v8404_v23 = vpack.c.bf16 %v8322_v47, %v8321_v57  ;;  %8807 = vmatprep.mubr.bf16.mxu0 %v10494_v41 }
 0x94f   : >> { %10829 = vmatpush3.bf16.msra.mxu0 %v18857_v19  ;;  %v12740_v22 = vpop.eup %12739  ;;  %v7991_v45 = vadd.f32 1.0, %v12738_v37  ;;  %v17366_v58 = vadd.f32 %v11395_v32, %v16841_v53  ;;  %v7435_v16 = vpop.f32.mrb[107].mxu0  ;;  %v8403_v43 = vpack.c.bf16 %v8320_v56, %v8319_v52  ;;  %v10406_v50 = vmul.f32 -1.442695, %v17357_v54  ;;  %v18859_v37 = vld [vmem:[#allocation268_spill] sm:$0xff] }
 0x950   : >> { %v12742_v40 = vpop.eup %12741  ;;  %12759 = vrcp.f32 %v7993_v3  ;;  %v7994_v39 = vadd.f32 1.0, %v12740_v22  ;;  %v17370_v31 = vadd.f32 %v7435_v16, %v16841_v53  ;;  %v10404_v28 = vmul.f32 -1.442695, %v17363_v61  ;;  %v18860_v3 = vld [vmem:[#allocation264_spill] sm:$0xff] }
 0x951   : >> { %v12744_v1 = vpop.eup %12743  ;;  %12761 = vrcp.f32 %v7991_v45  ;;  %v7992_v36 = vadd.f32 1.0, %v12742_v40  ;;  %10830 = vmatprep.subr.bf16.mxu0 %v8403_v43  ;;  %v10407_v57 = vmul.f32 -1.442695, %v17366_v58  ;;  %v18858_v41 = vpack.c.bf16 %v17233_v62, %v17230_v55 }
 0x952   : >> { %v12746_v42 = vpop.eup %12745  ;;  %12763 = vrcp.f32 %v7994_v39  ;;  %v10405_v15 = vmul.f32 -1.442695, %v17370_v31  ;;  %v10493_v51 = vcombine.low %v18856_v30, %v18854_v10  ;;  %v8325_v56 = vmul.f32 %v12744_v1, %v17274_v44 }
 0x953   : >> { %10831 = vmatpush3.bf16.msra.mxu0 %v18858_v41  ;;  %v12748_v47 = vpop.eup %12747  ;;  %12765 = vrcp.f32 %v7992_v36  ;;  %v10447_v32 = vcombine.high %v18860_v3, %v18859_v37 }
 0x954   : >> { %10832 = vmatprep.subr.bf16.mxu0 %v8404_v23  ;;  %v12750_v52 = vpop.eup %12749  ;;  %v8326_v59 = vmul.f32 %v12748_v47, %v17283_v2  ;;  %12767 = vpow2.f32 %v10406_v50  ;;  %v11398_v19 = vpop.f32.mrb[108].mxu0  ;;  %v18861_v2 = vpack.c.bf16 %v17225_v46, %v17222_v18 }
 0x955   : >> { %v12752_v55 = vpop.eup %12751  ;;  %v8324_v62 = vmul.f32 %v12750_v52, %v17287_v4  ;;  %12769 = vpow2.f32 %v10404_v28  ;;  %v17386_v22 = vadd.f32 %v11398_v19, %v16841_v53  ;;  %v7448_v23 = vpop.f32.mrb[109].mxu0  ;;  %v8323_v4 = vmul.f32 %v12746_v42, %v17279_v29  ;;  %8808 = vmatmul.mubr.bf16.gmra.mrb[172].mxu0 %v10493_v51 }
 0x956   : >> { %v12754_v45 = vpop.eup %12753  ;;  %v7997_v16 = vadd.f32 1.0, %v12752_v55  ;;  %12771 = vpow2.f32 %v10407_v57  ;;  %v17389_v44 = vadd.f32 %v7448_v23, %v16841_v53  ;;  %v11399_v43 = vpop.f32.mrb[110].mxu0  ;;  %v8406_v40 = vpack.c.bf16 %v8326_v59, %v8325_v56  ;;  %8848 = vmatprep.mubr.bf16.mxu0 %v10447_v32 }
 0x957   : >> { %10833 = vmatpush3.bf16.msra.mxu0 %v18861_v2  ;;  %v12756_v39 = vpop.eup %12755  ;;  %v7995_v50 = vadd.f32 1.0, %v12754_v45  ;;  %12773 = vpow2.f32 %v10405_v15  ;;  %v17396_v1 = vadd.f32 %v11399_v43, %v16841_v53  ;;  %v7451_v36 = vpop.f32.mrb[111].mxu0  ;;  %v10410_v41 = vmul.f32 -1.442695, %v17386_v22 }
 0x958   : >> { %v12758_v28 = vpop.eup %12757  ;;  %12775 = vrcp.f32 %v7997_v16  ;;  %v7998_v57 = vadd.f32 1.0, %v12756_v39  ;;  %v17400_v18 = vadd.f32 %v7451_v36, %v16841_v53  ;;  %v10408_v29 = vmul.f32 -1.442695, %v17389_v44 }
 0x959   : >> { %12777 = vrcp.f32 %v7995_v50  ;;  %v7996_v46 = vadd.f32 1.0, %v12758_v28  ;;  %v8405_v42 = vpack.c.bf16 %v8324_v62, %v8323_v4  ;;  %v10411_v15 = vmul.f32 -1.442695, %v17396_v1 }
 0x95a   : >> { %v12760_v47 = vpop.eup %12759  ;;  %12779 = vrcp.f32 %v7998_v57  ;;  %v10409_v51 = vmul.f32 -1.442695, %v17400_v18  ;;  %v18862_v59 = vpack.c.bf16 %v17269_v63, %v17266_v49  ;;  %v10446_v4 = vcombine.low %v18860_v3, %v18859_v37  ;;  %v18864_v57 = vld [vmem:[#allocation276_spill] sm:$0xff] }
 0x95b   : >> { %v12762_v52 = vpop.eup %12761  ;;  %12781 = vrcp.f32 %v7996_v46  ;;  %10834 = vmatprep.subr.bf16.mxu0 %v8405_v42  ;;  %v17409_v55 = vmul.f32 %v12760_v47, %v17300_v33  ;;  %v18863_v36 = vpack.c.bf16 %v17261_v8, %v17258_v38 }
 0x95c   : >> { %v12764_v56 = vpop.eup %12763  ;;  %12783 = vpow2.f32 %v10410_v41  ;;  %10835 = vmatpush3.bf16.msra.mxu0 %v18862_v59  ;;  %v11402_v19 = vpop.f32.mrb[112].mxu0  ;;  %v17418_v2 = vmul.f32 %v12762_v52, %v17303_v14  ;;  %v18865_v41 = vld [vmem:[#allocation272_spill] sm:$0xff] }
 0x95d   : >> { %v12766_v32 = vpop.eup %12765  ;;  %v17412_v62 = vmul.f32 %v12764_v56, %v17306_v60  ;;  %12785 = vpow2.f32 %v10408_v29  ;;  %10836 = vmatprep.subr.bf16.mxu0 %v8406_v40  ;;  %v17415_v23 = vadd.f32 %v11402_v19, %v16841_v53  ;;  %v7464_v45 = vpop.f32.mrb[113].mxu0  ;;  %v10454_v46 = vcombine.high %v18865_v41, %v18864_v57 }
 0x95e   : >> { %v12768_v16 = vpop.eup %12767  ;;  %v17421_v49 = vmul.f32 %v12766_v32, %v17310_v26  ;;  %12787 = vpow2.f32 %v10411_v15  ;;  %v17424_v33 = vadd.f32 %v7464_v45, %v16841_v53  ;;  %v11403_v63 = vpop.f32.mrb[114].mxu0  ;;  %v10453_v45 = vcombine.low %v18865_v41, %v18864_v57 }
 0x95f   : >> { %v12770_v60 = vpop.eup %12769  ;;  %v8001_v40 = vadd.f32 1.0, %v12768_v16  ;;  %12789 = vpow2.f32 %v10409_v51  ;;  %v7467_v39 = vpop.f32.mrb[115].mxu0  ;;  %v17436_v28 = vadd.f32 %v11403_v63, %v16841_v53  ;;  %v10414_v47 = vmul.f32 -1.442695, %v17415_v23 }
 0x960   : >> { %v12772_v14 = vpop.eup %12771  ;;  %v7999_v50 = vadd.f32 1.0, %v12770_v60  ;;  %10837 = vmatpush3.bf16.msra.mxu0 %v18863_v36  ;;  %v17442_v15 = vadd.f32 %v7467_v39, %v16841_v53  ;;  %v10412_v38 = vmul.f32 -1.442695, %v17424_v33 }
 0x961   : >> { %v12774_v29 = vpop.eup %12773  ;;  %12791 = vrcp.f32 %v8001_v40  ;;  %v8002_v42 = vadd.f32 1.0, %v12772_v14  ;;  %v10415_v56 = vmul.f32 -1.442695, %v17436_v28 }
 0x962   : >> { %v12776_v52 = vpop.eup %12775  ;;  %12793 = vrcp.f32 %v7999_v50  ;;  %v8000_v51 = vadd.f32 1.0, %v12774_v29  ;;  %v10413_v19 = vmul.f32 -1.442695, %v17442_v15 }
 0x963   : >> { %v12778_v8 = vpop.eup %12777  ;;  %12795 = vrcp.f32 %v8002_v42  ;;  %8849 = vmatmul.mubr.bf16.vlgmr.msra.gmra.mrb[176].mxu0 %v10446_v4  ;;  %v17450_v63 = vmul.f32 %v12776_v52, %v17327_v34  ;;  %v18867_v52 = vld [vmem:[#allocation280_spill] sm:$0xff] }
 0x964   : >> { %v12780_v59 = vpop.eup %12779  ;;  %12797 = vrcp.f32 %v8000_v51  ;;  %v11406_v32 = vpop.f32.mrb[116].mxu0  ;;  %8856 = vmatprep.mubr.bf16.mxu0 %v10454_v46  ;;  %v17459_v14 = vmul.f32 %v12778_v8, %v17333_v35 }
 0x965   : >> { %v12782_v16 = vpop.eup %12781  ;;  %v17453_v60 = vmul.f32 %v12780_v59, %v17337_v20  ;;  %12799 = vpow2.f32 %v10414_v47  ;;  %v17456_v40 = vadd.f32 %v11406_v32, %v16841_v53  ;;  %v7480_v39 = vpop.f32.mrb[117].mxu0  ;;  %v18866_v47 = vld [vmem:[#allocation284_spill] sm:$0xff] }
 0x966   : >> { %v12784_v4 = vpop.eup %12783  ;;  %v17462_v50 = vmul.f32 %v12782_v16, %v17341_v7  ;;  %12801 = vpow2.f32 %v10412_v38  ;;  %v17465_v36 = vadd.f32 %v7480_v39, %v16841_v53  ;;  %v11407_v34 = vpop.f32.mrb[118].mxu0  ;;  %v10461_v51 = vcombine.high %v18867_v52, %v18866_v47 }
 0x967   : >> { %v12786_v46 = vpop.eup %12785  ;;  %v8005_v29 = vadd.f32 1.0, %v12784_v4  ;;  %12803 = vpow2.f32 %v10415_v56  ;;  %v7483_v42 = vpop.f32.mrb[119].mxu0  ;;  %v10418_v38 = vmul.f32 -1.442695, %v17456_v40  ;;  %v17475_v16 = vadd.f32 %v11407_v34, %v16841_v53 }
 0x968   : >> { %v12788_v35 = vpop.eup %12787  ;;  %v8003_v8 = vadd.f32 1.0, %v12786_v46  ;;  %12805 = vpow2.f32 %v10413_v19  ;;  %v17478_v56 = vadd.f32 %v7483_v42, %v16841_v53  ;;  %v10416_v4 = vmul.f32 -1.442695, %v17465_v36 }
 0x969   : >> { %v12790_v59 = vpop.eup %12789  ;;  %12807 = vrcp.f32 %v8005_v29  ;;  %v8006_v32 = vadd.f32 1.0, %v12788_v35  ;;  %v10419_v46 = vmul.f32 -1.442695, %v17475_v16 }
 0x96a   : >> { %12809 = vrcp.f32 %v8003_v8  ;;  %v8004_v39 = vadd.f32 1.0, %v12790_v59  ;;  %v10417_v29 = vmul.f32 -1.442695, %v17478_v56  ;;  %v10460_v59 = vcombine.low %v18867_v52, %v18866_v47 }
 0x96b   : >> { %v12792_v20 = vpop.eup %12791  ;;  %12811 = vrcp.f32 %v8006_v32  ;;  %8857 = vmatmul.mubr.bf16.gmra.mrb[180].mxu0 %v10453_v45 }
 0x96c   : >> { %v12794_v19 = vpop.eup %12793  ;;  %12813 = vrcp.f32 %v8004_v39  ;;  %v11410_v35 = vpop.f32.mrb[120].mxu0  ;;  %8864 = vmatprep.mubr.bf16.mxu0 %v10461_v51  ;;  %v17484_v7 = vmul.f32 %v12792_v20, %v17357_v54 }
 0x96d   : >> { %v12796_v34 = vpop.eup %12795  ;;  %12815 = vpow2.f32 %v10418_v38  ;;  %v17487_v42 = vadd.f32 %v11410_v35, %v16841_v53  ;;  %v7496_v8 = vpop.f32.mrb[121].mxu0  ;;  %v17492_v45 = vmul.f32 %v12794_v19, %v17363_v61 }
 0x96e   : >> { %v12798_v32 = vpop.eup %12797  ;;  %v17495_v39 = vmul.f32 %v12796_v34, %v17366_v58  ;;  %12817 = vpow2.f32 %v10416_v4  ;;  %v17498_v51 = vadd.f32 %v7496_v8, %v16841_v53  ;;  %v11411_v54 = vpop.f32.mrb[122].mxu0  ;;  %v18868_v34 = vld [vmem:[#allocation292_spill] sm:$0xff] }
 0x96f   : >> { %v12800_v20 = vpop.eup %12799  ;;  %v17501_v38 = vmul.f32 %v12798_v32, %v17370_v31  ;;  %12819 = vpow2.f32 %v10419_v46  ;;  %v10422_v35 = vmul.f32 -1.442695, %v17487_v42  ;;  %v17505_v43 = vadd.f32 %v11411_v54, %v16841_v53  ;;  %v7499_v61 = vpop.f32.mrb[123].mxu0  ;;  %v18869_v8 = vld [vmem:[#allocation288_spill] sm:$0xff] }
 0x970   : >> { %v12802_v19 = vpop.eup %12801  ;;  %v8009_v4 = vadd.f32 1.0, %v12800_v20  ;;  %12821 = vpow2.f32 %v10417_v29  ;;  %v10468_v26 = vcombine.high %v18869_v8, %v18868_v34  ;;  %v10420_v3 = vmul.f32 -1.442695, %v17498_v51 }
 0x971   : >> { %v12804_v0 = vpop.eup %12803  ;;  %v8007_v46 = vadd.f32 1.0, %v12802_v19  ;;  %12823 = vpow2.f32 %v10422_v35  ;;  %v17515_v5 = vadd.f32 %v7499_v61, %v16841_v53  ;;  %v10423_v20 = vmul.f32 -1.442695, %v17505_v43 }
 0x972   : >> { %v12806_v32 = vpop.eup %12805  ;;  %12825 = vrcp.f32 %v8009_v4  ;;  %v8010_v54 = vadd.f32 1.0, %v12804_v0  ;;  %v10467_v61 = vcombine.low %v18869_v8, %v18868_v34 }
 0x973   : >> { %v12808_v58 = vpop.eup %12807  ;;  %12827 = vrcp.f32 %v8007_v46  ;;  %v8008_v29 = vadd.f32 1.0, %v12806_v32  ;;  %8865 = vmatmul.mubr.bf16.gmra.mrb[184].mxu0 %v10460_v59  ;;  %v10421_v31 = vmul.f32 -1.442695, %v17515_v5  ;;  %v18870_v46 = vld [vmem:[#allocation300_spill] sm:$0xff] }
 0x974   : >> { %v12810_v6 = vpop.eup %12809  ;;  %12829 = vrcp.f32 %v8010_v54  ;;  %v11414_v19 = vpop.f32.mrb[124].mxu0  ;;  %8872 = vmatprep.mubr.bf16.mxu0 %v10468_v26  ;;  %v18871_v32 = vld [vmem:[#allocation296_spill] sm:$0xff]  ;;  %v17527_v59 = vmul.f32 %v12808_v58, %v17386_v22 }
 0x975   : >> { %v12812_v35 = vpop.eup %12811  ;;  %12831 = vrcp.f32 %v8008_v29  ;;  %v17520_v0 = vadd.f32 %v11414_v19, %v16841_v53  ;;  %v7512_v4 = vpop.f32.mrb[125].mxu0  ;;  %v10475_v10 = vcombine.high %v18871_v32, %v18870_v46  ;;  %v17530_v54 = vmul.f32 %v12810_v6, %v17389_v44 }
 0x976   : >> { %v12814_v30 = vpop.eup %12813  ;;  %v17533_v26 = vmul.f32 %v12812_v35, %v17396_v1  ;;  %12833 = vpow2.f32 %v10420_v3  ;;  %v11415_v29 = vpop.f32.mrb[126].mxu0  ;;  %v17540_v34 = vadd.f32 %v7512_v4, %v16841_v53 }
 0x977   : >> { %v12816_v19 = vpop.eup %12815  ;;  %v17536_v37 = vmul.f32 %v12814_v30, %v17400_v18  ;;  %12835 = vpow2.f32 %v10423_v20  ;;  %v10426_v8 = vmul.f32 -1.442695, %v17520_v0  ;;  %v7515_v22 = vpop.f32.mrb[127].mxu0  ;;  %v17545_v3 = vadd.f32 %v11415_v29, %v16841_v53 }
 0x978   : >> { %v12818_v58 = vpop.eup %12817  ;;  %v8013_v44 = vadd.f32 1.0, %v12816_v19  ;;  %12837 = vpow2.f32 %v10421_v31  ;;  %v17550_v4 = vadd.f32 %v7515_v22, %v16841_v53  ;;  %v10424_v31 = vmul.f32 -1.442695, %v17540_v34 }
 0x979   : >> { %v12820_v1 = vpop.eup %12819  ;;  %v8011_v18 = vadd.f32 1.0, %v12818_v58  ;;  %12839 = vpow2.f32 %v10426_v8  ;;  %v10427_v47 = vmul.f32 -1.442695, %v17545_v3 }
 0x97a   : >> { %v12822_v20 = vpop.eup %12821  ;;  %12841 = vrcp.f32 %v8013_v44  ;;  %v8014_v35 = vadd.f32 1.0, %v12820_v1  ;;  %v10425_v58 = vmul.f32 -1.442695, %v17550_v4 }
 0x97b   : >> { %v12824_v41 = vpop.eup %12823  ;;  %12843 = vrcp.f32 %v8011_v18  ;;  %v8012_v6 = vadd.f32 1.0, %v12822_v20  ;;  %8873 = vmatmul.mubr.bf16.gmra.mrb[188].mxu0 %v10467_v61  ;;  %v18872_v20 = vld [vmem:[#allocation308_spill] sm:$0xff] }
 0x97c   : >> { %v12826_v29 = vpop.eup %12825  ;;  %12845 = vrcp.f32 %v8014_v35  ;;  %v8017_v19 = vadd.f32 1.0, %v12824_v41  ;;  %v11418_v30 = vpop.f32.mrb[128].mxu0  ;;  %8880 = vmatprep.mubr.bf16.mxu0 %v10475_v10  ;;  %v10474_v41 = vcombine.low %v18871_v32, %v18870_v46  ;;  %v18873_v35 = vld [vmem:[#allocation304_spill] sm:$0xff] }
 0x97d   : >> { %v12828_v8 = vpop.eup %12827  ;;  %12847 = vrcp.f32 %v8012_v6  ;;  %v17556_v22 = vadd.f32 %v11418_v30, %v16841_v53  ;;  %v7528_v44 = vpop.f32.mrb[129].mxu0  ;;  %v8345_v18 = vmul.f32 %v12826_v29, %v17415_v23  ;;  %v10482_v48 = vcombine.high %v18873_v35, %v18872_v20 }
 0x97e   : >> { %v12830_v1 = vpop.eup %12829  ;;  %12849 = vrcp.f32 %v8017_v19  ;;  %v11419_v61 = vpop.f32.mrb[130].mxu0  ;;  %v17566_v30 = vadd.f32 %v7528_v44, %v16841_v53  ;;  %v8343_v23 = vmul.f32 %v12828_v8, %v17424_v33 }
 0x97f   : >> { %v12832_v10 = vpop.eup %12831  ;;  %v8346_v6 = vmul.f32 %v12830_v1, %v17436_v28  ;;  %12851 = vpow2.f32 %v10424_v31  ;;  %v10430_v52 = vmul.f32 -1.442695, %v17556_v22  ;;  %v7531_v57 = vpop.f32.mrb[131].mxu0  ;;  %v17571_v19 = vadd.f32 %v11419_v61, %v16841_v53 }
 0x980   : >> { %v12834_v27 = vpop.eup %12833  ;;  %v8344_v29 = vmul.f32 %v12832_v10, %v17442_v15  ;;  %12853 = vpow2.f32 %v10427_v47  ;;  %v17574_v28 = vadd.f32 %v7531_v57, %v16841_v53  ;;  %v10428_v15 = vmul.f32 -1.442695, %v17566_v30  ;;  %v18875_v10 = vld [vmem:[#allocation316_spill] sm:$0xff] }
 0x981   : >> { %v12836_v32 = vpop.eup %12835  ;;  %v8015_v46 = vadd.f32 1.0, %v12834_v27  ;;  %12855 = vpow2.f32 %v10425_v58  ;;  %v8416_v31 = vpack.c.bf16 %v8346_v6, %v8345_v18  ;;  %v10431_v27 = vmul.f32 -1.442695, %v17571_v19  ;;  %v18876_v6 = vld [vmem:[#allocation312_spill] sm:$0xff] }
 0x982   : >> { %v12838_v1 = vpop.eup %12837  ;;  %v8018_v44 = vadd.f32 1.0, %v12836_v32  ;;  %12857 = vpow2.f32 %v10430_v52  ;;  %v8415_v12 = vpack.c.bf16 %v8344_v29, %v8343_v23  ;;  %v10429_v32 = vmul.f32 -1.442695, %v17574_v28 }
 0x983   : >> { %v12840_v9 = vpop.eup %12839  ;;  %12859 = vrcp.f32 %v8015_v46  ;;  %v8016_v33 = vadd.f32 1.0, %v12838_v1  ;;  %8881 = vmatmul.mubr.bf16.gmra.mrb[192].mxu0 %v10474_v41  ;;  %v18874_v52 = vpack.c.bf16 %v17421_v49, %v17418_v2  ;;  %v10489_v2 = vcombine.high %v18876_v6, %v18875_v10 }
 0x984   : >> { %v12842_v47 = vpop.eup %12841  ;;  %12861 = vrcp.f32 %v8018_v44  ;;  %v8021_v8 = vadd.f32 1.0, %v12840_v9  ;;  %10886 = vmatprep.subr.bf16.mxu0 %v8415_v12  ;;  %v11422_v58 = vpop.f32.mrb[132].mxu0  ;;  %8888 = vmatprep.mubr.bf16.mxu0 %v10482_v48  ;;  %v10481_v9 = vcombine.low %v18873_v35, %v18872_v20 }
 0x985   : >> { %v12844_v57 = vpop.eup %12843  ;;  %12863 = vrcp.f32 %v8016_v33  ;;  %10887 = vmatpush3.bf16.msra.mxu0 %v18874_v52  ;;  %v17583_v46 = vadd.f32 %v11422_v58, %v16841_v53  ;;  %v7544_v18 = vpop.f32.mrb[133].mxu0  ;;  %v8349_v12 = vmul.f32 %v12842_v47, %v17456_v40 }
 0x986   : >> { %v12846_v61 = vpop.eup %12845  ;;  %12865 = vrcp.f32 %v8021_v8  ;;  %10888 = vmatprep.subr.bf16.mxu0 %v8416_v31  ;;  %v17589_v48 = vadd.f32 %v7544_v18, %v16841_v53  ;;  %v11423_v41 = vpop.f32.mrb[134].mxu0  ;;  %v8347_v23 = vmul.f32 %v12844_v57, %v17465_v36  ;;  %v18877_v36 = vpack.c.bf16 %v17412_v62, %v17409_v55 }
 0x987   : >> { %v12848_v49 = vpop.eup %12847  ;;  %v8350_v29 = vmul.f32 %v12846_v61, %v17475_v16  ;;  %12867 = vpow2.f32 %v10428_v15  ;;  %v10434_v1 = vmul.f32 -1.442695, %v17583_v46  ;;  %v7547_v44 = vpop.f32.mrb[135].mxu0  ;;  %v17599_v47 = vadd.f32 %v11423_v41, %v16841_v53 }
 0x988   : >> { %v12850_v33 = vpop.eup %12849  ;;  %v8348_v40 = vmul.f32 %v12848_v49, %v17478_v56  ;;  %12869 = vpow2.f32 %v10431_v27  ;;  %v10432_v31 = vmul.f32 -1.442695, %v17589_v48  ;;  %v17605_v16 = vadd.f32 %v7547_v44, %v16841_v53 }
 0x989   : >> { %v12852_v8 = vpop.eup %12851  ;;  %12871 = vpow2.f32 %v10429_v32  ;;  %10889 = vmatpush3.bf16.msra.mxu0 %v18877_v36  ;;  %v8418_v15 = vpack.c.bf16 %v8350_v29, %v8349_v12  ;;  %v10435_v32 = vmul.f32 -1.442695, %v17599_v47  ;;  %v18878_v49 = vpack.c.bf16 %v17462_v50, %v17459_v14 }
 0x98a   : >> { %v12854_v58 = vpop.eup %12853  ;;  %v8019_v57 = vadd.f32 1.0, %v12852_v8  ;;  %12873 = vpow2.f32 %v10434_v1  ;;  %v8417_v56 = vpack.c.bf16 %v8348_v40, %v8347_v23  ;;  %v10433_v12 = vmul.f32 -1.442695, %v17605_v16  ;;  %v18879_v40 = vld [vmem:[#allocation324_spill] sm:$0xff] }
 0x98b   : >> { %v12856_v27 = vpop.eup %12855  ;;  %v8022_v52 = vadd.f32 1.0, %v12854_v58  ;;  %12875 = vpow2.f32 %v10432_v31  ;;  %8889 = vmatmul.mubr.bf16.gmra.mrb[196].mxu0 %v10481_v9  ;;  %v10488_v44 = vcombine.low %v18876_v6, %v18875_v10  ;;  %v18880_v31 = vld [vmem:[#allocation320_spill] sm:$0xff]  ;;  %v8353_v14 = vmul.f32 %v12850_v33, %v17487_v42 }
 0x98c   : >> { %v12858_v18 = vpop.eup %12857  ;;  %12877 = vrcp.f32 %v8019_v57  ;;  %v8020_v61 = vadd.f32 1.0, %v12856_v27  ;;  %10890 = vmatprep.subr.bf16.mxu0 %v8417_v56  ;;  %v11426_v55 = vpop.f32.mrb[136].mxu0  ;;  %8896 = vmatprep.mubr.bf16.mxu0 %v10489_v2  ;;  %v10496_v8 = vcombine.high %v18880_v31, %v18879_v40 }
 0x98d   : >> { %v12860_v62 = vpop.eup %12859  ;;  %12879 = vrcp.f32 %v8022_v52  ;;  %v8025_v41 = vadd.f32 1.0, %v12858_v18  ;;  %10891 = vmatpush3.bf16.msra.mxu0 %v18878_v49  ;;  %v17613_v23 = vadd.f32 %v11426_v55, %v16841_v53  ;;  %v7560_v9 = vpop.f32.mrb[137].mxu0 }
 0x98e   : >> { %v12862_v29 = vpop.eup %12861  ;;  %12881 = vrcp.f32 %v8020_v61  ;;  %10892 = vmatprep.subr.bf16.mxu0 %v8418_v15  ;;  %v17616_v1 = vadd.f32 %v7560_v9, %v16841_v53  ;;  %v11427_v2 = vpop.f32.mrb[138].mxu0  ;;  %v8351_v56 = vmul.f32 %v12860_v62, %v17498_v51  ;;  %v18881_v61 = vpack.c.bf16 %v17453_v60, %v17450_v63 }
 0x98f   : >> { %v12864_v36 = vpop.eup %12863  ;;  %v8354_v50 = vmul.f32 %v12862_v29, %v17505_v43  ;;  %12883 = vrcp.f32 %v8025_v41  ;;  %v10438_v58 = vmul.f32 -1.442695, %v17613_v23  ;;  %v7563_v57 = vpop.f32.mrb[139].mxu0  ;;  %v17632_v43 = vadd.f32 %v11427_v2, %v16841_v53 }
 0x990   : >> { %v12866_v15 = vpop.eup %12865  ;;  %v8352_v27 = vmul.f32 %v12864_v36, %v17515_v5  ;;  %12885 = vpow2.f32 %v10435_v32  ;;  %v10436_v52 = vmul.f32 -1.442695, %v17616_v1  ;;  %v17635_v51 = vadd.f32 %v7563_v57, %v16841_v53 }
 0x991   : >> { %v12868_v18 = vpop.eup %12867  ;;  %12887 = vpow2.f32 %v10433_v12  ;;  %10893 = vmatpush3.bf16.msra.mxu0 %v18881_v61  ;;  %v8420_v42 = vpack.c.bf16 %v8354_v50, %v8353_v14  ;;  %v10439_v9 = vmul.f32 -1.442695, %v17632_v43  ;;  %v18882_v29 = vpack.c.bf16 %v17501_v38, %v17492_v45 }
 0x992   : >> { %v12870_v33 = vpop.eup %12869  ;;  %v8023_v55 = vadd.f32 1.0, %v12868_v18  ;;  %12889 = vpow2.f32 %v10438_v58  ;;  %v8419_v5 = vpack.c.bf16 %v8352_v27, %v8351_v56  ;;  %v10437_v50 = vmul.f32 -1.442695, %v17635_v51  ;;  %v18883_v27 = vld [vmem:[#allocation269_spill] sm:$0xff] }
 0x993   : >> { %v12872_v32 = vpop.eup %12871  ;;  %v8026_v62 = vadd.f32 1.0, %v12870_v33  ;;  %12891 = vpow2.f32 %v10436_v52  ;;  %8897 = vmatmul.mubr.bf16.gmra.mrb[200].mxu0 %v10488_v44  ;;  %v10495_v38 = vcombine.low %v18880_v31, %v18879_v40  ;;  %v18884_v52 = vmov %v18883_v27  ;;  %v18885_v18 = vld [vmem:[#allocation265_spill] sm:$0xff] }
 0x994   : >> { %v12874_v41 = vpop.eup %12873  ;;  %12893 = vrcp.f32 %v8023_v55  ;;  %v8024_v12 = vadd.f32 1.0, %v12872_v32  ;;  %10894 = vmatprep.subr.bf16.mxu0 %v8419_v5  ;;  %v11430_v63 = vpop.f32.mrb[140].mxu0  ;;  %8904 = vmatprep.mubr.bf16.mxu0 %v10496_v8  ;;  %v18886_v61 = vmov %v18885_v18  ;;  %v10449_v33 = vcombine.high %v18885_v18, %v18883_v27 }
 0x995   : >> { %v12876_v60 = vpop.eup %12875  ;;  %12895 = vrcp.f32 %v8026_v62  ;;  %v8029_v49 = vadd.f32 1.0, %v12874_v41  ;;  %10895 = vmatpush3.bf16.msra.mxu0 %v18882_v29  ;;  %v17642_v2 = vadd.f32 %v11430_v63, %v16841_v53  ;;  %v7576_v36 = vpop.f32.mrb[141].mxu0  ;;  %v8357_v5 = vmul.f32 %v12866_v15, %v17520_v0 }
 0x996   : >> { %v12878_v44 = vpop.eup %12877  ;;  %12897 = vrcp.f32 %v8024_v12  ;;  %v8027_v14 = vadd.f32 1.0, %v12876_v60  ;;  %10896 = vmatprep.subr.bf16.mxu0 %v8420_v42  ;;  %v17646_v8 = vadd.f32 %v7576_v36, %v16841_v53  ;;  %v11431_v58 = vpop.f32.mrb[142].mxu0  ;;  %v18887_v63 = vpack.c.bf16 %v17495_v39, %v17484_v7 }
 0x997   : >> { %v12880_v57 = vpop.eup %12879  ;;  %12899 = vrcp.f32 %v8029_v49  ;;  %v10442_v56 = vmul.f32 -1.442695, %v17642_v2  ;;  %v7579_v45 = vpop.f32.mrb[143].mxu0  ;;  %v8355_v41 = vmul.f32 %v12878_v44, %v17540_v34  ;;  %v17662_v60 = vadd.f32 %v11431_v58, %v16841_v53 }
 0x998   : >> { %v12882_v55 = vpop.eup %12881  ;;  %v8358_v42 = vmul.f32 %v12880_v57, %v17545_v3  ;;  %12901 = vrcp.f32 %v8027_v14  ;;  %v10440_v32 = vmul.f32 -1.442695, %v17646_v8  ;;  %v17665_v0 = vadd.f32 %v7579_v45, %v16841_v53 }
 0x999   : >> { %v12884_v62 = vpop.eup %12883  ;;  %v8356_v12 = vmul.f32 %v12882_v55, %v17550_v4  ;;  %12903 = vpow2.f32 %v10439_v9  ;;  %10897 = vmatpush3.bf16.msra.mxu0 %v18887_v63  ;;  %v10443_v39 = vmul.f32 -1.442695, %v17662_v60  ;;  %v18888_v44 = vpack.c.bf16 %v17536_v37, %v17530_v54  ;;  %v18890_v55 = vld [vmem:[#allocation277_spill] sm:$0xff] }
 0x99a   : >> { %v12886_v49 = vpop.eup %12885  ;;  %12905 = vpow2.f32 %v10437_v50  ;;  %v8422_v3 = vpack.c.bf16 %v8358_v42, %v8357_v5  ;;  %v10441_v53 = vmul.f32 -1.442695, %v17665_v0  ;;  %v8361_v58 = vmul.f32 %v12884_v62, %v17556_v22 }
 0x99b   : >> { %v12888_v15 = vpop.eup %12887  ;;  %v8030_v29 = vadd.f32 1.0, %v12886_v49  ;;  %12907 = vpow2.f32 %v10442_v56  ;;  %8905 = vmatmul.mubr.bf16.gmra.mrb[204].mxu0 %v10495_v38  ;;  %v8421_v34 = vpack.c.bf16 %v8356_v12, %v8355_v41  ;;  %v10448_v45 = vcombine.low %v18886_v61, %v18884_v52 }
 0x99c   : >> { %v12890_v4 = vpop.eup %12889  ;;  %v8028_v9 = vadd.f32 1.0, %v12888_v15  ;;  %12909 = vpow2.f32 %v10440_v32  ;;  %8945 = vmatprep.mubr.bf16.mxu0 %v10449_v33  ;;  %v18889_v54 = vpack.c.bf16 %v17533_v26, %v17527_v59 }
 0x99d   : >> { %v12892_v7 = vpop.eup %12891  ;;  %12911 = vrcp.f32 %v8030_v29  ;;  %10898 = vmatprep.subr.bf16.mxu0 %v8421_v34  ;;  %v8033_v56 = vadd.f32 1.0, %v12890_v4 }
 0x99e   : >> { %v12894_v36 = vpop.eup %12893  ;;  %12913 = vrcp.f32 %v8028_v9  ;;  %10899 = vmatpush3.bf16.msra.mxu0 %v18888_v44  ;;  %v8031_v33 = vadd.f32 1.0, %v12892_v7 }
 0x99f   : >> { %v12896_v14 = vpop.eup %12895  ;;  %10900 = vmatprep.subr.bf16.mxu0 %v8422_v3  ;;  %v8359_v27 = vmul.f32 %v12894_v36, %v17566_v30  ;;  %12915 = vpow2.f32 %v10443_v39  ;;  %v18893_v39 = vld [vmem:[#allocation285_spill] sm:$0xff] }
 0x9a0   : >> { %v12898_v50 = vpop.eup %12897  ;;  %v8362_v57 = vmul.f32 %v12896_v14, %v17571_v19  ;;  %12917 = vpow2.f32 %v10441_v53  ;;  %v18891_v19 = vld [vmem:[#allocation273_spill] sm:$0xff] }
 0x9a1   : >> { %v12900_v38 = vpop.eup %12899  ;;  %v8360_v18 = vmul.f32 %v12898_v50, %v17574_v28  ;;  %v18892_v5 = vmov %v18891_v19  ;;  %v10456_v42 = vcombine.high %v18891_v19, %v18890_v55  ;;  %12919 = vrcp.f32 %v8033_v56  ;;  %v18894_v36 = vld [vmem:[#allocation281_spill] sm:$0xff] }
 0x9a2   : >> { %v12902_v37 = vpop.eup %12901  ;;  %10901 = vmatpush3.bf16.msra.mxu0 %v18889_v54  ;;  %v8424_v22 = vpack.c.bf16 %v8362_v57, %v8361_v58  ;;  %12921 = vrcp.f32 %v8031_v33  ;;  %v8365_v49 = vmul.f32 %v12900_v38, %v17583_v46  ;;  %v10455_v9 = vcombine.low %v18892_v5, %v18890_v55  ;;  %v18895_v33 = vld [vmem:[#allocation293_spill] sm:$0xff] }
 0x9a3   : >> { %v12904_v32 = vpop.eup %12903  ;;  %v8423_v62 = vpack.c.bf16 %v8360_v18, %v8359_v27  ;;  %v8363_v29 = vmul.f32 %v12902_v37, %v17589_v48  ;;  %v10463_v53 = vcombine.high %v18894_v36, %v18893_v39  ;;  %v10462_v38 = vcombine.low %v18894_v36, %v18893_v39  ;;  %v18896_v37 = vld [vmem:[#allocation289_spill] sm:$0xff] }
 0x9a4   : >> { %v12906_v41 = vpop.eup %12905  ;;  %v8034_v12 = vadd.f32 1.0, %v12904_v32  ;;  %v10470_v54 = vcombine.high %v18896_v37, %v18895_v33 }
 0x9a5   : >> { %v12908_v30 = vpop.eup %12907  ;;  %v8032_v28 = vadd.f32 1.0, %v12906_v41  ;;  %8946 = vmatmul.mubr.bf16.vlgmr.msra.gmra.mrb[208].mxu0 %v10448_v45  ;;  %11432 = vmatprep.subr.bf16.mxu0 %v8423_v62 }
 0x9a6   : >> { %v12910_v63 = vpop.eup %12909  ;;  %12923 = vrcp.f32 %v8034_v12  ;;  %11433 = vmatpush3.bf16.msra.mxu0 %v8423_v62  ;;  %8953 = vmatprep.mubr.bf16.mxu0 %v10456_v42  ;;  %v8037_v15 = vadd.f32 1.0, %v12908_v30  ;;  %v18897_v30 = vld [vmem:[#allocation301_spill] sm:$0xff] }
 0x9a7   : >> { %v12912_v59 = vpop.eup %12911  ;;  %12925 = vrcp.f32 %v8032_v28  ;;  %11434 = vmatprep.subr.bf16.mxu0 %v8424_v22  ;;  %v8035_v4 = vadd.f32 1.0, %v12910_v63  ;;  %v18898_v28 = vld [vmem:[#allocation297_spill] sm:$0xff] }
 0x9a8   : >> { %v12914_v26 = vpop.eup %12913  ;;  %v8366_v3 = vmul.f32 %v12912_v59, %v17599_v47  ;;  %12927 = vrcp.f32 %v8037_v15  ;;  %v18899_v63 = vmov %v18898_v28  ;;  %v10477_v59 = vcombine.high %v18898_v28, %v18897_v30 }
 0x9a9   : >> { %v8364_v34 = vmul.f32 %v12914_v26, %v17605_v16  ;;  %v12916_v44 = vpop.eup %12915  ;;  %12929 = vrcp.f32 %v8035_v4 }
 0x9aa   : >> { %11435 = vmatpush3.bf16.msra.mxu0 %v8424_v22  ;;  %v8426_v7 = vpack.c.bf16 %v8366_v3, %v8365_v49  ;;  %v12918_v50 = vpop.eup %12917  ;;  %v8038_v46 = vadd.f32 1.0, %v12916_v44  ;;  %v18901_v3 = vld [vmem:[#allocation305_spill] sm:$0xff] }
 0x9ab   : >> { %v8425_v14 = vpack.c.bf16 %v8364_v34, %v8363_v29  ;;  %v8036_v47 = vadd.f32 1.0, %v12918_v50  ;;  %v12920_v48 = vpop.eup %12919  ;;  %v18903_v29 = vld [vmem:[#allocation313_spill] sm:$0xff]  ;;  %v18907_v50 = vld [vmem:[#allocation270_spill] sm:$0xff] }
 0x9ac   : >> { %12931 = vrcp.f32 %v8038_v46  ;;  %v12922_v16 = vpop.eup %12921  ;;  %v8369_v56 = vmul.f32 %v12920_v48, %v17613_v23  ;;  %v18908_v46 = vld [vmem:[#allocation266_spill] sm:$0xff] }
 0x9ad   : >> { %8954 = vmatmul.mubr.bf16.gmra.mrb[212].mxu0 %v10455_v9  ;;  %11436 = vmatprep.subr.bf16.mxu0 %v8425_v14  ;;  %12933 = vrcp.f32 %v8036_v47  ;;  %v8367_v27 = vmul.f32 %v12922_v16, %v17616_v1  ;;  %v18904_v9 = vld [vmem:[#allocation325_spill] sm:$0xff]  ;;  %v10450_v47 = vcombine.low %v18908_v46, %v18907_v50  ;;  %v18909_v48 = vld [vmem:[#allocation278_spill] sm:$0xff] }
 0x9ae   : >> { %11437 = vmatpush3.bf16.msra.mxu0 %v8425_v14  ;;  %8961 = vmatprep.mubr.bf16.mxu0 %v10463_v53  ;;  %v18906_v53 = vld [vmem:[#allocation321_spill] sm:$0xff]  ;;  %v18910_v16 = vld [vmem:[#allocation274_spill] sm:$0xff] }
 0x9af   : >> { %11438 = vmatprep.subr.bf16.mxu0 %v8426_v7  ;;  %v10498_v44 = vcombine.high %v18906_v53, %v18904_v9 }
 0x9b0   : >> { %v12924_v58 = vpop.eup %12923 }
 0x9b1   : >> { %v12926_v57 = vpop.eup %12925  ;;  %v8370_v45 = vmul.f32 %v12924_v58, %v17632_v43  ;;  %v10457_v58 = vcombine.low %v18910_v16, %v18909_v48 }
 0x9b2   : >> { %v8368_v18 = vmul.f32 %v12926_v57, %v17635_v51  ;;  %11439 = vmatpush3.bf16.msra.mxu0 %v8426_v7  ;;  %v12928_v42 = vpop.eup %12927  ;;  %v10469_v51 = vcombine.low %v18896_v37, %v18895_v33  ;;  %v18905_v7 = vmov %v18904_v9  ;;  %v18911_v57 = vld [vmem:[#allocation286_spill] sm:$0xff] }
 0x9b3   : >> { %v8428_v22 = vpack.c.bf16 %v8370_v45, %v8369_v56  ;;  %v12930_v23 = vpop.eup %12929  ;;  %v8373_v62 = vmul.f32 %v12928_v42, %v17642_v2  ;;  %v10476_v2 = vcombine.low %v18899_v63, %v18897_v30  ;;  %v10497_v14 = vcombine.low %v18906_v53, %v18905_v7  ;;  %v18912_v56 = vld [vmem:[#allocation282_spill] sm:$0xff] }
 0x9b4   : >> { %v8427_v19 = vpack.c.bf16 %v8368_v18, %v8367_v27  ;;  %v8371_v41 = vmul.f32 %v12930_v23, %v17646_v8  ;;  %v10464_v45 = vcombine.low %v18912_v56, %v18911_v57  ;;  %v18914_v27 = vld [vmem:[#allocation290_spill] sm:$0xff] }
 0x9b5   : >> { %8962 = vmatmul.mubr.bf16.gmra.mrb[216].mxu0 %v10462_v38  ;;  %v18913_v38 = vld [vmem:[#allocation294_spill] sm:$0xff] }
 0x9b6   : >> { %11440 = vmatprep.subr.bf16.mxu0 %v8427_v19  ;;  %8969 = vmatprep.mubr.bf16.mxu0 %v10470_v54  ;;  %v12932_v43 = vpop.eup %12931  ;;  %v10471_v18 = vcombine.low %v18914_v27, %v18913_v38  ;;  %v18915_v54 = vld [vmem:[#allocation302_spill] sm:$0xff]  ;;  %v12015_v27 = vld [vmem:[%s15991_s3 + $0x10] ss:$24 sps:$4 sm:$0xff]  }
 0x9b7   : >> { %11441 = vmatpush3.bf16.msra.mxu0 %v8427_v19  ;;  %v12934_v32 = vpop.eup %12933  ;;  %v8374_v1 = vmul.f32 %v12932_v43, %v17662_v60  ;;  %v18900_v60 = vld [vmem:[#allocation309_spill] sm:$0xff]  ;;  %v18917_v23 = vld [vmem:[#allocation310_spill] sm:$0xff]  ;;  %11464 = vmatprep.subr.bf16.mxu1 %v12015_v27 }
 0x9b8   : >> { %11442 = vmatprep.subr.bf16.mxu0 %v8428_v22  ;;  %v8372_v12 = vmul.f32 %v12934_v32, %v17665_v0  ;;  %v10484_v15 = vcombine.high %v18901_v3, %v18900_v60  ;;  %v10483_v8 = vcombine.low %v18901_v3, %v18900_v60  ;;  %v18902_v0 = vld [vmem:[#allocation317_spill] sm:$0xff]  ;;  %v18918_v43 = vld [vmem:[#allocation306_spill] sm:$0xff]  ;;  %11465 = vmatpush3.bf16.msra.mxu1 %v12015_v27  ;;  %v12027_v27 = vld [vmem:[%s15991_s3 + $0xd0] ss:$24 sps:$4 sm:$0xff]  }
 0x9b9   : >> { %v8430_v26 = vpack.c.bf16 %v8374_v1, %v8373_v62  ;;  %v10491_v34 = vcombine.high %v18903_v29, %v18902_v0  ;;  %v10490_v4 = vcombine.low %v18903_v29, %v18902_v0  ;;  %v10485_v32 = vcombine.low %v18918_v43, %v18917_v23  ;;  %v18919_v1 = vld [vmem:[#allocation318_spill] sm:$0xff] }
 0x9ba   : >> { %v8429_v49 = vpack.c.bf16 %v8372_v12, %v8371_v41 }
 0x9bb   : >> { %11443 = vmatpush3.bf16.msra.mxu0 %v8428_v22  ;;  %v18916_v22 = vld [vmem:[#allocation298_spill] sm:$0xff] }
 0x9bc   : >> { %11444 = vmatprep.subr.bf16.mxu0 %v8429_v49  ;;  %v10478_v19 = vcombine.low %v18916_v22, %v18915_v54 }
 0x9bd   : >> { %8970 = vmatmul.mubr.bf16.gmra.mrb[220].mxu0 %v10469_v51  ;;  %v18920_v51 = vld [vmem:[#allocation314_spill] sm:$0xff] }
 0x9be   : >> { %8977 = vmatprep.mubr.bf16.mxu0 %v10477_v59  ;;  %v10492_v41 = vcombine.low %v18920_v51, %v18919_v1 }
 0x9bf   : >> { %11445 = vmatpush3.bf16.msra.mxu0 %v8429_v49 }
 0x9c0   : >> { %11446 = vmatprep.subr.bf16.mxu0 %v8430_v26 }
 0x9c3   : >> { %11447 = vmatpush3.bf16.msra.mxu0 %v8430_v26 }
 0x9c5   : >> { %8978 = vmatmul.mubr.bf16.gmra.mrb[224].mxu0 %v10476_v2  ;;  %v18921_v2 = vld [vmem:[#allocation326_spill] sm:$0xff] }
 0x9c6   : >> { %8985 = vmatprep.mubr.bf16.mxu0 %v10484_v15  ;;  %v18922_v15 = vld [vmem:[#allocation322_spill] sm:$0xff] }
 0x9cd   : >> { %8986 = vmatmul.mubr.bf16.gmra.mrb[228].mxu0 %v10483_v8  ;;  %v10499_v8 = vcombine.low %v18922_v15, %v18921_v2 }
 0x9ce   : >> { %8993 = vmatprep.mubr.bf16.mxu0 %v10491_v34 }
 0x9d5   : >> { %8994 = vmatmul.mubr.bf16.gmra.mrb[232].mxu0 %v10490_v4 }
 0x9d6   : >> { %9001 = vmatprep.mubr.bf16.mxu0 %v10498_v44 }
 0x9dd   : >> { %9002 = vmatmul.mubr.bf16.gmra.mrb[236].mxu0 %v10497_v14 }
 0x9de   : >> { %11448 = vmatprep.mubr.bf16.mxu0 %v10450_v47 }
 0x9e5   : >> { %11449 = vmatmul.mubr.bf16.vlgmr.msra.gmra.mrb[240].mxu0 %v10457_v58 }
 0x9e6   : >> { %11452 = vmatprep.mubr.bf16.mxu0 %v10464_v45 }
 0x9ed   : >> { %11453 = vmatmul.mubr.bf16.gmra.mrb[244].mxu0 %v10471_v18  ;;  %v17753_v18 = vld [vmem:[%s15991_s3 + $0x14] ss:$24 sps:$4 sm:$0xff]  }
 0x9ee   : >> { %11456 = vmatprep.mubr.bf16.mxu0 %v10478_v19  ;;  %11496 = vmatprep.subr.bf16.mxu0 %v17753_v18 }
 0x9ef   : >> { %11497 = vmatpush3.bf16.msra.mxu0 %v17753_v18 }
 0x9f0   : >> { %v10774_v42 = vpop.f32.mrb[144].mxu0 }
 0x9f1   : >> { %v10775_v62 = vpop.f32.mrb[145].mxu0 }
 0x9f2   : >> { %v17735_v12 = vadd.f32 %v10775_v62, %v10774_v42  ;;  %v10777_v28 = vpop.f32.mrb[146].mxu0  ;;  %v17763_v62 = vld [vmem:[%s15991_s3 + $0x44] ss:$24 sps:$4 sm:$0xff]  }
 0x9f3   : >> { %v10778_v59 = vpop.f32.mrb[147].mxu0  ;;  %11498 = vmatprep.subr.bf16.mxu0 %v17763_v62 }
 0x9f4   : >> { %v17737_v26 = vadd.f32 %v10778_v59, %v10777_v28  ;;  %11499 = vmatpush3.bf16.msra.mxu0 %v17763_v62  ;;  %v12021_v59 = vld [vmem:[%s15991_s3 + $0x70] ss:$24 sps:$4 sm:$0xff]  }
 0x9f5   : >> { %11457 = vmatmul.mubr.bf16.gmra.mrb[248].mxu0 %v10485_v32  ;;  %v12018_v32 = vld [vmem:[%s15991_s3 + $0x40] ss:$24 sps:$4 sm:$0xff]  }
 0x9f6   : >> { %11460 = vmatprep.mubr.bf16.mxu0 %v10492_v41  ;;  %11466 = vmatprep.subr.bf16.mxu1 %v12018_v32 }
 0x9f7   : >> { %11467 = vmatpush3.bf16.msra.mxu1 %v12018_v32 }
 0x9f8   : >> { %v10780_v49 = vpop.f32.mrb[148].mxu0  ;;  %11468 = vmatprep.subr.bf16.mxu1 %v12021_v59 }
 0x9f9   : >> { %v10781_v34 = vpop.f32.mrb[149].mxu0 }
 0x9fa   : >> { %v17741_v4 = vadd.f32 %v10781_v34, %v10780_v49  ;;  %v10783_v9 = vpop.f32.mrb[150].mxu0  ;;  %v17771_v49 = vld [vmem:[%s15991_s3 + $0x74] ss:$24 sps:$4 sm:$0xff]  }
 0x9fb   : >> { %v10784_v44 = vpop.f32.mrb[151].mxu0  ;;  %11500 = vmatprep.subr.bf16.mxu0 %v17771_v49  ;;  %11469 = vmatpush3.bf16.msra.mxu1 %v12021_v59 }
 0x9fc   : >> { %v17743_v14 = vadd.f32 %v10784_v44, %v10783_v9  ;;  %11501 = vmatpush3.bf16.msra.mxu0 %v17771_v49 }
 0x9fd   : >> { %11461 = vmatmul.mubr.bf16.gmra.mrb[252].mxu0 %v10499_v8 }
 0xa00   : >> { %v10786_v50 = vpop.f32.mrb[152].mxu0 }
 0xa01   : >> { %v10787_v46 = vpop.f32.mrb[153].mxu0 }
 0xa02   : >> { %v17745_v47 = vadd.f32 %v10787_v46, %v10786_v50  ;;  %v10789_v48 = vpop.f32.mrb[154].mxu0  ;;  %v12024_v50 = vld [vmem:[%s15991_s3 + $0xa0] ss:$24 sps:$4 sm:$0xff]   ;;  %v17781_v46 = vld [vmem:[%s15991_s3 + $0xa4] ss:$24 sps:$4 sm:$0xff]  }
 0xa03   : >> { %v10790_v16 = vpop.f32.mrb[155].mxu0  ;;  %11470 = vmatprep.subr.bf16.mxu1 %v12024_v50  ;;  %11502 = vmatprep.subr.bf16.mxu0 %v17781_v46 }
 0xa04   : >> { %v17747_v58 = vadd.f32 %v10790_v16, %v10789_v48  ;;  %11471 = vmatpush3.bf16.msra.mxu1 %v12024_v50  ;;  %11503 = vmatpush3.bf16.msra.mxu0 %v17781_v46 }
 0xa05   : >> { %11472 = vmatprep.subr.bf16.mxu1 %v12027_v27 }
 0xa08   : >> { %v10792_v57 = vpop.f32.mrb[156].mxu0  ;;  %11473 = vmatpush3.bf16.msra.mxu1 %v12027_v27 }
 0xa09   : >> { %v10793_v56 = vpop.f32.mrb[157].mxu0 }
 0xa0a   : >> { %v17749_v45 = vadd.f32 %v10793_v56, %v10792_v57  ;;  %v10795_v38 = vpop.f32.mrb[158].mxu0 }
 0xa0b   : >> { %v10796_v54 = vpop.f32.mrb[159].mxu0 }
 0xa0c   : >> { %v17755_v22 = vadd.f32 %v10796_v54, %v10795_v38  ;;  %v17791_v54 = vld [vmem:[%s15991_s3 + $0xd4] ss:$24 sps:$4 sm:$0xff]  }
 0xa0d   : >> { %11504 = vmatprep.subr.bf16.mxu0 %v17791_v54 }
 0xa0e   : >> { %11505 = vmatpush3.bf16.msra.mxu0 %v17791_v54 }
 0xa10   : >> { %v10798_v19 = vpop.f32.mrb[160].mxu0 }
 0xa11   : >> { %v10799_v42 = vpop.f32.mrb[161].mxu0 }
 0xa12   : >> { %v17759_v23 = vadd.f32 %v10799_v42, %v10798_v19  ;;  %v10801_v43 = vpop.f32.mrb[162].mxu0 }
 0xa13   : >> { %v10802_v1 = vpop.f32.mrb[163].mxu0 }
 0xa14   : >> { %v17765_v51 = vadd.f32 %v10802_v1, %v10801_v43 }
 0xa18   : >> { %v10804_v41 = vpop.f32.mrb[164].mxu0 }
 0xa19   : >> { %v10805_v28 = vpop.f32.mrb[165].mxu0 }
 0xa1a   : >> { %v17773_v2 = vadd.f32 %v10805_v28, %v10804_v41  ;;  %v10807_v15 = vpop.f32.mrb[166].mxu0  ;;  %v12030_v41 = vld [vmem:[%s15991_s3 + $0x100] ss:$24 sps:$4 sm:$0xff]   ;;  %v17801_v28 = vld [vmem:[%s15991_s3 + $0x104] ss:$24 sps:$4 sm:$0xff]  }
 0xa1b   : >> { %v10808_v8 = vpop.f32.mrb[167].mxu0  ;;  %11474 = vmatprep.subr.bf16.mxu1 %v12030_v41  ;;  %11506 = vmatprep.subr.bf16.mxu0 %v17801_v28 }
 0xa1c   : >> { %v17776_v34 = vadd.f32 %v10808_v8, %v10807_v15  ;;  %11475 = vmatpush3.bf16.msra.mxu1 %v12030_v41  ;;  %11507 = vmatpush3.bf16.msra.mxu0 %v17801_v28 }
 0xa20   : >> { %v10810_v9 = vpop.f32.mrb[168].mxu0 }
 0xa21   : >> { %v10811_v44 = vpop.f32.mrb[169].mxu0 }
 0xa22   : >> { %v17783_v48 = vadd.f32 %v10811_v44, %v10810_v9  ;;  %v10813_v16 = vpop.f32.mrb[170].mxu0  ;;  %v12033_v44 = vld [vmem:[%s15991_s3 + $0x130] ss:$24 sps:$4 sm:$0xff]  }
 0xa23   : >> { %v10814_v57 = vpop.f32.mrb[171].mxu0  ;;  %11476 = vmatprep.subr.bf16.mxu1 %v12033_v44 }
 0xa24   : >> { %v17786_v56 = vadd.f32 %v10814_v57, %v10813_v16  ;;  %11477 = vmatpush3.bf16.msra.mxu1 %v12033_v44 }
 0xa28   : >> { %v10816_v38 = vpop.f32.mrb[172].mxu0 }
 0xa29   : >> { %v10817_v19 = vpop.f32.mrb[173].mxu0 }
 0xa2a   : >> { %v17793_v42 = vadd.f32 %v10817_v19, %v10816_v38  ;;  %v10819_v43 = vpop.f32.mrb[174].mxu0  ;;  %v17810_v38 = vld [vmem:[%s15991_s3 + $0x134] ss:$24 sps:$4 sm:$0xff]   ;;  %v12036_v19 = vld [vmem:[%s15991_s3 + $0x160] ss:$24 sps:$4 sm:$0xff]  }
 0xa2b   : >> { %v10820_v32 = vpop.f32.mrb[175].mxu0  ;;  %11508 = vmatprep.subr.bf16.mxu0 %v17810_v38  ;;  %11478 = vmatprep.subr.bf16.mxu1 %v12036_v19 }
 0xa2c   : >> { %v17797_v1 = vadd.f32 %v10820_v32, %v10819_v43  ;;  %11509 = vmatpush3.bf16.msra.mxu0 %v17810_v38  ;;  %v17819_v32 = vld [vmem:[%s15991_s3 + $0x164] ss:$24 sps:$4 sm:$0xff]   ;;  %11479 = vmatpush3.bf16.msra.mxu1 %v12036_v19 }
 0xa2d   : >> { %11530 = vmatprep.subr.bf16.mxu1 %v17753_v18  ;;  %11510 = vmatprep.subr.bf16.mxu0 %v17819_v32 }
 0xa30   : >> { %11511 = vmatpush3.bf16.msra.mxu0 %v17819_v32 }
 0xa36   : >> { %v10838_v59 = vpop.f32.mrb[176].mxu0 }
 0xa37   : >> { %v10839_v15 = vpop.f32.mrb[177].mxu0 }
 0xa38   : >> { %v10840_v8 = vadd.f32 %v10839_v15, %v10838_v59  ;;  %v10841_v9 = vpop.f32.mrb[178].mxu0 }
 0xa39   : >> { %v10842_v50 = vpop.f32.mrb[179].mxu0 }
 0xa3a   : >> { %v17807_v16 = vadd.f32 %v10840_v8, %v17735_v12  ;;  %v10843_v57 = vadd.f32 %v10842_v50, %v10841_v9 }
 0xa3c   : >> { %v17813_v27 = vadd.f32 %v10843_v57, %v17737_v26 }
 0xa3e   : >> { %v10844_v43 = vpop.f32.mrb[180].mxu0 }
 0xa3f   : >> { %v10845_v41 = vpop.f32.mrb[181].mxu0 }
 0xa40   : >> { %v10846_v12 = vadd.f32 %v10845_v41, %v10844_v43  ;;  %v10847_v59 = vpop.f32.mrb[182].mxu0 }
 0xa41   : >> { %v10848_v15 = vpop.f32.mrb[183].mxu0 }
 0xa42   : >> { %v17825_v26 = vadd.f32 %v10846_v12, %v17741_v4  ;;  %v10849_v8 = vadd.f32 %v10848_v15, %v10847_v59 }
 0xa44   : >> { %v17828_v9 = vadd.f32 %v10849_v8, %v17743_v14 }
 0xa46   : >> { %v10850_v44 = vpop.f32.mrb[184].mxu0 }
 0xa47   : >> { %v10851_v50 = vpop.f32.mrb[185].mxu0 }
 0xa48   : >> { %v10852_v57 = vadd.f32 %v10851_v50, %v10850_v44  ;;  %v10853_v19 = vpop.f32.mrb[186].mxu0 }
 0xa49   : >> { %v10854_v43 = vpop.f32.mrb[187].mxu0 }
 0xa4a   : >> { %v17831_v41 = vadd.f32 %v10852_v57, %v17745_v47  ;;  %v10855_v0 = vadd.f32 %v10854_v43, %v10853_v19 }
 0xa4c   : >> { %v17834_v3 = vadd.f32 %v10855_v0, %v17747_v58 }
 0xa4e   : >> { %v10856_v5 = vpop.f32.mrb[188].mxu0 }
 0xa4f   : >> { %v10857_v6 = vpop.f32.mrb[189].mxu0 }
 0xa50   : >> { %v10858_v4 = vadd.f32 %v10857_v6, %v10856_v5  ;;  %v10859_v12 = vpop.f32.mrb[190].mxu0 }
 0xa51   : >> { %v10860_v59 = vpop.f32.mrb[191].mxu0 }
 0xa52   : >> { %v17837_v14 = vadd.f32 %v10858_v4, %v17749_v45  ;;  %v10861_v15 = vadd.f32 %v10860_v59, %v10859_v12 }
 0xa54   : >> { %v17840_v8 = vadd.f32 %v10861_v15, %v17755_v22 }
 0xa56   : >> { %v10862_v44 = vpop.f32.mrb[192].mxu0 }
 0xa57   : >> { %v10863_v50 = vpop.f32.mrb[193].mxu0 }
 0xa58   : >> { %v10864_v47 = vadd.f32 %v10863_v50, %v10862_v44  ;;  %v10865_v57 = vpop.f32.mrb[194].mxu0 }
 0xa59   : >> { %v10866_v19 = vpop.f32.mrb[195].mxu0 }
 0xa5a   : >> { %v17843_v0 = vadd.f32 %v10864_v47, %v17759_v23  ;;  %v10867_v58 = vadd.f32 %v10866_v19, %v10865_v57 }
 0xa5c   : >> { %v17846_v6 = vadd.f32 %v10867_v58, %v17765_v51 }
 0xa5e   : >> { %v10868_v5 = vpop.f32.mrb[196].mxu0 }
 0xa5f   : >> { %v10869_v43 = vpop.f32.mrb[197].mxu0 }
 0xa60   : >> { %v10870_v45 = vadd.f32 %v10869_v43, %v10868_v5  ;;  %v10871_v4 = vpop.f32.mrb[198].mxu0 }
 0xa61   : >> { %v10872_v12 = vpop.f32.mrb[199].mxu0 }
 0xa62   : >> { %v17849_v22 = vadd.f32 %v10870_v45, %v17773_v2  ;;  %v10873_v59 = vadd.f32 %v10872_v12, %v10871_v4 }
 0xa64   : >> { %v17852_v15 = vadd.f32 %v10873_v59, %v17776_v34 }
 0xa66   : >> { %v10874_v44 = vpop.f32.mrb[200].mxu0 }
 0xa67   : >> { %v10875_v50 = vpop.f32.mrb[201].mxu0 }
 0xa68   : >> { %v10876_v23 = vadd.f32 %v10875_v50, %v10874_v44  ;;  %v10877_v47 = vpop.f32.mrb[202].mxu0 }
 0xa69   : >> { %v10878_v57 = vpop.f32.mrb[203].mxu0 }
 0xa6a   : >> { %v17855_v51 = vadd.f32 %v10876_v23, %v17783_v48  ;;  %v10879_v19 = vadd.f32 %v10878_v57, %v10877_v47 }
 0xa6c   : >> { %v17858_v58 = vadd.f32 %v10879_v19, %v17786_v56 }
 0xa6e   : >> { %v10880_v5 = vpop.f32.mrb[204].mxu0 }
 0xa6f   : >> { %v10881_v43 = vpop.f32.mrb[205].mxu0 }
 0xa70   : >> { %v10882_v2 = vadd.f32 %v10881_v43, %v10880_v5  ;;  %v10883_v45 = vpop.f32.mrb[206].mxu0 }
 0xa71   : >> { %v10884_v4 = vpop.f32.mrb[207].mxu0 }
 0xa72   : >> { %v17861_v34 = vadd.f32 %v10882_v2, %v17793_v42  ;;  %v10885_v12 = vadd.f32 %v10884_v4, %v10883_v45 }
 0xa74   : >> { %v17864_v59 = vadd.f32 %v10885_v12, %v17797_v1 }
 0xa78   : >> { %v10902_v44 = vpop.f32.mrb[208].mxu0 }
 0xa79   : >> { %v10903_v50 = vpop.f32.mrb[209].mxu0 }
 0xa7a   : >> { %v10904_v48 = vadd.f32 %v10903_v50, %v10902_v44  ;;  %v10905_v23 = vpop.f32.mrb[210].mxu0 }
 0xa7b   : >> { %v10906_v47 = vpop.f32.mrb[211].mxu0 }
 0xa7c   : >> { %v10907_v57 = vadd.f32 %v10906_v47, %v10905_v23  ;;  %v8948_v56 = vadd.f32 %v10904_v48, %v17807_v16 }
 0xa7e   : >> { %v17868_v19 = vadd.f32 %v10907_v57, %v17813_v27 }
 0xa80   : >> { %v10908_v5 = vpop.f32.mrb[212].mxu0 }
 0xa81   : >> { %v10909_v43 = vpop.f32.mrb[213].mxu0 }
 0xa82   : >> { %v10910_v7 = vadd.f32 %v10909_v43, %v10908_v5  ;;  %v10911_v42 = vpop.f32.mrb[214].mxu0 }
 0xa83   : >> { %v10912_v2 = vpop.f32.mrb[215].mxu0 }
 0xa84   : >> { %v10913_v45 = vadd.f32 %v10912_v2, %v10911_v42  ;;  %v8956_v1 = vadd.f32 %v10910_v7, %v17825_v26 }
 0xa86   : >> { %v8959_v4 = vadd.f32 %v10913_v45, %v17828_v9 }
 0xa88   : >> { %v10914_v12 = vpop.f32.mrb[216].mxu0 }
 0xa89   : >> { %v10915_v44 = vpop.f32.mrb[217].mxu0 }
 0xa8a   : >> { %v10916_v50 = vadd.f32 %v10915_v44, %v10914_v12  ;;  %v10917_v10 = vpop.f32.mrb[218].mxu0 }
 0xa8b   : >> { %v10918_v23 = vpop.f32.mrb[219].mxu0 }
 0xa8c   : >> { %v10919_v47 = vadd.f32 %v10918_v23, %v10917_v10  ;;  %v8964_v16 = vadd.f32 %v10916_v50, %v17831_v41 }
 0xa8e   : >> { %v8967_v27 = vadd.f32 %v10919_v47, %v17834_v3 }
 0xa90   : >> { %v10920_v48 = vpop.f32.mrb[220].mxu0 }
 0xa91   : >> { %v10921_v57 = vpop.f32.mrb[221].mxu0 }
 0xa92   : >> { %v10922_v5 = vadd.f32 %v10921_v57, %v10920_v48  ;;  %v10923_v43 = vpop.f32.mrb[222].mxu0 }
 0xa93   : >> { %v10924_v20 = vpop.f32.mrb[223].mxu0 }
 0xa94   : >> { %v10925_v42 = vadd.f32 %v10924_v20, %v10923_v43  ;;  %v8972_v7 = vadd.f32 %v10922_v5, %v17837_v14 }
 0xa96   : >> { %v8975_v26 = vadd.f32 %v10925_v42, %v17840_v8 }
 0xa98   : >> { %v10926_v9 = vpop.f32.mrb[224].mxu0 }
 0xa99   : >> { %v10927_v2 = vpop.f32.mrb[225].mxu0 }
 0xa9a   : >> { %v10928_v45 = vadd.f32 %v10927_v2, %v10926_v9  ;;  %v10929_v12 = vpop.f32.mrb[226].mxu0 }
 0xa9b   : >> { %v10930_v44 = vpop.f32.mrb[227].mxu0 }
 0xa9c   : >> { %v10931_v10 = vadd.f32 %v10930_v44, %v10929_v12  ;;  %v8980_v41 = vadd.f32 %v10928_v45, %v17843_v0 }
 0xa9e   : >> { %v8983_v3 = vadd.f32 %v10931_v10, %v17846_v6 }
 0xaa0   : >> { %v10932_v50 = vpop.f32.mrb[228].mxu0 }
 0xaa1   : >> { %v10933_v23 = vpop.f32.mrb[229].mxu0 }
 0xaa2   : >> { %v10934_v47 = vadd.f32 %v10933_v23, %v10932_v50  ;;  %v10935_v48 = vpop.f32.mrb[230].mxu0 }
 0xaa3   : >> { %v10936_v57 = vpop.f32.mrb[231].mxu0 }
 0xaa4   : >> { %v10937_v20 = vadd.f32 %v10936_v57, %v10935_v48  ;;  %v8988_v14 = vadd.f32 %v10934_v47, %v17849_v22 }
 0xaa6   : >> { %v8991_v8 = vadd.f32 %v10937_v20, %v17852_v15 }
 0xaa8   : >> { %v10938_v5 = vpop.f32.mrb[232].mxu0 }
 0xaa9   : >> { %v10939_v43 = vpop.f32.mrb[233].mxu0 }
 0xaaa   : >> { %v10940_v42 = vadd.f32 %v10939_v43, %v10938_v5  ;;  %v10941_v9 = vpop.f32.mrb[234].mxu0 }
 0xaab   : >> { %v10942_v2 = vpop.f32.mrb[235].mxu0 }
 0xaac   : >> { %v10943_v12 = vadd.f32 %v10942_v2, %v10941_v9  ;;  %v8996_v0 = vadd.f32 %v10940_v42, %v17855_v51 }
 0xaae   : >> { %v8999_v6 = vadd.f32 %v10943_v12, %v17858_v58 }
 0xab0   : >> { %v10944_v45 = vpop.f32.mrb[236].mxu0 }
 0xab1   : >> { %v10945_v44 = vpop.f32.mrb[237].mxu0 }
 0xab2   : >> { %v10946_v10 = vadd.f32 %v10945_v44, %v10944_v45  ;;  %v10947_v50 = vpop.f32.mrb[238].mxu0 }
 0xab3   : >> { %v10948_v23 = vpop.f32.mrb[239].mxu0 }
 0xab4   : >> { %v10949_v48 = vadd.f32 %v10948_v23, %v10947_v50  ;;  %v9004_v22 = vadd.f32 %v10946_v10, %v17861_v34 }
 0xab6   : >> { %v9007_v15 = vadd.f32 %v10949_v48, %v17864_v59 }
 0xab8   : >> { %v11450_v47 = vpop.f32.mrb[240].mxu0 }
 0xab9   : >> { %v9053_v57 = vadd.f32 %v11450_v47, %v8956_v1  ;;  %v9044_v20 = vpop.f32.mrb[241].mxu0 }
 0xaba   : >> { %v9045_v5 = vadd.f32 %v9044_v20, %v8948_v56  ;;  %v11451_v43 = vpop.f32.mrb[242].mxu0 }
 0xabb   : >> { %v9056_v9 = vadd.f32 %v11451_v43, %v8959_v4  ;;  %v9047_v2 = vpop.f32.mrb[243].mxu0 }
 0xabc   : >> { %v9048_v51 = vadd.f32 %v9047_v2, %v17868_v19 }
 0xabd   : >> { %v9108_v58 = vpack.c.bf16 %v9056_v9, %v9053_v57 }
 0xabe   : >> { %v9107_v42 = vpack.c.bf16 %v9048_v51, %v9045_v5 }
 0xac0   : >> { %v11454_v12 = vpop.f32.mrb[244].mxu0  ;;  %11480 = vmatprep.mubr.bf16.mxu1 %v9107_v42 }
 0xac1   : >> { %v9069_v45 = vadd.f32 %v11454_v12, %v8972_v7  ;;  %v9060_v44 = vpop.f32.mrb[245].mxu0  ;;  %11481 = vmatmul.mubr.bf16.vlgmr.msra.gmra.mrb[0].mxu1 %v9108_v58 }
 0xac2   : >> { %v9061_v50 = vadd.f32 %v9060_v44, %v8964_v16  ;;  %v11455_v34 = vpop.f32.mrb[246].mxu0  ;;  %11538 = vmatpush3.bf16.msra.mxu1 %v17753_v18 }
 0xac3   : >> { %v9072_v59 = vadd.f32 %v11455_v34, %v8975_v26  ;;  %v9063_v1 = vpop.f32.mrb[247].mxu0  ;;  %11531 = vmatprep.subr.bf16.mxu1 %v17763_v62  ;;  %v9282_v34 = vld [vmem:[%s17901_s21 + $0x20] sm:$0xff] }
 0xac4   : >> { %v9064_v56 = vadd.f32 %v9063_v1, %v8967_v27  ;;  %v9285_v1 = vld [vmem:[%s17901_s21 + $0x38] sm:$0xff] }
 0xac5   : >> { %v9110_v4 = vpack.c.bf16 %v9072_v59, %v9069_v45 }
 0xac6   : >> { %v9109_v10 = vpack.c.bf16 %v9064_v56, %v9061_v50  ;;  %11539 = vmatpush3.bf16.msra.mxu1 %v17763_v62  ;;  %v9284_v50 = vld [vmem:[%s17901_s21 + $0x30] sm:$0xff] }
 0xac7   : >> { %11532 = vmatprep.subr.bf16.mxu1 %v17771_v49 }
 0xac8   : >> { %v11458_v19 = vpop.f32.mrb[248].mxu0  ;;  %11484 = vmatprep.mubr.bf16.mxu1 %v9109_v10  ;;  %v9283_v10 = vld [vmem:[%s17901_s21 + $0x28] sm:$0xff] }
 0xac9   : >> { %v9085_v7 = vadd.f32 %v11458_v19, %v8988_v14  ;;  %v9076_v23 = vpop.f32.mrb[249].mxu0  ;;  %11485 = vmatmul.mubr.bf16.gmra.mrb[4].mxu1 %v9110_v4 }
 0xaca   : >> { %v9077_v16 = vadd.f32 %v9076_v23, %v8980_v41  ;;  %v11459_v48 = vpop.f32.mrb[250].mxu0  ;;  %11540 = vmatpush3.bf16.msra.mxu1 %v17771_v49 }
 0xacb   : >> { %v9088_v18 = vadd.f32 %v11459_v48, %v8991_v8  ;;  %v9079_v26 = vpop.f32.mrb[251].mxu0  ;;  %11533 = vmatprep.subr.bf16.mxu1 %v17781_v46 }
 0xacc   : >> { %v9080_v27 = vadd.f32 %v9079_v26, %v8983_v3 }
 0xacd   : >> { %v9112_v47 = vpack.c.bf16 %v9088_v18, %v9085_v7 }
 0xace   : >> { %v9111_v57 = vpack.c.bf16 %v9080_v27, %v9077_v16  ;;  %11541 = vmatpush3.bf16.msra.mxu1 %v17781_v46  ;;  %v9280_v46 = vld [vmem:[%s17901_s21 + $0x10] sm:$0xff] }
 0xacf   : >> { %11534 = vmatprep.subr.bf16.mxu1 %v17791_v54 }
 0xad0   : >> { %v11462_v62 = vpop.f32.mrb[252].mxu0  ;;  %11488 = vmatprep.mubr.bf16.mxu1 %v9111_v57  ;;  %v9288_v57 = vld [vmem:[%s17901_s21 + $0x50] sm:$0xff] }
 0xad1   : >> { %v9101_v14 = vadd.f32 %v11462_v62, %v9004_v22  ;;  %v9092_v20 = vpop.f32.mrb[253].mxu0  ;;  %11489 = vmatmul.mubr.bf16.gmra.mrb[8].mxu1 %v9112_v47  ;;  %v9279_v22 = vld [vmem:[%s17901_s21 + $0x8] sm:$0xff] }
 0xad2   : >> { %v9093_v41 = vadd.f32 %v9092_v20, %v8996_v0  ;;  %v11463_v5 = vpop.f32.mrb[254].mxu0  ;;  %11542 = vmatpush3.bf16.msra.mxu1 %v17791_v54  ;;  %v9278_v54 = vld [vmem:[%s17901_s21] sm:$0xff]  ;;  %v9281_v0 = vld [vmem:[%s17901_s21 + $0x18] sm:$0xff] }
 0xad3   : >> { %v9104_v49 = vadd.f32 %v11463_v5, %v9007_v15  ;;  %v9095_v8 = vpop.f32.mrb[255].mxu0  ;;  %11535 = vmatprep.subr.bf16.mxu1 %v17801_v28 }
 0xad4   : >> { %v9096_v3 = vadd.f32 %v9095_v8, %v8999_v6 }
 0xad5   : >> { %v9114_v43 = vpack.c.bf16 %v9104_v49, %v9101_v14  ;;  %v9286_v14 = vld [vmem:[%s17901_s21 + $0x40] sm:$0xff]  ;;  %v9289_v49 = vld [vmem:[%s17901_s21 + $0x58] sm:$0xff] }
 0xad6   : >> { %v9113_v9 = vpack.c.bf16 %v9096_v3, %v9093_v41  ;;  %11543 = vmatpush3.bf16.msra.mxu1 %v17801_v28 }
 0xad7   : >> { %11536 = vmatprep.subr.bf16.mxu1 %v17810_v38 }
 0xad8   : >> { %11492 = vmatprep.mubr.bf16.mxu1 %v9113_v9 }
 0xad9   : >> { %11493 = vmatmul.mubr.bf16.gmra.mrb[12].mxu1 %v9114_v43 }
 0xada   : >> { %11544 = vmatpush3.bf16.msra.mxu1 %v17810_v38 }
 0xadb   : >> { %11537 = vmatprep.subr.bf16.mxu1 %v17819_v32 }
 0xade   : >> { %11545 = vmatpush3.bf16.msra.mxu1 %v17819_v32 }
 0xb94   : >> { %v11482_v28 = vpop.f32.mrb[0].mxu1 }
 0xb95   : >> { %v17906_v6 = vadd.f32 %v11482_v28, %v9280_v46  ;;  %v9197_v38 = vpop.f32.mrb[1].mxu1  ;;  %v9287_v46 = vld [vmem:[%s17901_s21 + $0x48] sm:$0xff] }
 0xb96   : >> { %v17909_v15 = vadd.f32 %v9278_v54, %v9197_v38  ;;  %v11483_v32 = vpop.f32.mrb[2].mxu1 }
 0xb97   : >> { %v10511_v2 = vmul.f32 -1.442695, %v17906_v6  ;;  %v17912_v51 = vadd.f32 %v11483_v32, %v9281_v0  ;;  %v9200_v58 = vpop.f32.mrb[3].mxu1 }
 0xb98   : >> { %v10509_v42 = vmul.f32 -1.442695, %v17909_v15  ;;  %v17915_v12 = vadd.f32 %v9279_v22, %v9200_v58 }
 0xb99   : >> { %12935 = vpow2.f32 %v10511_v2  ;;  %v10512_v45 = vmul.f32 -1.442695, %v17912_v51 }
 0xb9a   : >> { %12937 = vpow2.f32 %v10509_v42  ;;  %v10510_v44 = vmul.f32 -1.442695, %v17915_v12 }
 0xb9b   : >> { %12939 = vpow2.f32 %v10512_v45 }
 0xb9c   : >> { %12941 = vpow2.f32 %v10510_v44  ;;  %v11486_v59 = vpop.f32.mrb[4].mxu1 }
 0xb9d   : >> { %v17922_v56 = vadd.f32 %v11486_v59, %v9284_v50  ;;  %v9213_v4 = vpop.f32.mrb[5].mxu1 }
 0xb9e   : >> { %v17925_v19 = vadd.f32 %v9282_v34, %v9213_v4  ;;  %v11487_v7 = vpop.f32.mrb[6].mxu1  ;;  %v9292_v34 = vld [vmem:[%s17901_s21 + $0x70] sm:$0xff] }
 0xb9f   : >> { %v10515_v23 = vmul.f32 -1.442695, %v17922_v56  ;;  %v17928_v16 = vadd.f32 %v11487_v7, %v9285_v1  ;;  %v9216_v48 = vpop.f32.mrb[7].mxu1  ;;  %v9290_v1 = vld [vmem:[%s17901_s21 + $0x60] sm:$0xff] }
 0xba0   : >> { %v10513_v18 = vmul.f32 -1.442695, %v17925_v19  ;;  %v17931_v26 = vadd.f32 %v9283_v10, %v9216_v48 }
 0xba1   : >> { %12943 = vpow2.f32 %v10515_v23  ;;  %v10516_v27 = vmul.f32 -1.442695, %v17928_v16  ;;  %v9293_v23 = vld [vmem:[%s17901_s21 + $0x78] sm:$0xff] }
 0xba2   : >> { %12945 = vpow2.f32 %v10513_v18  ;;  %v10514_v47 = vmul.f32 -1.442695, %v17931_v26 }
 0xba3   : >> { %v12936_v62 = vpop.eup %12935  ;;  %12947 = vpow2.f32 %v10516_v27 }
 0xba4   : >> { %v12938_v20 = vpop.eup %12937  ;;  %v9360_v41 = vadd.f32 1.0, %v12936_v62  ;;  %12949 = vpow2.f32 %v10514_v47  ;;  %v11490_v5 = vpop.f32.mrb[8].mxu1 }
 0xba5   : >> { %v12940_v8 = vpop.eup %12939  ;;  %v9358_v3 = vadd.f32 1.0, %v12938_v20  ;;  %v17938_v43 = vadd.f32 %v11490_v5, %v9288_v57  ;;  %v9229_v9 = vpop.f32.mrb[9].mxu1  ;;  %v9291_v57 = vld [vmem:[%s17901_s21 + $0x68] sm:$0xff] }
 0xba6   : >> { %v12942_v54 = vpop.eup %12941  ;;  %12951 = vrcp.f32 %v9360_v41  ;;  %v9361_v28 = vadd.f32 1.0, %v12940_v8  ;;  %v17941_v0 = vadd.f32 %v9286_v14, %v9229_v9  ;;  %v11491_v38 = vpop.f32.mrb[10].mxu1 }
 0xba7   : >> { %12953 = vrcp.f32 %v9358_v3  ;;  %v9359_v22 = vadd.f32 1.0, %v12942_v54  ;;  %v10519_v32 = vmul.f32 -1.442695, %v17938_v43  ;;  %v17944_v2 = vadd.f32 %v11491_v38, %v9289_v49  ;;  %v9232_v58 = vpop.f32.mrb[11].mxu1 }
 0xba8   : >> { %12955 = vrcp.f32 %v9361_v28  ;;  %v10517_v42 = vmul.f32 -1.442695, %v17941_v0  ;;  %v17947_v45 = vadd.f32 %v9287_v46, %v9232_v58 }
 0xba9   : >> { %12957 = vrcp.f32 %v9359_v22  ;;  %v10520_v44 = vmul.f32 -1.442695, %v17944_v2 }
 0xbaa   : >> { %12959 = vpow2.f32 %v10519_v32  ;;  %v10518_v50 = vmul.f32 -1.442695, %v17947_v45 }
 0xbab   : >> { %v12944_v59 = vpop.eup %12943  ;;  %12961 = vpow2.f32 %v10517_v42 }
 0xbac   : >> { %v12946_v4 = vpop.eup %12945  ;;  %v9364_v10 = vadd.f32 1.0, %v12944_v59  ;;  %12963 = vpow2.f32 %v10520_v44  ;;  %v11494_v7 = vpop.f32.mrb[12].mxu1 }
 0xbad   : >> { %v12948_v48 = vpop.eup %12947  ;;  %v9362_v18 = vadd.f32 1.0, %v12946_v4  ;;  %12965 = vpow2.f32 %v10518_v50  ;;  %v17954_v27 = vadd.f32 %v11494_v7, %v9292_v34  ;;  %v9245_v47 = vpop.f32.mrb[13].mxu1 }
 0xbae   : >> { %v12950_v62 = vpop.eup %12949  ;;  %12967 = vrcp.f32 %v9364_v10  ;;  %v9365_v14 = vadd.f32 1.0, %v12948_v48  ;;  %v17957_v20 = vadd.f32 %v9290_v1, %v9245_v47  ;;  %v11495_v41 = vpop.f32.mrb[14].mxu1 }
 0xbaf   : >> { %12969 = vrcp.f32 %v9362_v18  ;;  %v9363_v5 = vadd.f32 1.0, %v12950_v62  ;;  %v10523_v49 = vmul.f32 -1.442695, %v17954_v27  ;;  %v17960_v8 = vadd.f32 %v11495_v41, %v9293_v23  ;;  %v9248_v3 = vpop.f32.mrb[15].mxu1 }
 0xbb0   : >> { %v12952_v9 = vpop.eup %12951  ;;  %12971 = vrcp.f32 %v9365_v14  ;;  %v10521_v46 = vmul.f32 -1.442695, %v17957_v20  ;;  %v17963_v54 = vadd.f32 %v9291_v57, %v9248_v3 }
 0xbb1   : >> { %v12954_v28 = vpop.eup %12953  ;;  %12973 = vrcp.f32 %v9363_v5  ;;  %v10524_v38 = vmul.f32 -1.442695, %v17960_v8  ;;  %v9408_v42 = vmul.f32 %v12952_v9, %v17906_v6 }
 0xbb2   : >> { %v12956_v22 = vpop.eup %12955  ;;  %12975 = vpow2.f32 %v10523_v49  ;;  %v10522_v32 = vmul.f32 -1.442695, %v17963_v54  ;;  %v9406_v34 = vmul.f32 %v12954_v28, %v17909_v15 }
 0xbb3   : >> { %v12958_v58 = vpop.eup %12957  ;;  %v9409_v44 = vmul.f32 %v12956_v22, %v17912_v51  ;;  %12977 = vpow2.f32 %v10521_v46 }
 0xbb4   : >> { %v12960_v50 = vpop.eup %12959  ;;  %v9407_v59 = vmul.f32 %v12958_v58, %v17915_v12  ;;  %12979 = vpow2.f32 %v10524_v38 }
 0xbb5   : >> { %v12962_v1 = vpop.eup %12961  ;;  %v9423_v4 = vpack.c.bf16 %v9409_v44, %v9408_v42  ;;  %v9368_v10 = vadd.f32 1.0, %v12960_v50  ;;  %12981 = vpow2.f32 %v10522_v32 }
 0xbb6   : >> { %v12964_v7 = vpop.eup %12963  ;;  %v9366_v23 = vadd.f32 1.0, %v12962_v1  ;;  %v9422_v48 = vpack.c.bf16 %v9407_v59, %v9406_v34 }
 0xbb7   : >> { %v12966_v18 = vpop.eup %12965  ;;  %12983 = vrcp.f32 %v9368_v10  ;;  %v9369_v47 = vadd.f32 1.0, %v12964_v7 }
 0xbb8   : >> { %v12968_v6 = vpop.eup %12967  ;;  %12985 = vrcp.f32 %v9366_v23  ;;  %v9367_v51 = vadd.f32 1.0, %v12966_v18  ;;  %11512 = vmatprep.mubr.bf16.mxu0 %v9422_v48 }
 0xbb9   : >> { %v12970_v57 = vpop.eup %12969  ;;  %12987 = vrcp.f32 %v9369_v47  ;;  %11513 = vmatmul.mubr.bf16.vlgmr.msra.gmra.mrb[0].mxu0 %v9423_v4  ;;  %v9412_v62 = vmul.f32 %v12968_v6, %v17922_v56 }
 0xbba   : >> { %v12972_v15 = vpop.eup %12971  ;;  %12989 = vrcp.f32 %v9367_v51  ;;  %v9410_v5 = vmul.f32 %v12970_v57, %v17925_v19  ;;  %v12999_v51 = vld [vmem:[%s16836_s25] sm:$0xff] }
 0xbbb   : >> { %v12974_v12 = vpop.eup %12973  ;;  %v9413_v14 = vmul.f32 %v12972_v15, %v17928_v16 }
 0xbbc   : >> { %v12976_v41 = vpop.eup %12975  ;;  %v9411_v49 = vmul.f32 %v12974_v12, %v17931_v26 }
 0xbbd   : >> { %v12978_v3 = vpop.eup %12977  ;;  %v9425_v9 = vpack.c.bf16 %v9413_v14, %v9412_v62  ;;  %v9372_v46 = vadd.f32 1.0, %v12976_v41 }
 0xbbe   : >> { %v12980_v28 = vpop.eup %12979  ;;  %v9370_v38 = vadd.f32 1.0, %v12978_v3  ;;  %v9424_v22 = vpack.c.bf16 %v9411_v49, %v9410_v5 }
 0xbbf   : >> { %v12982_v32 = vpop.eup %12981  ;;  %12991 = vrcp.f32 %v9372_v46  ;;  %v9373_v58 = vadd.f32 1.0, %v12980_v28  ;;  %v18924_v28 = vld [vmem:[#allocation337_spill] sm:$0xff] }
 0xbc0   : >> { %12993 = vrcp.f32 %v9370_v38  ;;  %v9371_v42 = vadd.f32 1.0, %v12982_v32  ;;  %11516 = vmatprep.mubr.bf16.mxu0 %v9424_v22 }
 0xbc1   : >> { %v12984_v56 = vpop.eup %12983  ;;  %12995 = vrcp.f32 %v9373_v58  ;;  %11517 = vmatmul.mubr.bf16.gmra.mrb[4].mxu0 %v9425_v9 }
 0xbc2   : >> { %v12986_v16 = vpop.eup %12985  ;;  %12997 = vrcp.f32 %v9371_v42  ;;  %v9416_v26 = vmul.f32 %v12984_v56, %v17938_v43 }
 0xbc3   : >> { %v12988_v19 = vpop.eup %12987  ;;  %v9414_v34 = vmul.f32 %v12986_v16, %v17941_v0 }
 0xbc4   : >> { %v12990_v44 = vpop.eup %12989  ;;  %v9417_v50 = vmul.f32 %v12988_v19, %v17944_v2 }
 0xbc5   : >> { %v9415_v59 = vmul.f32 %v12990_v44, %v17947_v45  ;;  %v9577_v45 = vsub.s32 3, %v16831_v25 }
 0xbc6   : >> { %v9427_v1 = vpack.c.bf16 %v9417_v50, %v9416_v26 }
 0xbc7   : >> { %v9426_v4 = vpack.c.bf16 %v9415_v59, %v9414_v34  ;;  %v9578_v57 = vrot.slane %v12999_v51, %v9577_v45  ;;  %v18928_v34 = vld [vmem:[#allocation334_spill] sm:$0xff] }
 0xbc8   : >> { %v18932_v51 = vld [vmem:[#allocation330_spill] sm:$0xff] }
 0xbc9   : >> { %v12992_v10 = vpop.eup %12991  ;;  %11520 = vmatprep.mubr.bf16.mxu1 %v9426_v4 }
 0xbca   : >> { %v12994_v7 = vpop.eup %12993  ;;  %11521 = vmatmul.mubr.bf16.vlgmr.msra.gmra.mrb[128].mxu1 %v9427_v1  ;;  %v9420_v18 = vmul.f32 %v12992_v10, %v17954_v27  ;;  %v18929_v1 = vld [vmem:[#allocation331_spill] sm:$0xff] }
 0xbcb   : >> { %v12996_v23 = vpop.eup %12995  ;;  %v9418_v43 = vmul.f32 %v12994_v7, %v17957_v20 }
 0xbcc   : >> { %v12998_v48 = vpop.eup %12997  ;;  %v9421_v47 = vmul.f32 %v12996_v23, %v17960_v8 }
 0xbcd   : >> { %v9419_v2 = vmul.f32 %v12998_v48, %v17963_v54  ;;  %v18930_v48 = vld [vmem:[#allocation333_spill] sm:$0xff] }
 0xbce   : >> { %v9429_v0 = vpack.c.bf16 %v9421_v47, %v9420_v18 }
 0xbcf   : >> { %v9428_v6 = vpack.c.bf16 %v9419_v2, %v9418_v43 }
 0xbd1   : >> { %11524 = vmatprep.mubr.bf16.mxu1 %v9428_v6 }
 0xbd2   : >> { %11525 = vmatmul.mubr.bf16.gmra.mrb[132].mxu1 %v9429_v0  ;;  %v18931_v0 = vld [vmem:[#allocation328_spill] sm:$0xff] }
 0xc8c   : >> { %v11514_v15 = vpop.f32.mrb[0].mxu0 }
 0xc8d   : >> { %v9561_v12 = vadd.f32 %v13500_v13, %v11514_v15  ;;  %v9496_v62 = vpop.f32.mrb[1].mxu0 }
 0xc8e   : >> { %v9559_v27 = vadd.f32 %v13508_v11, %v9496_v62  ;;  %v11515_v14 = vpop.f32.mrb[2].mxu0  ;;  %v18925_v11 = vld [vmem:[#allocation335_spill] sm:$0xff] }
 0xc8f   : >> { %v17987_v13 = vadd.f32 %v9578_v57, %v9561_v12   ;;  %v9562_v20 = vadd.f32 %v13496_v21, %v11515_v14  ;;  %v9499_v54 = vpop.f32.mrb[3].mxu0 }
 0xc90   : >> { %v9579_v41 = vadd.f32 %v9578_v57, %v9559_v27   ;;  %v9560_v5 = vadd.f32 %v13504_v17, %v9499_v54  ;;  %v18927_v17 = vld [vmem:[#allocation332_spill] sm:$0xff]  ;;  %v18933_v27 = vld [vmem:[#allocation327_spill] sm:$0xff] }
 0xc91   : >> { %v18923_v8 = vmov %v17987_v13  ;;  %v9582_v49 = vadd.f32 %v9578_v57, %v9562_v20   ;;  %v18926_v13 = vld [vmem:[#allocation336_spill] sm:$0xff] }
 0xc92   : >> { %v9580_v3 = vadd.f32 %v9578_v57, %v9560_v5   ;;  %v18934_v5 = vld [vmem:[#allocation329_spill] sm:$0xff]  ;;  %9595 = vst [vmem:[%s15884_s24] sm:$0xff] (%p18004_p9), %v9579_v41  ;;  %9597 = vst [vmem:[%s15884_s24 + $0x10] sm:$0xff] (%p18004_p9), %v18923_v8 }
 0xc93   : > { %9598 = vst [vmem:[%s15884_s24 + $0x18] sm:$0xff] (%p18004_p9), %v9582_v49 }
 0xc94   : >> { %v11518_v25 = vpop.f32.mrb[4].mxu0  ;;  %9596 = vst [vmem:[%s15884_s24 + $0x8] sm:$0xff] (%p18004_p9), %v9580_v3 }
 0xc95   : >> { %v9565_v9 = vadd.f32 %v13484_v24, %v11518_v25  ;;  %v9512_v46 = vpop.f32.mrb[5].mxu0 }
 0xc96   : >> { %v9563_v38 = vadd.f32 %v18924_v28, %v9512_v46  ;;  %v11519_v22 = vpop.f32.mrb[6].mxu0 }
 0xc97   : >> { %v9585_v32 = vadd.f32 %v9578_v57, %v9565_v9   ;;  %v9566_v58 = vadd.f32 %v18925_v11, %v11519_v22  ;;  %v9515_v42 = vpop.f32.mrb[7].mxu0  ;;  %v18951_v11 = vmov %v9579_v41 }
 0xc98   : >> { %v9583_v56 = vadd.f32 %v9578_v57, %v9563_v38   ;;  %v9564_v21 = vadd.f32 %v18926_v13, %v9515_v42  ;;  %v18949_v13 = vmov %v18923_v8 }
 0xc99   : >> { %v9586_v16 = vadd.f32 %v9578_v57, %v9566_v58   ;;  %9601 = vst [vmem:[%s15884_s24 + $0x30] sm:$0xff] (%p18004_p9), %v9585_v32 }
 0xc9a   : >> { %v9584_v44 = vadd.f32 %v9578_v57, %v9564_v21   ;;  %v18947_v9 = vmov %v9583_v56  ;;  %v18948_v21 = vmov %v9582_v49  ;;  %9599 = vst [vmem:[%s15884_s24 + $0x20] sm:$0xff] (%p18004_p9), %v9583_v56 }
 0xc9b   : > { %9602 = vst [vmem:[%s15884_s24 + $0x38] sm:$0xff] (%p18004_p9), %v9586_v16 }
 0xc9c   : > { %9600 = vst [vmem:[%s15884_s24 + $0x28] sm:$0xff] (%p18004_p9), %v9584_v44 }
 0xc9d   : >> { %v11522_v19 = vpop.f32.mrb[128].mxu1 }
 0xc9e   : >> { %v9569_v26 = vadd.f32 %v18927_v17, %v11522_v19  ;;  %v9528_v50 = vpop.f32.mrb[129].mxu1  ;;  %v18950_v17 = vmov %v9580_v3 }
 0xc9f   : >> { %v9567_v59 = vadd.f32 %v18928_v34, %v9528_v50  ;;  %v11523_v24 = vpop.f32.mrb[130].mxu1 }
 0xca0   : >> { %v9589_v10 = vadd.f32 %v9578_v57, %v9569_v26   ;;  %v9570_v4 = vadd.f32 %v18929_v1, %v11523_v24  ;;  %v9531_v7 = vpop.f32.mrb[131].mxu1  ;;  %v18945_v24 = vmov %v9585_v32 }
 0xca1   : >> { %v9587_v23 = vadd.f32 %v9578_v57, %v9567_v59   ;;  %v9568_v18 = vadd.f32 %v18930_v48, %v9531_v7 }
 0xca2   : >> { %v9590_v47 = vadd.f32 %v9578_v57, %v9570_v4   ;;  %v18941_v19 = vmov %v9589_v10  ;;  %9605 = vst [vmem:[%s15884_s24 + $0x50] sm:$0xff] (%p18004_p9), %v9589_v10 }
 0xca3   : >> { %v9588_v43 = vadd.f32 %v9578_v57, %v9568_v18   ;;  %v18943_v4 = vmov %v9587_v23  ;;  %9603 = vst [vmem:[%s15884_s24 + $0x40] sm:$0xff] (%p18004_p9), %v9587_v23 }
 0xca4   : >> { %v18940_v28 = vmov %v9590_v47  ;;  %9606 = vst [vmem:[%s15884_s24 + $0x58] sm:$0xff] (%p18004_p9), %v9590_v47 }
 0xca5   : >> { %v11526_v2 = vpop.f32.mrb[132].mxu1  ;;  %v18942_v26 = vmov %v9588_v43  ;;  %9604 = vst [vmem:[%s15884_s24 + $0x48] sm:$0xff] (%p18004_p9), %v9588_v43 }
 0xca6   : >> { %v9573_v6 = vadd.f32 %v18931_v0, %v11526_v2  ;;  %v9544_v45 = vpop.f32.mrb[133].mxu1 }
 0xca7   : >> { %v9571_v15 = vadd.f32 %v18932_v51, %v9544_v45  ;;  %v11527_v12 = vpop.f32.mrb[134].mxu1  ;;  %3940 = sbr.rel (!%p18004_p9) target bundleno = 1233 (0x4d1), region = 193 }
 0xca8   : >> { %v9593_v62 = vadd.f32 %v9578_v57, %v9573_v6   ;;  %v9574_v14 = vadd.f32 %v18933_v27, %v11527_v12  ;;  %v9547_v20 = vpop.f32.mrb[135].mxu1  ;;  %v18944_v12 = vmov %v9586_v16  ;;  %v18946_v27 = vmov %v9584_v44 }
 0xca9   : >> { %v9591_v54 = vadd.f32 %v9578_v57, %v9571_v15   ;;  %v9572_v25 = vadd.f32 %v18934_v5, %v9547_v20 }
 0xcaa   : >> { %v9594_v46 = vadd.f32 %v9578_v57, %v9574_v14   ;;  %v18937_v18 = vmov %v9593_v62  ;;  %9609 = vst [vmem:[%s15884_s24 + $0x70] sm:$0xff] (%p18004_p9), %v9593_v62 }
 0xcab   : >> { %v9592_v38 = vadd.f32 %v9578_v57, %v9572_v25   ;;  %v18939_v1 = vmov %v9591_v54  ;;  %9607 = vst [vmem:[%s15884_s24 + $0x60] sm:$0xff] (%p18004_p9), %v9591_v54 }
 0xcac   : >> { %v18936_v15 = vmov %v9594_v46  ;;  %9610 = vst [vmem:[%s15884_s24 + $0x78] sm:$0xff] (%p18004_p9), %v9594_v46 }
 0xcad   : >> { %v18938_v14 = vmov %v9592_v38  ;;  %9608 = vst [vmem:[%s15884_s24 + $0x68] sm:$0xff] (%p18004_p9), %v9592_v38 }
 0xcae   : > { %13303 = shalt.err (!%p13300_p6)
}
 0xcaf   : > { %s13304_s24 = scalar_lea.hbm %s18066_s27, 2048  ;;  %s13308_s30 = scalar_lea.hbm %s18955_s18, 4096 }
 0xcb0   : > { %p13305_p1 = scmp.ne.s32.totalorder %s18066_s27, %s13304_s24  ;;  %p13309_p3 = scmp.lt.u32.totalorder %s18066_s27, %s18955_s18 }
 0xcb1   : > { %p13310_p0 = scmp.lt.u32.totalorder %s13308_s30, %s13304_s24  ;;  %p13312_p12 = scmp.lt.u32.totalorder %s13304_s24, %s18066_s27 }
 0xcb2   : > { %p13306_p4 = pnand %p13305_p1, %p18956_p7 }
 0xcb3   : > { %p13311_p9 = por %p13310_p0, %p13309_p3 }
 0xcb4   : > { %p13307_p8 = pneg %p13306_p4 }
 0xcb5   : > { %p13313_p11 = por %p13312_p12, %p13311_p9 }
 0xcb7   : > { %p13314_p10 = pnand %p13313_p11, %p13307_p8 }
 0xcb9   : > { %13317 = shalt.err (!%p13314_p10)
}
 0xcba   : > { %s13535_s11 = smov 128   ;;  %s13536_s21 = smov 8  }
 0xcbb   : > { %11715 = dma.vmem_to_hbm [thread:$0]  (%p18956_p7), %s18069_s13, 2048, %s18066_s27, %s9612_s7, %s13535_s11, %s13535_s11, %s13536_s21  }
 0xcbc PF: > { %s18957_s22 = sld [smem:[#allocation29_spill]]  ;;  %s18958_s17 = sld [smem:[#allocation34_spill]] }
 0xcbd   : > { %p18960_p5 = scmp.ge.s32.totalorder %s13444_s16, 2 }
 0xcc2   : > { %s9640_s29 = sand.u32 1, %s18957_s22   ;;  %p18959_p2 = scmp.ne.s32.totalorder %s18958_s17, 0 }
 0xcc3   : > { %s9641_s28 = scalar_lea.sflag [#allocation6], %s9640_s29 }
 0xcc4   : > { %p11750_p13 = pnand %p18960_p5, %p18959_p2 }
 0xcc6   : > { %13427 = dma.done.wait (!%p11750_p13), %s9641_s28, 2048  }
 0xcc7   : > { %13429 = vsyncadd (!%p11750_p13), %s9641_s28, 4294965248  ;;  %s18961_s16 = sld [smem:[#allocation36_spill]]  ;;  %s18962_s13 = sld [smem:[#allocation30_spill]] }
 0xcc8   : > { %s18963_s14 = sld [smem:[#allocation31_spill]]  ;;  %s18964_s15 = sld [smem:[#allocation37_spill]] }
 0xccd   : > { %p32_p6 = scmp.ge.s32.totalorder %s18961_s16, 4  }
 0xccf   :  { %34 = sbr.rel (!%p32_p6) target bundleno = 18 (0x12), region = 204 }
 0xcd6   :  { %9646 = vsyncpa [#allocation5], 1 }
 0xcd7   :  { %9648 = vsyncpa [#allocation5 + $0x1], 1 }
 0xcd8   :  { %9649 = vsyncpa [#allocation8], 1 }
 0xcd9   :  { %9651 = vsyncpa [#allocation8 + $0x1], 1 }
 0xcda   :  { %9652 = vsyncpa [#allocation11], 1 }
 0xcdb   :  { %9654 = vsyncpa [#allocation11 + $0x1], 1 }
 0xcdc   :  { %9655 = vsyncpa [#allocation14], 1 }
 0xcdd   :  { %9656 = vsyncpa [#allocation17], 1 }
 0xcde   :  { %9657 = vsyncpa [#allocation20], 1 }
 0xcdf   :  { %9658 = vsyncpa [#allocation6], 1 }
 0xce0   :  { %9660 = vsyncpa [#allocation6 + $0x1], 1 }

</bundles_post_ra>
